<compile_context>
chip_gen: v7x
topology: tpu7x:2x2x1
jax: 0.10.0
libtpu: 0.0.40
codegen_flags: <defaults>
</compile_context>

<pallas_src>
import functools

import jax
import jax.numpy as jnp
from jax.experimental import pallas as pl
from jax.experimental.pallas import tpu as pltpu

D_IN = 784          # input features
H = 400             # true hidden width
H_PAD = 512         # hidden padded to 4 * 128 lanes
LATENT = 20         # true latent width
LATENT_PAD = 128    # latent padded to one full lane vreg
D_OUT = 784         # output features (stored directly, no pad)


def dae_kernel(x_ref,
               w1_ref, b1_ref,
               w2_ref, b2_ref,
               w3_ref, b3_ref,
               w4_ref, b4_ref,
               o_ref):
    # Cast f32 input to bf16 in-kernel (VPU) -- avoids a separate XLA pass.
    x = x_ref[...].astype(jnp.bfloat16)                              # (bm, 784)

    # encoder
    h1 = jnp.dot(x, w1_ref[...], preferred_element_type=jnp.float32) + b1_ref[...]
    h1 = jnp.maximum(h1, 0.0).astype(jnp.bfloat16)                   # (bm, 512)
    h2 = jnp.dot(h1, w2_ref[...], preferred_element_type=jnp.float32) + b2_ref[...]
    h2 = jnp.maximum(h2, 0.0).astype(jnp.bfloat16)                   # (bm, 128)

    # decoder
    h3 = jnp.dot(h2, w3_ref[...], preferred_element_type=jnp.float32) + b3_ref[...]
    h3 = jnp.maximum(h3, 0.0).astype(jnp.bfloat16)                   # (bm, 512)
    logits = jnp.dot(h3, w4_ref[...], preferred_element_type=jnp.float32) + b4_ref[...]

    # Sigmoid in f32 (works on all gens), store bf16 -> half the writeback.
    o_ref[...] = jax.nn.sigmoid(logits).astype(jnp.bfloat16)         # (bm, 784)


def pack_params(params):
    """Cast matmul weights to bf16 and zero-pad hidden/latent lane dims.

    Call ONCE (outside the jitted forward) and reuse the packed pytree.
    Zero pads (weights and biases) leave the math identical to the unpadded
    network: padded hidden/latent activations are ReLU(0) = 0 and the padded
    weight rows feeding the next layer are zero.
    """
    w1 = jnp.zeros((D_IN, H_PAD), jnp.bfloat16)
    w1 = w1.at[:, :H].set(params["w1"].astype(jnp.bfloat16))         # (784, 512)
    b1 = jnp.zeros((1, H_PAD), jnp.float32)
    b1 = b1.at[:, :H].set(params["b1"].astype(jnp.float32))          # (1, 512)

    w2 = jnp.zeros((H_PAD, LATENT_PAD), jnp.bfloat16)
    w2 = w2.at[:H, :LATENT].set(params["w2"].astype(jnp.bfloat16))   # (512, 128)
    b2 = jnp.zeros((1, LATENT_PAD), jnp.float32)
    b2 = b2.at[:, :LATENT].set(params["b2"].astype(jnp.float32))     # (1, 128)

    w3 = jnp.zeros((LATENT_PAD, H_PAD), jnp.bfloat16)
    w3 = w3.at[:LATENT, :H].set(params["w3"].astype(jnp.bfloat16))   # (128, 512)
    b3 = jnp.zeros((1, H_PAD), jnp.float32)
    b3 = b3.at[:, :H].set(params["b3"].astype(jnp.float32))          # (1, 512)

    w4 = jnp.zeros((H_PAD, D_OUT), jnp.bfloat16)
    w4 = w4.at[:H, :].set(params["w4"].astype(jnp.bfloat16))         # (512, 784)
    b4 = params["b4"].astype(jnp.float32)                            # (1, 784)

    return (w1, b1, w2, b2, w3, b3, w4, b4)


def _round_up(x, m):
    return ((x + m - 1) // m) * m


def _choose_bm(B):
    """Batch tile: big enough to amortize per-step overhead, >=2 grid steps
    for v7x's two TensorCores, capped at 1024 rows."""
    if B <= 256:
        return _round_up(max(B, 8), 8)
    return min(1024, _round_up(pl.cdiv(B, 2), 256))


@functools.partial(jax.jit, static_argnames=("bm",))
def dae_forward(x, packed, *, bm=None):
    """x: (B, 784) float32, packed: output of pack_params.
    Returns (B, 784) bfloat16 sigmoid outputs."""
    B, d_in = x.shape
    assert d_in == D_IN
    if bm is None:
        bm = _choose_bm(B)

    grid = (pl.cdiv(B, bm),)

    x_spec = pl.BlockSpec((bm, D_IN), lambda i: (i, 0))
    out_spec = pl.BlockSpec((bm, D_OUT), lambda i: (i, 0))
    # Weights/biases never change across grid steps -> single-buffered.
    weight_specs = [
        pl.BlockSpec(w.shape, lambda i: (0, 0), pipeline_mode=pl.Buffered(1))
        for w in packed
    ]

    flops = 2 * B * (D_IN * H_PAD + H_PAD * LATENT_PAD
                     + LATENT_PAD * H_PAD + H_PAD * D_OUT)
    weight_bytes = sum(int(w.size) * w.dtype.itemsize for w in packed)
    bytes_accessed = B * D_IN * 4 + B * D_OUT * 2 + weight_bytes

    return pl.pallas_call(
        dae_kernel,
        out_shape=jax.ShapeDtypeStruct((B, D_OUT), jnp.bfloat16),
        grid=grid,
        in_specs=[x_spec] + weight_specs,
        out_specs=out_spec,
        compiler_params=pltpu.CompilerParams(
            dimension_semantics=("parallel",),
            # ~12 MiB actual footprint at bm=1024; 32 MiB leaves headroom on v7x.
            vmem_limit_bytes=32 * 1024 * 1024,
        ),
        cost_estimate=pl.CostEstimate(
            flops=flops,
            transcendentals=B * D_OUT,     # sigmoid exp per output element
            bytes_accessed=bytes_accessed,
        ),
    )(x, *packed)


def init_params(key):
    """Parameter init matching the PyTorch module's shapes.

    PyTorch Linear stores weight as (out, in); we store the transpose (in, out)
    so the kernel does x @ W + b directly.
    """
    dims = [(D_IN, H), (H, LATENT), (LATENT, H), (H, D_OUT)]
    params = {}
    for idx, (din, dout) in enumerate(dims, start=1):
        key, kw, kb = jax.random.split(key, 3)
        bound = 1.0 / jnp.sqrt(din)  # matches nn.Linear default uniform bound
        params[f"w{idx}"] = jax.random.uniform(
            kw, (din, dout), jnp.float32, minval=-bound, maxval=bound)
        params[f"b{idx}"] = jax.random.uniform(
            kb, (1, dout), jnp.float32, minval=-bound, maxval=bound)
    return params


def dae_forward_ref_bf16(x, params):
    """Pure-JAX reference mirroring the kernel's bf16-in / f32-accumulate math."""
    def lin(h, w, b):
        return jnp.dot(h.astype(jnp.bfloat16), w.astype(jnp.bfloat16),
                       preferred_element_type=jnp.float32) + b
    h = jnp.maximum(lin(x, params["w1"], params["b1"]), 0.0)
    h = jnp.maximum(lin(h, params["w2"], params["b2"]), 0.0)
    h = jnp.maximum(lin(h, params["w3"], params["b3"]), 0.0)
    return jax.nn.sigmoid(lin(h, params["w4"], params["b4"]))


def dae_forward_ref_f32(x, params):
    """Full-precision reference (PyTorch semantics)."""
    h = jnp.maximum(x @ params["w1"] + params["b1"], 0.0)
    h = jnp.maximum(h @ params["w2"] + params["b2"], 0.0)
    h = jnp.maximum(h @ params["w3"] + params["b3"], 0.0)
    return jax.nn.sigmoid(h @ params["w4"] + params["b4"])


if __name__ == "__main__":
    key = jax.random.PRNGKey(0)
    key, kx = jax.random.split(key)

    B = 512  # two 256-row tiles -> exercises the grid and both TCs on v7x
    x = jax.random.normal(kx, (B, D_IN), dtype=jnp.float32)

    params = init_params(key)
    packed = pack_params(params)   # packed once, outside the jitted forward
    packed = jax.tree_util.tree_map(jax.block_until_ready, packed)

    out = dae_forward(x, packed)
    out = jax.block_until_ready(out)
    assert out.shape == (B, D_OUT)
    assert out.dtype == jnp.bfloat16

    out_f32 = out.astype(jnp.float32)
    ref_bf16 = dae_forward_ref_bf16(x, params)
    ref_f32 = dae_forward_ref_f32(x, params)
    # bf16 output rounding ~4e-3 abs on [0,1]; bf16 matmul path ~5e-2 vs f32.
    assert jnp.allclose(out_f32, ref_bf16, atol=1e-2, rtol=1e-2), "mismatch vs bf16 reference"
    assert jnp.allclose(out_f32, ref_f32, atol=5e-2, rtol=5e-2), "mismatch vs f32 reference"

    print("KERNEL_OK")
</pallas_src>

<mosaic_0001>
module attributes {stable_mosaic.version = 11 : i64} {
  func.func @dae_kernel(%arg0: i32, %arg1: memref<256x784xf32, #tpu.memory_space<vmem>>, %arg2: memref<784x512xbf16, #tpu.memory_space<vmem>>, %arg3: memref<1x512xf32, #tpu.memory_space<vmem>>, %arg4: memref<512x128xbf16, #tpu.memory_space<vmem>>, %arg5: memref<1x128xf32, #tpu.memory_space<vmem>>, %arg6: memref<128x512xbf16, #tpu.memory_space<vmem>>, %arg7: memref<1x512xf32, #tpu.memory_space<vmem>>, %arg8: memref<512x784xbf16, #tpu.memory_space<vmem>>, %arg9: memref<1x784xf32, #tpu.memory_space<vmem>>, %arg10: memref<256x784xbf16, #tpu.memory_space<vmem>>) attributes {dimension_semantics = [#tpu.dimension_semantics<parallel>], iteration_bounds = array<i64: 2>, scalar_prefetch = 0 : i64, scratch_operands = 0 : i64, tpu.core_type = #tpu.core_type<tc>, window_params = [{transform_indices = @transform_0, window_bounds = array<i64: 256, 784>}, {pipeline_mode = #tpu.pipeline_mode<synchronous>, transform_indices = @transform_1, window_bounds = array<i64: 784, 512>}, {pipeline_mode = #tpu.pipeline_mode<synchronous>, transform_indices = @transform_2, window_bounds = array<i64: 1, 512>}, {pipeline_mode = #tpu.pipeline_mode<synchronous>, transform_indices = @transform_3, window_bounds = array<i64: 512, 128>}, {pipeline_mode = #tpu.pipeline_mode<synchronous>, transform_indices = @transform_4, window_bounds = array<i64: 1, 128>}, {pipeline_mode = #tpu.pipeline_mode<synchronous>, transform_indices = @transform_5, window_bounds = array<i64: 128, 512>}, {pipeline_mode = #tpu.pipeline_mode<synchronous>, transform_indices = @transform_6, window_bounds = array<i64: 1, 512>}, {pipeline_mode = #tpu.pipeline_mode<synchronous>, transform_indices = @transform_7, window_bounds = array<i64: 512, 784>}, {pipeline_mode = #tpu.pipeline_mode<synchronous>, transform_indices = @transform_8, window_bounds = array<i64: 1, 784>}, {transform_indices = @transform_9, window_bounds = array<i64: 256, 784>}]} {
    %c0 = arith.constant 0 : index
    %c0_0 = arith.constant 0 : index
    %0 = vector.load %arg1[%c0, %c0_0] : memref<256x784xf32, #tpu.memory_space<vmem>>, vector<256x784xf32>
    %1 = arith.truncf %0 : vector<256x784xf32> to vector<256x784xbf16>
    %c0_1 = arith.constant 0 : index
    %c0_2 = arith.constant 0 : index
    %2 = vector.load %arg2[%c0_1, %c0_2] : memref<784x512xbf16, #tpu.memory_space<vmem>>, vector<784x512xbf16>
    %cst = arith.constant dense<0.000000e+00> : vector<256x512xf32>
    %3 = tpu.matmul %1, %2, %cst {dimension_numbers = #tpu.dot_dimension_numbers<[1], [0], [0], [1], [0, 0, 1, 1], [], []>} : vector<256x784xbf16>, vector<784x512xbf16>, vector<256x512xf32> -> vector<256x512xf32>
    %c0_3 = arith.constant 0 : index
    %c0_4 = arith.constant 0 : index
    %4 = vector.load %arg3[%c0_3, %c0_4] : memref<1x512xf32, #tpu.memory_space<vmem>>, vector<1x512xf32>
    %5 = vector.broadcast %4 : vector<1x512xf32> to vector<256x512xf32>
    %6 = arith.addf %3, %5 : vector<256x512xf32>
    %cst_5 = arith.constant 0.000000e+00 : f32
    %7 = vector.broadcast %cst_5 : f32 to vector<256x512xf32>
    %8 = arith.maximumf %6, %7 : vector<256x512xf32>
    %9 = arith.truncf %8 : vector<256x512xf32> to vector<256x512xbf16>
    %c0_6 = arith.constant 0 : index
    %c0_7 = arith.constant 0 : index
    %10 = vector.load %arg4[%c0_6, %c0_7] : memref<512x128xbf16, #tpu.memory_space<vmem>>, vector<512x128xbf16>
    %cst_8 = arith.constant dense<0.000000e+00> : vector<256x128xf32>
    %11 = tpu.matmul %9, %10, %cst_8 {dimension_numbers = #tpu.dot_dimension_numbers<[1], [0], [0], [1], [0, 0, 1, 1], [], []>} : vector<256x512xbf16>, vector<512x128xbf16>, vector<256x128xf32> -> vector<256x128xf32>
    %c0_9 = arith.constant 0 : index
    %c0_10 = arith.constant 0 : index
    %12 = vector.load %arg5[%c0_9, %c0_10] : memref<1x128xf32, #tpu.memory_space<vmem>>, vector<1x128xf32>
    %13 = vector.broadcast %12 : vector<1x128xf32> to vector<256x128xf32>
    %14 = arith.addf %11, %13 : vector<256x128xf32>
    %cst_11 = arith.constant 0.000000e+00 : f32
    %15 = vector.broadcast %cst_11 : f32 to vector<256x128xf32>
    %16 = arith.maximumf %14, %15 : vector<256x128xf32>
    %17 = arith.truncf %16 : vector<256x128xf32> to vector<256x128xbf16>
    %c0_12 = arith.constant 0 : index
    %c0_13 = arith.constant 0 : index
    %18 = vector.load %arg6[%c0_12, %c0_13] : memref<128x512xbf16, #tpu.memory_space<vmem>>, vector<128x512xbf16>
    %cst_14 = arith.constant dense<0.000000e+00> : vector<256x512xf32>
    %19 = tpu.matmul %17, %18, %cst_14 {dimension_numbers = #tpu.dot_dimension_numbers<[1], [0], [0], [1], [0, 0, 1, 1], [], []>} : vector<256x128xbf16>, vector<128x512xbf16>, vector<256x512xf32> -> vector<256x512xf32>
    %c0_15 = arith.constant 0 : index
    %c0_16 = arith.constant 0 : index
    %20 = vector.load %arg7[%c0_15, %c0_16] : memref<1x512xf32, #tpu.memory_space<vmem>>, vector<1x512xf32>
    %21 = vector.broadcast %20 : vector<1x512xf32> to vector<256x512xf32>
    %22 = arith.addf %19, %21 : vector<256x512xf32>
    %cst_17 = arith.constant 0.000000e+00 : f32
    %23 = vector.broadcast %cst_17 : f32 to vector<256x512xf32>
    %24 = arith.maximumf %22, %23 : vector<256x512xf32>
    %25 = arith.truncf %24 : vector<256x512xf32> to vector<256x512xbf16>
    %c0_18 = arith.constant 0 : index
    %c0_19 = arith.constant 0 : index
    %26 = vector.load %arg8[%c0_18, %c0_19] : memref<512x784xbf16, #tpu.memory_space<vmem>>, vector<512x784xbf16>
    %cst_20 = arith.constant dense<0.000000e+00> : vector<256x784xf32>
    %27 = tpu.matmul %25, %26, %cst_20 {dimension_numbers = #tpu.dot_dimension_numbers<[1], [0], [0], [1], [0, 0, 1, 1], [], []>} : vector<256x512xbf16>, vector<512x784xbf16>, vector<256x784xf32> -> vector<256x784xf32>
    %c0_21 = arith.constant 0 : index
    %c0_22 = arith.constant 0 : index
    %28 = vector.load %arg9[%c0_21, %c0_22] : memref<1x784xf32, #tpu.memory_space<vmem>>, vector<1x784xf32>
    %29 = vector.broadcast %28 : vector<1x784xf32> to vector<256x784xf32>
    %30 = arith.addf %27, %29 : vector<256x784xf32>
    %31 = arith.negf %30 : vector<256x784xf32>
    %32 = math.exp %31 : vector<256x784xf32>
    %cst_23 = arith.constant 1.000000e+00 : f32
    %33 = vector.broadcast %cst_23 : f32 to vector<256x784xf32>
    %34 = arith.addf %33, %32 : vector<256x784xf32>
    %35 = arith.divf %33, %34 : vector<256x784xf32>
    %36 = arith.truncf %35 : vector<256x784xf32> to vector<256x784xbf16>
    %c0_24 = arith.constant 0 : index
    %c0_25 = arith.constant 0 : index
    %37 = vector.load %arg10[%c0_24, %c0_25] : memref<256x784xbf16, #tpu.memory_space<vmem>>, vector<256x784xbf16>
    tpu.vector_store %arg10[%c0_24, %c0_25], %36 {strides = array<i32>} : memref<256x784xbf16, #tpu.memory_space<vmem>>, vector<256x784xbf16>,
    return
  }
  func.func @transform_0(%arg0: i32) -> (i32, i32) {
    %c0_i32 = arith.constant 0 : i32
    %c0_i32_0 = arith.constant 0 : i32
    return %arg0, %c0_i32 : i32, i32
  }
  func.func @transform_1(%arg0: i32) -> (i32, i32) {
    %c0_i32 = arith.constant 0 : i32
    %c0_i32_0 = arith.constant 0 : i32
    %c0_i32_1 = arith.constant 0 : i32
    return %c0_i32, %c0_i32_0 : i32, i32
  }
  func.func @transform_2(%arg0: i32) -> (i32, i32) {
    %c0_i32 = arith.constant 0 : i32
    %c0_i32_0 = arith.constant 0 : i32
    %c0_i32_1 = arith.constant 0 : i32
    return %c0_i32, %c0_i32_0 : i32, i32
  }
  func.func @transform_3(%arg0: i32) -> (i32, i32) {
    %c0_i32 = arith.constant 0 : i32
    %c0_i32_0 = arith.constant 0 : i32
    %c0_i32_1 = arith.constant 0 : i32
    return %c0_i32, %c0_i32_0 : i32, i32
  }
  func.func @transform_4(%arg0: i32) -> (i32, i32) {
    %c0_i32 = arith.constant 0 : i32
    %c0_i32_0 = arith.constant 0 : i32
    %c0_i32_1 = arith.constant 0 : i32
    return %c0_i32, %c0_i32_0 : i32, i32
  }
  func.func @transform_5(%arg0: i32) -> (i32, i32) {
    %c0_i32 = arith.constant 0 : i32
    %c0_i32_0 = arith.constant 0 : i32
    %c0_i32_1 = arith.constant 0 : i32
    return %c0_i32, %c0_i32_0 : i32, i32
  }
  func.func @transform_6(%arg0: i32) -> (i32, i32) {
    %c0_i32 = arith.constant 0 : i32
    %c0_i32_0 = arith.constant 0 : i32
    %c0_i32_1 = arith.constant 0 : i32
    return %c0_i32, %c0_i32_0 : i32, i32
  }
  func.func @transform_7(%arg0: i32) -> (i32, i32) {
    %c0_i32 = arith.constant 0 : i32
    %c0_i32_0 = arith.constant 0 : i32
    %c0_i32_1 = arith.constant 0 : i32
    return %c0_i32, %c0_i32_0 : i32, i32
  }
  func.func @transform_8(%arg0: i32) -> (i32, i32) {
    %c0_i32 = arith.constant 0 : i32
    %c0_i32_0 = arith.constant 0 : i32
    %c0_i32_1 = arith.constant 0 : i32
    return %c0_i32, %c0_i32_0 : i32, i32
  }
  func.func @transform_9(%arg0: i32) -> (i32, i32) {
    %c0_i32 = arith.constant 0 : i32
    %c0_i32_0 = arith.constant 0 : i32
    return %arg0, %c0_i32 : i32, i32
  }
}

</mosaic_0001>

<bundles_post_ra>
// kernel: dae_forward.1
= control target key start
LH: loop header
LB: loop body
LE: loop exit
PB: predicated region body
PF: predicated region fallthrough
CT: control target
= control target key end

     0   :  { %s14259_s30 = smov 0   ;;  %s17853_s0 = inlined_call_operand.vmem [shape: f32[512,784], index: 0, kind: input, shape index: {}]   ;;  %s17854_s1 = inlined_call_operand.vmem [shape: bf16[784,512], index: 1, kind: input, shape index: {}]   ;;  %s17855_s2 = inlined_call_operand.vmem [shape: f32[1,512], index: 2, kind: input, shape index: {}]   ;;  %s17856_s3 = inlined_call_operand.vmem [shape: bf16[512,128], index: 3, kind: input, shape index: {}]   ;;  %s17857_s4 = inlined_call_operand.vmem [shape: f32[1,128], index: 4, kind: input, shape index: {}]   ;;  %s17858_s5 = inlined_call_operand.vmem [shape: bf16[128,512], index: 5, kind: input, shape index: {}]   ;;  %s17859_s6 = inlined_call_operand.vmem [shape: f32[1,512], index: 6, kind: input, shape index: {}]   ;;  %s17860_s7 = inlined_call_operand.vmem [shape: bf16[512,784], index: 7, kind: input, shape index: {}]   ;;  %s17861_s8 = inlined_call_operand.vmem [shape: f32[1,784], index: 8, kind: input, shape index: {}]   ;;  %s17862_s9 = inlined_call_operand.vmem [shape: bf16[512,784], index: 9, kind: output, shape index: {}]  }
   0x1 LB: > { %s10246_s10 = sadd.s32 4294967295, %s14206_s30   ;;  %p10250_p0 = scmp.ge.s32.totalorder %s14206_s30, 1  ;;  %s14206_s30 = sphi %s14259_s30, %s19_s30  }
   0x2   : > { %p289_p1 = scmp.lt.s32.totalorder %s14206_s30, 3 }
   0x4   : > { %p290_p2 = pnand %p10250_p0, %p289_p1 }
   0x6   : > { %293 = sbr.rel (%p290_p2) target bundleno = 1953 (0x7a1), region = 56 }
   0xd   : > { %v12609_v0 = vld [vmem:[%s17854_s1 + $0x4] ss:$16 sps:$4 sm:$0xff]   ;;  %v12611_v1 = vld [vmem:[%s17854_s1 + $0xc] ss:$16 sps:$4 sm:$0xff]   ;;  %v12613_v2 = vld [vmem:[%s17854_s1] ss:$16 sps:$4 sm:$0xff]  }
   0xe   : > { %1925 = vmatprep.subr.bf16.mxu0 %v12609_v0  ;;  %v12614_v3 = vld [vmem:[%s17854_s1 + $0x8] ss:$16 sps:$4 sm:$0xff]   ;;  %2697 = vmatprep.subr.bf16.mxu1 %v12611_v1  ;;  %v12615_v4 = vld [vmem:[%s17854_s1 + $0x24] ss:$16 sps:$4 sm:$0xff]   ;;  %v12617_v5 = vld [vmem:[%s17854_s1 + $0x2c] ss:$16 sps:$4 sm:$0xff]  }
   0xf   : > { %1926 = vmatpush1.bf16.msra.mxu0 %v12613_v2  ;;  %2698 = vmatpush1.bf16.msra.mxu1 %v12614_v3  ;;  %v12619_v6 = vld [vmem:[%s17854_s1 + $0x20] ss:$16 sps:$4 sm:$0xff]   ;;  %v12620_v7 = vld [vmem:[%s17854_s1 + $0x28] ss:$16 sps:$4 sm:$0xff]   ;;  %v12621_v8 = vld [vmem:[%s17854_s1 + $0x44] ss:$16 sps:$4 sm:$0xff]  }
  0x10   : > { %1927 = vmatprep.subr.bf16.mxu0 %v12615_v4  ;;  %2699 = vmatprep.subr.bf16.mxu1 %v12617_v5  ;;  %v12623_v9 = vld [vmem:[%s17854_s1 + $0x4c] ss:$16 sps:$4 sm:$0xff]   ;;  %v12625_v10 = vld [vmem:[%s17854_s1 + $0x40] ss:$16 sps:$4 sm:$0xff]   ;;  %v12626_v11 = vld [vmem:[%s17854_s1 + $0x48] ss:$16 sps:$4 sm:$0xff]  }
  0x11   : > { %v12627_v12 = vld [vmem:[%s17854_s1 + $0x64] ss:$16 sps:$4 sm:$0xff]   ;;  %v12629_v13 = vld [vmem:[%s17854_s1 + $0x6c] ss:$16 sps:$4 sm:$0xff]   ;;  %v12631_v14 = vld [vmem:[%s17854_s1 + $0x60] ss:$16 sps:$4 sm:$0xff]  }
  0x12   : > { %v12632_v15 = vld [vmem:[%s17854_s1 + $0x68] ss:$16 sps:$4 sm:$0xff]   ;;  %v12633_v16 = vld [vmem:[%s17854_s1 + $0x84] ss:$16 sps:$4 sm:$0xff]   ;;  %v12635_v17 = vld [vmem:[%s17854_s1 + $0x8c] ss:$16 sps:$4 sm:$0xff]  }
  0x13   : > { %1928 = vmatpush1.bf16.msra.mxu0 %v12619_v6  ;;  %2700 = vmatpush1.bf16.msra.mxu1 %v12620_v7  ;;  %v12637_v18 = vld [vmem:[%s17854_s1 + $0x80] ss:$16 sps:$4 sm:$0xff]   ;;  %v12638_v19 = vld [vmem:[%s17854_s1 + $0x88] ss:$16 sps:$4 sm:$0xff]   ;;  %v12639_v20 = vld [vmem:[%s17854_s1 + $0xa4] ss:$16 sps:$4 sm:$0xff]  }
  0x14   : > { %1929 = vmatprep.subr.bf16.mxu0 %v12621_v8  ;;  %2701 = vmatprep.subr.bf16.mxu1 %v12623_v9  ;;  %v12641_v21 = vld [vmem:[%s17854_s1 + $0xac] ss:$16 sps:$4 sm:$0xff]   ;;  %v12643_v22 = vld [vmem:[%s17854_s1 + $0xa0] ss:$16 sps:$4 sm:$0xff]   ;;  %v12644_v23 = vld [vmem:[%s17854_s1 + $0xa8] ss:$16 sps:$4 sm:$0xff]  }
  0x15   : > { %v12645_v24 = vld [vmem:[%s17854_s1 + $0xc4] ss:$16 sps:$4 sm:$0xff]   ;;  %v12647_v25 = vld [vmem:[%s17854_s1 + $0xcc] ss:$16 sps:$4 sm:$0xff]   ;;  %v12649_v26 = vld [vmem:[%s17854_s1 + $0xc0] ss:$16 sps:$4 sm:$0xff]  }
  0x16   : > { %v12650_v27 = vld [vmem:[%s17854_s1 + $0xc8] ss:$16 sps:$4 sm:$0xff]   ;;  %v12651_v28 = vld [vmem:[%s17854_s1 + $0xe4] ss:$16 sps:$4 sm:$0xff]   ;;  %s10251_s12 = sshll.u32 %s10246_s10, 5  ;;  %vm1876_vm0 = vcmask 130048  }
  0x17   : > { %1930 = vmatpush1.bf16.msra.mxu0 %v12625_v10  ;;  %2702 = vmatpush1.bf16.msra.mxu1 %v12626_v11  ;;  %v12653_v29 = vld [vmem:[%s17854_s1 + $0xec] ss:$16 sps:$4 sm:$0xff]   ;;  %v12655_v30 = vld [vmem:[%s17854_s1 + $0xe0] ss:$16 sps:$4 sm:$0xff]   ;;  %p328_p3 = scmp.lt.s32.totalorder %s10251_s12, 63  ;;  %vm10062_vm1 = vcmask 125952  }
  0x18   : > { %1931 = vmatprep.subr.bf16.mxu0 %v12627_v12  ;;  %2703 = vmatprep.subr.bf16.mxu1 %v12629_v13  ;;  %v12656_v31 = vld [vmem:[%s17854_s1 + $0xe8] ss:$16 sps:$4 sm:$0xff]   ;;  %v12657_v32 = vld [vmem:[%s17854_s1 + $0x104] ss:$16 sps:$4 sm:$0xff]   ;;  %v12659_v33 = vld [vmem:[%s17854_s1 + $0x10c] ss:$16 sps:$4 sm:$0xff]  }
  0x19   : > { %v12661_v34 = vld [vmem:[%s17854_s1 + $0x100] ss:$16 sps:$4 sm:$0xff]   ;;  %v12662_v35 = vld [vmem:[%s17854_s1 + $0x108] ss:$16 sps:$4 sm:$0xff]   ;;  %s18060_s12 = smov (!%p328_p3, %s10251_s12), 63 }
  0x1a   : > { %v12663_v36 = vld [vmem:[%s17854_s1 + $0x124] ss:$16 sps:$4 sm:$0xff]   ;;  %v12665_v37 = vld [vmem:[%s17854_s1 + $0x12c] ss:$16 sps:$4 sm:$0xff]   ;;  %v12667_v38 = vld [vmem:[%s17854_s1 + $0x120] ss:$16 sps:$4 sm:$0xff]  }
  0x1b   : > { %1932 = vmatpush1.bf16.msra.mxu0 %v12631_v14  ;;  %2704 = vmatpush1.bf16.msra.mxu1 %v12632_v15  ;;  %s12598_s14 = smul.u32 56, %s18060_s12  ;;  %v12668_v39 = vld [vmem:[%s17854_s1 + $0x128] ss:$16 sps:$4 sm:$0xff]   ;;  %v12669_v40 = vld [vmem:[%s17854_s1 + $0x144] ss:$16 sps:$4 sm:$0xff]  }
  0x1c   : > { %1933 = vmatprep.subr.bf16.mxu0 %v12633_v16  ;;  %2705 = vmatprep.subr.bf16.mxu1 %v12635_v17  ;;  %v12671_v41 = vld [vmem:[%s17854_s1 + $0x14c] ss:$16 sps:$4 sm:$0xff]   ;;  %v12673_v42 = vld [vmem:[%s17854_s1 + $0x140] ss:$16 sps:$4 sm:$0xff]   ;;  %v12674_v43 = vld [vmem:[%s17854_s1 + $0x148] ss:$16 sps:$4 sm:$0xff]  }
  0x1d   : > { %s14407_s26 = scalar_lea.vmem %s17853_s0, %s12598_s14  ;;  %v12675_v44 = vld [vmem:[%s17854_s1 + $0x164] ss:$16 sps:$4 sm:$0xff]   ;;  %v12677_v45 = vld [vmem:[%s17854_s1 + $0x16c] ss:$16 sps:$4 sm:$0xff]   ;;  %v12679_v47 = vld [vmem:[%s17854_s1 + $0x160] ss:$16 sps:$4 sm:$0xff]  }
  0x1e   : > { %v343_v46 = vld [vmem:[%s14407_s26 + $0x8] sm:$0xff]  ;;  %v350_v49 = vld [vmem:[%s14407_s26 + $0x40] sm:$0xff]  ;;  %v349_v4 = vld [vmem:[%s14407_s26 + $0x38] sm:$0xff]  ;;  %s12599_s22 = smul.u32 28, %s18060_s12 }
  0x1f   : > { %1934 = vmatpush1.bf16.msra.mxu0 %v12637_v18  ;;  %2706 = vmatpush1.bf16.msra.mxu1 %v12638_v19  ;;  %v12680_v48 = vld [vmem:[%s17854_s1 + $0x168] ss:$16 sps:$4 sm:$0xff]   ;;  %v12681_v50 = vld [vmem:[%s17854_s1 + $0x184] ss:$16 sps:$4 sm:$0xff]   ;;  %v567_v51 = vpack.c.bf16 %v350_v49, %v343_v46  ;;  %v12683_v52 = vld [vmem:[%s17854_s1 + $0x18c] ss:$16 sps:$4 sm:$0xff]  }
  0x20   : > { %1935 = vmatprep.subr.bf16.mxu0 %v12639_v20  ;;  %2707 = vmatprep.subr.bf16.mxu1 %v12641_v21  ;;  %v12685_v53 = vld [vmem:[%s17854_s1 + $0x180] ss:$16 sps:$4 sm:$0xff]   ;;  %v12686_v54 = vld [vmem:[%s17854_s1 + $0x188] ss:$16 sps:$4 sm:$0xff]   ;;  %v12687_v55 = vld [vmem:[%s17854_s1 + $0x1a4] ss:$16 sps:$4 sm:$0xff]   ;;  %s16765_s24 = scalar_lea.vmem %s17862_s9, %s12599_s22 }
  0x21   : > { %1957 = vmatprep.mubr.bf16.mxu0 %v567_v51  ;;  %2729 = vmatprep.mubr.bf16.mxu1 %v567_v51  ;;  %v12689_v56 = vld [vmem:[%s17854_s1 + $0x1ac] ss:$16 sps:$4 sm:$0xff]   ;;  %v12691_v57 = vld [vmem:[%s17854_s1 + $0x1a0] ss:$16 sps:$4 sm:$0xff]   ;;  %v12692_v58 = vld [vmem:[%s17854_s1 + $0x1a8] ss:$16 sps:$4 sm:$0xff]  }
  0x22   : > { %v12693_v59 = vld [vmem:[%s17854_s1 + $0x1c4] ss:$16 sps:$4 sm:$0xff]   ;;  %v12695_v60 = vld [vmem:[%s17854_s1 + $0x1cc] ss:$16 sps:$4 sm:$0xff]   ;;  %v12697_v61 = vld [vmem:[%s17854_s1 + $0x1c0] ss:$16 sps:$4 sm:$0xff]  }
  0x23   : > { %1936 = vmatpush1.bf16.msra.mxu0 %v12643_v22  ;;  %2708 = vmatpush1.bf16.msra.mxu1 %v12644_v23  ;;  %v12698_v62 = vld [vmem:[%s17854_s1 + $0x1c8] ss:$16 sps:$4 sm:$0xff]   ;;  %v12699_v63 = vld [vmem:[%s17854_s1 + $0x1e4] ss:$16 sps:$4 sm:$0xff]   ;;  %v12701_v0 = vld [vmem:[%s17854_s1 + $0x1ec] ss:$16 sps:$4 sm:$0xff]  }
  0x24   : > { %1937 = vmatprep.subr.bf16.mxu0 %v12645_v24  ;;  %2709 = vmatprep.subr.bf16.mxu1 %v12647_v25  ;;  %v12703_v1 = vld [vmem:[%s17854_s1 + $0x1e0] ss:$16 sps:$4 sm:$0xff]   ;;  %v12704_v2 = vld [vmem:[%s17854_s1 + $0x1e8] ss:$16 sps:$4 sm:$0xff]   ;;  %v12707_v5 = vld [vmem:[%s17854_s1 + $0x204] ss:$16 sps:$4 sm:$0xff]  }
  0x25   : > { %v342_v3 = vld [vmem:[%s14407_s26] sm:$0xff]  ;;  %v12710_v6 = vld [vmem:[%s17854_s1 + $0x20c] ss:$16 sps:$4 sm:$0xff]   ;;  %v364_v8 = vld [vmem:[%s14407_s26 + $0xb0] sm:$0xff] }
  0x26   : > { %v357_v7 = vld [vmem:[%s14407_s26 + $0x78] sm:$0xff]  ;;  %v566_v9 = vpack.c.bf16 %v349_v4, %v342_v3  ;;  %v12705_v10 = vld [vmem:[%s17854_s1 + $0x200] ss:$16 sps:$4 sm:$0xff]   ;;  %v363_v14 = vld [vmem:[%s14407_s26 + $0xa8] sm:$0xff] }
  0x27   : > { %1938 = vmatpush1.bf16.msra.mxu0 %v12649_v26  ;;  %2710 = vmatpush1.bf16.msra.mxu1 %v12650_v27  ;;  %v12708_v11 = vld [vmem:[%s17854_s1 + $0x208] ss:$16 sps:$4 sm:$0xff]   ;;  %v574_v12 = vpack.c.bf16 %v364_v8, %v357_v7  ;;  %v356_v13 = vld [vmem:[%s14407_s26 + $0x70] sm:$0xff]  ;;  %v12716_v17 = vld [vmem:[%s17854_s1 + $0x22c] ss:$16 sps:$4 sm:$0xff]  }
  0x28   : > { %1939 = vmatprep.subr.bf16.mxu0 %v12651_v28  ;;  %2711 = vmatprep.subr.bf16.mxu1 %v12653_v29  ;;  %v12711_v15 = vld [vmem:[%s17854_s1 + $0x220] ss:$16 sps:$4 sm:$0xff]   ;;  %v12713_v16 = vld [vmem:[%s17854_s1 + $0x224] ss:$16 sps:$4 sm:$0xff]   ;;  %v12714_v18 = vld [vmem:[%s17854_s1 + $0x228] ss:$16 sps:$4 sm:$0xff]   ;;  %v573_v23 = vpack.c.bf16 %v363_v14, %v356_v13 }
  0x29   : > { %v371_v19 = vld [vmem:[%s14407_s26 + $0xe8] sm:$0xff]  ;;  %v378_v20 = vld [vmem:[%s14407_s26 + $0x120] sm:$0xff] }
  0x2a   : > { %v12719_v21 = vld [vmem:[%s17854_s1 + $0x244] ss:$16 sps:$4 sm:$0xff]   ;;  %v12722_v22 = vld [vmem:[%s17854_s1 + $0x24c] ss:$16 sps:$4 sm:$0xff]   ;;  %v581_v24 = vpack.c.bf16 %v378_v20, %v371_v19  ;;  %v12717_v25 = vld [vmem:[%s17854_s1 + $0x240] ss:$16 sps:$4 sm:$0xff]  }
  0x2b   : > { %1940 = vmatpush1.bf16.msra.mxu0 %v12655_v30  ;;  %2712 = vmatpush1.bf16.msra.mxu1 %v12656_v31  ;;  %v12720_v26 = vld [vmem:[%s17854_s1 + $0x248] ss:$16 sps:$4 sm:$0xff]   ;;  %v370_v27 = vld [vmem:[%s14407_s26 + $0xe0] sm:$0xff]  ;;  %v12728_v29 = vld [vmem:[%s17854_s1 + $0x26c] ss:$16 sps:$4 sm:$0xff]  }
  0x2c   : > { %1941 = vmatprep.subr.bf16.mxu0 %v12657_v32  ;;  %2713 = vmatprep.subr.bf16.mxu1 %v12659_v33  ;;  %v12725_v28 = vld [vmem:[%s17854_s1 + $0x264] ss:$16 sps:$4 sm:$0xff]   ;;  %v377_v30 = vld [vmem:[%s14407_s26 + $0x118] sm:$0xff]  ;;  %v12723_v33 = vld [vmem:[%s17854_s1 + $0x260] ss:$16 sps:$4 sm:$0xff]  }
  0x2d   : > { %v385_v31 = vld [vmem:[%s14407_s26 + $0x158] sm:$0xff]  ;;  %v392_v32 = vld [vmem:[%s14407_s26 + $0x190] sm:$0xff]  ;;  %v406_v46 = vld [vmem:[%s14407_s26 + $0x200] sm:$0xff] }
  0x2e   : > { %v12743_v49 = vld [vmem:[%s17854_s1 + $0x2c4] ss:$16 sps:$4 sm:$0xff]   ;;  %v12753_v3 = vld [vmem:[%s17854_s1 + $0x300] ss:$16 sps:$4 sm:$0xff]   ;;  %v12756_v4 = vld [vmem:[%s17854_s1 + $0x308] ss:$16 sps:$4 sm:$0xff]  }
  0x2f   : > { %1942 = vmatpush1.bf16.msra.mxu0 %v12661_v34  ;;  %2714 = vmatpush1.bf16.msra.mxu1 %v12662_v35  ;;  %v12726_v34 = vld [vmem:[%s17854_s1 + $0x268] ss:$16 sps:$4 sm:$0xff]   ;;  %v12731_v35 = vld [vmem:[%s17854_s1 + $0x284] ss:$16 sps:$4 sm:$0xff]   ;;  %v12764_v7 = vld [vmem:[%s17854_s1 + $0x32c] ss:$16 sps:$4 sm:$0xff]  }
  0x30   : > { %1943 = vmatprep.subr.bf16.mxu0 %v12663_v36  ;;  %2715 = vmatprep.subr.bf16.mxu1 %v12665_v37  ;;  %v12734_v36 = vld [vmem:[%s17854_s1 + $0x28c] ss:$16 sps:$4 sm:$0xff]   ;;  %v580_v37 = vpack.c.bf16 %v377_v30, %v370_v27  ;;  %v12767_v13 = vld [vmem:[%s17854_s1 + $0x344] ss:$16 sps:$4 sm:$0xff]  }
  0x31   : > { %v419_v8 = vld [vmem:[%s14407_s26 + $0x268] sm:$0xff]  ;;  %v426_v19 = vld [vmem:[%s14407_s26 + $0x2a0] sm:$0xff] }
  0x32   : > { %v12770_v14 = vld [vmem:[%s17854_s1 + $0x34c] ss:$16 sps:$4 sm:$0xff]   ;;  %v12773_v20 = vld [vmem:[%s17854_s1 + $0x364] ss:$16 sps:$4 sm:$0xff]  }
  0x33   : > { %1944 = vmatpush1.bf16.msra.mxu0 %v12667_v38  ;;  %2716 = vmatpush1.bf16.msra.mxu1 %v12668_v39  ;;  %v588_v38 = vpack.c.bf16 %v392_v32, %v385_v31  ;;  %v12729_v39 = vld [vmem:[%s17854_s1 + $0x280] ss:$16 sps:$4 sm:$0xff]   ;;  %v12779_v27 = vld [vmem:[%s17854_s1 + $0x384] ss:$16 sps:$4 sm:$0xff]   ;;  %v12780_v32 = vld [vmem:[%s17854_s1 + $0x388] ss:$16 sps:$4 sm:$0xff]  }
  0x34   : > { %1945 = vmatprep.subr.bf16.mxu0 %v12669_v40  ;;  %2717 = vmatprep.subr.bf16.mxu1 %v12671_v41  ;;  %v12732_v40 = vld [vmem:[%s17854_s1 + $0x288] ss:$16 sps:$4 sm:$0xff]   ;;  %v384_v41 = vld [vmem:[%s14407_s26 + $0x150] sm:$0xff] }
  0x35   : > { %v12777_v31 = vld [vmem:[%s17854_s1 + $0x380] ss:$16 sps:$4 sm:$0xff]  }
  0x37   : > { %1946 = vmatpush1.bf16.msra.mxu0 %v12673_v42  ;;  %2718 = vmatpush1.bf16.msra.mxu1 %v12674_v43  ;;  %v12737_v42 = vld [vmem:[%s17854_s1 + $0x2a4] ss:$16 sps:$4 sm:$0xff]   ;;  %v12740_v43 = vld [vmem:[%s17854_s1 + $0x2ac] ss:$16 sps:$4 sm:$0xff]  }
  0x38   : > { %1947 = vmatprep.subr.bf16.mxu0 %v12675_v44  ;;  %2719 = vmatprep.subr.bf16.mxu1 %v12677_v45  ;;  %v391_v44 = vld [vmem:[%s14407_s26 + $0x188] sm:$0xff] }
  0x39   : > { %v399_v45 = vld [vmem:[%s14407_s26 + $0x1c8] sm:$0xff]  ;;  %v587_v51 = vpack.c.bf16 %v391_v44, %v384_v41  ;;  %v12791_v41 = vld [vmem:[%s17854_s1 + $0x3c4] ss:$16 sps:$4 sm:$0xff]  }
  0x3b   : > { %1948 = vmatpush1.bf16.msra.mxu0 %v12679_v47  ;;  %2720 = vmatpush1.bf16.msra.mxu1 %v12680_v48  ;;  %v12735_v47 = vld [vmem:[%s17854_s1 + $0x2a0] ss:$16 sps:$4 sm:$0xff]   ;;  %v12738_v48 = vld [vmem:[%s17854_s1 + $0x2a8] ss:$16 sps:$4 sm:$0xff]  }
  0x3c   : > { %1949 = vmatprep.subr.bf16.mxu0 %v12681_v50  ;;  %2721 = vmatprep.subr.bf16.mxu1 %v12683_v52  ;;  %v12746_v50 = vld [vmem:[%s17854_s1 + $0x2cc] ss:$16 sps:$4 sm:$0xff]   ;;  %v595_v52 = vpack.c.bf16 %v406_v46, %v399_v45  ;;  %v12789_v45 = vld [vmem:[%s17854_s1 + $0x3c0] ss:$16 sps:$4 sm:$0xff]   ;;  %v12792_v46 = vld [vmem:[%s17854_s1 + $0x3c8] ss:$16 sps:$4 sm:$0xff]  }
  0x3f   : > { %1950 = vmatpush1.bf16.msra.mxu0 %v12685_v53  ;;  %2722 = vmatpush1.bf16.msra.mxu1 %v12686_v54  ;;  %v12741_v53 = vld [vmem:[%s17854_s1 + $0x2c0] ss:$16 sps:$4 sm:$0xff]   ;;  %v12744_v54 = vld [vmem:[%s17854_s1 + $0x2c8] ss:$16 sps:$4 sm:$0xff]  }
  0x40   : > { %1951 = vmatprep.subr.bf16.mxu0 %v12687_v55  ;;  %2723 = vmatprep.subr.bf16.mxu1 %v12689_v56  ;;  %v398_v55 = vld [vmem:[%s14407_s26 + $0x1c0] sm:$0xff] }
  0x41   : > { %v12749_v56 = vld [vmem:[%s17854_s1 + $0x2e4] ss:$16 sps:$4 sm:$0xff]  }
  0x43   : > { %1952 = vmatpush1.bf16.msra.mxu0 %v12691_v57  ;;  %2724 = vmatpush1.bf16.msra.mxu1 %v12692_v58  ;;  %v12752_v57 = vld [vmem:[%s17854_s1 + $0x2ec] ss:$16 sps:$4 sm:$0xff]  }
  0x44   : > { %1953 = vmatprep.subr.bf16.mxu0 %v12693_v59  ;;  %2725 = vmatprep.subr.bf16.mxu1 %v12695_v60  ;;  %v405_v58 = vld [vmem:[%s14407_s26 + $0x1f8] sm:$0xff]  ;;  %v420_v60 = vld [vmem:[%s14407_s26 + $0x270] sm:$0xff] }
  0x45   : > { %v413_v59 = vld [vmem:[%s14407_s26 + $0x238] sm:$0xff] }
  0x47   : > { %1954 = vmatpush1.bf16.msra.mxu0 %v12697_v61  ;;  %2726 = vmatpush1.bf16.msra.mxu1 %v12698_v62  ;;  %v12747_v61 = vld [vmem:[%s17854_s1 + $0x2e0] ss:$16 sps:$4 sm:$0xff]   ;;  %v12750_v62 = vld [vmem:[%s17854_s1 + $0x2e8] ss:$16 sps:$4 sm:$0xff]  }
  0x48   : > { %1955 = vmatprep.subr.bf16.mxu0 %v12699_v63  ;;  %2727 = vmatprep.subr.bf16.mxu1 %v12701_v0  ;;  %v12755_v63 = vld [vmem:[%s17854_s1 + $0x304] ss:$16 sps:$4 sm:$0xff]   ;;  %v12758_v0 = vld [vmem:[%s17854_s1 + $0x30c] ss:$16 sps:$4 sm:$0xff]  }
  0x4b   : > { %1956 = vmatpush1.bf16.msra.mxu0 %v12703_v1  ;;  %2728 = vmatpush1.bf16.msra.mxu1 %v12704_v2  ;;  %v594_v1 = vpack.c.bf16 %v405_v58, %v398_v55  ;;  %v602_v2 = vpack.c.bf16 %v420_v60, %v413_v59  ;;  %v12803_v55 = vld [vmem:[%s17854_s1 + $0x404] ss:$16 sps:$4 sm:$0xff]   ;;  %v475_v60 = vld [vmem:[%s14407_s26 + $0x428] sm:$0xff] }
  0x4c   : > { %2118 = vmatprep.subr.bf16.mxu0 %v12707_v5  ;;  %2890 = vmatprep.subr.bf16.mxu1 %v12710_v6  ;;  %v412_v5 = vld [vmem:[%s14407_s26 + $0x230] sm:$0xff] }
  0x4d   : > { %v12761_v6 = vld [vmem:[%s17854_s1 + $0x324] ss:$16 sps:$4 sm:$0xff]  }
  0x4e   : > { %1958 = vmatmul.mubr.bf16.vlgmr.msra.gmra.mrb[0].mxu0 %v566_v9  ;;  %2730 = vmatmul.mubr.bf16.vlgmr.msra.gmra.mrb[0].mxu1 %v566_v9  ;;  %v427_v9 = vld [vmem:[%s14407_s26 + $0x2a8] sm:$0xff]  ;;  %v468_v59 = vld [vmem:[%s14407_s26 + $0x3f0] sm:$0xff] }
  0x4f   : > { %2119 = vmatpush1.bf16.msra.mxu0 %v12705_v10  ;;  %2891 = vmatpush1.bf16.msra.mxu1 %v12708_v11  ;;  %v434_v10 = vld [vmem:[%s14407_s26 + $0x2e0] sm:$0xff] }
  0x50   : > { %1967 = vmatprep.mubr.bf16.mxu0 %v574_v12  ;;  %2739 = vmatprep.mubr.bf16.mxu1 %v574_v12  ;;  %v12759_v11 = vld [vmem:[%s17854_s1 + $0x320] ss:$16 sps:$4 sm:$0xff]   ;;  %v12762_v12 = vld [vmem:[%s17854_s1 + $0x328] ss:$16 sps:$4 sm:$0xff]  }
  0x51   : > { %2120 = vmatprep.subr.bf16.mxu0 %v12713_v16  ;;  %2892 = vmatprep.subr.bf16.mxu1 %v12716_v17  ;;  %v609_v16 = vpack.c.bf16 %v434_v10, %v427_v9  ;;  %v12765_v17 = vld [vmem:[%s17854_s1 + $0x340] ss:$16 sps:$4 sm:$0xff]   ;;  %v511_v9 = vld [vmem:[%s14407_s26 + $0x548] sm:$0xff] }
  0x52   : > { %v518_v10 = vld [vmem:[%s14407_s26 + $0x580] sm:$0xff] }
  0x53   : > { %2121 = vmatpush1.bf16.msra.mxu0 %v12711_v15  ;;  %2893 = vmatpush1.bf16.msra.mxu1 %v12714_v18  ;;  %v601_v15 = vpack.c.bf16 %v419_v8, %v412_v5  ;;  %v12768_v18 = vld [vmem:[%s17854_s1 + $0x348] ss:$16 sps:$4 sm:$0xff]  }
  0x54   : > { %2122 = vmatprep.subr.bf16.mxu0 %v12719_v21  ;;  %2894 = vmatprep.subr.bf16.mxu1 %v12722_v22  ;;  %v12776_v21 = vld [vmem:[%s17854_s1 + $0x36c] ss:$16 sps:$4 sm:$0xff]  }
  0x55   : > { %v433_v22 = vld [vmem:[%s14407_s26 + $0x2d8] sm:$0xff]  ;;  %v503_v8 = vld [vmem:[%s14407_s26 + $0x508] sm:$0xff] }
  0x56   : > { %1968 = vmatmul.mubr.bf16.gmra.mrb[4].mxu0 %v573_v23  ;;  %2740 = vmatmul.mubr.bf16.gmra.mrb[4].mxu1 %v573_v23  ;;  %v441_v23 = vld [vmem:[%s14407_s26 + $0x318] sm:$0xff] }
  0x57   : > { %1977 = vmatprep.mubr.bf16.mxu0 %v581_v24  ;;  %2749 = vmatprep.mubr.bf16.mxu1 %v581_v24  ;;  %v448_v24 = vld [vmem:[%s14407_s26 + $0x350] sm:$0xff] }
  0x58   : > { %2123 = vmatpush1.bf16.msra.mxu0 %v12717_v25  ;;  %2895 = vmatpush1.bf16.msra.mxu1 %v12720_v26  ;;  %v12771_v25 = vld [vmem:[%s17854_s1 + $0x360] ss:$16 sps:$4 sm:$0xff]   ;;  %v12774_v26 = vld [vmem:[%s17854_s1 + $0x368] ss:$16 sps:$4 sm:$0xff]   ;;  %v616_v30 = vpack.c.bf16 %v448_v24, %v441_v23 }
  0x59   : > { %2124 = vmatprep.subr.bf16.mxu0 %v12725_v28  ;;  %2896 = vmatprep.subr.bf16.mxu1 %v12728_v29  ;;  %v12782_v28 = vld [vmem:[%s17854_s1 + $0x38c] ss:$16 sps:$4 sm:$0xff]   ;;  %v608_v29 = vpack.c.bf16 %v433_v22, %v426_v19  ;;  %v524_v19 = vld [vmem:[%s14407_s26 + $0x5b0] sm:$0xff]  ;;  %v546_v22 = vld [vmem:[%s14407_s26 + $0x660] sm:$0xff] }
  0x5c   : > { %2125 = vmatpush1.bf16.msra.mxu0 %v12723_v33  ;;  %2897 = vmatpush1.bf16.msra.mxu1 %v12726_v34  ;;  %v440_v33 = vld [vmem:[%s14407_s26 + $0x310] sm:$0xff] }
  0x5d   : > { %2126 = vmatprep.subr.bf16.mxu0 %v12731_v35  ;;  %2898 = vmatprep.subr.bf16.mxu1 %v12734_v36  ;;  %v12785_v34 = vld [vmem:[%s17854_s1 + $0x3a4] ss:$16 sps:$4 sm:$0xff]   ;;  %v12788_v35 = vld [vmem:[%s17854_s1 + $0x3ac] ss:$16 sps:$4 sm:$0xff]  }
  0x5e   : > { %1978 = vmatmul.mubr.bf16.gmra.mrb[8].mxu0 %v580_v37  ;;  %2750 = vmatmul.mubr.bf16.gmra.mrb[8].mxu1 %v580_v37  ;;  %v447_v36 = vld [vmem:[%s14407_s26 + $0x348] sm:$0xff] }
  0x5f   : > { %1987 = vmatprep.mubr.bf16.mxu0 %v588_v38  ;;  %2759 = vmatprep.mubr.bf16.mxu1 %v588_v38  ;;  %v455_v37 = vld [vmem:[%s14407_s26 + $0x388] sm:$0xff]  ;;  %v462_v38 = vld [vmem:[%s14407_s26 + $0x3c0] sm:$0xff] }
  0x60   : > { %2127 = vmatpush1.bf16.msra.mxu0 %v12729_v39  ;;  %2899 = vmatpush1.bf16.msra.mxu1 %v12732_v40  ;;  %v12783_v39 = vld [vmem:[%s17854_s1 + $0x3a0] ss:$16 sps:$4 sm:$0xff]   ;;  %v12786_v40 = vld [vmem:[%s17854_s1 + $0x3a8] ss:$16 sps:$4 sm:$0xff]   ;;  %v623_v44 = vpack.c.bf16 %v462_v38, %v455_v37 }
  0x61   : > { %2128 = vmatprep.subr.bf16.mxu0 %v12737_v42  ;;  %2900 = vmatprep.subr.bf16.mxu1 %v12740_v43  ;;  %v12794_v42 = vld [vmem:[%s17854_s1 + $0x3cc] ss:$16 sps:$4 sm:$0xff]   ;;  %v615_v43 = vpack.c.bf16 %v447_v36, %v440_v33  ;;  %v344_v37 = vld [vmem:[%s14407_s26 + $0x10] sm:$0xff] }
  0x62   : > { %v345_v33 = vld [vmem:[%s14407_s26 + $0x18] sm:$0xff]  ;;  %v351_v38 = vld [vmem:[%s14407_s26 + $0x48] sm:$0xff] }
  0x64   : > { %2129 = vmatpush1.bf16.msra.mxu0 %v12735_v47  ;;  %2901 = vmatpush1.bf16.msra.mxu1 %v12738_v48  ;;  %v454_v47 = vld [vmem:[%s14407_s26 + $0x380] sm:$0xff] }
  0x65   : > { %2130 = vmatprep.subr.bf16.mxu0 %v12743_v49  ;;  %2902 = vmatprep.subr.bf16.mxu1 %v12746_v50  ;;  %v12797_v48 = vld [vmem:[%s17854_s1 + $0x3e4] ss:$16 sps:$4 sm:$0xff]   ;;  %v12800_v49 = vld [vmem:[%s17854_s1 + $0x3ec] ss:$16 sps:$4 sm:$0xff]  }
  0x66   : > { %1988 = vmatmul.mubr.bf16.gmra.mrb[12].mxu0 %v587_v51  ;;  %2760 = vmatmul.mubr.bf16.gmra.mrb[12].mxu1 %v587_v51  ;;  %v461_v50 = vld [vmem:[%s14407_s26 + $0x3b8] sm:$0xff] }
  0x67   : > { %1997 = vmatprep.mubr.bf16.mxu0 %v595_v52  ;;  %2769 = vmatprep.mubr.bf16.mxu1 %v595_v52  ;;  %v469_v51 = vld [vmem:[%s14407_s26 + $0x3f8] sm:$0xff]  ;;  %v476_v52 = vld [vmem:[%s14407_s26 + $0x430] sm:$0xff] }
  0x68   : > { %2131 = vmatpush1.bf16.msra.mxu0 %v12741_v53  ;;  %2903 = vmatpush1.bf16.msra.mxu1 %v12744_v54  ;;  %v12795_v53 = vld [vmem:[%s17854_s1 + $0x3e0] ss:$16 sps:$4 sm:$0xff]   ;;  %v12798_v54 = vld [vmem:[%s17854_s1 + $0x3e8] ss:$16 sps:$4 sm:$0xff]   ;;  %v630_v58 = vpack.c.bf16 %v476_v52, %v469_v51 }
  0x69   : > { %2132 = vmatprep.subr.bf16.mxu0 %v12749_v56  ;;  %2904 = vmatprep.subr.bf16.mxu1 %v12752_v57  ;;  %v12806_v56 = vld [vmem:[%s17854_s1 + $0x40c] ss:$16 sps:$4 sm:$0xff]   ;;  %v622_v57 = vpack.c.bf16 %v461_v50, %v454_v47  ;;  %v358_v47 = vld [vmem:[%s14407_s26 + $0x80] sm:$0xff]  ;;  %v12810_v50 = vld [vmem:[%s17854_s1 + $0x428] ss:$16 sps:$4 sm:$0xff]  }
  0x6a   : > { %v373_v51 = vld [vmem:[%s14407_s26 + $0xf8] sm:$0xff]  ;;  %v380_v52 = vld [vmem:[%s14407_s26 + $0x130] sm:$0xff] }
  0x6c   : > { %2133 = vmatpush1.bf16.msra.mxu0 %v12747_v61  ;;  %2905 = vmatpush1.bf16.msra.mxu1 %v12750_v62  ;;  %v483_v61 = vld [vmem:[%s14407_s26 + $0x468] sm:$0xff]  ;;  %v490_v62 = vld [vmem:[%s14407_s26 + $0x4a0] sm:$0xff] }
  0x6d   : > { %2134 = vmatprep.subr.bf16.mxu0 %v12755_v63  ;;  %2906 = vmatprep.subr.bf16.mxu1 %v12758_v0  ;;  %v629_v63 = vpack.c.bf16 %v475_v60, %v468_v59  ;;  %v637_v0 = vpack.c.bf16 %v490_v62, %v483_v61  ;;  %v12821_v59 = vld [vmem:[%s17854_s1 + $0x464] ss:$16 sps:$4 sm:$0xff]   ;;  %v12824_v60 = vld [vmem:[%s17854_s1 + $0x46c] ss:$16 sps:$4 sm:$0xff]  }
  0x6e   : > { %1998 = vmatmul.mubr.bf16.gmra.mrb[16].mxu0 %v594_v1  ;;  %2770 = vmatmul.mubr.bf16.gmra.mrb[16].mxu1 %v594_v1  ;;  %v482_v1 = vld [vmem:[%s14407_s26 + $0x460] sm:$0xff]  ;;  %v372_v61 = vld [vmem:[%s14407_s26 + $0xf0] sm:$0xff]  ;;  %v379_v62 = vld [vmem:[%s14407_s26 + $0x128] sm:$0xff] }
  0x6f   : > { %2007 = vmatprep.mubr.bf16.mxu0 %v602_v2  ;;  %2779 = vmatprep.mubr.bf16.mxu1 %v602_v2  ;;  %v489_v2 = vld [vmem:[%s14407_s26 + $0x498] sm:$0xff] }
  0x70   : > { %2135 = vmatpush1.bf16.msra.mxu0 %v12753_v3  ;;  %2907 = vmatpush1.bf16.msra.mxu1 %v12756_v4  ;;  %v497_v3 = vld [vmem:[%s14407_s26 + $0x4d8] sm:$0xff]  ;;  %v504_v4 = vld [vmem:[%s14407_s26 + $0x510] sm:$0xff]  ;;  %v636_v5 = vpack.c.bf16 %v489_v2, %v482_v1 }
  0x71   : > { %2136 = vmatprep.subr.bf16.mxu0 %v12761_v6  ;;  %2908 = vmatprep.subr.bf16.mxu1 %v12764_v7  ;;  %v644_v6 = vpack.c.bf16 %v504_v4, %v497_v3  ;;  %v496_v7 = vld [vmem:[%s14407_s26 + $0x4d0] sm:$0xff]  ;;  %v12822_v2 = vld [vmem:[%s17854_s1 + $0x468] ss:$16 sps:$4 sm:$0xff]   ;;  %v12830_v4 = vld [vmem:[%s17854_s1 + $0x48c] ss:$16 sps:$4 sm:$0xff]  }
  0x72   : > { %v12819_v1 = vld [vmem:[%s17854_s1 + $0x460] ss:$16 sps:$4 sm:$0xff]   ;;  %v12827_v3 = vld [vmem:[%s17854_s1 + $0x484] ss:$16 sps:$4 sm:$0xff]  }
  0x74   : > { %2137 = vmatpush1.bf16.msra.mxu0 %v12759_v11  ;;  %2909 = vmatpush1.bf16.msra.mxu1 %v12762_v12  ;;  %v643_v11 = vpack.c.bf16 %v503_v8, %v496_v7  ;;  %v651_v12 = vpack.c.bf16 %v518_v10, %v511_v9  ;;  %v12828_v7 = vld [vmem:[%s17854_s1 + $0x488] ss:$16 sps:$4 sm:$0xff]   ;;  %v12833_v9 = vld [vmem:[%s17854_s1 + $0x4a4] ss:$16 sps:$4 sm:$0xff]   ;;  %v12836_v10 = vld [vmem:[%s17854_s1 + $0x4ac] ss:$16 sps:$4 sm:$0xff]  }
  0x75   : > { %2138 = vmatprep.subr.bf16.mxu0 %v12767_v13  ;;  %2910 = vmatprep.subr.bf16.mxu1 %v12770_v14  ;;  %v510_v13 = vld [vmem:[%s14407_s26 + $0x540] sm:$0xff]  ;;  %v517_v14 = vld [vmem:[%s14407_s26 + $0x578] sm:$0xff] }
  0x76   : > { %2008 = vmatmul.mubr.bf16.gmra.mrb[20].mxu0 %v601_v15  ;;  %2780 = vmatmul.mubr.bf16.gmra.mrb[20].mxu1 %v601_v15  ;;  %v525_v15 = vld [vmem:[%s14407_s26 + $0x5b8] sm:$0xff] }
  0x77   : > { %2017 = vmatprep.mubr.bf16.mxu0 %v609_v16  ;;  %2789 = vmatprep.mubr.bf16.mxu1 %v609_v16  ;;  %v532_v16 = vld [vmem:[%s14407_s26 + $0x5f0] sm:$0xff] }
  0x78   : > { %2139 = vmatpush1.bf16.msra.mxu0 %v12765_v17  ;;  %2911 = vmatpush1.bf16.msra.mxu1 %v12768_v18  ;;  %v650_v17 = vpack.c.bf16 %v517_v14, %v510_v13  ;;  %v658_v18 = vpack.c.bf16 %v532_v16, %v525_v15  ;;  %v401_v13 = vld [vmem:[%s14407_s26 + $0x1d8] sm:$0xff]  ;;  %v408_v14 = vld [vmem:[%s14407_s26 + $0x210] sm:$0xff] }
  0x79   : > { %2140 = vmatprep.subr.bf16.mxu0 %v12773_v20  ;;  %2912 = vmatprep.subr.bf16.mxu1 %v12776_v21  ;;  %v531_v20 = vld [vmem:[%s14407_s26 + $0x5e8] sm:$0xff]  ;;  %v12831_v15 = vld [vmem:[%s17854_s1 + $0x4a0] ss:$16 sps:$4 sm:$0xff]  }
  0x7a   : > { %v539_v21 = vld [vmem:[%s14407_s26 + $0x628] sm:$0xff]  ;;  %v657_v23 = vpack.c.bf16 %v531_v20, %v524_v19  ;;  %v12837_v20 = vld [vmem:[%s17854_s1 + $0x4c0] ss:$16 sps:$4 sm:$0xff]  }
  0x7b   : > { %v665_v24 = vpack.c.bf16 %v546_v22, %v539_v21  ;;  %v12834_v16 = vld [vmem:[%s17854_s1 + $0x4a8] ss:$16 sps:$4 sm:$0xff]   ;;  %v597_v22 = vpack.c.bf16 %v408_v14, %v401_v13 }
  0x7c   : > { %2141 = vmatpush1.bf16.msra.mxu0 %v12771_v25  ;;  %2913 = vmatpush1.bf16.msra.mxu1 %v12774_v26  ;;  %v538_v25 = vld [vmem:[%s14407_s26 + $0x620] sm:$0xff]  ;;  %v545_v26 = vld [vmem:[%s14407_s26 + $0x658] sm:$0xff] }
  0x7d   : > { %2142 = vmatprep.subr.bf16.mxu0 %v12779_v27  ;;  %2914 = vmatprep.subr.bf16.mxu1 %v12782_v28  ;;  %v553_v27 = vld [vmem:[%s14407_s26 + $0x698] sm:$0xff]  ;;  %v560_v28 = vld [vmem:[%s14407_s26 + $0x6d0] sm:$0xff] }
  0x7e   : > { %2018 = vmatmul.mubr.bf16.gmra.mrb[24].mxu0 %v608_v29  ;;  %2790 = vmatmul.mubr.bf16.gmra.mrb[24].mxu1 %v608_v29  ;;  %v664_v29 = vpack.c.bf16 %v545_v26, %v538_v25  ;;  %v12840_v21 = vld [vmem:[%s17854_s1 + $0x4c8] ss:$16 sps:$4 sm:$0xff]   ;;  %v400_v25 = vld [vmem:[%s14407_s26 + $0x1d0] sm:$0xff] }
  0x7f   : > { %2027 = vmatprep.mubr.bf16.mxu0 %v616_v30  ;;  %2799 = vmatprep.mubr.bf16.mxu1 %v616_v30  ;;  %v672_v30 = vpack.c.bf16 %v560_v28, %v553_v27  ;;  %v407_v26 = vld [vmem:[%s14407_s26 + $0x208] sm:$0xff]  ;;  %v422_v28 = vld [vmem:[%s14407_s26 + $0x280] sm:$0xff] }
  0x80   : > { %2143 = vmatpush1.bf16.msra.mxu0 %v12777_v31  ;;  %2915 = vmatpush1.bf16.msra.mxu1 %v12780_v32  ;;  %v552_v31 = vld [vmem:[%s14407_s26 + $0x690] sm:$0xff]  ;;  %v559_v32 = vld [vmem:[%s14407_s26 + $0x6c8] sm:$0xff] }
  0x81   : > { %2144 = vmatprep.subr.bf16.mxu0 %v12785_v34  ;;  %2916 = vmatprep.subr.bf16.mxu1 %v12788_v35  ;;  %v352_v34 = vld [vmem:[%s14407_s26 + $0x50] sm:$0xff]  ;;  %v671_v35 = vpack.c.bf16 %v559_v32, %v552_v31  ;;  %v415_v27 = vld [vmem:[%s14407_s26 + $0x248] sm:$0xff] }
  0x82   : > { %v569_v36 = vpack.c.bf16 %v352_v34, %v345_v33  ;;  %v12851_v31 = vld [vmem:[%s17854_s1 + $0x504] ss:$16 sps:$4 sm:$0xff]   ;;  %v12854_v32 = vld [vmem:[%s17854_s1 + $0x50c] ss:$16 sps:$4 sm:$0xff]   ;;  %v596_v33 = vpack.c.bf16 %v407_v26, %v400_v25  ;;  %v12849_v34 = vld [vmem:[%s17854_s1 + $0x500] ss:$16 sps:$4 sm:$0xff]  }
  0x83   : > { %v12888_v13 = vld [vmem:[%s17854_s1 + $0x5c8] ss:$16 sps:$4 sm:$0xff]  }
  0x84   : > { %2145 = vmatpush1.bf16.msra.mxu0 %v12783_v39  ;;  %2917 = vmatpush1.bf16.msra.mxu1 %v12786_v40  ;;  %v359_v39 = vld [vmem:[%s14407_s26 + $0x88] sm:$0xff]  ;;  %v366_v40 = vld [vmem:[%s14407_s26 + $0xc0] sm:$0xff] }
  0x85   : > { %2146 = vmatprep.subr.bf16.mxu0 %v12791_v41  ;;  %2918 = vmatprep.subr.bf16.mxu1 %v12794_v42  ;;  %v12801_v41 = vld [vmem:[%s17854_s1 + $0x400] ss:$16 sps:$4 sm:$0xff]   ;;  %v12804_v42 = vld [vmem:[%s17854_s1 + $0x408] ss:$16 sps:$4 sm:$0xff]  }
  0x86   : > { %2028 = vmatmul.mubr.bf16.gmra.mrb[28].mxu0 %v615_v43  ;;  %2800 = vmatmul.mubr.bf16.gmra.mrb[28].mxu1 %v615_v43  ;;  %v568_v43 = vpack.c.bf16 %v351_v38, %v344_v37  ;;  %v12857_v37 = vld [vmem:[%s17854_s1 + $0x524] ss:$16 sps:$4 sm:$0xff]   ;;  %v12860_v38 = vld [vmem:[%s17854_s1 + $0x52c] ss:$16 sps:$4 sm:$0xff]  }
  0x87   : > { %2037 = vmatprep.mubr.bf16.mxu0 %v623_v44  ;;  %2809 = vmatprep.mubr.bf16.mxu1 %v623_v44  ;;  %v12809_v44 = vld [vmem:[%s17854_s1 + $0x424] ss:$16 sps:$4 sm:$0xff]  }
  0x88   : > { %2147 = vmatpush1.bf16.msra.mxu0 %v12789_v45  ;;  %2919 = vmatpush1.bf16.msra.mxu1 %v12792_v46  ;;  %v12812_v45 = vld [vmem:[%s17854_s1 + $0x42c] ss:$16 sps:$4 sm:$0xff]   ;;  %v576_v46 = vpack.c.bf16 %v366_v40, %v359_v39  ;;  %v414_v39 = vld [vmem:[%s14407_s26 + $0x240] sm:$0xff] }
  0x89   : > { %2148 = vmatprep.subr.bf16.mxu0 %v12797_v48  ;;  %2920 = vmatprep.subr.bf16.mxu1 %v12800_v49  ;;  %v365_v48 = vld [vmem:[%s14407_s26 + $0xb8] sm:$0xff]  ;;  %v12807_v49 = vld [vmem:[%s17854_s1 + $0x420] ss:$16 sps:$4 sm:$0xff]  }
  0x8a   : > { %v421_v40 = vld [vmem:[%s14407_s26 + $0x278] sm:$0xff] }
  0x8c   : > { %2149 = vmatpush1.bf16.msra.mxu0 %v12795_v53  ;;  %2921 = vmatpush1.bf16.msra.mxu1 %v12798_v54  ;;  %v12815_v53 = vld [vmem:[%s17854_s1 + $0x444] ss:$16 sps:$4 sm:$0xff]   ;;  %v12818_v54 = vld [vmem:[%s17854_s1 + $0x44c] ss:$16 sps:$4 sm:$0xff]  }
  0x8d   : > { %2311 = vmatprep.subr.bf16.mxu0 %v12803_v55  ;;  %3083 = vmatprep.subr.bf16.mxu1 %v12806_v56  ;;  %v575_v55 = vpack.c.bf16 %v365_v48, %v358_v47  ;;  %v12813_v56 = vld [vmem:[%s17854_s1 + $0x440] ss:$16 sps:$4 sm:$0xff]   ;;  %v603_v47 = vpack.c.bf16 %v421_v40, %v414_v39  ;;  %v505_v40 = vld [vmem:[%s14407_s26 + $0x518] sm:$0xff] }
  0x8e   : > { %2038 = vmatmul.mubr.bf16.gmra.mrb[32].mxu0 %v622_v57  ;;  %2810 = vmatmul.mubr.bf16.gmra.mrb[32].mxu1 %v622_v57  ;;  %v12816_v57 = vld [vmem:[%s17854_s1 + $0x448] ss:$16 sps:$4 sm:$0xff]   ;;  %v12861_v48 = vld [vmem:[%s17854_s1 + $0x540] ss:$16 sps:$4 sm:$0xff]  }
  0x8f   : > { %2047 = vmatprep.mubr.bf16.mxu0 %v630_v58  ;;  %2819 = vmatprep.mubr.bf16.mxu1 %v630_v58  ;;  %v583_v58 = vpack.c.bf16 %v380_v52, %v373_v51  ;;  %v12869_v51 = vld [vmem:[%s17854_s1 + $0x564] ss:$16 sps:$4 sm:$0xff]   ;;  %v12872_v52 = vld [vmem:[%s17854_s1 + $0x56c] ss:$16 sps:$4 sm:$0xff]  }
  0x90   : > { %v498_v39 = vld [vmem:[%s14407_s26 + $0x4e0] sm:$0xff] }
  0x96   : > { %2048 = vmatmul.mubr.bf16.gmra.mrb[36].mxu0 %v629_v63  ;;  %2820 = vmatmul.mubr.bf16.gmra.mrb[36].mxu1 %v629_v63  ;;  %v387_v63 = vld [vmem:[%s14407_s26 + $0x168] sm:$0xff] }
  0x97   : > { %2057 = vmatprep.mubr.bf16.mxu0 %v637_v0  ;;  %2829 = vmatprep.mubr.bf16.mxu1 %v637_v0  ;;  %v394_v0 = vld [vmem:[%s14407_s26 + $0x1a0] sm:$0xff] }
  0x98   : > { %v590_v8 = vpack.c.bf16 %v394_v0, %v387_v63  ;;  %v12876_v63 = vld [vmem:[%s17854_s1 + $0x588] ss:$16 sps:$4 sm:$0xff]  }
  0x9e   : > { %2058 = vmatmul.mubr.bf16.gmra.mrb[40].mxu0 %v636_v5  ;;  %2830 = vmatmul.mubr.bf16.gmra.mrb[40].mxu1 %v636_v5  ;;  %v582_v5 = vpack.c.bf16 %v379_v62, %v372_v61  ;;  %v12873_v62 = vld [vmem:[%s17854_s1 + $0x580] ss:$16 sps:$4 sm:$0xff]  }
  0x9f   : > { %2067 = vmatprep.mubr.bf16.mxu0 %v644_v6  ;;  %2839 = vmatprep.mubr.bf16.mxu1 %v644_v6  ;;  %v12825_v6 = vld [vmem:[%s17854_s1 + $0x480] ss:$16 sps:$4 sm:$0xff]  }
  0xa6   : > { %2068 = vmatmul.mubr.bf16.gmra.mrb[44].mxu0 %v643_v11  ;;  %2840 = vmatmul.mubr.bf16.gmra.mrb[44].mxu1 %v643_v11  ;;  %v386_v11 = vld [vmem:[%s14407_s26 + $0x160] sm:$0xff] }
  0xa7   : > { %2077 = vmatprep.mubr.bf16.mxu0 %v651_v12  ;;  %2849 = vmatprep.mubr.bf16.mxu1 %v651_v12  ;;  %v393_v12 = vld [vmem:[%s14407_s26 + $0x198] sm:$0xff] }
  0xa8   : > { %v589_v19 = vpack.c.bf16 %v393_v12, %v386_v11  ;;  %v12885_v12 = vld [vmem:[%s17854_s1 + $0x5c0] ss:$16 sps:$4 sm:$0xff]  }
  0xae   : > { %2078 = vmatmul.mubr.bf16.gmra.mrb[48].mxu0 %v650_v17  ;;  %2850 = vmatmul.mubr.bf16.gmra.mrb[48].mxu1 %v650_v17  ;;  %v12839_v17 = vld [vmem:[%s17854_s1 + $0x4c4] ss:$16 sps:$4 sm:$0xff]  }
  0xaf   : > { %2087 = vmatprep.mubr.bf16.mxu0 %v658_v18  ;;  %2859 = vmatprep.mubr.bf16.mxu1 %v658_v18  ;;  %v12842_v18 = vld [vmem:[%s17854_s1 + $0x4cc] ss:$16 sps:$4 sm:$0xff]  }
  0xb6   : > { %2088 = vmatmul.mubr.bf16.gmra.mrb[52].mxu0 %v657_v23  ;;  %2860 = vmatmul.mubr.bf16.gmra.mrb[52].mxu1 %v657_v23  ;;  %v12845_v23 = vld [vmem:[%s17854_s1 + $0x4e4] ss:$16 sps:$4 sm:$0xff]  }
  0xb7   : > { %2097 = vmatprep.mubr.bf16.mxu0 %v665_v24  ;;  %2869 = vmatprep.mubr.bf16.mxu1 %v665_v24  ;;  %v12848_v24 = vld [vmem:[%s17854_s1 + $0x4ec] ss:$16 sps:$4 sm:$0xff]  }
  0xbe   : > { %2098 = vmatmul.mubr.bf16.gmra.mrb[56].mxu0 %v664_v29  ;;  %2870 = vmatmul.mubr.bf16.gmra.mrb[56].mxu1 %v664_v29  ;;  %v12843_v29 = vld [vmem:[%s17854_s1 + $0x4e0] ss:$16 sps:$4 sm:$0xff]  }
  0xbf   : > { %2107 = vmatprep.mubr.bf16.mxu0 %v672_v30  ;;  %2879 = vmatprep.mubr.bf16.mxu1 %v672_v30  ;;  %v12846_v30 = vld [vmem:[%s17854_s1 + $0x4e8] ss:$16 sps:$4 sm:$0xff]  }
  0xc6   : > { %2108 = vmatmul.mubr.bf16.gmra.mrb[60].mxu0 %v671_v35  ;;  %2880 = vmatmul.mubr.bf16.gmra.mrb[60].mxu1 %v671_v35  ;;  %v12852_v35 = vld [vmem:[%s17854_s1 + $0x508] ss:$16 sps:$4 sm:$0xff]  }
  0xc7   : > { %2150 = vmatprep.mubr.bf16.mxu0 %v569_v36  ;;  %2922 = vmatprep.mubr.bf16.mxu1 %v569_v36  ;;  %v604_v36 = vpack.c.bf16 %v422_v28, %v415_v27  ;;  %v470_v27 = vld [vmem:[%s14407_s26 + $0x400] sm:$0xff]  ;;  %v477_v28 = vld [vmem:[%s14407_s26 + $0x438] sm:$0xff] }
  0xce   : > { %2151 = vmatmul.mubr.bf16.vlgmr.msra.gmra.mrb[0].mxu0 %v568_v43  ;;  %2923 = vmatmul.mubr.bf16.vlgmr.msra.gmra.mrb[0].mxu1 %v568_v43  ;;  %v12855_v43 = vld [vmem:[%s17854_s1 + $0x520] ss:$16 sps:$4 sm:$0xff]  }
  0xcf   : > { %2312 = vmatpush1.bf16.msra.mxu0 %v12801_v41  ;;  %3084 = vmatpush1.bf16.msra.mxu1 %v12804_v42  ;;  %v429_v41 = vld [vmem:[%s14407_s26 + $0x2b8] sm:$0xff]  ;;  %v436_v42 = vld [vmem:[%s14407_s26 + $0x2f0] sm:$0xff] }
  0xd0   : > { %2160 = vmatprep.mubr.bf16.mxu0 %v576_v46  ;;  %2932 = vmatprep.mubr.bf16.mxu1 %v576_v46  ;;  %v12866_v46 = vld [vmem:[%s17854_s1 + $0x54c] ss:$16 sps:$4 sm:$0xff]  }
  0xd1   : > { %2313 = vmatprep.subr.bf16.mxu0 %v12809_v44  ;;  %3085 = vmatprep.subr.bf16.mxu1 %v12812_v45  ;;  %v12858_v44 = vld [vmem:[%s17854_s1 + $0x528] ss:$16 sps:$4 sm:$0xff]   ;;  %v12863_v45 = vld [vmem:[%s17854_s1 + $0x544] ss:$16 sps:$4 sm:$0xff]  }
  0xd3   : > { %2314 = vmatpush1.bf16.msra.mxu0 %v12807_v49  ;;  %3086 = vmatpush1.bf16.msra.mxu1 %v12810_v50  ;;  %v12864_v49 = vld [vmem:[%s17854_s1 + $0x548] ss:$16 sps:$4 sm:$0xff]   ;;  %v611_v50 = vpack.c.bf16 %v436_v42, %v429_v41  ;;  %v520_v42 = vld [vmem:[%s14407_s26 + $0x590] sm:$0xff] }
  0xd4   : > { %2315 = vmatprep.subr.bf16.mxu0 %v12815_v53  ;;  %3087 = vmatprep.subr.bf16.mxu1 %v12818_v54  ;;  %v428_v53 = vld [vmem:[%s14407_s26 + $0x2b0] sm:$0xff]  ;;  %v435_v54 = vld [vmem:[%s14407_s26 + $0x2e8] sm:$0xff]  ;;  %v513_v41 = vld [vmem:[%s14407_s26 + $0x558] sm:$0xff] }
  0xd5   : > { %v610_v61 = vpack.c.bf16 %v435_v54, %v428_v53  ;;  %v541_v53 = vld [vmem:[%s14407_s26 + $0x638] sm:$0xff]  ;;  %v548_v54 = vld [vmem:[%s14407_s26 + $0x670] sm:$0xff] }
  0xd6   : > { %2161 = vmatmul.mubr.bf16.gmra.mrb[4].mxu0 %v575_v55  ;;  %2933 = vmatmul.mubr.bf16.gmra.mrb[4].mxu1 %v575_v55  ;;  %v443_v55 = vld [vmem:[%s14407_s26 + $0x328] sm:$0xff] }
  0xd7   : > { %2170 = vmatprep.mubr.bf16.mxu0 %v583_v58  ;;  %2942 = vmatprep.mubr.bf16.mxu1 %v583_v58  ;;  %v12870_v58 = vld [vmem:[%s17854_s1 + $0x568] ss:$16 sps:$4 sm:$0xff]  }
  0xd8   : > { %2316 = vmatpush1.bf16.msra.mxu0 %v12813_v56  ;;  %3088 = vmatpush1.bf16.msra.mxu1 %v12816_v57  ;;  %v450_v56 = vld [vmem:[%s14407_s26 + $0x360] sm:$0xff] }
  0xd9   : > { %2317 = vmatprep.subr.bf16.mxu0 %v12821_v59  ;;  %3089 = vmatprep.subr.bf16.mxu1 %v12824_v60  ;;  %v12867_v57 = vld [vmem:[%s17854_s1 + $0x560] ss:$16 sps:$4 sm:$0xff]   ;;  %v12875_v59 = vld [vmem:[%s17854_s1 + $0x584] ss:$16 sps:$4 sm:$0xff]   ;;  %v12878_v60 = vld [vmem:[%s17854_s1 + $0x58c] ss:$16 sps:$4 sm:$0xff]   ;;  %v618_v0 = vpack.c.bf16 %v450_v56, %v443_v55  ;;  %v667_v56 = vpack.c.bf16 %v548_v54, %v541_v53 }
  0xdc   : > { %2318 = vmatpush1.bf16.msra.mxu0 %v12819_v1  ;;  %3090 = vmatpush1.bf16.msra.mxu1 %v12822_v2  ;;  %v12881_v1 = vld [vmem:[%s17854_s1 + $0x5a4] ss:$16 sps:$4 sm:$0xff]   ;;  %v12884_v2 = vld [vmem:[%s17854_s1 + $0x5ac] ss:$16 sps:$4 sm:$0xff]  }
  0xdd   : > { %2319 = vmatprep.subr.bf16.mxu0 %v12827_v3  ;;  %3091 = vmatprep.subr.bf16.mxu1 %v12830_v4  ;;  %v442_v3 = vld [vmem:[%s14407_s26 + $0x320] sm:$0xff]  ;;  %v449_v4 = vld [vmem:[%s14407_s26 + $0x358] sm:$0xff] }
  0xde   : > { %2171 = vmatmul.mubr.bf16.gmra.mrb[8].mxu0 %v582_v5  ;;  %2943 = vmatmul.mubr.bf16.gmra.mrb[8].mxu1 %v582_v5  ;;  %v457_v5 = vld [vmem:[%s14407_s26 + $0x398] sm:$0xff]  ;;  %v617_v11 = vpack.c.bf16 %v449_v4, %v442_v3 }
  0xdf   : > { %2180 = vmatprep.mubr.bf16.mxu0 %v590_v8  ;;  %2952 = vmatprep.mubr.bf16.mxu1 %v590_v8  ;;  %v12882_v8 = vld [vmem:[%s17854_s1 + $0x5a8] ss:$16 sps:$4 sm:$0xff]  }
  0xe0   : > { %2320 = vmatpush1.bf16.msra.mxu0 %v12825_v6  ;;  %3092 = vmatpush1.bf16.msra.mxu1 %v12828_v7  ;;  %v464_v6 = vld [vmem:[%s14407_s26 + $0x3d0] sm:$0xff] }
  0xe1   : > { %2321 = vmatprep.subr.bf16.mxu0 %v12833_v9  ;;  %3093 = vmatprep.subr.bf16.mxu1 %v12836_v10  ;;  %v12879_v7 = vld [vmem:[%s17854_s1 + $0x5a0] ss:$16 sps:$4 sm:$0xff]   ;;  %v12887_v9 = vld [vmem:[%s17854_s1 + $0x5c4] ss:$16 sps:$4 sm:$0xff]   ;;  %v12890_v10 = vld [vmem:[%s17854_s1 + $0x5cc] ss:$16 sps:$4 sm:$0xff]   ;;  %v625_v14 = vpack.c.bf16 %v464_v6, %v457_v5 }
  0xe2   : > { %v346_v5 = vld [vmem:[%s14407_s26 + $0x20] sm:$0xff]  ;;  %v353_v6 = vld [vmem:[%s14407_s26 + $0x58] sm:$0xff] }
  0xe4   : > { %2322 = vmatpush1.bf16.msra.mxu0 %v12831_v15  ;;  %3094 = vmatpush1.bf16.msra.mxu1 %v12834_v16  ;;  %v12893_v15 = vld [vmem:[%s17854_s1 + $0x5e4] ss:$16 sps:$4 sm:$0xff]   ;;  %v12896_v16 = vld [vmem:[%s17854_s1 + $0x5ec] ss:$16 sps:$4 sm:$0xff]  }
  0xe5   : > { %2323 = vmatprep.subr.bf16.mxu0 %v12839_v17  ;;  %3095 = vmatprep.subr.bf16.mxu1 %v12842_v18  ;;  %v456_v17 = vld [vmem:[%s14407_s26 + $0x390] sm:$0xff]  ;;  %v463_v18 = vld [vmem:[%s14407_s26 + $0x3c8] sm:$0xff] }
  0xe6   : > { %2181 = vmatmul.mubr.bf16.gmra.mrb[12].mxu0 %v589_v19  ;;  %2953 = vmatmul.mubr.bf16.gmra.mrb[12].mxu1 %v589_v19  ;;  %v471_v19 = vld [vmem:[%s14407_s26 + $0x408] sm:$0xff]  ;;  %v624_v25 = vpack.c.bf16 %v463_v18, %v456_v17 }
  0xe7   : > { %2190 = vmatprep.mubr.bf16.mxu0 %v597_v22  ;;  %2962 = vmatprep.mubr.bf16.mxu1 %v597_v22  ;;  %v12894_v22 = vld [vmem:[%s17854_s1 + $0x5e8] ss:$16 sps:$4 sm:$0xff]  }
  0xe8   : > { %2324 = vmatpush1.bf16.msra.mxu0 %v12837_v20  ;;  %3096 = vmatpush1.bf16.msra.mxu1 %v12840_v21  ;;  %v478_v20 = vld [vmem:[%s14407_s26 + $0x440] sm:$0xff] }
  0xe9   : > { %2325 = vmatprep.subr.bf16.mxu0 %v12845_v23  ;;  %3097 = vmatprep.subr.bf16.mxu1 %v12848_v24  ;;  %v12891_v21 = vld [vmem:[%s17854_s1 + $0x5e0] ss:$16 sps:$4 sm:$0xff]   ;;  %v12899_v23 = vld [vmem:[%s17854_s1 + $0x604] ss:$16 sps:$4 sm:$0xff]   ;;  %v12902_v24 = vld [vmem:[%s17854_s1 + $0x60c] ss:$16 sps:$4 sm:$0xff]   ;;  %v632_v26 = vpack.c.bf16 %v478_v20, %v471_v19 }
  0xea   : > { %v374_v19 = vld [vmem:[%s14407_s26 + $0x100] sm:$0xff]  ;;  %v381_v20 = vld [vmem:[%s14407_s26 + $0x138] sm:$0xff] }
  0xec   : > { %2326 = vmatpush1.bf16.msra.mxu0 %v12843_v29  ;;  %3098 = vmatpush1.bf16.msra.mxu1 %v12846_v30  ;;  %v485_v29 = vld [vmem:[%s14407_s26 + $0x478] sm:$0xff]  ;;  %v492_v30 = vld [vmem:[%s14407_s26 + $0x4b0] sm:$0xff] }
  0xed   : > { %2327 = vmatprep.subr.bf16.mxu0 %v12851_v31  ;;  %3099 = vmatprep.subr.bf16.mxu1 %v12854_v32  ;;  %v631_v31 = vpack.c.bf16 %v477_v28, %v470_v27  ;;  %v639_v32 = vpack.c.bf16 %v492_v30, %v485_v29  ;;  %v403_v27 = vld [vmem:[%s14407_s26 + $0x1e8] sm:$0xff]  ;;  %v410_v28 = vld [vmem:[%s14407_s26 + $0x220] sm:$0xff] }
  0xee   : > { %2191 = vmatmul.mubr.bf16.gmra.mrb[16].mxu0 %v596_v33  ;;  %2963 = vmatmul.mubr.bf16.gmra.mrb[16].mxu1 %v596_v33  ;;  %v484_v33 = vld [vmem:[%s14407_s26 + $0x470] sm:$0xff]  ;;  %v599_v30 = vpack.c.bf16 %v410_v28, %v403_v27 }
  0xef   : > { %2200 = vmatprep.mubr.bf16.mxu0 %v604_v36  ;;  %2972 = vmatprep.mubr.bf16.mxu1 %v604_v36  ;;  %v506_v36 = vld [vmem:[%s14407_s26 + $0x520] sm:$0xff] }
  0xf0   : > { %2328 = vmatpush1.bf16.msra.mxu0 %v12849_v34  ;;  %3100 = vmatpush1.bf16.msra.mxu1 %v12852_v35  ;;  %v491_v34 = vld [vmem:[%s14407_s26 + $0x4a8] sm:$0xff] }
  0xf1   : > { %2329 = vmatprep.subr.bf16.mxu0 %v12857_v37  ;;  %3101 = vmatprep.subr.bf16.mxu1 %v12860_v38  ;;  %v499_v35 = vld [vmem:[%s14407_s26 + $0x4e8] sm:$0xff]  ;;  %v638_v37 = vpack.c.bf16 %v491_v34, %v484_v33  ;;  %v417_v33 = vld [vmem:[%s14407_s26 + $0x258] sm:$0xff]  ;;  %v424_v34 = vld [vmem:[%s14407_s26 + $0x290] sm:$0xff] }
  0xf2   : > { %v646_v38 = vpack.c.bf16 %v506_v36, %v499_v35  ;;  %v606_v36 = vpack.c.bf16 %v424_v34, %v417_v33 }
  0xf4   : > { %2330 = vmatpush1.bf16.msra.mxu0 %v12855_v43  ;;  %3102 = vmatpush1.bf16.msra.mxu1 %v12858_v44  ;;  %v645_v43 = vpack.c.bf16 %v505_v40, %v498_v39  ;;  %v653_v44 = vpack.c.bf16 %v520_v42, %v513_v41  ;;  %v431_v39 = vld [vmem:[%s14407_s26 + $0x2c8] sm:$0xff]  ;;  %v438_v40 = vld [vmem:[%s14407_s26 + $0x300] sm:$0xff] }
  0xf5   : > { %2331 = vmatprep.subr.bf16.mxu0 %v12863_v45  ;;  %3103 = vmatprep.subr.bf16.mxu1 %v12866_v46  ;;  %v512_v45 = vld [vmem:[%s14407_s26 + $0x550] sm:$0xff]  ;;  %v519_v46 = vld [vmem:[%s14407_s26 + $0x588] sm:$0xff]  ;;  %v613_v42 = vpack.c.bf16 %v438_v40, %v431_v39 }
  0xf6   : > { %2201 = vmatmul.mubr.bf16.gmra.mrb[20].mxu0 %v603_v47  ;;  %2973 = vmatmul.mubr.bf16.gmra.mrb[20].mxu1 %v603_v47  ;;  %v527_v47 = vld [vmem:[%s14407_s26 + $0x5c8] sm:$0xff]  ;;  %v348_v39 = vld [vmem:[%s14407_s26 + $0x30] sm:$0xff] }
  0xf7   : > { %2210 = vmatprep.mubr.bf16.mxu0 %v611_v50  ;;  %2982 = vmatprep.mubr.bf16.mxu1 %v611_v50  ;;  %v355_v40 = vld [vmem:[%s14407_s26 + $0x68] sm:$0xff] }
  0xf8   : > { %2332 = vmatpush1.bf16.msra.mxu0 %v12861_v48  ;;  %3104 = vmatpush1.bf16.msra.mxu1 %v12864_v49  ;;  %v534_v48 = vld [vmem:[%s14407_s26 + $0x600] sm:$0xff]  ;;  %v652_v49 = vpack.c.bf16 %v519_v46, %v512_v45  ;;  %v445_v45 = vld [vmem:[%s14407_s26 + $0x338] sm:$0xff]  ;;  %v452_v46 = vld [vmem:[%s14407_s26 + $0x370] sm:$0xff] }
  0xf9   : > { %2333 = vmatprep.subr.bf16.mxu0 %v12869_v51  ;;  %3105 = vmatprep.subr.bf16.mxu1 %v12872_v52  ;;  %v660_v50 = vpack.c.bf16 %v534_v48, %v527_v47  ;;  %v526_v51 = vld [vmem:[%s14407_s26 + $0x5c0] sm:$0xff]  ;;  %v533_v52 = vld [vmem:[%s14407_s26 + $0x5f8] sm:$0xff]  ;;  %v620_v48 = vpack.c.bf16 %v452_v46, %v445_v45  ;;  %v12909_v45 = vld [vmem:[%s17856_s3 + $0xc8] sm:$0xff]  }
  0xfa   : > { %v659_v55 = vpack.c.bf16 %v533_v52, %v526_v51  ;;  %v459_v51 = vld [vmem:[%s14407_s26 + $0x3a8] sm:$0xff]  ;;  %v466_v52 = vld [vmem:[%s14407_s26 + $0x3e0] sm:$0xff] }
  0xfb   : > { %v627_v54 = vpack.c.bf16 %v466_v52, %v459_v51  ;;  %v362_v46 = vld [vmem:[%s14407_s26 + $0xa0] sm:$0xff]  ;;  %v12913_v51 = vld [vmem:[%s17856_s3 + $0xd0] sm:$0xff]  }
  0xfc   : > { %2334 = vmatpush1.bf16.msra.mxu0 %v12867_v57  ;;  %3106 = vmatpush1.bf16.msra.mxu1 %v12870_v58  ;;  %v540_v57 = vld [vmem:[%s14407_s26 + $0x630] sm:$0xff]  ;;  %v547_v58 = vld [vmem:[%s14407_s26 + $0x668] sm:$0xff] }
  0xfd   : > { %2335 = vmatprep.subr.bf16.mxu0 %v12875_v59  ;;  %3107 = vmatprep.subr.bf16.mxu1 %v12878_v60  ;;  %v555_v59 = vld [vmem:[%s14407_s26 + $0x6a8] sm:$0xff]  ;;  %v562_v60 = vld [vmem:[%s14407_s26 + $0x6e0] sm:$0xff] }
  0xfe   : > { %2211 = vmatmul.mubr.bf16.gmra.mrb[24].mxu0 %v610_v61  ;;  %2983 = vmatmul.mubr.bf16.gmra.mrb[24].mxu1 %v610_v61  ;;  %v666_v61 = vpack.c.bf16 %v547_v58, %v540_v57  ;;  %v473_v57 = vld [vmem:[%s14407_s26 + $0x418] sm:$0xff]  ;;  %v480_v58 = vld [vmem:[%s14407_s26 + $0x450] sm:$0xff] }
  0xff   : > { %2220 = vmatprep.mubr.bf16.mxu0 %v618_v0  ;;  %2992 = vmatprep.mubr.bf16.mxu1 %v618_v0  ;;  %v561_v0 = vld [vmem:[%s14407_s26 + $0x6d8] sm:$0xff] }
 0x100   : > { %2336 = vmatpush1.bf16.msra.mxu0 %v12873_v62  ;;  %3108 = vmatpush1.bf16.msra.mxu1 %v12876_v63  ;;  %v674_v62 = vpack.c.bf16 %v562_v60, %v555_v59  ;;  %v554_v63 = vld [vmem:[%s14407_s26 + $0x6a0] sm:$0xff]  ;;  %v634_v60 = vpack.c.bf16 %v480_v58, %v473_v57  ;;  %v376_v57 = vld [vmem:[%s14407_s26 + $0x110] sm:$0xff]  ;;  %v383_v58 = vld [vmem:[%s14407_s26 + $0x148] sm:$0xff] }
 0x101   : > { %2337 = vmatprep.subr.bf16.mxu0 %v12881_v1  ;;  %3109 = vmatprep.subr.bf16.mxu1 %v12884_v2  ;;  %v347_v1 = vld [vmem:[%s14407_s26 + $0x28] sm:$0xff]  ;;  %v354_v2 = vld [vmem:[%s14407_s26 + $0x60] sm:$0xff]  ;;  %v673_v3 = vpack.c.bf16 %v561_v0, %v554_v63 }
 0x102   : > { %v571_v4 = vpack.c.bf16 %v354_v2, %v347_v1  ;;  %v487_v63 = vld [vmem:[%s14407_s26 + $0x488] sm:$0xff]  ;;  %v494_v0 = vld [vmem:[%s14407_s26 + $0x4c0] sm:$0xff] }
 0x103   : > { %v641_v2 = vpack.c.bf16 %v494_v0, %v487_v63  ;;  %v586_v63 = vpack.c.bf16 %v383_v58, %v376_v57  ;;  %v12920_v0 = vld [vmem:[%s17856_s3 + $0x20] sm:$0xff]  }
 0x104   : > { %2338 = vmatpush1.bf16.msra.mxu0 %v12879_v7  ;;  %3110 = vmatpush1.bf16.msra.mxu1 %v12882_v8  ;;  %v361_v7 = vld [vmem:[%s14407_s26 + $0x98] sm:$0xff]  ;;  %v368_v8 = vld [vmem:[%s14407_s26 + $0xd0] sm:$0xff] }
 0x105   : > { %2339 = vmatprep.subr.bf16.mxu0 %v12887_v9  ;;  %3111 = vmatprep.subr.bf16.mxu1 %v12890_v10  ;;  %v570_v9 = vpack.c.bf16 %v353_v6, %v346_v5  ;;  %v12897_v10 = vld [vmem:[%s17854_s1 + $0x600] ss:$16 sps:$4 sm:$0xff]   ;;  %v501_v5 = vld [vmem:[%s14407_s26 + $0x4f8] sm:$0xff] }
 0x106   : > { %2221 = vmatmul.mubr.bf16.gmra.mrb[28].mxu0 %v617_v11  ;;  %2993 = vmatmul.mubr.bf16.gmra.mrb[28].mxu1 %v617_v11  ;;  %v12900_v11 = vld [vmem:[%s17854_s1 + $0x608] ss:$16 sps:$4 sm:$0xff]   ;;  %v508_v6 = vld [vmem:[%s14407_s26 + $0x530] sm:$0xff] }
 0x107   : > { %2230 = vmatprep.mubr.bf16.mxu0 %v625_v14  ;;  %3002 = vmatprep.mubr.bf16.mxu1 %v625_v14  ;;  %v367_v14 = vld [vmem:[%s14407_s26 + $0xc8] sm:$0xff] }
 0x108   : > { %2340 = vmatpush1.bf16.msra.mxu0 %v12885_v12  ;;  %3112 = vmatpush1.bf16.msra.mxu1 %v12888_v13  ;;  %v578_v12 = vpack.c.bf16 %v368_v8, %v361_v7  ;;  %v360_v13 = vld [vmem:[%s14407_s26 + $0x90] sm:$0xff]  ;;  %v648_v8 = vpack.c.bf16 %v508_v6, %v501_v5  ;;  %v397_v5 = vld [vmem:[%s14407_s26 + $0x1b8] sm:$0xff]  ;;  %v12924_v6 = vld [vmem:[%s17856_s3 + $0x28] sm:$0xff]  }
 0x109   : > { %2341 = vmatprep.subr.bf16.mxu0 %v12893_v15  ;;  %3113 = vmatprep.subr.bf16.mxu1 %v12896_v16  ;;  %v375_v15 = vld [vmem:[%s14407_s26 + $0x108] sm:$0xff]  ;;  %v382_v16 = vld [vmem:[%s14407_s26 + $0x140] sm:$0xff]  ;;  %v577_v17 = vpack.c.bf16 %v367_v14, %v360_v13 }
 0x10a   : > { %v585_v18 = vpack.c.bf16 %v382_v16, %v375_v15  ;;  %v12903_v15 = vld [vmem:[%s17856_s3 + $0x40] sm:$0xff]  }
 0x10b   : > { %v514_v16 = vld [vmem:[%s14407_s26 + $0x560] sm:$0xff] }
 0x10c   : > { %2342 = vmatpush1.bf16.msra.mxu0 %v12891_v21  ;;  %3114 = vmatpush1.bf16.msra.mxu1 %v12894_v22  ;;  %v389_v21 = vld [vmem:[%s14407_s26 + $0x178] sm:$0xff]  ;;  %v396_v22 = vld [vmem:[%s14407_s26 + $0x1b0] sm:$0xff] }
 0x10d   : > { %2504 = vmatprep.subr.bf16.mxu0 %v12899_v23  ;;  %3276 = vmatprep.subr.bf16.mxu1 %v12902_v24  ;;  %v584_v23 = vpack.c.bf16 %v381_v20, %v374_v19  ;;  %v592_v24 = vpack.c.bf16 %v396_v22, %v389_v21  ;;  %v536_v19 = vld [vmem:[%s14407_s26 + $0x610] sm:$0xff]  ;;  %v12905_v22 = vld [vmem:[%s17856_s3 + $0xc0] sm:$0xff]  }
 0x10e   : > { %2231 = vmatmul.mubr.bf16.gmra.mrb[32].mxu0 %v624_v25  ;;  %3003 = vmatmul.mubr.bf16.gmra.mrb[32].mxu1 %v624_v25  ;;  %v388_v25 = vld [vmem:[%s14407_s26 + $0x170] sm:$0xff] }
 0x10f   : > { %2240 = vmatprep.mubr.bf16.mxu0 %v632_v26  ;;  %3012 = vmatprep.mubr.bf16.mxu1 %v632_v26  ;;  %v395_v26 = vld [vmem:[%s14407_s26 + $0x1a8] sm:$0xff] }
 0x110   : > { %v591_v29 = vpack.c.bf16 %v395_v26, %v388_v25  ;;  %v543_v25 = vld [vmem:[%s14407_s26 + $0x648] sm:$0xff]  ;;  %v550_v26 = vld [vmem:[%s14407_s26 + $0x680] sm:$0xff] }
 0x111   : > { %v669_v28 = vpack.c.bf16 %v550_v26, %v543_v25  ;;  %v446_v26 = vld [vmem:[%s14407_s26 + $0x340] sm:$0xff] }
 0x116   : > { %2241 = vmatmul.mubr.bf16.gmra.mrb[36].mxu0 %v631_v31  ;;  %3013 = vmatmul.mubr.bf16.gmra.mrb[36].mxu1 %v631_v31  ;;  %v402_v31 = vld [vmem:[%s14407_s26 + $0x1e0] sm:$0xff] }
 0x117   : > { %2250 = vmatprep.mubr.bf16.mxu0 %v639_v32  ;;  %3022 = vmatprep.mubr.bf16.mxu1 %v639_v32  ;;  %v409_v32 = vld [vmem:[%s14407_s26 + $0x218] sm:$0xff] }
 0x118   : > { %v598_v35 = vpack.c.bf16 %v409_v32, %v402_v31  ;;  %v557_v31 = vld [vmem:[%s14407_s26 + $0x6b8] sm:$0xff]  ;;  %v564_v32 = vld [vmem:[%s14407_s26 + $0x6f0] sm:$0xff] }
 0x119   : > { %v676_v34 = vpack.c.bf16 %v564_v32, %v557_v31  ;;  %v474_v32 = vld [vmem:[%s14407_s26 + $0x420] sm:$0xff] }
 0x11e   : > { %2251 = vmatmul.mubr.bf16.gmra.mrb[40].mxu0 %v638_v37  ;;  %3023 = vmatmul.mubr.bf16.gmra.mrb[40].mxu1 %v638_v37  ;;  %v416_v37 = vld [vmem:[%s14407_s26 + $0x250] sm:$0xff] }
 0x11f   : > { %2260 = vmatprep.mubr.bf16.mxu0 %v646_v38  ;;  %3032 = vmatprep.mubr.bf16.mxu1 %v646_v38  ;;  %v423_v38 = vld [vmem:[%s14407_s26 + $0x288] sm:$0xff] }
 0x120   : > { %v605_v41 = vpack.c.bf16 %v423_v38, %v416_v37  ;;  %v14208_v38 = vmov 0  }
 0x126   : > { %2261 = vmatmul.mubr.bf16.gmra.mrb[44].mxu0 %v645_v43  ;;  %3033 = vmatmul.mubr.bf16.gmra.mrb[44].mxu1 %v645_v43  ;;  %v430_v43 = vld [vmem:[%s14407_s26 + $0x2c0] sm:$0xff] }
 0x127   : > { %2270 = vmatprep.mubr.bf16.mxu0 %v653_v44  ;;  %3042 = vmatprep.mubr.bf16.mxu1 %v653_v44  ;;  %v437_v44 = vld [vmem:[%s14407_s26 + $0x2f8] sm:$0xff] }
 0x128   : > { %v612_v47 = vpack.c.bf16 %v437_v44, %v430_v43  ;;  %v12906_v43 = vld [vmem:[%s17856_s3 + $0x80] sm:$0xff]   ;;  %v12907_v44 = vld [vmem:[%s17856_s3 + $0x48] sm:$0xff]  }
 0x12e   : > { %2271 = vmatmul.mubr.bf16.gmra.mrb[48].mxu0 %v652_v49  ;;  %3043 = vmatmul.mubr.bf16.gmra.mrb[48].mxu1 %v652_v49  ;;  %v444_v49 = vld [vmem:[%s14407_s26 + $0x330] sm:$0xff] }
 0x12f   : > { %2280 = vmatprep.mubr.bf16.mxu0 %v660_v50  ;;  %3052 = vmatprep.mubr.bf16.mxu1 %v660_v50  ;;  %v451_v50 = vld [vmem:[%s14407_s26 + $0x368] sm:$0xff] }
 0x130   : > { %v619_v53 = vpack.c.bf16 %v451_v50, %v444_v49  ;;  %v12910_v49 = vld [vmem:[%s17856_s3 + $0x88] sm:$0xff]   ;;  %v12911_v50 = vld [vmem:[%s17856_s3 + $0x50] sm:$0xff]  }
 0x136   : > { %2281 = vmatmul.mubr.bf16.gmra.mrb[52].mxu0 %v659_v55  ;;  %3053 = vmatmul.mubr.bf16.gmra.mrb[52].mxu1 %v659_v55  ;;  %v458_v55 = vld [vmem:[%s14407_s26 + $0x3a0] sm:$0xff] }
 0x137   : > { %2290 = vmatprep.mubr.bf16.mxu0 %v667_v56  ;;  %3062 = vmatprep.mubr.bf16.mxu1 %v667_v56  ;;  %v465_v56 = vld [vmem:[%s14407_s26 + $0x3d8] sm:$0xff] }
 0x138   : > { %v626_v59 = vpack.c.bf16 %v465_v56, %v458_v55  ;;  %v12915_v55 = vld [vmem:[%s17856_s3 + $0x58] sm:$0xff]  }
 0x139   : > { %v12917_v56 = vld [vmem:[%s17856_s3 + $0xd8] sm:$0xff]  }
 0x13e   : > { %2291 = vmatmul.mubr.bf16.gmra.mrb[56].mxu0 %v666_v61  ;;  %3063 = vmatmul.mubr.bf16.gmra.mrb[56].mxu1 %v666_v61  ;;  %v472_v61 = vld [vmem:[%s14407_s26 + $0x410] sm:$0xff] }
 0x13f   : > { %2300 = vmatprep.mubr.bf16.mxu0 %v674_v62  ;;  %3072 = vmatprep.mubr.bf16.mxu1 %v674_v62  ;;  %v479_v62 = vld [vmem:[%s14407_s26 + $0x448] sm:$0xff] }
 0x140   : > { %v633_v1 = vpack.c.bf16 %v479_v62, %v472_v61  ;;  %v12919_v61 = vld [vmem:[%s17856_s3 + $0x60] sm:$0xff]  }
 0x141   : > { %v12921_v62 = vld [vmem:[%s17856_s3 + $0xe0] sm:$0xff]  }
 0x146   : > { %2301 = vmatmul.mubr.bf16.gmra.mrb[60].mxu0 %v673_v3  ;;  %3073 = vmatmul.mubr.bf16.gmra.mrb[60].mxu1 %v673_v3  ;;  %v486_v3 = vld [vmem:[%s14407_s26 + $0x480] sm:$0xff] }
 0x147   : > { %2343 = vmatprep.mubr.bf16.mxu0 %v571_v4  ;;  %3115 = vmatprep.mubr.bf16.mxu1 %v571_v4  ;;  %v493_v4 = vld [vmem:[%s14407_s26 + $0x4b8] sm:$0xff] }
 0x148   : > { %v640_v7 = vpack.c.bf16 %v493_v4, %v486_v3  ;;  %v12925_v3 = vld [vmem:[%s17856_s3 + $0xe8] sm:$0xff]   ;;  %v390_v4 = vld [vmem:[%s14407_s26 + $0x180] sm:$0xff] }
 0x14e   : > { %2344 = vmatmul.mubr.bf16.vlgmr.msra.gmra.mrb[0].mxu0 %v570_v9  ;;  %3116 = vmatmul.mubr.bf16.vlgmr.msra.gmra.mrb[0].mxu1 %v570_v9  ;;  %v500_v9 = vld [vmem:[%s14407_s26 + $0x4f0] sm:$0xff] }
 0x14f   : > { %2505 = vmatpush1.bf16.msra.mxu0 %v12897_v10  ;;  %3277 = vmatpush1.bf16.msra.mxu1 %v12900_v11  ;;  %v507_v10 = vld [vmem:[%s14407_s26 + $0x528] sm:$0xff] }
 0x150   : > { %2353 = vmatprep.mubr.bf16.mxu0 %v578_v12  ;;  %3125 = vmatprep.mubr.bf16.mxu1 %v578_v12  ;;  %v515_v11 = vld [vmem:[%s14407_s26 + $0x568] sm:$0xff]  ;;  %v522_v12 = vld [vmem:[%s14407_s26 + $0x5a0] sm:$0xff]  ;;  %v647_v13 = vpack.c.bf16 %v507_v10, %v500_v9  ;;  %v12929_v9 = vld [vmem:[%s17856_s3 + $0xf0] sm:$0xff]   ;;  %v593_v10 = vpack.c.bf16 %v397_v5, %v390_v4 }
 0x151   : > { %v655_v14 = vpack.c.bf16 %v522_v12, %v515_v11  ;;  %11254 = vmatprep.subr.bf16.mxu0 %v12903_v15  ;;  %11366 = vmatprep.subr.bf16.mxu1 %v12905_v22  ;;  %v12928_v11 = vld [vmem:[%s17856_s3 + $0x30] sm:$0xff]  }
 0x152   : > { %v12930_v12 = vld [vmem:[%s17856_s3 + $0xb0] sm:$0xff]  }
 0x153   : > { %v404_v15 = vld [vmem:[%s14407_s26 + $0x1f0] sm:$0xff] }
 0x156   : > { %2354 = vmatmul.mubr.bf16.gmra.mrb[4].mxu0 %v577_v17  ;;  %3126 = vmatmul.mubr.bf16.gmra.mrb[4].mxu1 %v577_v17  ;;  %v521_v17 = vld [vmem:[%s14407_s26 + $0x598] sm:$0xff] }
 0x157   : > { %2363 = vmatprep.mubr.bf16.mxu0 %v585_v18  ;;  %3135 = vmatprep.mubr.bf16.mxu1 %v585_v18  ;;  %v529_v18 = vld [vmem:[%s14407_s26 + $0x5d8] sm:$0xff]  ;;  %v654_v20 = vpack.c.bf16 %v521_v17, %v514_v16  ;;  %v411_v16 = vld [vmem:[%s14407_s26 + $0x228] sm:$0xff] }
 0x158   : > { %v662_v21 = vpack.c.bf16 %v536_v19, %v529_v18  ;;  %v12932_v17 = vld [vmem:[%s17856_s3 + $0x38] sm:$0xff]   ;;  %v600_v19 = vpack.c.bf16 %v411_v16, %v404_v15 }
 0x159   : > { %v12934_v18 = vld [vmem:[%s17856_s3 + $0xb8] sm:$0xff]  }
 0x15e   : > { %2364 = vmatmul.mubr.bf16.gmra.mrb[8].mxu0 %v584_v23  ;;  %3136 = vmatmul.mubr.bf16.gmra.mrb[8].mxu1 %v584_v23  ;;  %v528_v23 = vld [vmem:[%s14407_s26 + $0x5d0] sm:$0xff] }
 0x15f   : > { %2373 = vmatprep.mubr.bf16.mxu0 %v592_v24  ;;  %3145 = vmatprep.mubr.bf16.mxu1 %v592_v24  ;;  %v535_v24 = vld [vmem:[%s14407_s26 + $0x608] sm:$0xff] }
 0x160   : > { %v661_v27 = vpack.c.bf16 %v535_v24, %v528_v23  ;;  %v432_v23 = vld [vmem:[%s14407_s26 + $0x2d0] sm:$0xff]  ;;  %v439_v24 = vld [vmem:[%s14407_s26 + $0x308] sm:$0xff] }
 0x161   : > { %v614_v25 = vpack.c.bf16 %v439_v24, %v432_v23 }
 0x166   : > { %2374 = vmatmul.mubr.bf16.gmra.mrb[12].mxu0 %v591_v29  ;;  %3146 = vmatmul.mubr.bf16.gmra.mrb[12].mxu1 %v591_v29  ;;  %v542_v29 = vld [vmem:[%s14407_s26 + $0x640] sm:$0xff] }
 0x167   : > { %2383 = vmatprep.mubr.bf16.mxu0 %v599_v30  ;;  %3155 = vmatprep.mubr.bf16.mxu1 %v599_v30  ;;  %v549_v30 = vld [vmem:[%s14407_s26 + $0x678] sm:$0xff] }
 0x168   : > { %v668_v33 = vpack.c.bf16 %v549_v30, %v542_v29  ;;  %v460_v29 = vld [vmem:[%s14407_s26 + $0x3b0] sm:$0xff]  ;;  %v467_v30 = vld [vmem:[%s14407_s26 + $0x3e8] sm:$0xff] }
 0x169   : > { %v628_v31 = vpack.c.bf16 %v467_v30, %v460_v29 }
 0x16e   : > { %2384 = vmatmul.mubr.bf16.gmra.mrb[16].mxu0 %v598_v35  ;;  %3156 = vmatmul.mubr.bf16.gmra.mrb[16].mxu1 %v598_v35  ;;  %v556_v35 = vld [vmem:[%s14407_s26 + $0x6b0] sm:$0xff] }
 0x16f   : > { %2393 = vmatprep.mubr.bf16.mxu0 %v606_v36  ;;  %3165 = vmatprep.mubr.bf16.mxu1 %v606_v36  ;;  %v563_v36 = vld [vmem:[%s14407_s26 + $0x6e8] sm:$0xff] }
 0x170   : > { %v675_v37 = vpack.c.bf16 %v563_v36, %v556_v35  ;;  %v488_v35 = vld [vmem:[%s14407_s26 + $0x490] sm:$0xff]  ;;  %v495_v36 = vld [vmem:[%s14407_s26 + $0x4c8] sm:$0xff] }
 0x176   : > { %2394 = vmatmul.mubr.bf16.gmra.mrb[20].mxu0 %v605_v41  ;;  %3166 = vmatmul.mubr.bf16.gmra.mrb[20].mxu1 %v605_v41  ;;  %v572_v41 = vpack.c.bf16 %v355_v40, %v348_v39  ;;  %v502_v39 = vld [vmem:[%s14407_s26 + $0x500] sm:$0xff]  ;;  %v509_v40 = vld [vmem:[%s14407_s26 + $0x538] sm:$0xff] }
 0x177   : > { %2403 = vmatprep.mubr.bf16.mxu0 %v613_v42  ;;  %3175 = vmatprep.mubr.bf16.mxu1 %v613_v42  ;;  %v12904_v42 = vld [vmem:[%s17856_s3] sm:$0xff]  }
 0x17e   : > { %2404 = vmatmul.mubr.bf16.gmra.mrb[24].mxu0 %v612_v47  ;;  %3176 = vmatmul.mubr.bf16.gmra.mrb[24].mxu1 %v612_v47  ;;  %v369_v47 = vld [vmem:[%s14407_s26 + $0xd8] sm:$0xff] }
 0x17f   : > { %2413 = vmatprep.mubr.bf16.mxu0 %v620_v48  ;;  %3185 = vmatprep.mubr.bf16.mxu1 %v620_v48  ;;  %v12908_v48 = vld [vmem:[%s17856_s3 + $0x8] sm:$0xff]   ;;  %v579_v52 = vpack.c.bf16 %v369_v47, %v362_v46  ;;  %v537_v46 = vld [vmem:[%s14407_s26 + $0x618] sm:$0xff] }
 0x186   : > { %2414 = vmatmul.mubr.bf16.gmra.mrb[28].mxu0 %v619_v53  ;;  %3186 = vmatmul.mubr.bf16.gmra.mrb[28].mxu1 %v619_v53  ;;  %v12912_v53 = vld [vmem:[%s17856_s3 + $0x10] sm:$0xff]  }
 0x187   : > { %2423 = vmatprep.mubr.bf16.mxu0 %v627_v54  ;;  %3195 = vmatprep.mubr.bf16.mxu1 %v627_v54  ;;  %v12914_v54 = vld [vmem:[%s17856_s3 + $0x90] sm:$0xff]  }
 0x18e   : > { %2424 = vmatmul.mubr.bf16.gmra.mrb[32].mxu0 %v626_v59  ;;  %3196 = vmatmul.mubr.bf16.gmra.mrb[32].mxu1 %v626_v59  ;;  %v12916_v59 = vld [vmem:[%s17856_s3 + $0x18] sm:$0xff]  }
 0x18f   : > { %2433 = vmatprep.mubr.bf16.mxu0 %v634_v60  ;;  %3205 = vmatprep.mubr.bf16.mxu1 %v634_v60  ;;  %v12918_v60 = vld [vmem:[%s17856_s3 + $0x98] sm:$0xff]  }
 0x196   : > { %2434 = vmatmul.mubr.bf16.gmra.mrb[36].mxu0 %v633_v1  ;;  %3206 = vmatmul.mubr.bf16.gmra.mrb[36].mxu1 %v633_v1  ;;  %v12922_v1 = vld [vmem:[%s17856_s3 + $0xa0] sm:$0xff]  }
 0x197   : > { %2443 = vmatprep.mubr.bf16.mxu0 %v641_v2  ;;  %3215 = vmatprep.mubr.bf16.mxu1 %v641_v2  ;;  %v12923_v2 = vld [vmem:[%s17856_s3 + $0x68] sm:$0xff]  }
 0x19e   : > { %2444 = vmatmul.mubr.bf16.gmra.mrb[40].mxu0 %v640_v7  ;;  %3216 = vmatmul.mubr.bf16.gmra.mrb[40].mxu1 %v640_v7  ;;  %v12926_v7 = vld [vmem:[%s17856_s3 + $0xa8] sm:$0xff]  }
 0x19f   : > { %2453 = vmatprep.mubr.bf16.mxu0 %v648_v8  ;;  %3225 = vmatprep.mubr.bf16.mxu1 %v648_v8  ;;  %v12927_v8 = vld [vmem:[%s17856_s3 + $0x70] sm:$0xff]  }
 0x1a6   : > { %2454 = vmatmul.mubr.bf16.gmra.mrb[44].mxu0 %v647_v13  ;;  %3226 = vmatmul.mubr.bf16.gmra.mrb[44].mxu1 %v647_v13  ;;  %v12931_v13 = vld [vmem:[%s17856_s3 + $0x78] sm:$0xff]  }
 0x1a7   : > { %2463 = vmatprep.mubr.bf16.mxu0 %v655_v14  ;;  %3235 = vmatprep.mubr.bf16.mxu1 %v655_v14  ;;  %v12933_v14 = vld [vmem:[%s17856_s3 + $0xf8] sm:$0xff]  }
 0x1ae   : > { %2464 = vmatmul.mubr.bf16.gmra.mrb[48].mxu0 %v654_v20  ;;  %3236 = vmatmul.mubr.bf16.gmra.mrb[48].mxu1 %v654_v20  ;;  %v418_v20 = vld [vmem:[%s14407_s26 + $0x260] sm:$0xff] }
 0x1af   : > { %2473 = vmatprep.mubr.bf16.mxu0 %v662_v21  ;;  %3245 = vmatprep.mubr.bf16.mxu1 %v662_v21  ;;  %v425_v21 = vld [vmem:[%s14407_s26 + $0x298] sm:$0xff] }
 0x1b0   : > { %v607_v22 = vpack.c.bf16 %v425_v21, %v418_v20 }
 0x1b6   : > { %2474 = vmatmul.mubr.bf16.gmra.mrb[52].mxu0 %v661_v27  ;;  %3246 = vmatmul.mubr.bf16.gmra.mrb[52].mxu1 %v661_v27  ;;  %v453_v27 = vld [vmem:[%s14407_s26 + $0x378] sm:$0xff] }
 0x1b7   : > { %2483 = vmatprep.mubr.bf16.mxu0 %v669_v28  ;;  %3255 = vmatprep.mubr.bf16.mxu1 %v669_v28  ;;  %v621_v28 = vpack.c.bf16 %v453_v27, %v446_v26 }
 0x1be   : > { %2484 = vmatmul.mubr.bf16.gmra.mrb[56].mxu0 %v668_v33  ;;  %3256 = vmatmul.mubr.bf16.gmra.mrb[56].mxu1 %v668_v33  ;;  %v481_v33 = vld [vmem:[%s14407_s26 + $0x458] sm:$0xff] }
 0x1bf   : > { %2493 = vmatprep.mubr.bf16.mxu0 %v676_v34  ;;  %3265 = vmatprep.mubr.bf16.mxu1 %v676_v34  ;;  %v635_v34 = vpack.c.bf16 %v481_v33, %v474_v32  ;;  %v12935_v33 = vld [vmem:[%s17858_s5] ss:$16 sps:$4 sm:$0xff]  }
 0x1c6   : > { %2494 = vmatmul.mubr.bf16.gmra.mrb[60].mxu0 %v675_v37  ;;  %3266 = vmatmul.mubr.bf16.gmra.mrb[60].mxu1 %v675_v37  ;;  %v642_v37 = vpack.c.bf16 %v495_v36, %v488_v35 }
 0x1c7   : > { %2536 = vmatprep.mubr.bf16.mxu0 %v14208_v38  ;;  %3308 = vmatprep.mubr.bf16.mxu1 %v14208_v38 }
 0x1ce   : > { %10451 = vmatmul.mubr.msk.bf16.vlgmr.msra.gmra.mrb[0].mxu0 %vm1876_vm0, %v572_v41  ;;  %10467 = vmatmul.mubr.msk.bf16.vlgmr.msra.gmra.mrb[0].mxu1 %vm1876_vm0, %v572_v41  ;;  %v649_v41 = vpack.c.bf16 %v509_v40, %v502_v39  ;;  %v12940_v40 = vld [vmem:[%s17858_s5 + $0x24] ss:$16 sps:$4 sm:$0xff]  }
 0x1cf   : > { %2546 = vmatprep.mubr.bf16.mxu0 %v14208_v38  ;;  %3318 = vmatprep.mubr.bf16.mxu1 %v14208_v38 }
 0x1d0   : > { %11255 = vmatpush3.bf16.msra.mxu0 %v12904_v42  ;;  %11367 = vmatpush3.bf16.msra.mxu1 %v12906_v43  ;;  %v516_v42 = vld [vmem:[%s14407_s26 + $0x570] sm:$0xff]  ;;  %v523_v43 = vld [vmem:[%s14407_s26 + $0x5a8] sm:$0xff] }
 0x1d1   : > { %11256 = vmatprep.subr.bf16.mxu0 %v12907_v44  ;;  %11368 = vmatprep.subr.bf16.mxu1 %v12909_v45  ;;  %v656_v44 = vpack.c.bf16 %v523_v43, %v516_v42  ;;  %v530_v45 = vld [vmem:[%s14407_s26 + $0x5e0] sm:$0xff] }
 0x1d2   : > { %v663_v47 = vpack.c.bf16 %v537_v46, %v530_v45 }
 0x1d4   : > { %11257 = vmatpush3.bf16.msra.mxu0 %v12908_v48  ;;  %11369 = vmatpush3.bf16.msra.mxu1 %v12910_v49  ;;  %v544_v48 = vld [vmem:[%s14407_s26 + $0x650] sm:$0xff]  ;;  %v551_v49 = vld [vmem:[%s14407_s26 + $0x688] sm:$0xff] }
 0x1d5   : > { %11258 = vmatprep.subr.bf16.mxu0 %v12911_v50  ;;  %11370 = vmatprep.subr.bf16.mxu1 %v12913_v51  ;;  %v670_v50 = vpack.c.bf16 %v551_v49, %v544_v48  ;;  %v558_v51 = vld [vmem:[%s14407_s26 + $0x6c0] sm:$0xff] }
 0x1d6   : > { %10452 = vmatmul.mubr.msk.bf16.gmra.mrb[4].mxu0 %vm1876_vm0, %v579_v52  ;;  %10468 = vmatmul.mubr.msk.bf16.gmra.mrb[4].mxu1 %vm1876_vm0, %v579_v52  ;;  %v565_v52 = vld [vmem:[%s14407_s26 + $0x6f8] sm:$0xff] }
 0x1d7   : > { %2556 = vmatprep.mubr.bf16.mxu0 %v14208_v38  ;;  %3328 = vmatprep.mubr.bf16.mxu1 %v14208_v38 }
 0x1d8   : > { %11259 = vmatpush3.bf16.msra.mxu0 %v12912_v53  ;;  %11371 = vmatpush3.bf16.msra.mxu1 %v12914_v54  ;;  %v677_v53 = vpack.c.bf16 %v565_v52, %v558_v51  ;;  %v12937_v54 = vld [vmem:[%s17858_s5 + $0x4] ss:$16 sps:$4 sm:$0xff]   ;;  %v12938_v52 = vld [vmem:[%s17858_s5 + $0x20] ss:$16 sps:$4 sm:$0xff]  }
 0x1d9   : > { %11260 = vmatprep.subr.bf16.mxu0 %v12915_v55  ;;  %11372 = vmatprep.subr.bf16.mxu1 %v12917_v56  ;;  %v876_v55 = vlaneseq }
 0x1db   : > { %v15252_v56 = vshrl.u32 %v876_v55, 7 }
 0x1dc   : > { %11261 = vmatpush3.bf16.msra.mxu0 %v12916_v59  ;;  %11373 = vmatpush3.bf16.msra.mxu1 %v12918_v60  ;;  %v874_v59 = vld [vmem:[%s17855_s2] sm:$0xf] }
 0x1dd   : > { %11262 = vmatprep.subr.bf16.mxu0 %v12919_v61  ;;  %11374 = vmatprep.subr.bf16.mxu1 %v12921_v62  ;;  %17937 = vst [vmem:[#allocation2_spill] sm:$0xff] %v15252_v56  ;;  %v15255_v57 = vsub.s32 0, %v15252_v56  ;;  %v15258_v58 = vsub.s32 2, %v15252_v56  ;;  %v15264_v60 = vsub.s32 1, %v15252_v56  ;;  %v15267_v61 = vsub.s32 3, %v15252_v56 }
 0x1de   : > { %10453 = vmatmul.mubr.msk.bf16.gmra.mrb[8].mxu0 %vm1876_vm0, %v586_v63  ;;  %10469 = vmatmul.mubr.msk.bf16.gmra.mrb[8].mxu1 %vm1876_vm0, %v586_v63 }
 0x1df   : > { %2566 = vmatprep.mubr.bf16.mxu0 %v14208_v38  ;;  %3338 = vmatprep.mubr.bf16.mxu1 %v14208_v38  ;;  %17938 = vst [vmem:[#allocation3_spill] sm:$0xff] %v15255_v57  ;;  %17939 = vst [vmem:[#allocation4_spill] sm:$0xff] %v15258_v58  ;;  %v15270_v62 = vrot.slane %v874_v59, %v15255_v57  ;;  %v15273_v63 = vrot.slane %v874_v59, %v15258_v58 }
 0x1e0   : > { %11263 = vmatpush3.bf16.msra.mxu0 %v12920_v0  ;;  %11375 = vmatpush3.bf16.msra.mxu1 %v12922_v1  ;;  %17940 = vst [vmem:[#allocation5_spill] sm:$0xff] %v15264_v60  ;;  %17941 = vst [vmem:[#allocation6_spill] sm:$0xff] %v15267_v61  ;;  %v15276_v0 = vrot.slane %v874_v59, %v15264_v60  ;;  %v15279_v1 = vrot.slane %v874_v59, %v15267_v61 }
 0x1e1   : > { %11264 = vmatprep.subr.bf16.mxu0 %v12923_v2  ;;  %11376 = vmatprep.subr.bf16.mxu1 %v12925_v3 }
 0x1e4   : > { %11265 = vmatpush3.bf16.msra.mxu0 %v12924_v6  ;;  %11377 = vmatpush3.bf16.msra.mxu1 %v12926_v7 }
 0x1e5   : > { %11266 = vmatprep.subr.bf16.mxu0 %v12927_v8  ;;  %11378 = vmatprep.subr.bf16.mxu1 %v12929_v9 }
 0x1e6   : > { %10454 = vmatmul.mubr.msk.bf16.gmra.mrb[12].mxu0 %vm1876_vm0, %v593_v10  ;;  %10470 = vmatmul.mubr.msk.bf16.gmra.mrb[12].mxu1 %vm1876_vm0, %v593_v10 }
 0x1e7   : > { %2576 = vmatprep.mubr.bf16.mxu0 %v14208_v38  ;;  %3348 = vmatprep.mubr.bf16.mxu1 %v14208_v38 }
 0x1e8   : > { %11267 = vmatpush3.bf16.msra.mxu0 %v12928_v11  ;;  %11379 = vmatpush3.bf16.msra.mxu1 %v12930_v12 }
 0x1e9   : > { %11268 = vmatprep.subr.bf16.mxu0 %v12931_v13  ;;  %11380 = vmatprep.subr.bf16.mxu1 %v12933_v14 }
 0x1ec   : > { %11269 = vmatpush3.bf16.msra.mxu0 %v12932_v17  ;;  %11381 = vmatpush3.bf16.msra.mxu1 %v12934_v18 }
 0x1ed   : > { %4508 = vmatprep.subr.bf16.mxu0 %v12937_v54  ;;  %v12959_v54 = vld [vmem:[%s17858_s5 + $0x28] ss:$16 sps:$4 sm:$0xff]  }
 0x1ee   : > { %10455 = vmatmul.mubr.msk.bf16.gmra.mrb[16].mxu0 %vm1876_vm0, %v600_v19  ;;  %10471 = vmatmul.mubr.msk.bf16.gmra.mrb[16].mxu1 %vm1876_vm0, %v600_v19 }
 0x1ef   : > { %2586 = vmatprep.mubr.bf16.mxu0 %v14208_v38  ;;  %3358 = vmatprep.mubr.bf16.mxu1 %v14208_v38 }
 0x1f6   : > { %10456 = vmatmul.mubr.msk.bf16.gmra.mrb[20].mxu0 %vm1876_vm0, %v607_v22  ;;  %10472 = vmatmul.mubr.msk.bf16.gmra.mrb[20].mxu1 %vm1876_vm0, %v607_v22 }
 0x1f7   : > { %2596 = vmatprep.mubr.bf16.mxu0 %v14208_v38  ;;  %3368 = vmatprep.mubr.bf16.mxu1 %v14208_v38 }
 0x1fe   : > { %10457 = vmatmul.mubr.msk.bf16.gmra.mrb[24].mxu0 %vm1876_vm0, %v614_v25  ;;  %10473 = vmatmul.mubr.msk.bf16.gmra.mrb[24].mxu1 %vm1876_vm0, %v614_v25 }
 0x1ff   : > { %2606 = vmatprep.mubr.bf16.mxu0 %v14208_v38  ;;  %3378 = vmatprep.mubr.bf16.mxu1 %v14208_v38 }
 0x206   : > { %10458 = vmatmul.mubr.msk.bf16.gmra.mrb[28].mxu0 %vm1876_vm0, %v621_v28  ;;  %10474 = vmatmul.mubr.msk.bf16.gmra.mrb[28].mxu1 %vm1876_vm0, %v621_v28  ;;  %v12955_v28 = vld [vmem:[%s17858_s5 + $0xc] ss:$16 sps:$4 sm:$0xff]  }
 0x207   : > { %2616 = vmatprep.mubr.bf16.mxu0 %v14208_v38  ;;  %3388 = vmatprep.mubr.bf16.mxu1 %v14208_v38 }
 0x208   : > { %4701 = vmatprep.subr.bf16.mxu1 %v12955_v28 }
 0x20e   : > { %10459 = vmatmul.mubr.msk.bf16.gmra.mrb[32].mxu0 %vm1876_vm0, %v628_v31  ;;  %10475 = vmatmul.mubr.msk.bf16.gmra.mrb[32].mxu1 %vm1876_vm0, %v628_v31 }
 0x20f   : > { %2626 = vmatprep.mubr.bf16.mxu0 %v14208_v38  ;;  %3398 = vmatprep.mubr.bf16.mxu1 %v14208_v38 }
 0x216   : > { %10460 = vmatmul.mubr.msk.bf16.gmra.mrb[36].mxu0 %vm1876_vm0, %v635_v34  ;;  %10476 = vmatmul.mubr.msk.bf16.gmra.mrb[36].mxu1 %vm1876_vm0, %v635_v34  ;;  %v12953_v34 = vld [vmem:[%s17858_s5 + $0x8] ss:$16 sps:$4 sm:$0xff]  }
 0x217   : > { %2636 = vmatprep.mubr.bf16.mxu0 %v14208_v38  ;;  %3408 = vmatprep.mubr.bf16.mxu1 %v14208_v38 }
 0x21e   : > { %10461 = vmatmul.mubr.msk.bf16.gmra.mrb[40].mxu0 %vm1876_vm0, %v642_v37  ;;  %10477 = vmatmul.mubr.msk.bf16.gmra.mrb[40].mxu1 %vm1876_vm0, %v642_v37 }
 0x21f   : > { %2646 = vmatprep.mubr.bf16.mxu0 %v14208_v38  ;;  %3418 = vmatprep.mubr.bf16.mxu1 %v14208_v38 }
 0x226   : > { %10462 = vmatmul.mubr.msk.bf16.gmra.mrb[44].mxu0 %vm1876_vm0, %v649_v41  ;;  %10478 = vmatmul.mubr.msk.bf16.gmra.mrb[44].mxu1 %vm1876_vm0, %v649_v41  ;;  %v12961_v41 = vld [vmem:[%s17858_s5 + $0x2c] ss:$16 sps:$4 sm:$0xff]  }
 0x227   : > { %2656 = vmatprep.mubr.bf16.mxu0 %v14208_v38  ;;  %3428 = vmatprep.mubr.bf16.mxu1 %v14208_v38 }
 0x22e   : > { %10463 = vmatmul.mubr.msk.bf16.gmra.mrb[48].mxu0 %vm1876_vm0, %v656_v44  ;;  %10479 = vmatmul.mubr.msk.bf16.gmra.mrb[48].mxu1 %vm1876_vm0, %v656_v44 }
 0x22f   : > { %2666 = vmatprep.mubr.bf16.mxu0 %v14208_v38  ;;  %3438 = vmatprep.mubr.bf16.mxu1 %v14208_v38 }
 0x236   : > { %10464 = vmatmul.mubr.msk.bf16.gmra.mrb[52].mxu0 %vm1876_vm0, %v663_v47  ;;  %10480 = vmatmul.mubr.msk.bf16.gmra.mrb[52].mxu1 %vm1876_vm0, %v663_v47 }
 0x237   : > { %2676 = vmatprep.mubr.bf16.mxu0 %v14208_v38  ;;  %3448 = vmatprep.mubr.bf16.mxu1 %v14208_v38 }
 0x23e   : > { %10465 = vmatmul.mubr.msk.bf16.gmra.mrb[56].mxu0 %vm1876_vm0, %v670_v50  ;;  %10481 = vmatmul.mubr.msk.bf16.gmra.mrb[56].mxu1 %vm1876_vm0, %v670_v50 }
 0x23f   : > { %2686 = vmatprep.mubr.bf16.mxu0 %v14208_v38  ;;  %3458 = vmatprep.mubr.bf16.mxu1 %v14208_v38 }
 0x246   : > { %10466 = vmatmul.mubr.msk.bf16.gmra.mrb[60].mxu0 %vm1876_vm0, %v677_v53  ;;  %10482 = vmatmul.mubr.msk.bf16.gmra.mrb[60].mxu1 %vm1876_vm0, %v677_v53  ;;  %v12943_v53 = vld [vmem:[%s17858_s5 + $0x44] ss:$16 sps:$4 sm:$0xff]  }
 0x2a1   : > { %v2538_v2 = vpop.f32.mrb[0].mxu0  ;;  %v3310_v3 = vpop.f32.mrb[0].mxu1 }
 0x2a2   : > { %v11702_v4 = vadd.f32 %v2538_v2, %v15270_v62  ;;  %v11766_v5 = vadd.f32 %v3310_v3, %v15273_v63  ;;  %v2540_v6 = vpop.f32.mrb[1].mxu0  ;;  %v3312_v7 = vpop.f32.mrb[1].mxu1 }
 0x2a3   : > { %v11703_v8 = vadd.f32 %v2540_v6, %v15276_v0  ;;  %v11767_v9 = vadd.f32 %v3312_v7, %v15279_v1  ;;  %v2542_v10 = vpop.f32.mrb[2].mxu0  ;;  %v3314_v11 = vpop.f32.mrb[2].mxu1 }
 0x2a4   : > { %v11704_v12 = vadd.f32 %v2542_v10, %v15270_v62  ;;  %v11768_v13 = vadd.f32 %v3314_v11, %v15273_v63  ;;  %v2544_v14 = vpop.f32.mrb[3].mxu0  ;;  %v3316_v15 = vpop.f32.mrb[3].mxu1  ;;  %v3469_v18 = vmax.f32 %v11702_v4, 0.0  ;;  %v3471_v19 = vmax.f32 %v11766_v5, 0.0  ;;  %v12964_v4 = vld [vmem:[%s17858_s5 + $0x4c] ss:$16 sps:$4 sm:$0xff]  }
 0x2a5   : > { %v11705_v16 = vadd.f32 %v2544_v14, %v15276_v0  ;;  %v11769_v17 = vadd.f32 %v3316_v15, %v15279_v1  ;;  %v3472_v22 = vmax.f32 %v11767_v9, 0.0  ;;  %v3470_v24 = vmax.f32 %v11703_v8, 0.0  ;;  %v12941_v15 = vld [vmem:[%s17858_s5 + $0x40] ss:$16 sps:$4 sm:$0xff]  }
 0x2a6   : > { %v3473_v20 = vmax.f32 %v11704_v12, 0.0  ;;  %v3475_v21 = vmax.f32 %v11768_v13, 0.0 }
 0x2a7   : > { %v3476_v23 = vmax.f32 %v11769_v17, 0.0  ;;  %v3474_v25 = vmax.f32 %v11705_v16, 0.0  ;;  %v12962_v16 = vld [vmem:[%s17858_s5 + $0x48] ss:$16 sps:$4 sm:$0xff]  }
 0x2a8   : > { %v3597_v26 = vpack.c.bf16 %v3473_v20, %v3469_v18  ;;  %v3599_v27 = vpack.c.bf16 %v3475_v21, %v3471_v19  ;;  %v12946_v21 = vld [vmem:[%s17858_s5 + $0x64] ss:$16 sps:$4 sm:$0xff]  }
 0x2a9   : > { %v2548_v29 = vpop.f32.mrb[4].mxu0  ;;  %v3320_v30 = vpop.f32.mrb[4].mxu1  ;;  %v3598_v31 = vpack.c.bf16 %v3474_v25, %v3470_v24  ;;  %v3600_v32 = vpack.c.bf16 %v3476_v23, %v3472_v22  ;;  %v12967_v22 = vld [vmem:[%s17858_s5 + $0x6c] ss:$16 sps:$4 sm:$0xff]  }
 0x2aa   : > { %v11706_v35 = vadd.f32 %v2548_v29, %v15270_v62  ;;  %v11770_v36 = vadd.f32 %v3320_v30, %v15273_v63  ;;  %v2550_v37 = vpop.f32.mrb[5].mxu0  ;;  %v3322_v39 = vpop.f32.mrb[5].mxu1 }
 0x2ab   : > { %v11707_v42 = vadd.f32 %v2550_v37, %v15276_v0  ;;  %v11771_v43 = vadd.f32 %v3322_v39, %v15279_v1  ;;  %v2552_v44 = vpop.f32.mrb[6].mxu0  ;;  %v3324_v45 = vpop.f32.mrb[6].mxu1  ;;  %3956 = vmatprep.mubr.bf16.mxu0 %v3598_v31  ;;  %4117 = vmatprep.mubr.bf16.mxu1 %v3600_v32 }
 0x2ac   : > { %v11708_v46 = vadd.f32 %v2552_v44, %v15270_v62  ;;  %v11772_v47 = vadd.f32 %v3324_v45, %v15273_v63  ;;  %v2554_v48 = vpop.f32.mrb[7].mxu0  ;;  %v3326_v49 = vpop.f32.mrb[7].mxu1  ;;  %3957 = vmatmul.mubr.bf16.vlgmr.msra.gmra.mrb[64].mxu0 %v3597_v26  ;;  %4118 = vmatmul.mubr.bf16.vlgmr.msra.gmra.mrb[64].mxu1 %v3599_v27  ;;  %v3479_v55 = vmax.f32 %v11770_v36, 0.0  ;;  %v3477_v2 = vmax.f32 %v11706_v35, 0.0  ;;  %v12965_v35 = vld [vmem:[%s17858_s5 + $0x68] ss:$16 sps:$4 sm:$0xff]  }
 0x2ad   : > { %v11709_v50 = vadd.f32 %v2554_v48, %v15276_v0  ;;  %v11773_v51 = vadd.f32 %v3326_v49, %v15279_v1  ;;  %4509 = vmatpush1.bf16.msra.mxu0 %v12935_v33  ;;  %4702 = vmatpush1.bf16.msra.mxu1 %v12953_v34  ;;  %v3480_v5 = vmax.f32 %v11771_v43, 0.0  ;;  %v3478_v7 = vmax.f32 %v11707_v42, 0.0  ;;  %v12944_v33 = vld [vmem:[%s17858_s5 + $0x60] ss:$16 sps:$4 sm:$0xff]   ;;  %v12949_v34 = vld [vmem:[%s17858_s5 + $0x84] ss:$16 sps:$4 sm:$0xff]  }
 0x2ae   : > { %v3483_v59 = vmax.f32 %v11772_v47, 0.0  ;;  %v3481_v3 = vmax.f32 %v11708_v46, 0.0  ;;  %4510 = vmatprep.subr.bf16.mxu0 %v12940_v40  ;;  %4703 = vmatprep.subr.bf16.mxu1 %v12961_v41  ;;  %v12973_v41 = vld [vmem:[%s17858_s5 + $0x8c] ss:$16 sps:$4 sm:$0xff]  }
 0x2af   : > { %v3484_v6 = vmax.f32 %v11773_v51, 0.0  ;;  %v3482_v8 = vmax.f32 %v11709_v50, 0.0 }
 0x2b0   : > { %v3601_v9 = vpack.c.bf16 %v3481_v3, %v3477_v2  ;;  %v3603_v10 = vpack.c.bf16 %v3483_v59, %v3479_v55  ;;  %v12952_v3 = vld [vmem:[%s17858_s5 + $0xa4] ss:$16 sps:$4 sm:$0xff]  }
 0x2b1   : > { %v2558_v11 = vpop.f32.mrb[8].mxu0  ;;  %v3330_v12 = vpop.f32.mrb[8].mxu1  ;;  %v3602_v13 = vpack.c.bf16 %v3482_v8, %v3478_v7  ;;  %v3604_v14 = vpack.c.bf16 %v3484_v6, %v3480_v5  ;;  %4511 = vmatpush1.bf16.msra.mxu0 %v12938_v52  ;;  %4704 = vmatpush1.bf16.msra.mxu1 %v12959_v54  ;;  %v12947_v52 = vld [vmem:[%s17858_s5 + $0x80] ss:$16 sps:$4 sm:$0xff]  }
 0x2b2   : > { %v11710_v17 = vadd.f32 %v2558_v11, %v15270_v62  ;;  %v11774_v18 = vadd.f32 %v3330_v12, %v15273_v63  ;;  %v2560_v19 = vpop.f32.mrb[9].mxu0  ;;  %v3332_v20 = vpop.f32.mrb[9].mxu1  ;;  %4512 = vmatprep.subr.bf16.mxu0 %v12943_v53  ;;  %4705 = vmatprep.subr.bf16.mxu1 %v12964_v4  ;;  %v12971_v53 = vld [vmem:[%s17858_s5 + $0x88] ss:$16 sps:$4 sm:$0xff]  }
 0x2b3   : > { %v11711_v23 = vadd.f32 %v2560_v19, %v15276_v0  ;;  %v11775_v24 = vadd.f32 %v3332_v20, %v15279_v1  ;;  %v2562_v25 = vpop.f32.mrb[10].mxu0  ;;  %v3334_v26 = vpop.f32.mrb[10].mxu1  ;;  %3964 = vmatprep.mubr.bf16.mxu0 %v3602_v13  ;;  %4125 = vmatprep.mubr.bf16.mxu1 %v3604_v14  ;;  %v12950_v14 = vld [vmem:[%s17858_s5 + $0xa0] ss:$16 sps:$4 sm:$0xff]   ;;  %v12958_v19 = vld [vmem:[%s17858_s5 + $0xc4] ss:$16 sps:$4 sm:$0xff]  }
 0x2b4   : > { %v11712_v27 = vadd.f32 %v2562_v25, %v15270_v62  ;;  %v11776_v28 = vadd.f32 %v3334_v26, %v15273_v63  ;;  %v2564_v29 = vpop.f32.mrb[11].mxu0  ;;  %v3336_v30 = vpop.f32.mrb[11].mxu1  ;;  %3965 = vmatmul.mubr.bf16.gmra.mrb[68].mxu0 %v3601_v9  ;;  %4126 = vmatmul.mubr.bf16.gmra.mrb[68].mxu1 %v3603_v10  ;;  %v3487_v36 = vmax.f32 %v11774_v18, 0.0  ;;  %v3485_v39 = vmax.f32 %v11710_v17, 0.0 }
 0x2b5   : > { %v11713_v31 = vadd.f32 %v2564_v29, %v15276_v0  ;;  %v11777_v32 = vadd.f32 %v3336_v30, %v15279_v1  ;;  %4513 = vmatpush1.bf16.msra.mxu0 %v12941_v15  ;;  %4706 = vmatpush1.bf16.msra.mxu1 %v12962_v16  ;;  %v3488_v42 = vmax.f32 %v11775_v24, 0.0  ;;  %v3486_v44 = vmax.f32 %v11711_v23, 0.0  ;;  %v12956_v30 = vld [vmem:[%s17858_s5 + $0xc0] ss:$16 sps:$4 sm:$0xff]  }
 0x2b6   : > { %v3491_v37 = vmax.f32 %v11776_v28, 0.0  ;;  %v3489_v40 = vmax.f32 %v11712_v27, 0.0  ;;  %4514 = vmatprep.subr.bf16.mxu0 %v12946_v21  ;;  %4707 = vmatprep.subr.bf16.mxu1 %v12967_v22 }
 0x2b7   : > { %v3492_v43 = vmax.f32 %v11777_v32, 0.0  ;;  %v3490_v45 = vmax.f32 %v11713_v31, 0.0 }
 0x2b8   : > { %v3605_v46 = vpack.c.bf16 %v3489_v40, %v3485_v39  ;;  %v3607_v47 = vpack.c.bf16 %v3491_v37, %v3487_v36 }
 0x2b9   : > { %v2568_v48 = vpop.f32.mrb[12].mxu0  ;;  %v3340_v49 = vpop.f32.mrb[12].mxu1  ;;  %v3606_v50 = vpack.c.bf16 %v3490_v45, %v3486_v44  ;;  %v3608_v51 = vpack.c.bf16 %v3492_v43, %v3488_v42  ;;  %4515 = vmatpush1.bf16.msra.mxu0 %v12944_v33  ;;  %4708 = vmatpush1.bf16.msra.mxu1 %v12965_v35  ;;  %v12970_v35 = vld [vmem:[%s17858_s5 + $0xe4] ss:$16 sps:$4 sm:$0xff]  }
 0x2ba   : > { %v11714_v54 = vadd.f32 %v2568_v48, %v15270_v62  ;;  %v11778_v55 = vadd.f32 %v3340_v49, %v15273_v63  ;;  %v2570_v59 = vpop.f32.mrb[13].mxu0  ;;  %v3342_v2 = vpop.f32.mrb[13].mxu1  ;;  %4516 = vmatprep.subr.bf16.mxu0 %v12949_v34  ;;  %4709 = vmatprep.subr.bf16.mxu1 %v12973_v41 }
 0x2bb   : > { %v11715_v4 = vadd.f32 %v2570_v59, %v15276_v0  ;;  %v11779_v5 = vadd.f32 %v3342_v2, %v15279_v1  ;;  %v2572_v6 = vpop.f32.mrb[14].mxu0  ;;  %v3344_v7 = vpop.f32.mrb[14].mxu1  ;;  %3972 = vmatprep.mubr.bf16.mxu0 %v3606_v50  ;;  %4133 = vmatprep.mubr.bf16.mxu1 %v3608_v51 }
 0x2bc   : > { %v11716_v8 = vadd.f32 %v2572_v6, %v15270_v62  ;;  %v11780_v9 = vadd.f32 %v3344_v7, %v15273_v63  ;;  %v2574_v10 = vpop.f32.mrb[15].mxu0  ;;  %v3346_v11 = vpop.f32.mrb[15].mxu1  ;;  %3973 = vmatmul.mubr.bf16.gmra.mrb[72].mxu0 %v3605_v46  ;;  %4134 = vmatmul.mubr.bf16.gmra.mrb[72].mxu1 %v3607_v47  ;;  %v3495_v15 = vmax.f32 %v11778_v55, 0.0  ;;  %v3493_v17 = vmax.f32 %v11714_v54, 0.0  ;;  %v12968_v47 = vld [vmem:[%s17858_s5 + $0xe0] ss:$16 sps:$4 sm:$0xff]  }
 0x2bd   : > { %v11717_v12 = vadd.f32 %v2574_v10, %v15276_v0  ;;  %v11781_v13 = vadd.f32 %v3346_v11, %v15279_v1  ;;  %4517 = vmatpush1.bf16.msra.mxu0 %v12947_v52  ;;  %4710 = vmatpush1.bf16.msra.mxu1 %v12971_v53  ;;  %v3496_v20 = vmax.f32 %v11779_v5, 0.0  ;;  %v3494_v22 = vmax.f32 %v11715_v4, 0.0 }
 0x2be   : > { %v3499_v16 = vmax.f32 %v11780_v9, 0.0  ;;  %v3497_v18 = vmax.f32 %v11716_v8, 0.0  ;;  %4518 = vmatprep.subr.bf16.mxu0 %v12952_v3 }
 0x2bf   : > { %v3500_v21 = vmax.f32 %v11781_v13, 0.0  ;;  %v3498_v23 = vmax.f32 %v11717_v12, 0.0 }
 0x2c0   : > { %v3609_v24 = vpack.c.bf16 %v3497_v18, %v3493_v17  ;;  %v3611_v25 = vpack.c.bf16 %v3499_v16, %v3495_v15 }
 0x2c1   : > { %v2578_v26 = vpop.f32.mrb[16].mxu0  ;;  %v3350_v27 = vpop.f32.mrb[16].mxu1  ;;  %v3610_v28 = vpack.c.bf16 %v3498_v23, %v3494_v22  ;;  %v3612_v29 = vpack.c.bf16 %v3500_v21, %v3496_v20  ;;  %4519 = vmatpush1.bf16.msra.mxu0 %v12950_v14 }
 0x2c2   : > { %v11718_v31 = vadd.f32 %v2578_v26, %v15270_v62  ;;  %v11782_v32 = vadd.f32 %v3350_v27, %v15273_v63  ;;  %v2580_v33 = vpop.f32.mrb[17].mxu0  ;;  %v3352_v34 = vpop.f32.mrb[17].mxu1  ;;  %4520 = vmatprep.subr.bf16.mxu0 %v12958_v19 }
 0x2c3   : > { %v11719_v36 = vadd.f32 %v2580_v33, %v15276_v0  ;;  %v11783_v37 = vadd.f32 %v3352_v34, %v15279_v1  ;;  %v2582_v39 = vpop.f32.mrb[18].mxu0  ;;  %v3354_v40 = vpop.f32.mrb[18].mxu1  ;;  %3980 = vmatprep.mubr.bf16.mxu0 %v3610_v28  ;;  %4141 = vmatprep.mubr.bf16.mxu1 %v3612_v29 }
 0x2c4   : > { %v11720_v41 = vadd.f32 %v2582_v39, %v15270_v62  ;;  %v11784_v42 = vadd.f32 %v3354_v40, %v15273_v63  ;;  %v2584_v43 = vpop.f32.mrb[19].mxu0  ;;  %v3356_v44 = vpop.f32.mrb[19].mxu1  ;;  %3981 = vmatmul.mubr.bf16.gmra.mrb[76].mxu0 %v3609_v24  ;;  %4142 = vmatmul.mubr.bf16.gmra.mrb[76].mxu1 %v3611_v25  ;;  %v3503_v48 = vmax.f32 %v11782_v32, 0.0  ;;  %v3501_v50 = vmax.f32 %v11718_v31, 0.0 }
 0x2c5   : > { %v11721_v45 = vadd.f32 %v2584_v43, %v15276_v0  ;;  %v11785_v46 = vadd.f32 %v3356_v44, %v15279_v1  ;;  %4521 = vmatpush1.bf16.msra.mxu0 %v12956_v30  ;;  %v3504_v52 = vmax.f32 %v11783_v37, 0.0  ;;  %v3502_v54 = vmax.f32 %v11719_v36, 0.0 }
 0x2c6   : > { %v3507_v49 = vmax.f32 %v11784_v42, 0.0  ;;  %v3505_v51 = vmax.f32 %v11720_v41, 0.0  ;;  %4522 = vmatprep.subr.bf16.mxu0 %v12970_v35 }
 0x2c7   : > { %v3508_v53 = vmax.f32 %v11785_v46, 0.0  ;;  %v3506_v55 = vmax.f32 %v11721_v45, 0.0 }
 0x2c8   : > { %v3613_v59 = vpack.c.bf16 %v3505_v51, %v3501_v50  ;;  %v3615_v2 = vpack.c.bf16 %v3507_v49, %v3503_v48 }
 0x2c9   : > { %v2588_v3 = vpop.f32.mrb[20].mxu0  ;;  %v3360_v4 = vpop.f32.mrb[20].mxu1  ;;  %v3614_v5 = vpack.c.bf16 %v3506_v55, %v3502_v54  ;;  %v3616_v6 = vpack.c.bf16 %v3508_v53, %v3504_v52  ;;  %4523 = vmatpush1.bf16.msra.mxu0 %v12968_v47 }
 0x2ca   : > { %v11722_v7 = vadd.f32 %v2588_v3, %v15270_v62  ;;  %v11786_v8 = vadd.f32 %v3360_v4, %v15273_v63  ;;  %v2590_v9 = vpop.f32.mrb[21].mxu0  ;;  %v3362_v10 = vpop.f32.mrb[21].mxu1 }
 0x2cb   : > { %v11723_v11 = vadd.f32 %v2590_v9, %v15276_v0  ;;  %v11787_v12 = vadd.f32 %v3362_v10, %v15279_v1  ;;  %v2592_v13 = vpop.f32.mrb[22].mxu0  ;;  %v3364_v14 = vpop.f32.mrb[22].mxu1  ;;  %3988 = vmatprep.mubr.bf16.mxu0 %v3614_v5  ;;  %4149 = vmatprep.mubr.bf16.mxu1 %v3616_v6 }
 0x2cc   : > { %v11724_v15 = vadd.f32 %v2592_v13, %v15270_v62  ;;  %v11788_v16 = vadd.f32 %v3364_v14, %v15273_v63  ;;  %v2594_v17 = vpop.f32.mrb[23].mxu0  ;;  %v3366_v18 = vpop.f32.mrb[23].mxu1  ;;  %3989 = vmatmul.mubr.bf16.gmra.mrb[80].mxu0 %v3613_v59  ;;  %4150 = vmatmul.mubr.bf16.gmra.mrb[80].mxu1 %v3615_v2  ;;  %v3511_v21 = vmax.f32 %v11786_v8, 0.0  ;;  %v3509_v23 = vmax.f32 %v11722_v7, 0.0 }
 0x2cd   : > { %v11725_v19 = vadd.f32 %v2594_v17, %v15276_v0  ;;  %v11789_v20 = vadd.f32 %v3366_v18, %v15279_v1  ;;  %v3512_v25 = vmax.f32 %v11787_v12, 0.0  ;;  %v3510_v27 = vmax.f32 %v11723_v11, 0.0 }
 0x2ce   : > { %v3515_v22 = vmax.f32 %v11788_v16, 0.0  ;;  %v3513_v24 = vmax.f32 %v11724_v15, 0.0 }
 0x2cf   : > { %v3516_v26 = vmax.f32 %v11789_v20, 0.0  ;;  %v3514_v28 = vmax.f32 %v11725_v19, 0.0 }
 0x2d0   : > { %v3617_v29 = vpack.c.bf16 %v3513_v24, %v3509_v23  ;;  %v3619_v30 = vpack.c.bf16 %v3515_v22, %v3511_v21 }
 0x2d1   : > { %v2598_v31 = vpop.f32.mrb[24].mxu0  ;;  %v3370_v32 = vpop.f32.mrb[24].mxu1  ;;  %v3618_v33 = vpack.c.bf16 %v3514_v28, %v3510_v27  ;;  %v3620_v34 = vpack.c.bf16 %v3516_v26, %v3512_v25 }
 0x2d2   : > { %v11726_v35 = vadd.f32 %v2598_v31, %v15270_v62  ;;  %v11790_v36 = vadd.f32 %v3370_v32, %v15273_v63  ;;  %v2600_v37 = vpop.f32.mrb[25].mxu0  ;;  %v3372_v39 = vpop.f32.mrb[25].mxu1 }
 0x2d3   : > { %v11727_v40 = vadd.f32 %v2600_v37, %v15276_v0  ;;  %v11791_v41 = vadd.f32 %v3372_v39, %v15279_v1  ;;  %v2602_v42 = vpop.f32.mrb[26].mxu0  ;;  %v3374_v43 = vpop.f32.mrb[26].mxu1  ;;  %3996 = vmatprep.mubr.bf16.mxu0 %v3618_v33  ;;  %4157 = vmatprep.mubr.bf16.mxu1 %v3620_v34 }
 0x2d4   : > { %v11728_v44 = vadd.f32 %v2602_v42, %v15270_v62  ;;  %v11792_v45 = vadd.f32 %v3374_v43, %v15273_v63  ;;  %v2604_v46 = vpop.f32.mrb[27].mxu0  ;;  %v3376_v47 = vpop.f32.mrb[27].mxu1  ;;  %3997 = vmatmul.mubr.bf16.gmra.mrb[84].mxu0 %v3617_v29  ;;  %4158 = vmatmul.mubr.bf16.gmra.mrb[84].mxu1 %v3619_v30  ;;  %v3519_v50 = vmax.f32 %v11790_v36, 0.0  ;;  %v3517_v52 = vmax.f32 %v11726_v35, 0.0 }
 0x2d5   : > { %v11729_v48 = vadd.f32 %v2604_v46, %v15276_v0  ;;  %v11793_v49 = vadd.f32 %v3376_v47, %v15279_v1  ;;  %v3520_v54 = vmax.f32 %v11791_v41, 0.0  ;;  %v3518_v59 = vmax.f32 %v11727_v40, 0.0 }
 0x2d6   : > { %v3523_v51 = vmax.f32 %v11792_v45, 0.0  ;;  %v3521_v53 = vmax.f32 %v11728_v44, 0.0 }
 0x2d7   : > { %v3524_v55 = vmax.f32 %v11793_v49, 0.0  ;;  %v3522_v2 = vmax.f32 %v11729_v48, 0.0 }
 0x2d8   : > { %v3621_v3 = vpack.c.bf16 %v3521_v53, %v3517_v52  ;;  %v3623_v4 = vpack.c.bf16 %v3523_v51, %v3519_v50 }
 0x2d9   : > { %v2608_v5 = vpop.f32.mrb[28].mxu0  ;;  %v3380_v6 = vpop.f32.mrb[28].mxu1  ;;  %v3622_v7 = vpack.c.bf16 %v3522_v2, %v3518_v59  ;;  %v3624_v8 = vpack.c.bf16 %v3524_v55, %v3520_v54 }
 0x2da   : > { %v11730_v9 = vadd.f32 %v2608_v5, %v15270_v62  ;;  %v11794_v10 = vadd.f32 %v3380_v6, %v15273_v63  ;;  %v2610_v11 = vpop.f32.mrb[29].mxu0  ;;  %v3382_v12 = vpop.f32.mrb[29].mxu1 }
 0x2db   : > { %v11731_v13 = vadd.f32 %v2610_v11, %v15276_v0  ;;  %v11795_v14 = vadd.f32 %v3382_v12, %v15279_v1  ;;  %v2612_v15 = vpop.f32.mrb[30].mxu0  ;;  %v3384_v16 = vpop.f32.mrb[30].mxu1  ;;  %4004 = vmatprep.mubr.bf16.mxu0 %v3622_v7  ;;  %4165 = vmatprep.mubr.bf16.mxu1 %v3624_v8 }
 0x2dc   : > { %v11732_v17 = vadd.f32 %v2612_v15, %v15270_v62  ;;  %v11796_v18 = vadd.f32 %v3384_v16, %v15273_v63  ;;  %v2614_v19 = vpop.f32.mrb[31].mxu0  ;;  %v3386_v20 = vpop.f32.mrb[31].mxu1  ;;  %4005 = vmatmul.mubr.bf16.gmra.mrb[88].mxu0 %v3621_v3  ;;  %4166 = vmatmul.mubr.bf16.gmra.mrb[88].mxu1 %v3623_v4  ;;  %v3527_v23 = vmax.f32 %v11794_v10, 0.0  ;;  %v3525_v25 = vmax.f32 %v11730_v9, 0.0 }
 0x2dd   : > { %v11733_v21 = vadd.f32 %v2614_v19, %v15276_v0  ;;  %v11797_v22 = vadd.f32 %v3386_v20, %v15279_v1  ;;  %v3528_v27 = vmax.f32 %v11795_v14, 0.0  ;;  %v3526_v29 = vmax.f32 %v11731_v13, 0.0 }
 0x2de   : > { %v3531_v24 = vmax.f32 %v11796_v18, 0.0  ;;  %v3529_v26 = vmax.f32 %v11732_v17, 0.0 }
 0x2df   : > { %v3532_v28 = vmax.f32 %v11797_v22, 0.0  ;;  %v3530_v30 = vmax.f32 %v11733_v21, 0.0 }
 0x2e0   : > { %v3625_v31 = vpack.c.bf16 %v3529_v26, %v3525_v25  ;;  %v3627_v32 = vpack.c.bf16 %v3531_v24, %v3527_v23 }
 0x2e1   : > { %v2618_v33 = vpop.f32.mrb[32].mxu0  ;;  %v3390_v34 = vpop.f32.mrb[32].mxu1  ;;  %v3626_v35 = vpack.c.bf16 %v3530_v30, %v3526_v29  ;;  %v3628_v36 = vpack.c.bf16 %v3532_v28, %v3528_v27 }
 0x2e2   : > { %v11734_v37 = vadd.f32 %v2618_v33, %v15270_v62  ;;  %v11798_v39 = vadd.f32 %v3390_v34, %v15273_v63  ;;  %v2620_v40 = vpop.f32.mrb[33].mxu0  ;;  %v3392_v41 = vpop.f32.mrb[33].mxu1 }
 0x2e3   : > { %v11735_v42 = vadd.f32 %v2620_v40, %v15276_v0  ;;  %v11799_v43 = vadd.f32 %v3392_v41, %v15279_v1  ;;  %v2622_v44 = vpop.f32.mrb[34].mxu0  ;;  %v3394_v45 = vpop.f32.mrb[34].mxu1  ;;  %4012 = vmatprep.mubr.bf16.mxu0 %v3626_v35  ;;  %4173 = vmatprep.mubr.bf16.mxu1 %v3628_v36 }
 0x2e4   : > { %v11736_v46 = vadd.f32 %v2622_v44, %v15270_v62  ;;  %v11800_v47 = vadd.f32 %v3394_v45, %v15273_v63  ;;  %v2624_v48 = vpop.f32.mrb[35].mxu0  ;;  %v3396_v49 = vpop.f32.mrb[35].mxu1  ;;  %4013 = vmatmul.mubr.bf16.gmra.mrb[92].mxu0 %v3625_v31  ;;  %4174 = vmatmul.mubr.bf16.gmra.mrb[92].mxu1 %v3627_v32  ;;  %v3535_v52 = vmax.f32 %v11798_v39, 0.0  ;;  %v3533_v54 = vmax.f32 %v11734_v37, 0.0 }
 0x2e5   : > { %v11737_v50 = vadd.f32 %v2624_v48, %v15276_v0  ;;  %v11801_v51 = vadd.f32 %v3396_v49, %v15279_v1  ;;  %v3536_v59 = vmax.f32 %v11799_v43, 0.0  ;;  %v3534_v3 = vmax.f32 %v11735_v42, 0.0 }
 0x2e6   : > { %v3539_v53 = vmax.f32 %v11800_v47, 0.0  ;;  %v3537_v55 = vmax.f32 %v11736_v46, 0.0 }
 0x2e7   : > { %v3540_v2 = vmax.f32 %v11801_v51, 0.0  ;;  %v3538_v4 = vmax.f32 %v11737_v50, 0.0 }
 0x2e8   : > { %v3629_v5 = vpack.c.bf16 %v3537_v55, %v3533_v54  ;;  %v3631_v6 = vpack.c.bf16 %v3539_v53, %v3535_v52 }
 0x2e9   : > { %v2628_v7 = vpop.f32.mrb[36].mxu0  ;;  %v3400_v8 = vpop.f32.mrb[36].mxu1  ;;  %v3630_v9 = vpack.c.bf16 %v3538_v4, %v3534_v3  ;;  %v3632_v10 = vpack.c.bf16 %v3540_v2, %v3536_v59 }
 0x2ea   : > { %v11738_v11 = vadd.f32 %v2628_v7, %v15270_v62  ;;  %v11802_v12 = vadd.f32 %v3400_v8, %v15273_v63  ;;  %v2630_v13 = vpop.f32.mrb[37].mxu0  ;;  %v3402_v14 = vpop.f32.mrb[37].mxu1 }
 0x2eb   : > { %v11739_v15 = vadd.f32 %v2630_v13, %v15276_v0  ;;  %v11803_v16 = vadd.f32 %v3402_v14, %v15279_v1  ;;  %v2632_v17 = vpop.f32.mrb[38].mxu0  ;;  %v3404_v18 = vpop.f32.mrb[38].mxu1  ;;  %4020 = vmatprep.mubr.bf16.mxu0 %v3630_v9  ;;  %4181 = vmatprep.mubr.bf16.mxu1 %v3632_v10 }
 0x2ec   : > { %v11740_v19 = vadd.f32 %v2632_v17, %v15270_v62  ;;  %v11804_v20 = vadd.f32 %v3404_v18, %v15273_v63  ;;  %v2634_v21 = vpop.f32.mrb[39].mxu0  ;;  %v3406_v22 = vpop.f32.mrb[39].mxu1  ;;  %4021 = vmatmul.mubr.bf16.gmra.mrb[96].mxu0 %v3629_v5  ;;  %4182 = vmatmul.mubr.bf16.gmra.mrb[96].mxu1 %v3631_v6  ;;  %v3543_v25 = vmax.f32 %v11802_v12, 0.0  ;;  %v3541_v27 = vmax.f32 %v11738_v11, 0.0 }
 0x2ed   : > { %v11741_v23 = vadd.f32 %v2634_v21, %v15276_v0  ;;  %v11805_v24 = vadd.f32 %v3406_v22, %v15279_v1  ;;  %v3544_v29 = vmax.f32 %v11803_v16, 0.0  ;;  %v3542_v31 = vmax.f32 %v11739_v15, 0.0 }
 0x2ee   : > { %v3547_v26 = vmax.f32 %v11804_v20, 0.0  ;;  %v3545_v28 = vmax.f32 %v11740_v19, 0.0 }
 0x2ef   : > { %v3548_v30 = vmax.f32 %v11805_v24, 0.0  ;;  %v3546_v32 = vmax.f32 %v11741_v23, 0.0 }
 0x2f0   : > { %v3633_v33 = vpack.c.bf16 %v3545_v28, %v3541_v27  ;;  %v3635_v34 = vpack.c.bf16 %v3547_v26, %v3543_v25 }
 0x2f1   : > { %v2638_v35 = vpop.f32.mrb[40].mxu0  ;;  %v3410_v36 = vpop.f32.mrb[40].mxu1  ;;  %v3634_v37 = vpack.c.bf16 %v3546_v32, %v3542_v31  ;;  %v3636_v39 = vpack.c.bf16 %v3548_v30, %v3544_v29 }
 0x2f2   : > { %v11742_v40 = vadd.f32 %v2638_v35, %v15270_v62  ;;  %v11806_v41 = vadd.f32 %v3410_v36, %v15273_v63  ;;  %v2640_v42 = vpop.f32.mrb[41].mxu0  ;;  %v3412_v43 = vpop.f32.mrb[41].mxu1  ;;  %v12976_v35 = vld [vmem:[%s17858_s5 + $0xac] ss:$16 sps:$4 sm:$0xff]  }
 0x2f3   : > { %v11743_v44 = vadd.f32 %v2640_v42, %v15276_v0  ;;  %v11807_v45 = vadd.f32 %v3412_v43, %v15279_v1  ;;  %v2642_v46 = vpop.f32.mrb[42].mxu0  ;;  %v3414_v47 = vpop.f32.mrb[42].mxu1  ;;  %4028 = vmatprep.mubr.bf16.mxu0 %v3634_v37  ;;  %4189 = vmatprep.mubr.bf16.mxu1 %v3636_v39  ;;  %v12974_v39 = vld [vmem:[%s17858_s5 + $0xa8] ss:$16 sps:$4 sm:$0xff]  }
 0x2f4   : > { %v11744_v48 = vadd.f32 %v2642_v46, %v15270_v62  ;;  %v11808_v49 = vadd.f32 %v3414_v47, %v15273_v63  ;;  %v2644_v50 = vpop.f32.mrb[43].mxu0  ;;  %v3416_v51 = vpop.f32.mrb[43].mxu1  ;;  %4029 = vmatmul.mubr.bf16.gmra.mrb[100].mxu0 %v3633_v33  ;;  %4190 = vmatmul.mubr.bf16.gmra.mrb[100].mxu1 %v3635_v34  ;;  %v3551_v54 = vmax.f32 %v11806_v41, 0.0  ;;  %v3549_v59 = vmax.f32 %v11742_v40, 0.0 }
 0x2f5   : > { %v11745_v52 = vadd.f32 %v2644_v50, %v15276_v0  ;;  %v11809_v53 = vadd.f32 %v3416_v51, %v15279_v1  ;;  %v3552_v3 = vmax.f32 %v11807_v45, 0.0  ;;  %v3550_v5 = vmax.f32 %v11743_v44, 0.0  ;;  %4711 = vmatprep.subr.bf16.mxu1 %v12976_v35 }
 0x2f6   : > { %v3555_v55 = vmax.f32 %v11808_v49, 0.0  ;;  %v3553_v2 = vmax.f32 %v11744_v48, 0.0  ;;  %4712 = vmatpush1.bf16.msra.mxu1 %v12974_v39 }
 0x2f7   : > { %v3556_v4 = vmax.f32 %v11809_v53, 0.0  ;;  %v3554_v6 = vmax.f32 %v11745_v52, 0.0  ;;  %v12979_v52 = vld [vmem:[%s17858_s5 + $0xcc] ss:$16 sps:$4 sm:$0xff]  }
 0x2f8   : > { %v3637_v7 = vpack.c.bf16 %v3553_v2, %v3549_v59  ;;  %v3639_v8 = vpack.c.bf16 %v3555_v55, %v3551_v54  ;;  %v12977_v2 = vld [vmem:[%s17858_s5 + $0xc8] ss:$16 sps:$4 sm:$0xff]   ;;  %4713 = vmatprep.subr.bf16.mxu1 %v12979_v52 }
 0x2f9   : > { %v2648_v9 = vpop.f32.mrb[44].mxu0  ;;  %v3420_v10 = vpop.f32.mrb[44].mxu1  ;;  %v3638_v11 = vpack.c.bf16 %v3554_v6, %v3550_v5  ;;  %v3640_v12 = vpack.c.bf16 %v3556_v4, %v3552_v3 }
 0x2fa   : > { %v11746_v13 = vadd.f32 %v2648_v9, %v15270_v62  ;;  %v11810_v14 = vadd.f32 %v3420_v10, %v15273_v63  ;;  %v2650_v15 = vpop.f32.mrb[45].mxu0  ;;  %v3422_v16 = vpop.f32.mrb[45].mxu1  ;;  %4714 = vmatpush1.bf16.msra.mxu1 %v12977_v2 }
 0x2fb   : > { %v11747_v17 = vadd.f32 %v2650_v15, %v15276_v0  ;;  %v11811_v18 = vadd.f32 %v3422_v16, %v15279_v1  ;;  %v2652_v19 = vpop.f32.mrb[46].mxu0  ;;  %v3424_v20 = vpop.f32.mrb[46].mxu1  ;;  %4036 = vmatprep.mubr.bf16.mxu0 %v3638_v11  ;;  %4197 = vmatprep.mubr.bf16.mxu1 %v3640_v12  ;;  %v12980_v16 = vld [vmem:[%s17858_s5 + $0xe8] ss:$16 sps:$4 sm:$0xff]  }
 0x2fc   : > { %v11748_v21 = vadd.f32 %v2652_v19, %v15270_v62  ;;  %v11812_v22 = vadd.f32 %v3424_v20, %v15273_v63  ;;  %v2654_v23 = vpop.f32.mrb[47].mxu0  ;;  %v3426_v24 = vpop.f32.mrb[47].mxu1  ;;  %4037 = vmatmul.mubr.bf16.gmra.mrb[104].mxu0 %v3637_v7  ;;  %4198 = vmatmul.mubr.bf16.gmra.mrb[104].mxu1 %v3639_v8  ;;  %v3559_v27 = vmax.f32 %v11810_v14, 0.0  ;;  %v3557_v29 = vmax.f32 %v11746_v13, 0.0  ;;  %v12982_v13 = vld [vmem:[%s17858_s5 + $0xec] ss:$16 sps:$4 sm:$0xff]  }
 0x2fd   : > { %v11749_v25 = vadd.f32 %v2654_v23, %v15276_v0  ;;  %v11813_v26 = vadd.f32 %v3426_v24, %v15279_v1  ;;  %v3560_v31 = vmax.f32 %v11811_v18, 0.0  ;;  %v3558_v33 = vmax.f32 %v11747_v17, 0.0  ;;  %4715 = vmatprep.subr.bf16.mxu1 %v12982_v13 }
 0x2fe   : > { %v3563_v28 = vmax.f32 %v11812_v22, 0.0  ;;  %v3561_v30 = vmax.f32 %v11748_v21, 0.0  ;;  %4716 = vmatpush1.bf16.msra.mxu1 %v12980_v16 }
 0x2ff   : > { %v3564_v32 = vmax.f32 %v11813_v26, 0.0  ;;  %v3562_v34 = vmax.f32 %v11749_v25, 0.0 }
 0x300   : > { %v3641_v36 = vpack.c.bf16 %v3561_v30, %v3557_v29  ;;  %v3643_v37 = vpack.c.bf16 %v3563_v28, %v3559_v27 }
 0x301   : > { %v2658_v40 = vpop.f32.mrb[48].mxu0  ;;  %v3430_v41 = vpop.f32.mrb[48].mxu1  ;;  %v3642_v42 = vpack.c.bf16 %v3562_v34, %v3558_v33  ;;  %v3644_v43 = vpack.c.bf16 %v3564_v32, %v3560_v31 }
 0x302   : > { %v11750_v44 = vadd.f32 %v2658_v40, %v15270_v62  ;;  %v11814_v45 = vadd.f32 %v3430_v41, %v15273_v63  ;;  %v2660_v46 = vpop.f32.mrb[49].mxu0  ;;  %v3432_v47 = vpop.f32.mrb[49].mxu1 }
 0x303   : > { %v11751_v48 = vadd.f32 %v2660_v46, %v15276_v0  ;;  %v11815_v49 = vadd.f32 %v3432_v47, %v15279_v1  ;;  %v2662_v50 = vpop.f32.mrb[50].mxu0  ;;  %v3434_v51 = vpop.f32.mrb[50].mxu1  ;;  %4044 = vmatprep.mubr.bf16.mxu0 %v3642_v42  ;;  %4205 = vmatprep.mubr.bf16.mxu1 %v3644_v43 }
 0x304   : > { %v11752_v53 = vadd.f32 %v2662_v50, %v15270_v62  ;;  %v11816_v54 = vadd.f32 %v3434_v51, %v15273_v63  ;;  %v2664_v55 = vpop.f32.mrb[51].mxu0  ;;  %v3436_v59 = vpop.f32.mrb[51].mxu1  ;;  %4045 = vmatmul.mubr.bf16.gmra.mrb[108].mxu0 %v3641_v36  ;;  %4206 = vmatmul.mubr.bf16.gmra.mrb[108].mxu1 %v3643_v37  ;;  %v3567_v5 = vmax.f32 %v11814_v45, 0.0  ;;  %v3565_v7 = vmax.f32 %v11750_v44, 0.0 }
 0x305   : > { %v11753_v3 = vadd.f32 %v2664_v55, %v15276_v0  ;;  %v11817_v4 = vadd.f32 %v3436_v59, %v15279_v1  ;;  %v3568_v9 = vmax.f32 %v11815_v49, 0.0  ;;  %v3566_v11 = vmax.f32 %v11751_v48, 0.0 }
 0x306   : > { %v3571_v6 = vmax.f32 %v11816_v54, 0.0  ;;  %v3569_v8 = vmax.f32 %v11752_v53, 0.0 }
 0x307   : > { %v3572_v10 = vmax.f32 %v11817_v4, 0.0  ;;  %v3570_v12 = vmax.f32 %v11753_v3, 0.0 }
 0x308   : > { %v3645_v14 = vpack.c.bf16 %v3569_v8, %v3565_v7  ;;  %v3647_v15 = vpack.c.bf16 %v3571_v6, %v3567_v5 }
 0x309   : > { %v2668_v17 = vpop.f32.mrb[52].mxu0  ;;  %v3440_v18 = vpop.f32.mrb[52].mxu1  ;;  %v3646_v19 = vpack.c.bf16 %v3570_v12, %v3566_v11  ;;  %v3648_v20 = vpack.c.bf16 %v3572_v10, %v3568_v9 }
 0x30a   : > { %v11754_v21 = vadd.f32 %v2668_v17, %v15270_v62  ;;  %v11818_v22 = vadd.f32 %v3440_v18, %v15273_v63  ;;  %v2670_v23 = vpop.f32.mrb[53].mxu0  ;;  %v3442_v24 = vpop.f32.mrb[53].mxu1 }
 0x30b   : > { %v11755_v25 = vadd.f32 %v2670_v23, %v15276_v0  ;;  %v11819_v26 = vadd.f32 %v3442_v24, %v15279_v1  ;;  %v2672_v27 = vpop.f32.mrb[54].mxu0  ;;  %v3444_v28 = vpop.f32.mrb[54].mxu1  ;;  %4052 = vmatprep.mubr.bf16.mxu0 %v3646_v19  ;;  %4213 = vmatprep.mubr.bf16.mxu1 %v3648_v20 }
 0x30c   : > { %v11756_v29 = vadd.f32 %v2672_v27, %v15270_v62  ;;  %v11820_v30 = vadd.f32 %v3444_v28, %v15273_v63  ;;  %v2674_v31 = vpop.f32.mrb[55].mxu0  ;;  %v3446_v32 = vpop.f32.mrb[55].mxu1  ;;  %4053 = vmatmul.mubr.bf16.gmra.mrb[112].mxu0 %v3645_v14  ;;  %4214 = vmatmul.mubr.bf16.gmra.mrb[112].mxu1 %v3647_v15  ;;  %v3575_v35 = vmax.f32 %v11818_v22, 0.0  ;;  %v3573_v37 = vmax.f32 %v11754_v21, 0.0 }
 0x30d   : > { %v11757_v33 = vadd.f32 %v2674_v31, %v15276_v0  ;;  %v11821_v34 = vadd.f32 %v3446_v32, %v15279_v1  ;;  %v3576_v40 = vmax.f32 %v11819_v26, 0.0  ;;  %v3574_v42 = vmax.f32 %v11755_v25, 0.0 }
 0x30e   : > { %v3579_v36 = vmax.f32 %v11820_v30, 0.0  ;;  %v3577_v39 = vmax.f32 %v11756_v29, 0.0 }
 0x30f   : > { %v3580_v41 = vmax.f32 %v11821_v34, 0.0  ;;  %v3578_v43 = vmax.f32 %v11757_v33, 0.0 }
 0x310   : > { %v3649_v44 = vpack.c.bf16 %v3577_v39, %v3573_v37  ;;  %v3651_v45 = vpack.c.bf16 %v3579_v36, %v3575_v35 }
 0x311   : > { %v2678_v46 = vpop.f32.mrb[56].mxu0  ;;  %v3450_v47 = vpop.f32.mrb[56].mxu1  ;;  %v3650_v48 = vpack.c.bf16 %v3578_v43, %v3574_v42  ;;  %v3652_v49 = vpack.c.bf16 %v3580_v41, %v3576_v40 }
 0x312   : > { %v11758_v50 = vadd.f32 %v2678_v46, %v15270_v62  ;;  %v11822_v51 = vadd.f32 %v3450_v47, %v15273_v63  ;;  %v2680_v52 = vpop.f32.mrb[57].mxu0  ;;  %v3452_v53 = vpop.f32.mrb[57].mxu1 }
 0x313   : > { %v11759_v54 = vadd.f32 %v2680_v52, %v15276_v0  ;;  %v11823_v55 = vadd.f32 %v3452_v53, %v15279_v1  ;;  %v2682_v59 = vpop.f32.mrb[58].mxu0  ;;  %v3454_v2 = vpop.f32.mrb[58].mxu1  ;;  %4060 = vmatprep.mubr.bf16.mxu0 %v3650_v48  ;;  %4221 = vmatprep.mubr.bf16.mxu1 %v3652_v49 }
 0x314   : > { %v11760_v3 = vadd.f32 %v2682_v59, %v15270_v62  ;;  %v11824_v4 = vadd.f32 %v3454_v2, %v15273_v63  ;;  %v2684_v5 = vpop.f32.mrb[59].mxu0  ;;  %v3456_v6 = vpop.f32.mrb[59].mxu1  ;;  %4061 = vmatmul.mubr.bf16.gmra.mrb[116].mxu0 %v3649_v44  ;;  %4222 = vmatmul.mubr.bf16.gmra.mrb[116].mxu1 %v3651_v45  ;;  %v3583_v9 = vmax.f32 %v11822_v51, 0.0  ;;  %v3581_v11 = vmax.f32 %v11758_v50, 0.0  ;;  %v15513_v50 = vld [vmem:[%s17857_s4] ss:$0 sm:$0xff] }
 0x315   : > { %v11761_v7 = vadd.f32 %v2684_v5, %v15276_v0  ;;  %v11825_v8 = vadd.f32 %v3456_v6, %v15279_v1  ;;  %v3584_v13 = vmax.f32 %v11823_v55, 0.0  ;;  %v3582_v15 = vmax.f32 %v11759_v54, 0.0 }
 0x316   : > { %v3587_v10 = vmax.f32 %v11824_v4, 0.0  ;;  %v3585_v12 = vmax.f32 %v11760_v3, 0.0 }
 0x317   : > { %v3588_v14 = vmax.f32 %v11825_v8, 0.0  ;;  %v3586_v16 = vmax.f32 %v11761_v7, 0.0 }
 0x318   : > { %v3653_v17 = vpack.c.bf16 %v3585_v12, %v3581_v11  ;;  %v3655_v18 = vpack.c.bf16 %v3587_v10, %v3583_v9 }
 0x319   : > { %v2688_v19 = vpop.f32.mrb[60].mxu0  ;;  %v3460_v20 = vpop.f32.mrb[60].mxu1  ;;  %v3654_v21 = vpack.c.bf16 %v3586_v16, %v3582_v15  ;;  %v3656_v22 = vpack.c.bf16 %v3588_v14, %v3584_v13 }
 0x31a   : > { %v11762_v23 = vadd.f32 %v2688_v19, %v15270_v62  ;;  %v11826_v24 = vadd.f32 %v3460_v20, %v15273_v63  ;;  %v2690_v25 = vpop.f32.mrb[61].mxu0  ;;  %v3462_v26 = vpop.f32.mrb[61].mxu1 }
 0x31b   : > { %v11763_v27 = vadd.f32 %v2690_v25, %v15276_v0  ;;  %v11827_v28 = vadd.f32 %v3462_v26, %v15279_v1  ;;  %v2692_v29 = vpop.f32.mrb[62].mxu0  ;;  %v3464_v30 = vpop.f32.mrb[62].mxu1  ;;  %4068 = vmatprep.mubr.bf16.mxu0 %v3654_v21  ;;  %4229 = vmatprep.mubr.bf16.mxu1 %v3656_v22  ;;  %v12983_v26 = vld [vmem:[%s17860_s7 + $0x8] ss:$28 sps:$4 sm:$0xff]  }
 0x31c   : > { %v11764_v31 = vadd.f32 %v2692_v29, %v15270_v62  ;;  %v11828_v32 = vadd.f32 %v3464_v30, %v15273_v63  ;;  %v2694_v33 = vpop.f32.mrb[63].mxu0  ;;  %v3466_v34 = vpop.f32.mrb[63].mxu1  ;;  %4069 = vmatmul.mubr.bf16.gmra.mrb[120].mxu0 %v3653_v17  ;;  %4230 = vmatmul.mubr.bf16.gmra.mrb[120].mxu1 %v3655_v18  ;;  %v3591_v37 = vmax.f32 %v11826_v24, 0.0  ;;  %v3589_v40 = vmax.f32 %v11762_v23, 0.0  ;;  %v12994_v29 = vld [vmem:[%s17860_s7 + $0x3c] ss:$28 sps:$4 sm:$0xff]  }
 0x31d   : > { %v11765_v35 = vadd.f32 %v2694_v33, %v15276_v0  ;;  %v11829_v36 = vadd.f32 %v3466_v34, %v15279_v1  ;;  %v3592_v42 = vmax.f32 %v11827_v28, 0.0  ;;  %v3590_v44 = vmax.f32 %v11763_v27, 0.0  ;;  %v12985_v0 = vld [vmem:[%s17860_s7 + $0xc] ss:$28 sps:$4 sm:$0xff]   ;;  %v12988_v1 = vld [vmem:[%s17860_s7 + $0x4] ss:$28 sps:$4 sm:$0xff]  }
 0x31e   : > { %v3595_v39 = vmax.f32 %v11828_v32, 0.0  ;;  %v3593_v41 = vmax.f32 %v11764_v31, 0.0  ;;  %6917 = vmatprep.subr.bf16.mxu1 %v12985_v0  ;;  %6531 = vmatprep.subr.bf16.mxu0 %v12988_v1  ;;  %v12986_v27 = vld [vmem:[%s17860_s7] ss:$28 sps:$4 sm:$0xff]  }
 0x31f   : > { %v3596_v43 = vmax.f32 %v11829_v36, 0.0  ;;  %v3594_v45 = vmax.f32 %v11765_v35, 0.0  ;;  %v12991_v28 = vld [vmem:[%s17860_s7 + $0x44] ss:$28 sps:$4 sm:$0xff]  }
 0x320   : > { %v3657_v46 = vpack.c.bf16 %v3593_v41, %v3589_v40  ;;  %v3659_v62 = vpack.c.bf16 %v3595_v39, %v3591_v37  ;;  %v12989_v35 = vld [vmem:[%s17860_s7 + $0x40] ss:$28 sps:$4 sm:$0xff]   ;;  %v12992_v39 = vld [vmem:[%s17860_s7 + $0x38] ss:$28 sps:$4 sm:$0xff]  }
 0x321   : > { %v3658_v47 = vpack.c.bf16 %v3594_v45, %v3590_v44  ;;  %v3660_v63 = vpack.c.bf16 %v3596_v43, %v3592_v42  ;;  %v12997_v40 = vld [vmem:[%s17860_s7 + $0x7c] ss:$28 sps:$4 sm:$0xff]  }
 0x323   : > { %4076 = vmatprep.mubr.bf16.mxu0 %v3658_v47  ;;  %4237 = vmatprep.mubr.bf16.mxu1 %v3660_v63 }
 0x324   : > { %4077 = vmatmul.mubr.bf16.gmra.mrb[124].mxu0 %v3657_v46  ;;  %4238 = vmatmul.mubr.bf16.gmra.mrb[124].mxu1 %v3659_v62 }
 0x325   : > { %4540 = vmatprep.mubr.bf16.mxu0 %v14208_v38  ;;  %4733 = vmatprep.mubr.bf16.mxu1 %v14208_v38 }
 0x37f   : > { %v11270_v48 = vpop.f32.mrb[64].mxu0  ;;  %v11382_v49 = vpop.f32.mrb[64].mxu1 }
 0x380   : > { %v11271_v51 = vpop.f32.mrb[65].mxu0  ;;  %v11383_v52 = vpop.f32.mrb[65].mxu1 }
 0x381   : > { %v11272_v53 = vadd.f32 %v11271_v51, %v11270_v48  ;;  %v11384_v54 = vadd.f32 %v11383_v52, %v11382_v49  ;;  %v11273_v55 = vpop.f32.mrb[66].mxu0  ;;  %v11385_v59 = vpop.f32.mrb[66].mxu1  ;;  %v12995_v49 = vld [vmem:[%s17860_s7 + $0x78] ss:$28 sps:$4 sm:$0xff]   ;;  %v12998_v52 = vld [vmem:[%s17860_s7 + $0x70] ss:$28 sps:$4 sm:$0xff]  }
 0x382   : > { %v11274_v2 = vpop.f32.mrb[67].mxu0  ;;  %v11386_v3 = vpop.f32.mrb[67].mxu1  ;;  %v13000_v51 = vld [vmem:[%s17860_s7 + $0x74] ss:$28 sps:$4 sm:$0xff]  }
 0x383   : > { %v3959_v4 = vadd.f32 %v11272_v53, %v15513_v50  ;;  %v11275_v5 = vadd.f32 %v11274_v2, %v11273_v55  ;;  %v11387_v6 = vadd.f32 %v11386_v3, %v11385_v59  ;;  %v13003_v53 = vld [vmem:[%s17860_s7 + $0xb4] ss:$28 sps:$4 sm:$0xff]   ;;  %v13006_v59 = vld [vmem:[%s17860_s7 + $0xac] ss:$28 sps:$4 sm:$0xff]  }
 0x385   : > { %v4120_v7 = vadd.f32 %v11384_v54, %v3959_v4  ;;  %v3962_v8 = vadd.f32 %v11275_v5, %v15513_v50  ;;  %v13001_v5 = vld [vmem:[%s17860_s7 + $0xb0] ss:$28 sps:$4 sm:$0xff]  }
 0x387   : > { %v4123_v9 = vadd.f32 %v11387_v6, %v3962_v8  ;;  %v11276_v10 = vpop.f32.mrb[68].mxu0  ;;  %v11388_v11 = vpop.f32.mrb[68].mxu1  ;;  %v4246_v14 = vmax.f32 %v4120_v7, 0.0  ;;  %v13004_v8 = vld [vmem:[%s17860_s7 + $0xa8] ss:$28 sps:$4 sm:$0xff]  }
 0x388   : > { %v11277_v12 = vpop.f32.mrb[69].mxu0  ;;  %v11389_v13 = vpop.f32.mrb[69].mxu1 }
 0x389   : > { %v4247_v15 = vmax.f32 %v4123_v9, 0.0  ;;  %v11278_v16 = vadd.f32 %v11277_v12, %v11276_v10  ;;  %v11390_v17 = vadd.f32 %v11389_v13, %v11388_v11  ;;  %v11279_v18 = vpop.f32.mrb[70].mxu0  ;;  %v11391_v19 = vpop.f32.mrb[70].mxu1  ;;  %v13009_v9 = vld [vmem:[%s17860_s7 + $0xec] ss:$28 sps:$4 sm:$0xff]  }
 0x38a   : > { %v11280_v20 = vpop.f32.mrb[71].mxu0  ;;  %v11392_v21 = vpop.f32.mrb[71].mxu1 }
 0x38b   : > { %v4278_v22 = vpack.c.bf16 %v4247_v15, %v4246_v14  ;;  %v3967_v23 = vadd.f32 %v11278_v16, %v15513_v50  ;;  %v11281_v24 = vadd.f32 %v11280_v20, %v11279_v18  ;;  %v11393_v25 = vadd.f32 %v11392_v21, %v11391_v19 }
 0x38d   : > { %v4128_v30 = vadd.f32 %v11390_v17, %v3967_v23  ;;  %v3970_v31 = vadd.f32 %v11281_v24, %v15513_v50  ;;  %4541 = vmatmul.mubr.bf16.vlgmr.msra.gmra.mrb[128].mxu0 %v4278_v22  ;;  %4734 = vmatmul.mubr.bf16.vlgmr.msra.gmra.mrb[128].mxu1 %v4278_v22  ;;  %v13007_v22 = vld [vmem:[%s17860_s7 + $0xe8] ss:$28 sps:$4 sm:$0xff]   ;;  %v13010_v24 = vld [vmem:[%s17860_s7 + $0xe0] ss:$28 sps:$4 sm:$0xff]  }
 0x38e   : > { %4550 = vmatprep.mubr.bf16.mxu0 %v14208_v38  ;;  %4743 = vmatprep.mubr.bf16.mxu1 %v14208_v38  ;;  %v13012_v23 = vld [vmem:[%s17860_s7 + $0xe4] ss:$28 sps:$4 sm:$0xff]  }
 0x38f   : > { %v4131_v32 = vadd.f32 %v11393_v25, %v3970_v31  ;;  %v11282_v33 = vpop.f32.mrb[72].mxu0  ;;  %v11394_v34 = vpop.f32.mrb[72].mxu1  ;;  %6918 = vmatpush1.bf16.msra.mxu1 %v12983_v26  ;;  %6532 = vmatpush1.bf16.msra.mxu0 %v12986_v27  ;;  %v4248_v45 = vmax.f32 %v4128_v30, 0.0  ;;  %v13015_v25 = vld [vmem:[%s17860_s7 + $0x124] ss:$28 sps:$4 sm:$0xff]  }
 0x390   : > { %v11283_v36 = vpop.f32.mrb[73].mxu0  ;;  %v11395_v37 = vpop.f32.mrb[73].mxu1  ;;  %6919 = vmatprep.subr.bf16.mxu1 %v12991_v28  ;;  %6533 = vmatprep.subr.bf16.mxu0 %v12994_v29  ;;  %v13018_v28 = vld [vmem:[%s17860_s7 + $0x11c] ss:$28 sps:$4 sm:$0xff]  }
 0x391   : > { %v11284_v41 = vadd.f32 %v11283_v36, %v11282_v33  ;;  %v11396_v42 = vadd.f32 %v11395_v37, %v11394_v34  ;;  %v11285_v43 = vpop.f32.mrb[74].mxu0  ;;  %v11397_v44 = vpop.f32.mrb[74].mxu1  ;;  %v4249_v46 = vmax.f32 %v4131_v32, 0.0  ;;  %v13013_v32 = vld [vmem:[%s17860_s7 + $0x120] ss:$28 sps:$4 sm:$0xff]  }
 0x392   : > { %v11286_v62 = vpop.f32.mrb[75].mxu0  ;;  %v11398_v47 = vpop.f32.mrb[75].mxu1  ;;  %v13021_v36 = vld [vmem:[%s17860_s7 + $0x15c] ss:$28 sps:$4 sm:$0xff]  }
 0x393   : > { %v3975_v63 = vadd.f32 %v11284_v41, %v15513_v50  ;;  %v11287_v0 = vadd.f32 %v11286_v62, %v11285_v43  ;;  %v11399_v1 = vadd.f32 %v11398_v47, %v11397_v44  ;;  %v4279_v48 = vpack.c.bf16 %v4249_v46, %v4248_v45  ;;  %6920 = vmatpush1.bf16.msra.mxu1 %v12989_v35  ;;  %v13016_v35 = vld [vmem:[%s17860_s7 + $0x118] ss:$28 sps:$4 sm:$0xff]  }
 0x394   : > { %6534 = vmatpush1.bf16.msra.mxu0 %v12992_v39  ;;  %6921 = vmatprep.subr.bf16.mxu1 %v12997_v40 }
 0x395   : > { %v4136_v54 = vadd.f32 %v11396_v42, %v3975_v63  ;;  %v3978_v55 = vadd.f32 %v11287_v0, %v15513_v50  ;;  %4551 = vmatmul.mubr.bf16.gmra.mrb[132].mxu0 %v4279_v48  ;;  %4744 = vmatmul.mubr.bf16.gmra.mrb[132].mxu1 %v4279_v48  ;;  %v13019_v0 = vld [vmem:[%s17860_s7 + $0x158] ss:$28 sps:$4 sm:$0xff]   ;;  %v13022_v48 = vld [vmem:[%s17860_s7 + $0x150] ss:$28 sps:$4 sm:$0xff]  }
 0x396   : > { %4560 = vmatprep.mubr.bf16.mxu0 %v14208_v38  ;;  %4753 = vmatprep.mubr.bf16.mxu1 %v14208_v38 }
 0x397   : > { %v4139_v2 = vadd.f32 %v11399_v1, %v3978_v55  ;;  %v11288_v3 = vpop.f32.mrb[76].mxu0  ;;  %v11400_v4 = vpop.f32.mrb[76].mxu1  ;;  %6922 = vmatpush1.bf16.msra.mxu1 %v12995_v49  ;;  %6535 = vmatprep.subr.bf16.mxu0 %v13000_v51  ;;  %v4250_v14 = vmax.f32 %v4136_v54, 0.0  ;;  %v13024_v1 = vld [vmem:[%s17860_s7 + $0x154] ss:$28 sps:$4 sm:$0xff]  }
 0x398   : > { %v11289_v6 = vpop.f32.mrb[77].mxu0  ;;  %v11401_v7 = vpop.f32.mrb[77].mxu1  ;;  %6536 = vmatpush1.bf16.msra.mxu0 %v12998_v52  ;;  %6923 = vmatprep.subr.bf16.mxu1 %v13003_v53  ;;  %v13027_v49 = vld [vmem:[%s17860_s7 + $0x194] ss:$28 sps:$4 sm:$0xff]   ;;  %v13030_v53 = vld [vmem:[%s17860_s7 + $0x18c] ss:$28 sps:$4 sm:$0xff]  }
 0x399   : > { %v11290_v10 = vadd.f32 %v11289_v6, %v11288_v3  ;;  %v11402_v11 = vadd.f32 %v11401_v7, %v11400_v4  ;;  %v11291_v12 = vpop.f32.mrb[78].mxu0  ;;  %v11403_v13 = vpop.f32.mrb[78].mxu1  ;;  %v4251_v15 = vmax.f32 %v4139_v2, 0.0  ;;  %6537 = vmatprep.subr.bf16.mxu0 %v13006_v59  ;;  %v13025_v2 = vld [vmem:[%s17860_s7 + $0x190] ss:$28 sps:$4 sm:$0xff]  }
 0x39a   : > { %v11292_v16 = vpop.f32.mrb[79].mxu0  ;;  %v11404_v17 = vpop.f32.mrb[79].mxu1  ;;  %v13033_v6 = vld [vmem:[%s17860_s7 + $0x1cc] ss:$28 sps:$4 sm:$0xff]  }
 0x39b   : > { %v3983_v18 = vadd.f32 %v11290_v10, %v15513_v50  ;;  %v11293_v19 = vadd.f32 %v11292_v16, %v11291_v12  ;;  %v11405_v20 = vadd.f32 %v11404_v17, %v11403_v13  ;;  %v4280_v21 = vpack.c.bf16 %v4251_v15, %v4250_v14  ;;  %6924 = vmatpush1.bf16.msra.mxu1 %v13001_v5  ;;  %v13028_v5 = vld [vmem:[%s17860_s7 + $0x188] ss:$28 sps:$4 sm:$0xff]  }
 0x39c   : > { %6538 = vmatpush1.bf16.msra.mxu0 %v13004_v8  ;;  %6925 = vmatprep.subr.bf16.mxu1 %v13009_v9 }
 0x39d   : > { %v4144_v26 = vadd.f32 %v11402_v11, %v3983_v18  ;;  %v3986_v27 = vadd.f32 %v11293_v19, %v15513_v50  ;;  %4561 = vmatmul.mubr.bf16.gmra.mrb[136].mxu0 %v4280_v21  ;;  %4754 = vmatmul.mubr.bf16.gmra.mrb[136].mxu1 %v4280_v21  ;;  %v13031_v19 = vld [vmem:[%s17860_s7 + $0x1c8] ss:$28 sps:$4 sm:$0xff]   ;;  %v13034_v21 = vld [vmem:[%s17860_s7 + $0x1c0] ss:$28 sps:$4 sm:$0xff]  }
 0x39e   : > { %4570 = vmatprep.mubr.bf16.mxu0 %v14208_v38  ;;  %4763 = vmatprep.mubr.bf16.mxu1 %v14208_v38 }
 0x39f   : > { %v4147_v29 = vadd.f32 %v11405_v20, %v3986_v27  ;;  %v11294_v30 = vpop.f32.mrb[80].mxu0  ;;  %v11406_v31 = vpop.f32.mrb[80].mxu1  ;;  %6926 = vmatpush1.bf16.msra.mxu1 %v13007_v22  ;;  %6539 = vmatprep.subr.bf16.mxu0 %v13012_v23  ;;  %v4252_v42 = vmax.f32 %v4144_v26, 0.0  ;;  %v13036_v20 = vld [vmem:[%s17860_s7 + $0x1c4] ss:$28 sps:$4 sm:$0xff]  }
 0x3a0   : > { %v11295_v33 = vpop.f32.mrb[81].mxu0  ;;  %v11407_v34 = vpop.f32.mrb[81].mxu1  ;;  %6540 = vmatpush1.bf16.msra.mxu0 %v13010_v24  ;;  %6927 = vmatprep.subr.bf16.mxu1 %v13015_v25  ;;  %v13039_v22 = vld [vmem:[%s17860_s7 + $0x204] ss:$28 sps:$4 sm:$0xff]   ;;  %v13042_v25 = vld [vmem:[%s17860_s7 + $0x1fc] ss:$28 sps:$4 sm:$0xff]  }
 0x3a1   : > { %v11296_v37 = vadd.f32 %v11295_v33, %v11294_v30  ;;  %v11408_v39 = vadd.f32 %v11407_v34, %v11406_v31  ;;  %v11297_v40 = vpop.f32.mrb[82].mxu0  ;;  %v11409_v41 = vpop.f32.mrb[82].mxu1  ;;  %v4253_v43 = vmax.f32 %v4147_v29, 0.0  ;;  %6541 = vmatprep.subr.bf16.mxu0 %v13018_v28  ;;  %v13037_v29 = vld [vmem:[%s17860_s7 + $0x200] ss:$28 sps:$4 sm:$0xff]  }
 0x3a2   : > { %v11298_v44 = vpop.f32.mrb[83].mxu0  ;;  %v11410_v45 = vpop.f32.mrb[83].mxu1  ;;  %v13045_v33 = vld [vmem:[%s17860_s7 + $0x23c] ss:$28 sps:$4 sm:$0xff]  }
 0x3a3   : > { %v3991_v46 = vadd.f32 %v11296_v37, %v15513_v50  ;;  %v11299_v62 = vadd.f32 %v11298_v44, %v11297_v40  ;;  %v11411_v47 = vadd.f32 %v11410_v45, %v11409_v41  ;;  %v4281_v63 = vpack.c.bf16 %v4253_v43, %v4252_v42  ;;  %6928 = vmatpush1.bf16.msra.mxu1 %v13013_v32  ;;  %v13040_v32 = vld [vmem:[%s17860_s7 + $0x1f8] ss:$28 sps:$4 sm:$0xff]  }
 0x3a4   : > { %6542 = vmatpush1.bf16.msra.mxu0 %v13016_v35  ;;  %6929 = vmatprep.subr.bf16.mxu1 %v13021_v36 }
 0x3a5   : > { %v4152_v51 = vadd.f32 %v11408_v39, %v3991_v46  ;;  %v3994_v52 = vadd.f32 %v11299_v62, %v15513_v50  ;;  %4571 = vmatmul.mubr.bf16.gmra.mrb[140].mxu0 %v4281_v63  ;;  %4764 = vmatmul.mubr.bf16.gmra.mrb[140].mxu1 %v4281_v63  ;;  %v13043_v62 = vld [vmem:[%s17860_s7 + $0x238] ss:$28 sps:$4 sm:$0xff]   ;;  %v13046_v63 = vld [vmem:[%s17860_s7 + $0x230] ss:$28 sps:$4 sm:$0xff]  }
 0x3a6   : > { %4580 = vmatprep.mubr.bf16.mxu0 %v14208_v38  ;;  %4773 = vmatprep.mubr.bf16.mxu1 %v14208_v38 }
 0x3a7   : > { %v4155_v54 = vadd.f32 %v11411_v47, %v3994_v52  ;;  %v11300_v55 = vpop.f32.mrb[84].mxu0  ;;  %v11412_v59 = vpop.f32.mrb[84].mxu1  ;;  %6930 = vmatpush1.bf16.msra.mxu1 %v13019_v0  ;;  %6543 = vmatprep.subr.bf16.mxu0 %v13024_v1  ;;  %v4254_v11 = vmax.f32 %v4152_v51, 0.0  ;;  %v13048_v47 = vld [vmem:[%s17860_s7 + $0x234] ss:$28 sps:$4 sm:$0xff]  }
 0x3a8   : > { %v11301_v3 = vpop.f32.mrb[85].mxu0  ;;  %v11413_v4 = vpop.f32.mrb[85].mxu1  ;;  %6544 = vmatpush1.bf16.msra.mxu0 %v13022_v48  ;;  %6931 = vmatprep.subr.bf16.mxu1 %v13027_v49  ;;  %v13051_v0 = vld [vmem:[%s17860_s7 + $0x274] ss:$28 sps:$4 sm:$0xff]   ;;  %v13054_v49 = vld [vmem:[%s17860_s7 + $0x26c] ss:$28 sps:$4 sm:$0xff]  }
 0x3a9   : > { %v11302_v7 = vadd.f32 %v11301_v3, %v11300_v55  ;;  %v11414_v8 = vadd.f32 %v11413_v4, %v11412_v59  ;;  %v11303_v9 = vpop.f32.mrb[86].mxu0  ;;  %v11415_v10 = vpop.f32.mrb[86].mxu1  ;;  %v4255_v12 = vmax.f32 %v4155_v54, 0.0  ;;  %6545 = vmatprep.subr.bf16.mxu0 %v13030_v53  ;;  %v13049_v54 = vld [vmem:[%s17860_s7 + $0x270] ss:$28 sps:$4 sm:$0xff]  }
 0x3aa   : > { %v11304_v13 = vpop.f32.mrb[87].mxu0  ;;  %v11416_v14 = vpop.f32.mrb[87].mxu1  ;;  %v13057_v3 = vld [vmem:[%s17860_s7 + $0x2ac] ss:$28 sps:$4 sm:$0xff]  }
 0x3ab   : > { %v3999_v15 = vadd.f32 %v11302_v7, %v15513_v50  ;;  %v11305_v16 = vadd.f32 %v11304_v13, %v11303_v9  ;;  %v11417_v17 = vadd.f32 %v11416_v14, %v11415_v10  ;;  %v4282_v18 = vpack.c.bf16 %v4255_v12, %v4254_v11  ;;  %6932 = vmatpush1.bf16.msra.mxu1 %v13025_v2  ;;  %v13052_v2 = vld [vmem:[%s17860_s7 + $0x268] ss:$28 sps:$4 sm:$0xff]  }
 0x3ac   : > { %6546 = vmatpush1.bf16.msra.mxu0 %v13028_v5  ;;  %6933 = vmatprep.subr.bf16.mxu1 %v13033_v6 }
 0x3ad   : > { %v4160_v23 = vadd.f32 %v11414_v8, %v3999_v15  ;;  %v4002_v24 = vadd.f32 %v11305_v16, %v15513_v50  ;;  %4581 = vmatmul.mubr.bf16.gmra.mrb[144].mxu0 %v4282_v18  ;;  %4774 = vmatmul.mubr.bf16.gmra.mrb[144].mxu1 %v4282_v18  ;;  %v13055_v16 = vld [vmem:[%s17860_s7 + $0x2a8] ss:$28 sps:$4 sm:$0xff]   ;;  %v13058_v18 = vld [vmem:[%s17860_s7 + $0x2a0] ss:$28 sps:$4 sm:$0xff]  }
 0x3ae   : > { %4590 = vmatprep.mubr.bf16.mxu0 %v14208_v38  ;;  %4783 = vmatprep.mubr.bf16.mxu1 %v14208_v38 }
 0x3af   : > { %v4163_v26 = vadd.f32 %v11417_v17, %v4002_v24  ;;  %v11306_v27 = vpop.f32.mrb[88].mxu0  ;;  %v11418_v28 = vpop.f32.mrb[88].mxu1  ;;  %6934 = vmatpush1.bf16.msra.mxu1 %v13031_v19  ;;  %6547 = vmatprep.subr.bf16.mxu0 %v13036_v20  ;;  %v4256_v39 = vmax.f32 %v4160_v23, 0.0  ;;  %v13060_v17 = vld [vmem:[%s17860_s7 + $0x2a4] ss:$28 sps:$4 sm:$0xff]  }
 0x3b0   : > { %v11307_v30 = vpop.f32.mrb[89].mxu0  ;;  %v11419_v31 = vpop.f32.mrb[89].mxu1  ;;  %6548 = vmatpush1.bf16.msra.mxu0 %v13034_v21  ;;  %6935 = vmatprep.subr.bf16.mxu1 %v13039_v22  ;;  %v13063_v19 = vld [vmem:[%s17860_s7 + $0x2e4] ss:$28 sps:$4 sm:$0xff]   ;;  %v13066_v22 = vld [vmem:[%s17860_s7 + $0x2dc] ss:$28 sps:$4 sm:$0xff]  }
 0x3b1   : > { %v11308_v34 = vadd.f32 %v11307_v30, %v11306_v27  ;;  %v11420_v35 = vadd.f32 %v11419_v31, %v11418_v28  ;;  %v11309_v36 = vpop.f32.mrb[90].mxu0  ;;  %v11421_v37 = vpop.f32.mrb[90].mxu1  ;;  %v4257_v40 = vmax.f32 %v4163_v26, 0.0  ;;  %6549 = vmatprep.subr.bf16.mxu0 %v13042_v25  ;;  %v13061_v26 = vld [vmem:[%s17860_s7 + $0x2e0] ss:$28 sps:$4 sm:$0xff]  }
 0x3b2   : > { %v11310_v41 = vpop.f32.mrb[91].mxu0  ;;  %v11422_v42 = vpop.f32.mrb[91].mxu1  ;;  %v13069_v30 = vld [vmem:[%s17860_s7 + $0x31c] ss:$28 sps:$4 sm:$0xff]  }
 0x3b3   : > { %v4007_v43 = vadd.f32 %v11308_v34, %v15513_v50  ;;  %v11311_v44 = vadd.f32 %v11310_v41, %v11309_v36  ;;  %v11423_v45 = vadd.f32 %v11422_v42, %v11421_v37  ;;  %v4283_v46 = vpack.c.bf16 %v4257_v40, %v4256_v39  ;;  %6936 = vmatpush1.bf16.msra.mxu1 %v13037_v29  ;;  %v13064_v29 = vld [vmem:[%s17860_s7 + $0x2d8] ss:$28 sps:$4 sm:$0xff]  }
 0x3b4   : > { %6550 = vmatpush1.bf16.msra.mxu0 %v13040_v32  ;;  %6937 = vmatprep.subr.bf16.mxu1 %v13045_v33 }
 0x3b5   : > { %v4168_v1 = vadd.f32 %v11420_v35, %v4007_v43  ;;  %v4010_v48 = vadd.f32 %v11311_v44, %v15513_v50  ;;  %4591 = vmatmul.mubr.bf16.gmra.mrb[148].mxu0 %v4283_v46  ;;  %4784 = vmatmul.mubr.bf16.gmra.mrb[148].mxu1 %v4283_v46  ;;  %v13067_v44 = vld [vmem:[%s17860_s7 + $0x318] ss:$28 sps:$4 sm:$0xff]   ;;  %v13070_v46 = vld [vmem:[%s17860_s7 + $0x310] ss:$28 sps:$4 sm:$0xff]  }
 0x3b6   : > { %4600 = vmatprep.mubr.bf16.mxu0 %v14208_v38  ;;  %4793 = vmatprep.mubr.bf16.mxu1 %v14208_v38 }
 0x3b7   : > { %v4171_v51 = vadd.f32 %v11423_v45, %v4010_v48  ;;  %v11312_v52 = vpop.f32.mrb[92].mxu0  ;;  %v11424_v53 = vpop.f32.mrb[92].mxu1  ;;  %6938 = vmatpush1.bf16.msra.mxu1 %v13043_v62  ;;  %6551 = vmatprep.subr.bf16.mxu0 %v13048_v47  ;;  %v4258_v8 = vmax.f32 %v4168_v1, 0.0  ;;  %v13072_v45 = vld [vmem:[%s17860_s7 + $0x314] ss:$28 sps:$4 sm:$0xff]  }
 0x3b8   : > { %v11313_v55 = vpop.f32.mrb[93].mxu0  ;;  %v11425_v59 = vpop.f32.mrb[93].mxu1  ;;  %6552 = vmatpush1.bf16.msra.mxu0 %v13046_v63  ;;  %6939 = vmatprep.subr.bf16.mxu1 %v13051_v0 }
 0x3b9   : > { %v11314_v4 = vadd.f32 %v11313_v55, %v11312_v52  ;;  %v11426_v5 = vadd.f32 %v11425_v59, %v11424_v53  ;;  %v11315_v6 = vpop.f32.mrb[94].mxu0  ;;  %v11427_v7 = vpop.f32.mrb[94].mxu1  ;;  %v4259_v9 = vmax.f32 %v4171_v51, 0.0  ;;  %6553 = vmatprep.subr.bf16.mxu0 %v13054_v49 }
 0x3ba   : > { %v11316_v10 = vpop.f32.mrb[95].mxu0  ;;  %v11428_v11 = vpop.f32.mrb[95].mxu1 }
 0x3bb   : > { %v4015_v12 = vadd.f32 %v11314_v4, %v15513_v50  ;;  %v11317_v13 = vadd.f32 %v11316_v10, %v11315_v6  ;;  %v11429_v14 = vadd.f32 %v11428_v11, %v11427_v7  ;;  %v4284_v15 = vpack.c.bf16 %v4259_v9, %v4258_v8  ;;  %6940 = vmatpush1.bf16.msra.mxu1 %v13049_v54 }
 0x3bc   : > { %6554 = vmatpush1.bf16.msra.mxu0 %v13052_v2  ;;  %6941 = vmatprep.subr.bf16.mxu1 %v13057_v3 }
 0x3bd   : > { %v4176_v20 = vadd.f32 %v11426_v5, %v4015_v12  ;;  %v4018_v21 = vadd.f32 %v11317_v13, %v15513_v50  ;;  %4601 = vmatmul.mubr.bf16.gmra.mrb[152].mxu0 %v4284_v15  ;;  %4794 = vmatmul.mubr.bf16.gmra.mrb[152].mxu1 %v4284_v15 }
 0x3be   : > { %4610 = vmatprep.mubr.bf16.mxu0 %v14208_v38  ;;  %4803 = vmatprep.mubr.bf16.mxu1 %v14208_v38 }
 0x3bf   : > { %v4179_v23 = vadd.f32 %v11429_v14, %v4018_v21  ;;  %v11318_v24 = vpop.f32.mrb[96].mxu0  ;;  %v11430_v25 = vpop.f32.mrb[96].mxu1  ;;  %6942 = vmatpush1.bf16.msra.mxu1 %v13055_v16  ;;  %6555 = vmatprep.subr.bf16.mxu0 %v13060_v17  ;;  %v4260_v35 = vmax.f32 %v4176_v20, 0.0 }
 0x3c0   : > { %v11319_v27 = vpop.f32.mrb[97].mxu0  ;;  %v11431_v28 = vpop.f32.mrb[97].mxu1  ;;  %6556 = vmatpush1.bf16.msra.mxu0 %v13058_v18  ;;  %6943 = vmatprep.subr.bf16.mxu1 %v13063_v19 }
 0x3c1   : > { %v11320_v31 = vadd.f32 %v11319_v27, %v11318_v24  ;;  %v11432_v32 = vadd.f32 %v11431_v28, %v11430_v25  ;;  %v11321_v33 = vpop.f32.mrb[98].mxu0  ;;  %v11433_v34 = vpop.f32.mrb[98].mxu1  ;;  %v4261_v36 = vmax.f32 %v4179_v23, 0.0  ;;  %6557 = vmatprep.subr.bf16.mxu0 %v13066_v22 }
 0x3c2   : > { %v11322_v37 = vpop.f32.mrb[99].mxu0  ;;  %v11434_v39 = vpop.f32.mrb[99].mxu1 }
 0x3c3   : > { %v4023_v40 = vadd.f32 %v11320_v31, %v15513_v50  ;;  %v11323_v41 = vadd.f32 %v11322_v37, %v11321_v33  ;;  %v11435_v42 = vadd.f32 %v11434_v39, %v11433_v34  ;;  %v4285_v43 = vpack.c.bf16 %v4261_v36, %v4260_v35  ;;  %6944 = vmatpush1.bf16.msra.mxu1 %v13061_v26 }
 0x3c4   : > { %6558 = vmatpush1.bf16.msra.mxu0 %v13064_v29  ;;  %6945 = vmatprep.subr.bf16.mxu1 %v13069_v30 }
 0x3c5   : > { %v4184_v62 = vadd.f32 %v11432_v32, %v4023_v40  ;;  %v4026_v47 = vadd.f32 %v11323_v41, %v15513_v50  ;;  %4611 = vmatmul.mubr.bf16.gmra.mrb[156].mxu0 %v4285_v43  ;;  %4804 = vmatmul.mubr.bf16.gmra.mrb[156].mxu1 %v4285_v43 }
 0x3c6   : > { %4620 = vmatprep.mubr.bf16.mxu0 %v14208_v38  ;;  %4813 = vmatprep.mubr.bf16.mxu1 %v14208_v38 }
 0x3c7   : > { %v4187_v63 = vadd.f32 %v11435_v42, %v4026_v47  ;;  %v11324_v0 = vpop.f32.mrb[100].mxu0  ;;  %v11436_v1 = vpop.f32.mrb[100].mxu1  ;;  %6946 = vmatpush1.bf16.msra.mxu1 %v13067_v44  ;;  %6559 = vmatprep.subr.bf16.mxu0 %v13072_v45  ;;  %v4262_v55 = vmax.f32 %v4184_v62, 0.0 }
 0x3c8   : > { %v11325_v48 = vpop.f32.mrb[101].mxu0  ;;  %v11437_v49 = vpop.f32.mrb[101].mxu1  ;;  %6560 = vmatpush1.bf16.msra.mxu0 %v13070_v46 }
 0x3c9   : > { %v11326_v51 = vadd.f32 %v11325_v48, %v11324_v0  ;;  %v11438_v52 = vadd.f32 %v11437_v49, %v11436_v1  ;;  %v11327_v53 = vpop.f32.mrb[102].mxu0  ;;  %v11439_v54 = vpop.f32.mrb[102].mxu1  ;;  %v4263_v59 = vmax.f32 %v4187_v63, 0.0 }
 0x3ca   : > { %v11328_v2 = vpop.f32.mrb[103].mxu0  ;;  %v11440_v3 = vpop.f32.mrb[103].mxu1 }
 0x3cb   : > { %v4031_v4 = vadd.f32 %v11326_v51, %v15513_v50  ;;  %v11329_v5 = vadd.f32 %v11328_v2, %v11327_v53  ;;  %v11441_v6 = vadd.f32 %v11440_v3, %v11439_v54  ;;  %v4286_v7 = vpack.c.bf16 %v4263_v59, %v4262_v55 }
 0x3cd   : > { %v4192_v8 = vadd.f32 %v11438_v52, %v4031_v4  ;;  %v4034_v9 = vadd.f32 %v11329_v5, %v15513_v50  ;;  %4621 = vmatmul.mubr.bf16.gmra.mrb[160].mxu0 %v4286_v7  ;;  %4814 = vmatmul.mubr.bf16.gmra.mrb[160].mxu1 %v4286_v7 }
 0x3ce   : > { %4630 = vmatprep.mubr.bf16.mxu0 %v14208_v38  ;;  %4823 = vmatprep.mubr.bf16.mxu1 %v14208_v38 }
 0x3cf   : > { %v4195_v10 = vadd.f32 %v11441_v6, %v4034_v9  ;;  %v11330_v11 = vpop.f32.mrb[104].mxu0  ;;  %v11442_v12 = vpop.f32.mrb[104].mxu1  ;;  %v4264_v19 = vmax.f32 %v4192_v8, 0.0 }
 0x3d0   : > { %v11331_v13 = vpop.f32.mrb[105].mxu0  ;;  %v11443_v14 = vpop.f32.mrb[105].mxu1 }
 0x3d1   : > { %v11332_v15 = vadd.f32 %v11331_v13, %v11330_v11  ;;  %v11444_v16 = vadd.f32 %v11443_v14, %v11442_v12  ;;  %v11333_v17 = vpop.f32.mrb[106].mxu0  ;;  %v11445_v18 = vpop.f32.mrb[106].mxu1  ;;  %v4265_v20 = vmax.f32 %v4195_v10, 0.0  ;;  %v13075_v10 = vld [vmem:[%s17860_s7 + $0x354] ss:$28 sps:$4 sm:$0xff]  }
 0x3d2   : > { %v11334_v21 = vpop.f32.mrb[107].mxu0  ;;  %v11446_v22 = vpop.f32.mrb[107].mxu1  ;;  %v13078_v11 = vld [vmem:[%s17860_s7 + $0x34c] ss:$28 sps:$4 sm:$0xff]   ;;  %6947 = vmatprep.subr.bf16.mxu1 %v13075_v10 }
 0x3d3   : > { %v4039_v23 = vadd.f32 %v11332_v15, %v15513_v50  ;;  %v11335_v24 = vadd.f32 %v11334_v21, %v11333_v17  ;;  %v11447_v25 = vadd.f32 %v11446_v22, %v11445_v18  ;;  %v4287_v26 = vpack.c.bf16 %v4265_v20, %v4264_v19  ;;  %v13073_v12 = vld [vmem:[%s17860_s7 + $0x350] ss:$28 sps:$4 sm:$0xff]   ;;  %v13076_v13 = vld [vmem:[%s17860_s7 + $0x348] ss:$28 sps:$4 sm:$0xff]   ;;  %6561 = vmatprep.subr.bf16.mxu0 %v13078_v11 }
 0x3d4   : > { %6948 = vmatpush1.bf16.msra.mxu1 %v13073_v12  ;;  %6562 = vmatpush1.bf16.msra.mxu0 %v13076_v13 }
 0x3d5   : > { %v4200_v27 = vadd.f32 %v11444_v16, %v4039_v23  ;;  %v4042_v28 = vadd.f32 %v11335_v24, %v15513_v50  ;;  %4631 = vmatmul.mubr.bf16.gmra.mrb[164].mxu0 %v4287_v26  ;;  %4824 = vmatmul.mubr.bf16.gmra.mrb[164].mxu1 %v4287_v26 }
 0x3d6   : > { %4640 = vmatprep.mubr.bf16.mxu0 %v14208_v38  ;;  %4833 = vmatprep.mubr.bf16.mxu1 %v14208_v38 }
 0x3d7   : > { %v4203_v29 = vadd.f32 %v11447_v25, %v4042_v28  ;;  %v11336_v30 = vpop.f32.mrb[108].mxu0  ;;  %v11448_v31 = vpop.f32.mrb[108].mxu1  ;;  %v4266_v39 = vmax.f32 %v4200_v27, 0.0 }
 0x3d8   : > { %v11337_v32 = vpop.f32.mrb[109].mxu0  ;;  %v11449_v33 = vpop.f32.mrb[109].mxu1 }
 0x3d9   : > { %v11338_v34 = vadd.f32 %v11337_v32, %v11336_v30  ;;  %v11450_v35 = vadd.f32 %v11449_v33, %v11448_v31  ;;  %v11339_v36 = vpop.f32.mrb[110].mxu0  ;;  %v11451_v37 = vpop.f32.mrb[110].mxu1  ;;  %v4267_v40 = vmax.f32 %v4203_v29, 0.0 }
 0x3da   : > { %v11340_v41 = vpop.f32.mrb[111].mxu0  ;;  %v11452_v42 = vpop.f32.mrb[111].mxu1 }
 0x3db   : > { %v4047_v43 = vadd.f32 %v11338_v34, %v15513_v50  ;;  %v11341_v44 = vadd.f32 %v11340_v41, %v11339_v36  ;;  %v11453_v45 = vadd.f32 %v11452_v42, %v11451_v37  ;;  %v4288_v46 = vpack.c.bf16 %v4267_v40, %v4266_v39  ;;  %v13081_v39 = vld [vmem:[%s17860_s7 + $0x38c] ss:$28 sps:$4 sm:$0xff]  }
 0x3dc   : > { %7110 = vmatprep.subr.bf16.mxu1 %v13081_v39 }
 0x3dd   : > { %v4208_v62 = vadd.f32 %v11450_v35, %v4047_v43  ;;  %v4050_v47 = vadd.f32 %v11341_v44, %v15513_v50  ;;  %4641 = vmatmul.mubr.bf16.gmra.mrb[168].mxu0 %v4288_v46  ;;  %4834 = vmatmul.mubr.bf16.gmra.mrb[168].mxu1 %v4288_v46 }
 0x3de   : > { %4650 = vmatprep.mubr.bf16.mxu0 %v14208_v38  ;;  %4843 = vmatprep.mubr.bf16.mxu1 %v14208_v38 }
 0x3df   : > { %v4211_v63 = vadd.f32 %v11453_v45, %v4050_v47  ;;  %v11342_v0 = vpop.f32.mrb[112].mxu0  ;;  %v11454_v1 = vpop.f32.mrb[112].mxu1  ;;  %v4268_v55 = vmax.f32 %v4208_v62, 0.0  ;;  %v13084_v47 = vld [vmem:[%s17860_s7 + $0x384] ss:$28 sps:$4 sm:$0xff]  }
 0x3e0   : > { %v11343_v48 = vpop.f32.mrb[113].mxu0  ;;  %v11455_v49 = vpop.f32.mrb[113].mxu1  ;;  %6724 = vmatprep.subr.bf16.mxu0 %v13084_v47 }
 0x3e1   : > { %v11344_v51 = vadd.f32 %v11343_v48, %v11342_v0  ;;  %v11456_v52 = vadd.f32 %v11455_v49, %v11454_v1  ;;  %v11345_v53 = vpop.f32.mrb[114].mxu0  ;;  %v11457_v54 = vpop.f32.mrb[114].mxu1  ;;  %v4269_v59 = vmax.f32 %v4211_v63, 0.0 }
 0x3e2   : > { %v11346_v2 = vpop.f32.mrb[115].mxu0  ;;  %v11458_v3 = vpop.f32.mrb[115].mxu1 }
 0x3e3   : > { %v4055_v4 = vadd.f32 %v11344_v51, %v15513_v50  ;;  %v11347_v5 = vadd.f32 %v11346_v2, %v11345_v53  ;;  %v11459_v6 = vadd.f32 %v11458_v3, %v11457_v54  ;;  %v4289_v7 = vpack.c.bf16 %v4269_v59, %v4268_v55 }
 0x3e5   : > { %v4216_v8 = vadd.f32 %v11456_v52, %v4055_v4  ;;  %v4058_v9 = vadd.f32 %v11347_v5, %v15513_v50  ;;  %4651 = vmatmul.mubr.bf16.gmra.mrb[172].mxu0 %v4289_v7  ;;  %4844 = vmatmul.mubr.bf16.gmra.mrb[172].mxu1 %v4289_v7 }
 0x3e6   : > { %4660 = vmatprep.mubr.bf16.mxu0 %v14208_v38  ;;  %4853 = vmatprep.mubr.bf16.mxu1 %v14208_v38 }
 0x3e7   : > { %v4219_v14 = vadd.f32 %v11459_v6, %v4058_v9  ;;  %v11348_v15 = vpop.f32.mrb[116].mxu0  ;;  %v11460_v16 = vpop.f32.mrb[116].mxu1  ;;  %v4270_v23 = vmax.f32 %v4216_v8, 0.0 }
 0x3e8   : > { %v11349_v17 = vpop.f32.mrb[117].mxu0  ;;  %v11461_v18 = vpop.f32.mrb[117].mxu1 }
 0x3e9   : > { %v11350_v19 = vadd.f32 %v11349_v17, %v11348_v15  ;;  %v11462_v20 = vadd.f32 %v11461_v18, %v11460_v16  ;;  %v11351_v21 = vpop.f32.mrb[118].mxu0  ;;  %v11463_v22 = vpop.f32.mrb[118].mxu1  ;;  %v4271_v24 = vmax.f32 %v4219_v14, 0.0 }
 0x3ea   : > { %v11352_v25 = vpop.f32.mrb[119].mxu0  ;;  %v11464_v26 = vpop.f32.mrb[119].mxu1 }
 0x3eb   : > { %v4063_v27 = vadd.f32 %v11350_v19, %v15513_v50  ;;  %v11353_v28 = vadd.f32 %v11352_v25, %v11351_v21  ;;  %v11465_v29 = vadd.f32 %v11464_v26, %v11463_v22  ;;  %v4290_v30 = vpack.c.bf16 %v4271_v24, %v4270_v23 }
 0x3ed   : > { %v4224_v31 = vadd.f32 %v11462_v20, %v4063_v27  ;;  %v4066_v32 = vadd.f32 %v11353_v28, %v15513_v50  ;;  %4661 = vmatmul.mubr.bf16.gmra.mrb[176].mxu0 %v4290_v30  ;;  %4854 = vmatmul.mubr.bf16.gmra.mrb[176].mxu1 %v4290_v30  ;;  %v4326_v20 = vld [vmem:[%s17859_s6] sm:$0xf] }
 0x3ee   : > { %4670 = vmatprep.mubr.bf16.mxu0 %v14208_v38  ;;  %4863 = vmatprep.mubr.bf16.mxu1 %v14208_v38  ;;  %v15773_v21 = vrot.slane %v4326_v20, %v15255_v57  ;;  %v15779_v22 = vrot.slane %v4326_v20, %v15264_v60 }
 0x3ef   : > { %v4227_v33 = vadd.f32 %v11465_v29, %v4066_v32  ;;  %v11354_v34 = vpop.f32.mrb[120].mxu0  ;;  %v11466_v35 = vpop.f32.mrb[120].mxu1  ;;  %v4272_v44 = vmax.f32 %v4224_v31, 0.0 }
 0x3f0   : > { %v11355_v36 = vpop.f32.mrb[121].mxu0  ;;  %v11467_v37 = vpop.f32.mrb[121].mxu1 }
 0x3f1   : > { %v11356_v40 = vadd.f32 %v11355_v36, %v11354_v34  ;;  %v11468_v41 = vadd.f32 %v11467_v37, %v11466_v35  ;;  %v11357_v42 = vpop.f32.mrb[122].mxu0  ;;  %v11469_v43 = vpop.f32.mrb[122].mxu1  ;;  %v4273_v45 = vmax.f32 %v4227_v33, 0.0 }
 0x3f2   : > { %v11358_v46 = vpop.f32.mrb[123].mxu0  ;;  %v11470_v62 = vpop.f32.mrb[123].mxu1 }
 0x3f3   : > { %v4071_v63 = vadd.f32 %v11356_v40, %v15513_v50  ;;  %v11359_v0 = vadd.f32 %v11358_v46, %v11357_v42  ;;  %v11471_v1 = vadd.f32 %v11470_v62, %v11469_v43  ;;  %v4291_v48 = vpack.c.bf16 %v4273_v45, %v4272_v44 }
 0x3f5   : > { %v4232_v49 = vadd.f32 %v11468_v41, %v4071_v63  ;;  %v4074_v51 = vadd.f32 %v11359_v0, %v15513_v50  ;;  %4671 = vmatmul.mubr.bf16.gmra.mrb[180].mxu0 %v4291_v48  ;;  %4864 = vmatmul.mubr.bf16.gmra.mrb[180].mxu1 %v4291_v48 }
 0x3f6   : > { %4680 = vmatprep.mubr.bf16.mxu0 %v14208_v38  ;;  %4873 = vmatprep.mubr.bf16.mxu1 %v14208_v38 }
 0x3f7   : > { %v4235_v52 = vadd.f32 %v11471_v1, %v4074_v51  ;;  %v11360_v53 = vpop.f32.mrb[124].mxu0  ;;  %v11472_v54 = vpop.f32.mrb[124].mxu1  ;;  %v4274_v6 = vmax.f32 %v4232_v49, 0.0  ;;  %v13079_v51 = vld [vmem:[%s17860_s7 + $0x388] ss:$28 sps:$4 sm:$0xff]  }
 0x3f8   : > { %v11361_v55 = vpop.f32.mrb[125].mxu0  ;;  %v11473_v59 = vpop.f32.mrb[125].mxu1 }
 0x3f9   : > { %v11362_v2 = vadd.f32 %v11361_v55, %v11360_v53  ;;  %v11474_v3 = vadd.f32 %v11473_v59, %v11472_v54  ;;  %v11363_v4 = vpop.f32.mrb[126].mxu0  ;;  %v11475_v5 = vpop.f32.mrb[126].mxu1  ;;  %v4275_v7 = vmax.f32 %v4235_v52, 0.0  ;;  %v13082_v52 = vld [vmem:[%s17860_s7 + $0x380] ss:$28 sps:$4 sm:$0xff]  }
 0x3fa   : > { %v11364_v8 = vpop.f32.mrb[127].mxu0  ;;  %v11476_v9 = vpop.f32.mrb[127].mxu1 }
 0x3fb   : > { %v4079_v10 = vadd.f32 %v11362_v2, %v15513_v50  ;;  %v11365_v11 = vadd.f32 %v11364_v8, %v11363_v4  ;;  %v11477_v12 = vadd.f32 %v11476_v9, %v11475_v5  ;;  %v4292_v13 = vpack.c.bf16 %v4275_v7, %v4274_v6  ;;  %v13087_v2 = vld [vmem:[%s17860_s7 + $0x3c4] ss:$28 sps:$4 sm:$0xff]  }
 0x3fd   : > { %v4240_v14 = vadd.f32 %v11474_v3, %v4079_v10  ;;  %v4082_v15 = vadd.f32 %v11365_v11, %v15513_v50  ;;  %4681 = vmatmul.mubr.bf16.gmra.mrb[184].mxu0 %v4292_v13  ;;  %4874 = vmatmul.mubr.bf16.gmra.mrb[184].mxu1 %v4292_v13  ;;  %v15776_v50 = vrot.slane %v4326_v20, %v15258_v58  ;;  %v13090_v3 = vld [vmem:[%s17860_s7 + $0x3bc] ss:$28 sps:$4 sm:$0xff]  }
 0x3fe   : > { %4690 = vmatprep.mubr.bf16.mxu0 %v14208_v38  ;;  %4883 = vmatprep.mubr.bf16.mxu1 %v14208_v38  ;;  %v15782_v38 = vrot.slane %v4326_v20, %v15267_v61 }
 0x3ff   : > { %v4243_v16 = vadd.f32 %v11477_v12, %v4082_v15  ;;  %v4276_v17 = vmax.f32 %v4240_v14, 0.0  ;;  %v13085_v14 = vld [vmem:[%s17860_s7 + $0x3c0] ss:$28 sps:$4 sm:$0xff]   ;;  %v13088_v15 = vld [vmem:[%s17860_s7 + $0x3b8] ss:$28 sps:$4 sm:$0xff]  }
 0x401   : > { %v4277_v18 = vmax.f32 %v4243_v16, 0.0  ;;  %v13093_v16 = vld [vmem:[%s17860_s7 + $0x3fc] ss:$28 sps:$4 sm:$0xff]  }
 0x403   : > { %v4293_v19 = vpack.c.bf16 %v4277_v18, %v4276_v17 }
 0x405   : > { %4691 = vmatmul.mubr.bf16.gmra.mrb[188].mxu0 %v4293_v19  ;;  %4884 = vmatmul.mubr.bf16.gmra.mrb[188].mxu1 %v4293_v19 }
 0x460   : > { %v4542_v23 = vpop.f32.mrb[128].mxu0  ;;  %v4735_v24 = vpop.f32.mrb[128].mxu1 }
 0x461   : > { %v4543_v25 = vadd.f32 %v4542_v23, %v15773_v21  ;;  %v4736_v26 = vadd.f32 %v4735_v24, %v15776_v50  ;;  %v4544_v27 = vpop.f32.mrb[129].mxu0  ;;  %v4737_v28 = vpop.f32.mrb[129].mxu1  ;;  %v13096_v23 = vld [vmem:[%s17860_s7 + $0x3f4] ss:$28 sps:$4 sm:$0xff]  }
 0x462   : > { %v4545_v29 = vadd.f32 %v4544_v27, %v15779_v22  ;;  %v4738_v30 = vadd.f32 %v4737_v28, %v15782_v38  ;;  %v4546_v31 = vpop.f32.mrb[130].mxu0  ;;  %v4739_v32 = vpop.f32.mrb[130].mxu1 }
 0x463   : > { %v4547_v33 = vadd.f32 %v4546_v31, %v15773_v21  ;;  %v4740_v34 = vadd.f32 %v4739_v32, %v15776_v50  ;;  %v4548_v35 = vpop.f32.mrb[131].mxu0  ;;  %v4741_v36 = vpop.f32.mrb[131].mxu1  ;;  %v4894_v40 = vmax.f32 %v4543_v25, 0.0  ;;  %v4896_v41 = vmax.f32 %v4736_v26, 0.0 }
 0x464   : > { %v4549_v37 = vadd.f32 %v4548_v35, %v15779_v22  ;;  %v4742_v39 = vadd.f32 %v4741_v36, %v15782_v38  ;;  %v4895_v44 = vmax.f32 %v4545_v29, 0.0  ;;  %v4897_v45 = vmax.f32 %v4738_v30, 0.0  ;;  %v13094_v35 = vld [vmem:[%s17860_s7 + $0x3f0] ss:$28 sps:$4 sm:$0xff]  }
 0x465   : > { %v4898_v42 = vmax.f32 %v4547_v33, 0.0  ;;  %v4900_v43 = vmax.f32 %v4740_v34, 0.0  ;;  %v13091_v34 = vld [vmem:[%s17860_s7 + $0x3f8] ss:$28 sps:$4 sm:$0xff]  }
 0x466   : > { %v4899_v46 = vmax.f32 %v4549_v37, 0.0  ;;  %v4901_v62 = vmax.f32 %v4742_v39, 0.0 }
 0x467   : > { %v15792_v47 = vpack.c.bf16 %v4898_v42, %v4894_v40  ;;  %v15794_v63 = vpack.c.bf16 %v4900_v43, %v4896_v41  ;;  %v13099_v41 = vld [vmem:[%s17860_s7 + $0x434] ss:$28 sps:$4 sm:$0xff]   ;;  %v13102_v42 = vld [vmem:[%s17860_s7 + $0x42c] ss:$28 sps:$4 sm:$0xff]  }
 0x468   : > { %v15796_v0 = vpack.c.bf16 %v4899_v46, %v4895_v44  ;;  %v15798_v1 = vpack.c.bf16 %v4901_v62, %v4897_v45  ;;  %v4552_v48 = vpop.f32.mrb[132].mxu0  ;;  %v4745_v49 = vpop.f32.mrb[132].mxu1 }
 0x469   : > { %v4553_v53 = vadd.f32 %v4552_v48, %v15773_v21  ;;  %v4746_v54 = vadd.f32 %v4745_v49, %v15776_v50  ;;  %v4554_v55 = vpop.f32.mrb[133].mxu0  ;;  %v4747_v59 = vpop.f32.mrb[133].mxu1 }
 0x46a   : > { %v4555_v4 = vadd.f32 %v4554_v55, %v15779_v22  ;;  %v4748_v5 = vadd.f32 %v4747_v59, %v15782_v38  ;;  %v4556_v6 = vpop.f32.mrb[134].mxu0  ;;  %v4749_v7 = vpop.f32.mrb[134].mxu1  ;;  %6563 = vmatprep.mubr.bf16.mxu0 %v15796_v0  ;;  %6949 = vmatprep.mubr.bf16.mxu1 %v15796_v0  ;;  %v13100_v55 = vld [vmem:[%s17860_s7 + $0x428] ss:$28 sps:$4 sm:$0xff]  }
 0x46b   : > { %v4557_v8 = vadd.f32 %v4556_v6, %v15773_v21  ;;  %v4750_v9 = vadd.f32 %v4749_v7, %v15776_v50  ;;  %v4558_v10 = vpop.f32.mrb[135].mxu0  ;;  %v4751_v11 = vpop.f32.mrb[135].mxu1  ;;  %6564 = vmatmul.mubr.bf16.vlgmr.msra.gmra.mrb[192].mxu0 %v15792_v47  ;;  %6950 = vmatmul.mubr.bf16.vlgmr.msra.gmra.mrb[192].mxu1 %v15792_v47  ;;  %v4902_v17 = vmax.f32 %v4553_v53, 0.0  ;;  %v4904_v18 = vmax.f32 %v4746_v54, 0.0  ;;  %v13097_v54 = vld [vmem:[%s17860_s7 + $0x430] ss:$28 sps:$4 sm:$0xff]  }
 0x46c   : > { %v4559_v12 = vadd.f32 %v4558_v10, %v15779_v22  ;;  %v4752_v13 = vadd.f32 %v4751_v11, %v15782_v38  ;;  %7111 = vmatpush1.bf16.msra.mxu1 %v13079_v51  ;;  %6725 = vmatpush1.bf16.msra.mxu0 %v13082_v52  ;;  %v4903_v24 = vmax.f32 %v4555_v4, 0.0  ;;  %v4905_v25 = vmax.f32 %v4748_v5, 0.0  ;;  %v13105_v59 = vld [vmem:[%s17860_s7 + $0x46c] ss:$28 sps:$4 sm:$0xff]   ;;  %v13108_v6 = vld [vmem:[%s17860_s7 + $0x464] ss:$28 sps:$4 sm:$0xff]  }
 0x46d   : > { %v4906_v19 = vmax.f32 %v4557_v8, 0.0  ;;  %v4908_v20 = vmax.f32 %v4750_v9, 0.0  ;;  %7112 = vmatprep.subr.bf16.mxu1 %v13087_v2  ;;  %6726 = vmatprep.subr.bf16.mxu0 %v13090_v3 }
 0x46e   : > { %v4907_v26 = vmax.f32 %v4559_v12, 0.0  ;;  %v4909_v27 = vmax.f32 %v4752_v13, 0.0 }
 0x46f   : > { %v15836_v28 = vpack.c.bf16 %v4906_v19, %v4902_v17  ;;  %v15838_v29 = vpack.c.bf16 %v4908_v20, %v4904_v18  ;;  %v13103_v17 = vld [vmem:[%s17860_s7 + $0x468] ss:$28 sps:$4 sm:$0xff]   ;;  %v13106_v18 = vld [vmem:[%s17860_s7 + $0x460] ss:$28 sps:$4 sm:$0xff]  }
 0x470   : > { %v15840_v30 = vpack.c.bf16 %v4907_v26, %v4903_v24  ;;  %v15842_v31 = vpack.c.bf16 %v4909_v27, %v4905_v25  ;;  %v4562_v32 = vpop.f32.mrb[136].mxu0  ;;  %v4755_v33 = vpop.f32.mrb[136].mxu1  ;;  %7113 = vmatpush1.bf16.msra.mxu1 %v13085_v14  ;;  %6727 = vmatpush1.bf16.msra.mxu0 %v13088_v15  ;;  %v13111_v25 = vld [vmem:[%s17860_s7 + $0x4a4] ss:$28 sps:$4 sm:$0xff]   ;;  %v13114_v26 = vld [vmem:[%s17860_s7 + $0x49c] ss:$28 sps:$4 sm:$0xff]  }
 0x471   : > { %v4563_v36 = vadd.f32 %v4562_v32, %v15773_v21  ;;  %v4756_v37 = vadd.f32 %v4755_v33, %v15776_v50  ;;  %v4564_v39 = vpop.f32.mrb[137].mxu0  ;;  %v4757_v40 = vpop.f32.mrb[137].mxu1  ;;  %7114 = vmatprep.subr.bf16.mxu1 %v13093_v16  ;;  %6728 = vmatprep.subr.bf16.mxu0 %v13096_v23 }
 0x472   : > { %v4565_v43 = vadd.f32 %v4564_v39, %v15779_v22  ;;  %v4758_v44 = vadd.f32 %v4757_v40, %v15782_v38  ;;  %v4566_v45 = vpop.f32.mrb[138].mxu0  ;;  %v4759_v46 = vpop.f32.mrb[138].mxu1  ;;  %6573 = vmatprep.mubr.bf16.mxu0 %v15840_v30  ;;  %6959 = vmatprep.mubr.bf16.mxu1 %v15840_v30 }
 0x473   : > { %v4567_v62 = vadd.f32 %v4566_v45, %v15773_v21  ;;  %v4760_v48 = vadd.f32 %v4759_v46, %v15776_v50  ;;  %v4568_v49 = vpop.f32.mrb[139].mxu0  ;;  %v4761_v51 = vpop.f32.mrb[139].mxu1  ;;  %6574 = vmatmul.mubr.bf16.gmra.mrb[196].mxu0 %v15836_v28  ;;  %6960 = vmatmul.mubr.bf16.gmra.mrb[196].mxu1 %v15836_v28  ;;  %v4910_v2 = vmax.f32 %v4563_v36, 0.0  ;;  %v4912_v3 = vmax.f32 %v4756_v37, 0.0 }
 0x474   : > { %v4569_v52 = vadd.f32 %v4568_v49, %v15779_v22  ;;  %v4762_v53 = vadd.f32 %v4761_v51, %v15782_v38  ;;  %7115 = vmatpush1.bf16.msra.mxu1 %v13091_v34  ;;  %6729 = vmatpush1.bf16.msra.mxu0 %v13094_v35  ;;  %v4911_v7 = vmax.f32 %v4565_v43, 0.0  ;;  %v4913_v8 = vmax.f32 %v4758_v44, 0.0  ;;  %v13112_v43 = vld [vmem:[%s17860_s7 + $0x498] ss:$28 sps:$4 sm:$0xff]  }
 0x475   : > { %v4914_v4 = vmax.f32 %v4567_v62, 0.0  ;;  %v4916_v5 = vmax.f32 %v4760_v48, 0.0  ;;  %7116 = vmatprep.subr.bf16.mxu1 %v13099_v41  ;;  %6730 = vmatprep.subr.bf16.mxu0 %v13102_v42  ;;  %v13109_v42 = vld [vmem:[%s17860_s7 + $0x4a0] ss:$28 sps:$4 sm:$0xff]   ;;  %v13120_v49 = vld [vmem:[%s17860_s7 + $0x4d4] ss:$28 sps:$4 sm:$0xff]  }
 0x476   : > { %v4915_v9 = vmax.f32 %v4569_v52, 0.0  ;;  %v4917_v10 = vmax.f32 %v4762_v53, 0.0  ;;  %v13117_v44 = vld [vmem:[%s17860_s7 + $0x4dc] ss:$28 sps:$4 sm:$0xff]  }
 0x477   : > { %v15880_v11 = vpack.c.bf16 %v4914_v4, %v4910_v2  ;;  %v15882_v12 = vpack.c.bf16 %v4916_v5, %v4912_v3 }
 0x478   : > { %v15884_v13 = vpack.c.bf16 %v4915_v9, %v4911_v7  ;;  %v15886_v14 = vpack.c.bf16 %v4917_v10, %v4913_v8  ;;  %v4572_v15 = vpop.f32.mrb[140].mxu0  ;;  %v4765_v16 = vpop.f32.mrb[140].mxu1  ;;  %7117 = vmatpush1.bf16.msra.mxu1 %v13097_v54  ;;  %6731 = vmatpush1.bf16.msra.mxu0 %v13100_v55  ;;  %v13118_v7 = vld [vmem:[%s17860_s7 + $0x4d0] ss:$28 sps:$4 sm:$0xff]  }
 0x479   : > { %v4573_v19 = vadd.f32 %v4572_v15, %v15773_v21  ;;  %v4766_v20 = vadd.f32 %v4765_v16, %v15776_v50  ;;  %v4574_v23 = vpop.f32.mrb[141].mxu0  ;;  %v4767_v24 = vpop.f32.mrb[141].mxu1  ;;  %7118 = vmatprep.subr.bf16.mxu1 %v13105_v59  ;;  %6732 = vmatprep.subr.bf16.mxu0 %v13108_v6  ;;  %v13115_v6 = vld [vmem:[%s17860_s7 + $0x4d8] ss:$28 sps:$4 sm:$0xff]  }
 0x47a   : > { %v4575_v27 = vadd.f32 %v4574_v23, %v15779_v22  ;;  %v4768_v32 = vadd.f32 %v4767_v24, %v15782_v38  ;;  %v4576_v33 = vpop.f32.mrb[142].mxu0  ;;  %v4769_v34 = vpop.f32.mrb[142].mxu1  ;;  %6583 = vmatprep.mubr.bf16.mxu0 %v15884_v13  ;;  %6969 = vmatprep.mubr.bf16.mxu1 %v15884_v13  ;;  %v13123_v16 = vld [vmem:[%s17860_s7 + $0x514] ss:$28 sps:$4 sm:$0xff]  }
 0x47b   : > { %v4577_v35 = vadd.f32 %v4576_v33, %v15773_v21  ;;  %v4770_v36 = vadd.f32 %v4769_v34, %v15776_v50  ;;  %v4578_v37 = vpop.f32.mrb[143].mxu0  ;;  %v4771_v39 = vpop.f32.mrb[143].mxu1  ;;  %6584 = vmatmul.mubr.bf16.gmra.mrb[200].mxu0 %v15880_v11  ;;  %6970 = vmatmul.mubr.bf16.gmra.mrb[200].mxu1 %v15880_v11  ;;  %v4918_v45 = vmax.f32 %v4573_v19, 0.0  ;;  %v4920_v46 = vmax.f32 %v4766_v20, 0.0  ;;  %v13121_v34 = vld [vmem:[%s17860_s7 + $0x510] ss:$28 sps:$4 sm:$0xff]  }
 0x47c   : > { %v4579_v40 = vadd.f32 %v4578_v37, %v15779_v22  ;;  %v4772_v41 = vadd.f32 %v4771_v39, %v15782_v38  ;;  %7119 = vmatpush1.bf16.msra.mxu1 %v13103_v17  ;;  %6733 = vmatpush1.bf16.msra.mxu0 %v13106_v18  ;;  %v4919_v51 = vmax.f32 %v4575_v27, 0.0  ;;  %v4921_v52 = vmax.f32 %v4768_v32, 0.0  ;;  %v13126_v17 = vld [vmem:[%s17860_s7 + $0x50c] ss:$28 sps:$4 sm:$0xff]  }
 0x47d   : > { %v4922_v62 = vmax.f32 %v4577_v35, 0.0  ;;  %v4924_v48 = vmax.f32 %v4770_v36, 0.0  ;;  %7120 = vmatprep.subr.bf16.mxu1 %v13111_v25  ;;  %6734 = vmatprep.subr.bf16.mxu0 %v13114_v26  ;;  %v13124_v35 = vld [vmem:[%s17860_s7 + $0x508] ss:$28 sps:$4 sm:$0xff]  }
 0x47e   : > { %v4923_v53 = vmax.f32 %v4579_v40, 0.0  ;;  %v4925_v54 = vmax.f32 %v4772_v41, 0.0  ;;  %v13129_v36 = vld [vmem:[%s17860_s7 + $0x54c] ss:$28 sps:$4 sm:$0xff]  }
 0x47f   : > { %v15924_v55 = vpack.c.bf16 %v4922_v62, %v4918_v45  ;;  %v15926_v59 = vpack.c.bf16 %v4924_v48, %v4920_v46 }
 0x480   : > { %v15928_v2 = vpack.c.bf16 %v4923_v53, %v4919_v51  ;;  %v15930_v3 = vpack.c.bf16 %v4925_v54, %v4921_v52  ;;  %v4582_v4 = vpop.f32.mrb[144].mxu0  ;;  %v4775_v5 = vpop.f32.mrb[144].mxu1  ;;  %7121 = vmatpush1.bf16.msra.mxu1 %v13109_v42  ;;  %6735 = vmatpush1.bf16.msra.mxu0 %v13112_v43  ;;  %v13132_v42 = vld [vmem:[%s17860_s7 + $0x544] ss:$28 sps:$4 sm:$0xff]  }
 0x481   : > { %v4583_v8 = vadd.f32 %v4582_v4, %v15773_v21  ;;  %v4776_v9 = vadd.f32 %v4775_v5, %v15776_v50  ;;  %v4584_v10 = vpop.f32.mrb[145].mxu0  ;;  %v4777_v15 = vpop.f32.mrb[145].mxu1  ;;  %7122 = vmatprep.subr.bf16.mxu1 %v13117_v44  ;;  %6736 = vmatprep.subr.bf16.mxu0 %v13120_v49  ;;  %v13127_v54 = vld [vmem:[%s17860_s7 + $0x548] ss:$28 sps:$4 sm:$0xff]   ;;  %v13130_v4 = vld [vmem:[%s17860_s7 + $0x540] ss:$28 sps:$4 sm:$0xff]  }
 0x482   : > { %v4585_v18 = vadd.f32 %v4584_v10, %v15779_v22  ;;  %v4778_v19 = vadd.f32 %v4777_v15, %v15782_v38  ;;  %v4586_v20 = vpop.f32.mrb[146].mxu0  ;;  %v4779_v23 = vpop.f32.mrb[146].mxu1  ;;  %6593 = vmatprep.mubr.bf16.mxu0 %v15928_v2  ;;  %6979 = vmatprep.mubr.bf16.mxu1 %v15928_v2  ;;  %v13138_v10 = vld [vmem:[%s17860_s7 + $0x57c] ss:$28 sps:$4 sm:$0xff]  }
 0x483   : > { %v4587_v24 = vadd.f32 %v4586_v20, %v15773_v21  ;;  %v4780_v25 = vadd.f32 %v4779_v23, %v15776_v50  ;;  %v4588_v26 = vpop.f32.mrb[147].mxu0  ;;  %v4781_v27 = vpop.f32.mrb[147].mxu1  ;;  %6594 = vmatmul.mubr.bf16.gmra.mrb[204].mxu0 %v15924_v55  ;;  %6980 = vmatmul.mubr.bf16.gmra.mrb[204].mxu1 %v15924_v55  ;;  %v4926_v37 = vmax.f32 %v4583_v8, 0.0  ;;  %v4928_v39 = vmax.f32 %v4776_v9, 0.0  ;;  %v13135_v9 = vld [vmem:[%s17860_s7 + $0x584] ss:$28 sps:$4 sm:$0xff]  }
 0x484   : > { %v4589_v32 = vadd.f32 %v4588_v26, %v15779_v22  ;;  %v4782_v33 = vadd.f32 %v4781_v27, %v15782_v38  ;;  %7123 = vmatpush1.bf16.msra.mxu1 %v13115_v6  ;;  %6737 = vmatpush1.bf16.msra.mxu0 %v13118_v7  ;;  %v4927_v43 = vmax.f32 %v4585_v18, 0.0  ;;  %v4929_v44 = vmax.f32 %v4778_v19, 0.0  ;;  %v13133_v27 = vld [vmem:[%s17860_s7 + $0x580] ss:$28 sps:$4 sm:$0xff]  }
 0x485   : > { %v4930_v40 = vmax.f32 %v4587_v24, 0.0  ;;  %v4932_v41 = vmax.f32 %v4780_v25, 0.0  ;;  %7124 = vmatprep.subr.bf16.mxu1 %v13123_v16  ;;  %6738 = vmatprep.subr.bf16.mxu0 %v13126_v17 }
 0x486   : > { %v4931_v45 = vmax.f32 %v4589_v32, 0.0  ;;  %v4933_v46 = vmax.f32 %v4782_v33, 0.0  ;;  %v13136_v32 = vld [vmem:[%s17860_s7 + $0x578] ss:$28 sps:$4 sm:$0xff]  }
 0x487   : > { %v15968_v62 = vpack.c.bf16 %v4930_v40, %v4926_v37  ;;  %v15970_v48 = vpack.c.bf16 %v4932_v41, %v4928_v39  ;;  %v13141_v33 = vld [vmem:[%s17860_s7 + $0x5bc] ss:$28 sps:$4 sm:$0xff]   ;;  %v13144_v39 = vld [vmem:[%s17860_s7 + $0x5b4] ss:$28 sps:$4 sm:$0xff]  }
 0x488   : > { %v15972_v49 = vpack.c.bf16 %v4931_v45, %v4927_v43  ;;  %v15974_v51 = vpack.c.bf16 %v4933_v46, %v4929_v44  ;;  %v4592_v52 = vpop.f32.mrb[148].mxu0  ;;  %v4785_v53 = vpop.f32.mrb[148].mxu1  ;;  %7125 = vmatpush1.bf16.msra.mxu1 %v13121_v34  ;;  %6739 = vmatpush1.bf16.msra.mxu0 %v13124_v35 }
 0x489   : > { %17942 = vst [vmem:[#allocation7_spill] sm:$0xff] %v15968_v62  ;;  %v4593_v5 = vadd.f32 %v4592_v52, %v15773_v21  ;;  %v4786_v6 = vadd.f32 %v4785_v53, %v15776_v50  ;;  %v4594_v7 = vpop.f32.mrb[149].mxu0  ;;  %v4787_v8 = vpop.f32.mrb[149].mxu1  ;;  %7126 = vmatprep.subr.bf16.mxu1 %v13129_v36  ;;  %6740 = vmatprep.subr.bf16.mxu0 %v13132_v42 }
 0x48a   : > { %v4595_v15 = vadd.f32 %v4594_v7, %v15779_v22  ;;  %v4788_v16 = vadd.f32 %v4787_v8, %v15782_v38  ;;  %v4596_v17 = vpop.f32.mrb[150].mxu0  ;;  %v4789_v18 = vpop.f32.mrb[150].mxu1  ;;  %6603 = vmatprep.mubr.bf16.mxu0 %v15972_v49  ;;  %6989 = vmatprep.mubr.bf16.mxu1 %v15972_v49 }
 0x48b   : > { %v4597_v19 = vadd.f32 %v4596_v17, %v15773_v21  ;;  %v4790_v20 = vadd.f32 %v4789_v18, %v15776_v50  ;;  %v4598_v23 = vpop.f32.mrb[151].mxu0  ;;  %v4791_v24 = vpop.f32.mrb[151].mxu1  ;;  %6604 = vmatmul.mubr.bf16.gmra.mrb[208].mxu0 %v15968_v62  ;;  %6990 = vmatmul.mubr.bf16.gmra.mrb[208].mxu1 %v15968_v62  ;;  %v4934_v34 = vmax.f32 %v4593_v5, 0.0  ;;  %v4936_v35 = vmax.f32 %v4786_v6, 0.0  ;;  %v13142_v5 = vld [vmem:[%s17860_s7 + $0x5b0] ss:$28 sps:$4 sm:$0xff]  }
 0x48c   : > { %v4599_v25 = vadd.f32 %v4598_v23, %v15779_v22  ;;  %v4792_v26 = vadd.f32 %v4791_v24, %v15782_v38  ;;  %7127 = vmatpush1.bf16.msra.mxu1 %v13127_v54  ;;  %6741 = vmatpush1.bf16.msra.mxu0 %v13130_v4  ;;  %v4935_v40 = vmax.f32 %v4595_v15, 0.0  ;;  %v4937_v41 = vmax.f32 %v4788_v16, 0.0  ;;  %v13139_v4 = vld [vmem:[%s17860_s7 + $0x5b8] ss:$28 sps:$4 sm:$0xff]   ;;  %v13150_v15 = vld [vmem:[%s17860_s7 + $0x5ec] ss:$28 sps:$4 sm:$0xff]  }
 0x48d   : > { %v4938_v36 = vmax.f32 %v4597_v19, 0.0  ;;  %v4940_v37 = vmax.f32 %v4790_v20, 0.0  ;;  %7128 = vmatprep.subr.bf16.mxu1 %v13135_v9  ;;  %6742 = vmatprep.subr.bf16.mxu0 %v13138_v10  ;;  %v13147_v10 = vld [vmem:[%s17860_s7 + $0x5f4] ss:$28 sps:$4 sm:$0xff]  }
 0x48e   : > { %v4939_v42 = vmax.f32 %v4599_v25, 0.0  ;;  %v4941_v43 = vmax.f32 %v4792_v26, 0.0 }
 0x48f   : > { %v16012_v44 = vpack.c.bf16 %v4938_v36, %v4934_v34  ;;  %v16014_v45 = vpack.c.bf16 %v4940_v37, %v4936_v35  ;;  %v13153_v34 = vld [vmem:[%s17860_s7 + $0x62c] ss:$28 sps:$4 sm:$0xff]  }
 0x490   : > { %v16016_v46 = vpack.c.bf16 %v4939_v42, %v4935_v40  ;;  %v16018_v52 = vpack.c.bf16 %v4941_v43, %v4937_v41  ;;  %v4602_v53 = vpop.f32.mrb[152].mxu0  ;;  %v4795_v54 = vpop.f32.mrb[152].mxu1  ;;  %7129 = vmatpush1.bf16.msra.mxu1 %v13133_v27  ;;  %6743 = vmatpush1.bf16.msra.mxu0 %v13136_v32  ;;  %v13145_v32 = vld [vmem:[%s17860_s7 + $0x5f0] ss:$28 sps:$4 sm:$0xff]   ;;  %v13156_v40 = vld [vmem:[%s17860_s7 + $0x624] ss:$28 sps:$4 sm:$0xff]  }
 0x491   : > { %17943 = vst [vmem:[#allocation8_spill] sm:$0xff] %v16012_v44  ;;  %v4603_v6 = vadd.f32 %v4602_v53, %v15773_v21  ;;  %v4796_v7 = vadd.f32 %v4795_v54, %v15776_v50  ;;  %v4604_v8 = vpop.f32.mrb[153].mxu0  ;;  %v4797_v9 = vpop.f32.mrb[153].mxu1  ;;  %7130 = vmatprep.subr.bf16.mxu1 %v13141_v33  ;;  %6744 = vmatprep.subr.bf16.mxu0 %v13144_v39  ;;  %v13148_v33 = vld [vmem:[%s17860_s7 + $0x5e8] ss:$28 sps:$4 sm:$0xff]  }
 0x492   : > { %17944 = vst [vmem:[#allocation9_spill] sm:$0xff] %v16016_v46  ;;  %v4605_v16 = vadd.f32 %v4604_v8, %v15779_v22  ;;  %v4798_v17 = vadd.f32 %v4797_v9, %v15782_v38  ;;  %v4606_v18 = vpop.f32.mrb[154].mxu0  ;;  %v4799_v19 = vpop.f32.mrb[154].mxu1  ;;  %6613 = vmatprep.mubr.bf16.mxu0 %v16016_v46  ;;  %6999 = vmatprep.mubr.bf16.mxu1 %v16016_v46  ;;  %v13151_v9 = vld [vmem:[%s17860_s7 + $0x628] ss:$28 sps:$4 sm:$0xff]  }
 0x493   : > { %v4607_v20 = vadd.f32 %v4606_v18, %v15773_v21  ;;  %v4800_v23 = vadd.f32 %v4799_v19, %v15776_v50  ;;  %v4608_v24 = vpop.f32.mrb[155].mxu0  ;;  %v4801_v25 = vpop.f32.mrb[155].mxu1  ;;  %6614 = vmatmul.mubr.bf16.gmra.mrb[212].mxu0 %v16012_v44  ;;  %7000 = vmatmul.mubr.bf16.gmra.mrb[212].mxu1 %v16012_v44  ;;  %v4942_v35 = vmax.f32 %v4603_v6, 0.0  ;;  %v4944_v36 = vmax.f32 %v4796_v7, 0.0  ;;  %v13159_v19 = vld [vmem:[%s17860_s7 + $0x664] ss:$28 sps:$4 sm:$0xff]  }
 0x494   : > { %v4609_v26 = vadd.f32 %v4608_v24, %v15779_v22  ;;  %v4802_v27 = vadd.f32 %v4801_v25, %v15782_v38  ;;  %7131 = vmatpush1.bf16.msra.mxu1 %v13139_v4  ;;  %6745 = vmatpush1.bf16.msra.mxu0 %v13142_v5  ;;  %v4943_v41 = vmax.f32 %v4605_v16, 0.0  ;;  %v4945_v42 = vmax.f32 %v4798_v17, 0.0 }
 0x495   : > { %v4946_v37 = vmax.f32 %v4607_v20, 0.0  ;;  %v4948_v39 = vmax.f32 %v4800_v23, 0.0  ;;  %7132 = vmatprep.subr.bf16.mxu1 %v13147_v10  ;;  %6746 = vmatprep.subr.bf16.mxu0 %v13150_v15  ;;  %v13154_v10 = vld [vmem:[%s17860_s7 + $0x620] ss:$28 sps:$4 sm:$0xff]  }
 0x496   : > { %v4947_v43 = vmax.f32 %v4609_v26, 0.0  ;;  %v4949_v53 = vmax.f32 %v4802_v27, 0.0  ;;  %v13162_v20 = vld [vmem:[%s17860_s7 + $0x65c] ss:$28 sps:$4 sm:$0xff]  }
 0x497   : > { %v16056_v54 = vpack.c.bf16 %v4946_v37, %v4942_v35  ;;  %v16058_v4 = vpack.c.bf16 %v4948_v39, %v4944_v36  ;;  %v13157_v37 = vld [vmem:[%s17860_s7 + $0x660] ss:$28 sps:$4 sm:$0xff]   ;;  %v13160_v39 = vld [vmem:[%s17860_s7 + $0x658] ss:$28 sps:$4 sm:$0xff]  }
 0x498   : > { %v16060_v5 = vpack.c.bf16 %v4947_v43, %v4943_v41  ;;  %v16062_v6 = vpack.c.bf16 %v4949_v53, %v4945_v42  ;;  %v4612_v7 = vpop.f32.mrb[156].mxu0  ;;  %v4805_v8 = vpop.f32.mrb[156].mxu1  ;;  %7133 = vmatpush1.bf16.msra.mxu1 %v13145_v32  ;;  %6747 = vmatpush1.bf16.msra.mxu0 %v13148_v33 }
 0x499   : > { %17945 = vst [vmem:[#allocation10_spill] sm:$0xff] %v16056_v54  ;;  %v4613_v15 = vadd.f32 %v4612_v7, %v15773_v21  ;;  %v4806_v16 = vadd.f32 %v4805_v8, %v15776_v50  ;;  %v4614_v17 = vpop.f32.mrb[157].mxu0  ;;  %v4807_v18 = vpop.f32.mrb[157].mxu1  ;;  %7134 = vmatprep.subr.bf16.mxu1 %v13153_v34  ;;  %6748 = vmatprep.subr.bf16.mxu0 %v13156_v40  ;;  %v13165_v40 = vld [vmem:[%s17860_s7 + $0x69c] ss:$28 sps:$4 sm:$0xff]  }
 0x49a   : > { %17946 = vst [vmem:[#allocation11_spill] sm:$0xff] %v16060_v5  ;;  %v4615_v23 = vadd.f32 %v4614_v17, %v15779_v22  ;;  %v4808_v24 = vadd.f32 %v4807_v18, %v15782_v38  ;;  %v4616_v25 = vpop.f32.mrb[158].mxu0  ;;  %v4809_v26 = vpop.f32.mrb[158].mxu1  ;;  %6623 = vmatprep.mubr.bf16.mxu0 %v16060_v5  ;;  %7009 = vmatprep.mubr.bf16.mxu1 %v16060_v5  ;;  %v13168_v7 = vld [vmem:[%s17860_s7 + $0x694] ss:$28 sps:$4 sm:$0xff]  }
 0x49b   : > { %v4617_v27 = vadd.f32 %v4616_v25, %v15773_v21  ;;  %v4810_v32 = vadd.f32 %v4809_v26, %v15776_v50  ;;  %v4618_v33 = vpop.f32.mrb[159].mxu0  ;;  %v4811_v34 = vpop.f32.mrb[159].mxu1  ;;  %6624 = vmatmul.mubr.bf16.gmra.mrb[216].mxu0 %v16056_v54  ;;  %7010 = vmatmul.mubr.bf16.gmra.mrb[216].mxu1 %v16056_v54  ;;  %v4950_v41 = vmax.f32 %v4613_v15, 0.0  ;;  %v4952_v42 = vmax.f32 %v4806_v16, 0.0 }
 0x49c   : > { %v4619_v35 = vadd.f32 %v4618_v33, %v15779_v22  ;;  %v4812_v36 = vadd.f32 %v4811_v34, %v15782_v38  ;;  %7135 = vmatpush1.bf16.msra.mxu1 %v13151_v9  ;;  %6749 = vmatpush1.bf16.msra.mxu0 %v13154_v10  ;;  %v4951_v8 = vmax.f32 %v4615_v23, 0.0  ;;  %v4953_v9 = vmax.f32 %v4808_v24, 0.0  ;;  %v13171_v34 = vld [vmem:[%s17860_s7 + $0x6d4] ss:$28 sps:$4 sm:$0xff]  }
 0x49d   : > { %v4954_v43 = vmax.f32 %v4617_v27, 0.0  ;;  %v4956_v53 = vmax.f32 %v4810_v32, 0.0  ;;  %7136 = vmatprep.subr.bf16.mxu1 %v13159_v19  ;;  %6750 = vmatprep.subr.bf16.mxu0 %v13162_v20  ;;  %v13163_v19 = vld [vmem:[%s17860_s7 + $0x698] ss:$28 sps:$4 sm:$0xff]   ;;  %v13166_v20 = vld [vmem:[%s17860_s7 + $0x690] ss:$28 sps:$4 sm:$0xff]  }
 0x49e   : > { %v4955_v10 = vmax.f32 %v4619_v35, 0.0  ;;  %v4957_v17 = vmax.f32 %v4812_v36, 0.0  ;;  %v13174_v35 = vld [vmem:[%s17860_s7 + $0x6cc] ss:$28 sps:$4 sm:$0xff]  }
 0x49f   : > { %v16100_v18 = vpack.c.bf16 %v4954_v43, %v4950_v41  ;;  %v16102_v25 = vpack.c.bf16 %v4956_v53, %v4952_v42 }
 0x4a0   : > { %v16104_v26 = vpack.c.bf16 %v4955_v10, %v4951_v8  ;;  %v16106_v15 = vpack.c.bf16 %v4957_v17, %v4953_v9  ;;  %v4622_v16 = vpop.f32.mrb[160].mxu0  ;;  %v4815_v27 = vpop.f32.mrb[160].mxu1  ;;  %7137 = vmatpush1.bf16.msra.mxu1 %v13157_v37  ;;  %6751 = vmatpush1.bf16.msra.mxu0 %v13160_v39  ;;  %v13169_v9 = vld [vmem:[%s17860_s7 + $0x6d0] ss:$28 sps:$4 sm:$0xff]   ;;  %v13172_v10 = vld [vmem:[%s17860_s7 + $0x6c8] ss:$28 sps:$4 sm:$0xff]  }
 0x4a1   : > { %17947 = vst [vmem:[#allocation12_spill] sm:$0xff] %v16100_v18  ;;  %v4623_v23 = vadd.f32 %v4622_v16, %v15773_v21  ;;  %v4816_v24 = vadd.f32 %v4815_v27, %v15776_v50  ;;  %v4624_v32 = vpop.f32.mrb[161].mxu0  ;;  %v4817_v33 = vpop.f32.mrb[161].mxu1  ;;  %7138 = vmatprep.subr.bf16.mxu1 %v13165_v40  ;;  %6752 = vmatprep.subr.bf16.mxu0 %v13168_v7  ;;  %v13175_v17 = vld [vmem:[%s17860_s7 + $0x1d8] ss:$28 sps:$4 sm:$0xff]  }
 0x4a2   : > { %17948 = vst [vmem:[#allocation13_spill] sm:$0xff] %v16104_v26  ;;  %v4625_v36 = vadd.f32 %v4624_v32, %v15779_v22  ;;  %v4818_v37 = vadd.f32 %v4817_v33, %v15782_v38  ;;  %v4626_v39 = vpop.f32.mrb[162].mxu0  ;;  %v4819_v41 = vpop.f32.mrb[162].mxu1  ;;  %6633 = vmatprep.mubr.bf16.mxu0 %v16104_v26  ;;  %7019 = vmatprep.mubr.bf16.mxu1 %v16104_v26 }
 0x4a3   : > { %v4627_v40 = vadd.f32 %v4626_v39, %v15773_v21  ;;  %v4820_v42 = vadd.f32 %v4819_v41, %v15776_v50  ;;  %v4628_v43 = vpop.f32.mrb[163].mxu0  ;;  %v4821_v53 = vpop.f32.mrb[163].mxu1  ;;  %6634 = vmatmul.mubr.bf16.gmra.mrb[220].mxu0 %v16100_v18  ;;  %7020 = vmatmul.mubr.bf16.gmra.mrb[220].mxu1 %v16100_v18  ;;  %v4958_v16 = vmax.f32 %v4623_v23, 0.0  ;;  %v4960_v27 = vmax.f32 %v4816_v24, 0.0 }
 0x4a4   : > { %v4629_v7 = vadd.f32 %v4628_v43, %v15779_v22  ;;  %v4822_v8 = vadd.f32 %v4821_v53, %v15782_v38  ;;  %7139 = vmatpush1.bf16.msra.mxu1 %v13163_v19  ;;  %6753 = vmatpush1.bf16.msra.mxu0 %v13166_v20  ;;  %v13179_v19 = vld [vmem:[%s17860_s7 + $0x14] ss:$28 sps:$4 sm:$0xff]   ;;  %v4959_v20 = vmax.f32 %v4625_v36, 0.0  ;;  %v4961_v39 = vmax.f32 %v4818_v37, 0.0 }
 0x4a5   : > { %v4962_v32 = vmax.f32 %v4627_v40, 0.0  ;;  %v4964_v33 = vmax.f32 %v4820_v42, 0.0  ;;  %7140 = vmatprep.subr.bf16.mxu1 %v13171_v34  ;;  %6754 = vmatprep.subr.bf16.mxu0 %v13174_v35 }
 0x4a6   : > { %v4963_v41 = vmax.f32 %v4629_v7, 0.0  ;;  %v4965_v43 = vmax.f32 %v4822_v8, 0.0 }
 0x4a7   : > { %v16144_v53 = vpack.c.bf16 %v4962_v32, %v4958_v16  ;;  %v16146_v56 = vpack.c.bf16 %v4964_v33, %v4960_v27 }
 0x4a8   : > { %v16148_v61 = vpack.c.bf16 %v4963_v41, %v4959_v20  ;;  %v16150_v23 = vpack.c.bf16 %v4965_v43, %v4961_v39  ;;  %v4632_v24 = vpop.f32.mrb[164].mxu0  ;;  %v4825_v40 = vpop.f32.mrb[164].mxu1  ;;  %7141 = vmatpush1.bf16.msra.mxu1 %v13169_v9  ;;  %6755 = vmatpush1.bf16.msra.mxu0 %v13172_v10 }
 0x4a9   : > { %17949 = vst [vmem:[#allocation14_spill] sm:$0xff] %v16144_v53  ;;  %v4633_v34 = vadd.f32 %v4632_v24, %v15773_v21  ;;  %v4826_v35 = vadd.f32 %v4825_v40, %v15776_v50  ;;  %v4634_v36 = vpop.f32.mrb[165].mxu0  ;;  %v4827_v37 = vpop.f32.mrb[165].mxu1  ;;  %11478 = vmatprep.subr.bf16.mxu1 %v13175_v17  ;;  %7303 = vmatprep.subr.bf16.mxu0 %v13179_v19 }
 0x4aa   : > { %17950 = vst [vmem:[#allocation15_spill] sm:$0xff] %v16148_v61  ;;  %v4635_v42 = vadd.f32 %v4634_v36, %v15779_v22  ;;  %v4828_v7 = vadd.f32 %v4827_v37, %v15782_v38  ;;  %v4636_v8 = vpop.f32.mrb[166].mxu0  ;;  %v4829_v16 = vpop.f32.mrb[166].mxu1  ;;  %6643 = vmatprep.mubr.bf16.mxu0 %v16148_v61  ;;  %7029 = vmatprep.mubr.bf16.mxu1 %v16148_v61 }
 0x4ab   : > { %v4637_v9 = vadd.f32 %v4636_v8, %v15773_v21  ;;  %v4830_v10 = vadd.f32 %v4829_v16, %v15776_v50  ;;  %v4638_v27 = vpop.f32.mrb[167].mxu0  ;;  %v4831_v32 = vpop.f32.mrb[167].mxu1  ;;  %6644 = vmatmul.mubr.bf16.gmra.mrb[224].mxu0 %v16144_v53  ;;  %7030 = vmatmul.mubr.bf16.gmra.mrb[224].mxu1 %v16144_v53  ;;  %v4966_v19 = vmax.f32 %v4633_v34, 0.0  ;;  %v4968_v20 = vmax.f32 %v4826_v35, 0.0 }
 0x4ac   : > { %v4639_v17 = vadd.f32 %v4638_v27, %v15779_v22  ;;  %v4832_v33 = vadd.f32 %v4831_v32, %v15782_v38  ;;  %v4967_v43 = vmax.f32 %v4635_v42, 0.0  ;;  %v4969_v24 = vmax.f32 %v4828_v7, 0.0 }
 0x4ad   : > { %v4970_v39 = vmax.f32 %v4637_v9, 0.0  ;;  %v4972_v41 = vmax.f32 %v4830_v10, 0.0 }
 0x4ae   : > { %v4971_v40 = vmax.f32 %v4639_v17, 0.0  ;;  %v4973_v36 = vmax.f32 %v4832_v33, 0.0 }
 0x4af   : > { %v16164_v37 = vpack.c.bf16 %v4970_v39, %v4966_v19  ;;  %v16166_v8 = vpack.c.bf16 %v4972_v41, %v4968_v20 }
 0x4b0   : > { %v16168_v16 = vpack.c.bf16 %v4971_v40, %v4967_v43  ;;  %v16170_v60 = vpack.c.bf16 %v4973_v36, %v4969_v24  ;;  %v4642_v58 = vpop.f32.mrb[168].mxu0  ;;  %v4835_v27 = vpop.f32.mrb[168].mxu1 }
 0x4b1   : > { %17951 = vst [vmem:[#allocation16_spill] sm:$0xff] %v16164_v37  ;;  %17952 = vst [vmem:[#allocation17_spill] sm:$0xff] %v16166_v8  ;;  %v4643_v32 = vadd.f32 %v4642_v58, %v15773_v21  ;;  %v4836_v34 = vadd.f32 %v4835_v27, %v15776_v50  ;;  %v4644_v35 = vpop.f32.mrb[169].mxu0  ;;  %v4837_v9 = vpop.f32.mrb[169].mxu1 }
 0x4b2   : > { %17953 = vst [vmem:[#allocation18_spill] sm:$0xff] %v16168_v16  ;;  %17954 = vst [vmem:[#allocation19_spill] sm:$0xff] %v16170_v60  ;;  %v4645_v42 = vadd.f32 %v4644_v35, %v15779_v22  ;;  %v4838_v7 = vadd.f32 %v4837_v9, %v15782_v38  ;;  %v4646_v10 = vpop.f32.mrb[170].mxu0  ;;  %v4839_v17 = vpop.f32.mrb[170].mxu1  ;;  %6653 = vmatprep.mubr.bf16.mxu0 %v16168_v16  ;;  %7039 = vmatprep.mubr.bf16.mxu1 %v16168_v16 }
 0x4b3   : > { %v4647_v33 = vadd.f32 %v4646_v10, %v15773_v21  ;;  %v4840_v19 = vadd.f32 %v4839_v17, %v15776_v50  ;;  %v4648_v20 = vpop.f32.mrb[171].mxu0  ;;  %v4841_v58 = vpop.f32.mrb[171].mxu1  ;;  %6654 = vmatmul.mubr.bf16.gmra.mrb[228].mxu0 %v16164_v37  ;;  %7040 = vmatmul.mubr.bf16.gmra.mrb[228].mxu1 %v16164_v37  ;;  %v4974_v43 = vmax.f32 %v4643_v32, 0.0  ;;  %v4976_v24 = vmax.f32 %v4836_v34, 0.0 }
 0x4b4   : > { %v4649_v39 = vadd.f32 %v4648_v20, %v15779_v22  ;;  %v4842_v41 = vadd.f32 %v4841_v58, %v15782_v38  ;;  %v4975_v27 = vmax.f32 %v4645_v42, 0.0  ;;  %v4977_v35 = vmax.f32 %v4838_v7, 0.0 }
 0x4b5   : > { %v4978_v40 = vmax.f32 %v4647_v33, 0.0  ;;  %v4980_v36 = vmax.f32 %v4840_v19, 0.0 }
 0x4b6   : > { %v4979_v9 = vmax.f32 %v4649_v39, 0.0  ;;  %v4981_v10 = vmax.f32 %v4842_v41, 0.0 }
 0x4b7   : > { %v16184_v57 = vpack.c.bf16 %v4978_v40, %v4974_v43  ;;  %v16186_v17 = vpack.c.bf16 %v4980_v36, %v4976_v24 }
 0x4b8   : > { %v16188_v16 = vpack.c.bf16 %v4979_v9, %v4975_v27  ;;  %v16190_v53 = vpack.c.bf16 %v4981_v10, %v4977_v35  ;;  %v4652_v37 = vpop.f32.mrb[172].mxu0  ;;  %v4845_v20 = vpop.f32.mrb[172].mxu1 }
 0x4b9   : > { %17955 = vst [vmem:[#allocation20_spill] sm:$0xff] %v16184_v57  ;;  %17956 = vst [vmem:[#allocation21_spill] sm:$0xff] %v16186_v17  ;;  %v4653_v58 = vadd.f32 %v4652_v37, %v15773_v21  ;;  %v4846_v32 = vadd.f32 %v4845_v20, %v15776_v50  ;;  %v4654_v34 = vpop.f32.mrb[173].mxu0  ;;  %v4847_v33 = vpop.f32.mrb[173].mxu1 }
 0x4ba   : > { %17957 = vst [vmem:[#allocation22_spill] sm:$0xff] %v16188_v16  ;;  %17958 = vst [vmem:[#allocation23_spill] sm:$0xff] %v16190_v53  ;;  %v4655_v42 = vadd.f32 %v4654_v34, %v15779_v22  ;;  %v4848_v7 = vadd.f32 %v4847_v33, %v15782_v38  ;;  %v4656_v19 = vpop.f32.mrb[174].mxu0  ;;  %v4849_v39 = vpop.f32.mrb[174].mxu1  ;;  %6663 = vmatprep.mubr.bf16.mxu0 %v16188_v16  ;;  %7049 = vmatprep.mubr.bf16.mxu1 %v16188_v16 }
 0x4bb   : > { %v4657_v41 = vadd.f32 %v4656_v19, %v15773_v21  ;;  %v4850_v43 = vadd.f32 %v4849_v39, %v15776_v50  ;;  %v4658_v24 = vpop.f32.mrb[175].mxu0  ;;  %v4851_v37 = vpop.f32.mrb[175].mxu1  ;;  %6664 = vmatmul.mubr.bf16.gmra.mrb[232].mxu0 %v16184_v57  ;;  %7050 = vmatmul.mubr.bf16.gmra.mrb[232].mxu1 %v16184_v57  ;;  %v4982_v27 = vmax.f32 %v4653_v58, 0.0  ;;  %v4984_v35 = vmax.f32 %v4846_v32, 0.0 }
 0x4bc   : > { %v4659_v40 = vadd.f32 %v4658_v24, %v15779_v22  ;;  %v4852_v36 = vadd.f32 %v4851_v37, %v15782_v38  ;;  %v4983_v20 = vmax.f32 %v4655_v42, 0.0  ;;  %v4985_v34 = vmax.f32 %v4848_v7, 0.0 }
 0x4bd   : > { %v4986_v9 = vmax.f32 %v4657_v41, 0.0  ;;  %v4988_v10 = vmax.f32 %v4850_v43, 0.0 }
 0x4be   : > { %v4987_v33 = vmax.f32 %v4659_v40, 0.0  ;;  %v4989_v19 = vmax.f32 %v4852_v36, 0.0 }
 0x4bf   : > { %v16204_v16 = vpack.c.bf16 %v4986_v9, %v4982_v27  ;;  %v16206_v39 = vpack.c.bf16 %v4988_v10, %v4984_v35 }
 0x4c0   : > { %v16208_v61 = vpack.c.bf16 %v4987_v33, %v4983_v20  ;;  %v16210_v18 = vpack.c.bf16 %v4989_v19, %v4985_v34  ;;  %v4662_v57 = vpop.f32.mrb[176].mxu0  ;;  %v4855_v24 = vpop.f32.mrb[176].mxu1 }
 0x4c1   : > { %17959 = vst [vmem:[#allocation24_spill] sm:$0xff] %v16204_v16  ;;  %17960 = vst [vmem:[#allocation25_spill] sm:$0xff] %v16206_v39  ;;  %v4663_v37 = vadd.f32 %v4662_v57, %v15773_v21  ;;  %v4856_v58 = vadd.f32 %v4855_v24, %v15776_v50  ;;  %v4664_v32 = vpop.f32.mrb[177].mxu0  ;;  %v4857_v41 = vpop.f32.mrb[177].mxu1 }
 0x4c2   : > { %17961 = vst [vmem:[#allocation26_spill] sm:$0xff] %v16208_v61  ;;  %17962 = vst [vmem:[#allocation27_spill] sm:$0xff] %v16210_v18  ;;  %v4665_v42 = vadd.f32 %v4664_v32, %v15779_v22  ;;  %v4858_v7 = vadd.f32 %v4857_v41, %v15782_v38  ;;  %v4666_v43 = vpop.f32.mrb[178].mxu0  ;;  %v4859_v40 = vpop.f32.mrb[178].mxu1  ;;  %6673 = vmatprep.mubr.bf16.mxu0 %v16208_v61  ;;  %7059 = vmatprep.mubr.bf16.mxu1 %v16208_v61 }
 0x4c3   : > { %v4667_v36 = vadd.f32 %v4666_v43, %v15773_v21  ;;  %v4860_v27 = vadd.f32 %v4859_v40, %v15776_v50  ;;  %v4668_v35 = vpop.f32.mrb[179].mxu0  ;;  %v4861_v57 = vpop.f32.mrb[179].mxu1  ;;  %6674 = vmatmul.mubr.bf16.gmra.mrb[236].mxu0 %v16204_v16  ;;  %7060 = vmatmul.mubr.bf16.gmra.mrb[236].mxu1 %v16204_v16  ;;  %v4990_v20 = vmax.f32 %v4663_v37, 0.0  ;;  %v4992_v34 = vmax.f32 %v4856_v58, 0.0 }
 0x4c4   : > { %v4669_v9 = vadd.f32 %v4668_v35, %v15779_v22  ;;  %v4862_v10 = vadd.f32 %v4861_v57, %v15782_v38  ;;  %v4991_v24 = vmax.f32 %v4665_v42, 0.0  ;;  %v4993_v32 = vmax.f32 %v4858_v7, 0.0 }
 0x4c5   : > { %v4994_v33 = vmax.f32 %v4667_v36, 0.0  ;;  %v4996_v19 = vmax.f32 %v4860_v27, 0.0 }
 0x4c6   : > { %v4995_v41 = vmax.f32 %v4669_v9, 0.0  ;;  %v4997_v43 = vmax.f32 %v4862_v10, 0.0 }
 0x4c7   : > { %v16224_v61 = vpack.c.bf16 %v4994_v33, %v4990_v20  ;;  %v16226_v40 = vpack.c.bf16 %v4996_v19, %v4992_v34 }
 0x4c8   : > { %v16228_v26 = vpack.c.bf16 %v4995_v41, %v4991_v24  ;;  %v16230_v54 = vpack.c.bf16 %v4997_v43, %v4993_v32  ;;  %v4672_v16 = vpop.f32.mrb[180].mxu0  ;;  %v4865_v35 = vpop.f32.mrb[180].mxu1 }
 0x4c9   : > { %17963 = vst [vmem:[#allocation28_spill] sm:$0xff] %v16224_v61  ;;  %17964 = vst [vmem:[#allocation29_spill] sm:$0xff] %v16226_v40  ;;  %v4673_v57 = vadd.f32 %v4672_v16, %v15773_v21  ;;  %v4866_v37 = vadd.f32 %v4865_v35, %v15776_v50  ;;  %v4674_v58 = vpop.f32.mrb[181].mxu0  ;;  %v4867_v36 = vpop.f32.mrb[181].mxu1 }
 0x4ca   : > { %17965 = vst [vmem:[#allocation30_spill] sm:$0xff] %v16228_v26  ;;  %17966 = vst [vmem:[#allocation31_spill] sm:$0xff] %v16230_v54  ;;  %v4675_v42 = vadd.f32 %v4674_v58, %v15779_v22  ;;  %v4868_v7 = vadd.f32 %v4867_v36, %v15782_v38  ;;  %v4676_v27 = vpop.f32.mrb[182].mxu0  ;;  %v4869_v9 = vpop.f32.mrb[182].mxu1  ;;  %6683 = vmatprep.mubr.bf16.mxu0 %v16228_v26  ;;  %7069 = vmatprep.mubr.bf16.mxu1 %v16228_v26 }
 0x4cb   : > { %v4677_v10 = vadd.f32 %v4676_v27, %v15773_v21  ;;  %v4870_v20 = vadd.f32 %v4869_v9, %v15776_v50  ;;  %v4678_v34 = vpop.f32.mrb[183].mxu0  ;;  %v4871_v16 = vpop.f32.mrb[183].mxu1  ;;  %6684 = vmatmul.mubr.bf16.gmra.mrb[240].mxu0 %v16224_v61  ;;  %7070 = vmatmul.mubr.bf16.gmra.mrb[240].mxu1 %v16224_v61  ;;  %v4998_v24 = vmax.f32 %v4673_v57, 0.0  ;;  %v5000_v32 = vmax.f32 %v4866_v37, 0.0 }
 0x4cc   : > { %v4679_v33 = vadd.f32 %v4678_v34, %v15779_v22  ;;  %v4872_v19 = vadd.f32 %v4871_v16, %v15782_v38  ;;  %v4999_v35 = vmax.f32 %v4675_v42, 0.0  ;;  %v5001_v58 = vmax.f32 %v4868_v7, 0.0 }
 0x4cd   : > { %v5002_v41 = vmax.f32 %v4677_v10, 0.0  ;;  %v5004_v43 = vmax.f32 %v4870_v20, 0.0 }
 0x4ce   : > { %v5003_v36 = vmax.f32 %v4679_v33, 0.0  ;;  %v5005_v27 = vmax.f32 %v4872_v19, 0.0 }
 0x4cf   : > { %v16244_v26 = vpack.c.bf16 %v5002_v41, %v4998_v24  ;;  %v16246_v9 = vpack.c.bf16 %v5004_v43, %v5000_v32 }
 0x4d0   : > { %v16248_v5 = vpack.c.bf16 %v5003_v36, %v4999_v35  ;;  %v16250_v44 = vpack.c.bf16 %v5005_v27, %v5001_v58  ;;  %v4682_v61 = vpop.f32.mrb[184].mxu0  ;;  %v4875_v34 = vpop.f32.mrb[184].mxu1 }
 0x4d1   : > { %17967 = vst [vmem:[#allocation32_spill] sm:$0xff] %v16244_v26  ;;  %17968 = vst [vmem:[#allocation33_spill] sm:$0xff] %v16246_v9  ;;  %v4683_v16 = vadd.f32 %v4682_v61, %v15773_v21  ;;  %v4876_v57 = vadd.f32 %v4875_v34, %v15776_v50  ;;  %v4684_v37 = vpop.f32.mrb[185].mxu0  ;;  %v4877_v10 = vpop.f32.mrb[185].mxu1 }
 0x4d2   : > { %17969 = vst [vmem:[#allocation34_spill] sm:$0xff] %v16248_v5  ;;  %17970 = vst [vmem:[#allocation35_spill] sm:$0xff] %v16250_v44  ;;  %v4685_v42 = vadd.f32 %v4684_v37, %v15779_v22  ;;  %v4878_v7 = vadd.f32 %v4877_v10, %v15782_v38  ;;  %v4686_v20 = vpop.f32.mrb[186].mxu0  ;;  %v4879_v33 = vpop.f32.mrb[186].mxu1  ;;  %6693 = vmatprep.mubr.bf16.mxu0 %v16248_v5  ;;  %7079 = vmatprep.mubr.bf16.mxu1 %v16248_v5 }
 0x4d3   : > { %v4687_v19 = vadd.f32 %v4686_v20, %v15773_v21  ;;  %v4880_v24 = vadd.f32 %v4879_v33, %v15776_v50  ;;  %v4688_v32 = vpop.f32.mrb[187].mxu0  ;;  %v4881_v61 = vpop.f32.mrb[187].mxu1  ;;  %6694 = vmatmul.mubr.bf16.gmra.mrb[244].mxu0 %v16244_v26  ;;  %7080 = vmatmul.mubr.bf16.gmra.mrb[244].mxu1 %v16244_v26  ;;  %v5006_v35 = vmax.f32 %v4683_v16, 0.0  ;;  %v5008_v58 = vmax.f32 %v4876_v57, 0.0 }
 0x4d4   : > { %v4689_v41 = vadd.f32 %v4688_v32, %v15779_v22  ;;  %v4882_v43 = vadd.f32 %v4881_v61, %v15782_v38  ;;  %v5007_v34 = vmax.f32 %v4685_v42, 0.0  ;;  %v5009_v37 = vmax.f32 %v4878_v7, 0.0 }
 0x4d5   : > { %v5010_v36 = vmax.f32 %v4687_v19, 0.0  ;;  %v5012_v27 = vmax.f32 %v4880_v24, 0.0 }
 0x4d6   : > { %v5011_v10 = vmax.f32 %v4689_v41, 0.0  ;;  %v5013_v20 = vmax.f32 %v4882_v43, 0.0 }
 0x4d7   : > { %v16264_v5 = vpack.c.bf16 %v5010_v36, %v5006_v35  ;;  %v16266_v33 = vpack.c.bf16 %v5012_v27, %v5008_v58 }
 0x4d8   : > { %v16268_v46 = vpack.c.bf16 %v5011_v10, %v5007_v34  ;;  %v16270_v62 = vpack.c.bf16 %v5013_v20, %v5009_v37  ;;  %v4692_v26 = vpop.f32.mrb[188].mxu0  ;;  %v4885_v32 = vpop.f32.mrb[188].mxu1 }
 0x4d9   : > { %17971 = vst [vmem:[#allocation36_spill] sm:$0xff] %v16266_v33  ;;  %v4693_v61 = vadd.f32 %v4692_v26, %v15773_v21  ;;  %v4886_v16 = vadd.f32 %v4885_v32, %v15776_v50  ;;  %v4694_v57 = vpop.f32.mrb[189].mxu0  ;;  %v4887_v19 = vpop.f32.mrb[189].mxu1 }
 0x4da   : > { %17972 = vst [vmem:[#allocation37_spill] sm:$0xff] %v16268_v46  ;;  %17973 = vst [vmem:[#allocation38_spill] sm:$0xff] %v16270_v62  ;;  %v4695_v42 = vadd.f32 %v4694_v57, %v15779_v22  ;;  %v4888_v7 = vadd.f32 %v4887_v19, %v15782_v38  ;;  %v4696_v24 = vpop.f32.mrb[190].mxu0  ;;  %v4889_v41 = vpop.f32.mrb[190].mxu1  ;;  %6703 = vmatprep.mubr.bf16.mxu0 %v16268_v46  ;;  %7089 = vmatprep.mubr.bf16.mxu1 %v16268_v46 }
 0x4db   : > { %v4697_v43 = vadd.f32 %v4696_v24, %v15773_v21  ;;  %v4890_v35 = vadd.f32 %v4889_v41, %v15776_v50  ;;  %v4698_v58 = vpop.f32.mrb[191].mxu0  ;;  %v4891_v26 = vpop.f32.mrb[191].mxu1  ;;  %6704 = vmatmul.mubr.bf16.gmra.mrb[248].mxu0 %v16264_v5  ;;  %7090 = vmatmul.mubr.bf16.gmra.mrb[248].mxu1 %v16264_v5  ;;  %v5014_v34 = vmax.f32 %v4693_v61, 0.0  ;;  %v5016_v37 = vmax.f32 %v4886_v16, 0.0  ;;  %v13182_v61 = vld [vmem:[%s17860_s7 + $0x4c] ss:$28 sps:$4 sm:$0xff]  }
 0x4dc   : > { %v4699_v36 = vadd.f32 %v4698_v58, %v15779_v22  ;;  %v4892_v27 = vadd.f32 %v4891_v26, %v15782_v38  ;;  %v5015_v32 = vmax.f32 %v4695_v42, 0.0  ;;  %v5017_v57 = vmax.f32 %v4888_v7, 0.0  ;;  %v13176_v22 = vld [vmem:[%s17860_s7 + $0x18] ss:$28 sps:$4 sm:$0xff]   ;;  %v13177_v38 = vld [vmem:[%s17860_s7 + $0x10] ss:$28 sps:$4 sm:$0xff]  }
 0x4dd   : > { %v5018_v10 = vmax.f32 %v4697_v43, 0.0  ;;  %v5020_v20 = vmax.f32 %v4890_v35, 0.0  ;;  %v13183_v16 = vld [vmem:[%s17860_s7 + $0x210] ss:$28 sps:$4 sm:$0xff]   ;;  %v13180_v42 = vld [vmem:[%s17860_s7 + $0x48] ss:$28 sps:$4 sm:$0xff]  }
 0x4de   : > { %v5019_v19 = vmax.f32 %v4699_v36, 0.0  ;;  %v5021_v21 = vmax.f32 %v4892_v27, 0.0  ;;  %v13184_v7 = vld [vmem:[%s17860_s7 + $0x50] ss:$28 sps:$4 sm:$0xff]   ;;  %v13187_v43 = vld [vmem:[%s17860_s7 + $0x84] ss:$28 sps:$4 sm:$0xff]  }
 0x4df   : > { %v16284_v24 = vpack.c.bf16 %v5018_v10, %v5014_v34  ;;  %v16286_v50 = vpack.c.bf16 %v5020_v20, %v5016_v37  ;;  %v13191_v35 = vld [vmem:[%s17860_s7 + $0x248] ss:$28 sps:$4 sm:$0xff]   ;;  %v13185_v58 = vld [vmem:[%s17860_s7 + $0x80] ss:$28 sps:$4 sm:$0xff]   ;;  %v13188_v34 = vld [vmem:[%s17860_s7 + $0xb8] ss:$28 sps:$4 sm:$0xff]  }
 0x4e0   : > { %v16288_v41 = vpack.c.bf16 %v5019_v19, %v5015_v32  ;;  %v16290_v46 = vpack.c.bf16 %v5021_v21, %v5017_v57  ;;  %v13192_v26 = vld [vmem:[%s17860_s7 + $0x88] ss:$28 sps:$4 sm:$0xff]   ;;  %v13190_v36 = vld [vmem:[%s17860_s7 + $0xbc] ss:$28 sps:$4 sm:$0xff]   ;;  %v13195_v10 = vld [vmem:[%s17860_s7 + $0xf4] ss:$28 sps:$4 sm:$0xff]  }
 0x4e1   : > { %17974 = vst [vmem:[#allocation39_spill] sm:$0xff] %v16286_v50  ;;  %v13199_v27 = vld [vmem:[%s17860_s7 + $0x280] ss:$28 sps:$4 sm:$0xff]   ;;  %v13207_v20 = vld [vmem:[%s17860_s7 + $0x2b8] ss:$28 sps:$4 sm:$0xff]  }
 0x4e2   : > { %17975 = vst [vmem:[#allocation40_spill] sm:$0xff] %v16290_v46  ;;  %6713 = vmatprep.mubr.bf16.mxu0 %v16288_v41  ;;  %7099 = vmatprep.mubr.bf16.mxu1 %v16288_v41  ;;  %v13200_v37 = vld [vmem:[%s17860_s7 + $0xc0] ss:$28 sps:$4 sm:$0xff]   ;;  %v13193_v32 = vld [vmem:[%s17860_s7 + $0xf0] ss:$28 sps:$4 sm:$0xff]  }
 0x4e3   : > { %6714 = vmatmul.mubr.bf16.gmra.mrb[252].mxu0 %v16284_v24  ;;  %7100 = vmatmul.mubr.bf16.gmra.mrb[252].mxu1 %v16284_v24  ;;  %v13208_v57 = vld [vmem:[%s17860_s7 + $0xf8] ss:$28 sps:$4 sm:$0xff]   ;;  %v13198_v19 = vld [vmem:[%s17860_s7 + $0x12c] ss:$28 sps:$4 sm:$0xff]  }
 0x4e4   : > { %6756 = vmatprep.mubr.bf16.mxu0 %v15798_v1  ;;  %7142 = vmatprep.mubr.bf16.mxu1 %v15798_v1  ;;  %v13215_v21 = vld [vmem:[%s17860_s7 + $0x2f0] ss:$28 sps:$4 sm:$0xff]  }
 0x4eb   : > { %6757 = vmatmul.mubr.bf16.vlgmr.msra.gmra.mrb[192].mxu0 %v15794_v63  ;;  %7143 = vmatmul.mubr.bf16.vlgmr.msra.gmra.mrb[192].mxu1 %v15794_v63 }
 0x4ec   : > { %6766 = vmatprep.mubr.bf16.mxu0 %v15842_v31  ;;  %7152 = vmatprep.mubr.bf16.mxu1 %v15842_v31 }
 0x4ed   : > { %11479 = vmatpush3.bf16.msra.mxu1 %v13176_v22  ;;  %7304 = vmatpush1.bf16.msra.mxu0 %v13177_v38  ;;  %v13196_v22 = vld [vmem:[%s17860_s7 + $0x128] ss:$28 sps:$4 sm:$0xff]   ;;  %v13216_v38 = vld [vmem:[%s17860_s7 + $0x130] ss:$28 sps:$4 sm:$0xff]  }
 0x4ee   : > { %7305 = vmatprep.subr.bf16.mxu0 %v13182_v61  ;;  %11480 = vmatprep.subr.bf16.mxu1 %v13183_v16  ;;  %v13203_v61 = vld [vmem:[%s17860_s7 + $0x164] ss:$28 sps:$4 sm:$0xff]  }
 0x4ef   : > { %v13223_v16 = vld [vmem:[%s17860_s7 + $0x328] ss:$28 sps:$4 sm:$0xff]  }
 0x4f1   : > { %7306 = vmatpush1.bf16.msra.mxu0 %v13180_v42  ;;  %11481 = vmatpush3.bf16.msra.mxu1 %v13184_v7  ;;  %v13201_v42 = vld [vmem:[%s17860_s7 + $0x160] ss:$28 sps:$4 sm:$0xff]   ;;  %v13224_v7 = vld [vmem:[%s17860_s7 + $0x168] ss:$28 sps:$4 sm:$0xff]  }
 0x4f2   : > { %7307 = vmatprep.subr.bf16.mxu0 %v13187_v43  ;;  %11482 = vmatprep.subr.bf16.mxu1 %v13191_v35  ;;  %v13206_v43 = vld [vmem:[%s17860_s7 + $0x19c] ss:$28 sps:$4 sm:$0xff]  }
 0x4f3   : > { %6767 = vmatmul.mubr.bf16.gmra.mrb[196].mxu0 %v15838_v29  ;;  %7153 = vmatmul.mubr.bf16.gmra.mrb[196].mxu1 %v15838_v29  ;;  %v13231_v35 = vld [vmem:[%s17860_s7 + $0x360] ss:$28 sps:$4 sm:$0xff]  }
 0x4f4   : > { %6776 = vmatprep.mubr.bf16.mxu0 %v15886_v14  ;;  %7162 = vmatprep.mubr.bf16.mxu1 %v15886_v14 }
 0x4f5   : > { %7308 = vmatpush1.bf16.msra.mxu0 %v13185_v58  ;;  %11483 = vmatpush3.bf16.msra.mxu1 %v13192_v26  ;;  %v13204_v58 = vld [vmem:[%s17860_s7 + $0x198] ss:$28 sps:$4 sm:$0xff]   ;;  %v13232_v26 = vld [vmem:[%s17860_s7 + $0x1a0] ss:$28 sps:$4 sm:$0xff]  }
 0x4f6   : > { %7309 = vmatprep.subr.bf16.mxu0 %v13190_v36  ;;  %11484 = vmatprep.subr.bf16.mxu1 %v13199_v27  ;;  %v13211_v36 = vld [vmem:[%s17860_s7 + $0x1d4] ss:$28 sps:$4 sm:$0xff]  }
 0x4f7   : > { %v13239_v27 = vld [vmem:[%s17860_s7 + $0x558] ss:$28 sps:$4 sm:$0xff]  }
 0x4f9   : > { %7310 = vmatpush1.bf16.msra.mxu0 %v13188_v34  ;;  %11485 = vmatpush3.bf16.msra.mxu1 %v13200_v37  ;;  %v13209_v34 = vld [vmem:[%s17860_s7 + $0x1d0] ss:$28 sps:$4 sm:$0xff]  }
 0x4fa   : > { %7311 = vmatprep.subr.bf16.mxu0 %v13195_v10  ;;  %11486 = vmatprep.subr.bf16.mxu1 %v13207_v20  ;;  %v13214_v37 = vld [vmem:[%s17860_s7 + $0x20c] ss:$28 sps:$4 sm:$0xff]   ;;  %v13219_v20 = vld [vmem:[%s17860_s7 + $0x244] ss:$28 sps:$4 sm:$0xff]  }
 0x4fb   : > { %6777 = vmatmul.mubr.bf16.gmra.mrb[200].mxu0 %v15882_v12  ;;  %7163 = vmatmul.mubr.bf16.gmra.mrb[200].mxu1 %v15882_v12  ;;  %v13212_v10 = vld [vmem:[%s17860_s7 + $0x208] ss:$28 sps:$4 sm:$0xff]  }
 0x4fc   : > { %6786 = vmatprep.mubr.bf16.mxu0 %v15930_v3  ;;  %7172 = vmatprep.mubr.bf16.mxu1 %v15930_v3 }
 0x4fd   : > { %7312 = vmatpush1.bf16.msra.mxu0 %v13193_v32  ;;  %11487 = vmatpush3.bf16.msra.mxu1 %v13208_v57  ;;  %v13217_v32 = vld [vmem:[%s17860_s7 + $0x240] ss:$28 sps:$4 sm:$0xff]  }
 0x4fe   : > { %7313 = vmatprep.subr.bf16.mxu0 %v13198_v19  ;;  %11488 = vmatprep.subr.bf16.mxu1 %v13215_v21  ;;  %v13222_v57 = vld [vmem:[%s17860_s7 + $0x27c] ss:$28 sps:$4 sm:$0xff]   ;;  %v13227_v21 = vld [vmem:[%s17860_s7 + $0x2b4] ss:$28 sps:$4 sm:$0xff]  }
 0x4ff   : > { %v13220_v19 = vld [vmem:[%s17860_s7 + $0x278] ss:$28 sps:$4 sm:$0xff]  }
 0x501   : > { %7314 = vmatpush1.bf16.msra.mxu0 %v13196_v22  ;;  %11489 = vmatpush3.bf16.msra.mxu1 %v13216_v38  ;;  %v13225_v22 = vld [vmem:[%s17860_s7 + $0x2b0] ss:$28 sps:$4 sm:$0xff]  }
 0x502   : > { %7315 = vmatprep.subr.bf16.mxu0 %v13203_v61  ;;  %11490 = vmatprep.subr.bf16.mxu1 %v13223_v16  ;;  %v13230_v38 = vld [vmem:[%s17860_s7 + $0x2ec] ss:$28 sps:$4 sm:$0xff]   ;;  %v13235_v16 = vld [vmem:[%s17860_s7 + $0x324] ss:$28 sps:$4 sm:$0xff]  }
 0x503   : > { %6787 = vmatmul.mubr.bf16.gmra.mrb[204].mxu0 %v15926_v59  ;;  %7173 = vmatmul.mubr.bf16.gmra.mrb[204].mxu1 %v15926_v59  ;;  %v13228_v61 = vld [vmem:[%s17860_s7 + $0x2e8] ss:$28 sps:$4 sm:$0xff]  }
 0x504   : > { %6796 = vmatprep.mubr.bf16.mxu0 %v15974_v51  ;;  %7182 = vmatprep.mubr.bf16.mxu1 %v15974_v51 }
 0x505   : > { %7316 = vmatpush1.bf16.msra.mxu0 %v13201_v42  ;;  %11491 = vmatpush3.bf16.msra.mxu1 %v13224_v7  ;;  %v13233_v42 = vld [vmem:[%s17860_s7 + $0x320] ss:$28 sps:$4 sm:$0xff]  }
 0x506   : > { %7317 = vmatprep.subr.bf16.mxu0 %v13206_v43  ;;  %11492 = vmatprep.subr.bf16.mxu1 %v13231_v35  ;;  %v13238_v7 = vld [vmem:[%s17860_s7 + $0x35c] ss:$28 sps:$4 sm:$0xff]   ;;  %v13243_v35 = vld [vmem:[%s17860_s7 + $0x394] ss:$28 sps:$4 sm:$0xff]  }
 0x507   : > { %v13236_v43 = vld [vmem:[%s17860_s7 + $0x358] ss:$28 sps:$4 sm:$0xff]  }
 0x509   : > { %7318 = vmatpush1.bf16.msra.mxu0 %v13204_v58  ;;  %11493 = vmatpush3.bf16.msra.mxu1 %v13232_v26  ;;  %v13240_v58 = vld [vmem:[%s17860_s7 + $0x398] ss:$28 sps:$4 sm:$0xff]   ;;  %v13241_v26 = vld [vmem:[%s17860_s7 + $0x390] ss:$28 sps:$4 sm:$0xff]  }
 0x50a   : > { %7319 = vmatprep.subr.bf16.mxu0 %v13211_v36  ;;  %11590 = vmatprep.subr.bf16.mxu1 %v13239_v27  ;;  %v13246_v36 = vld [vmem:[%s17860_s7 + $0x3cc] ss:$28 sps:$4 sm:$0xff]  }
 0x50b   : > { %6797 = vmatmul.mubr.bf16.gmra.mrb[208].mxu0 %v15970_v48  ;;  %7183 = vmatmul.mubr.bf16.gmra.mrb[208].mxu1 %v15970_v48  ;;  %v13247_v27 = vld [vmem:[%s17860_s7 + $0x590] ss:$28 sps:$4 sm:$0xff]  }
 0x50c   : > { %6806 = vmatprep.mubr.bf16.mxu0 %v16018_v52  ;;  %7192 = vmatprep.mubr.bf16.mxu1 %v16018_v52 }
 0x50d   : > { %7320 = vmatpush1.bf16.msra.mxu0 %v13209_v34  ;;  %v13248_v34 = vld [vmem:[%s17860_s7 + $0x3d0] ss:$28 sps:$4 sm:$0xff]  }
 0x50e   : > { %7321 = vmatprep.subr.bf16.mxu0 %v13214_v37  ;;  %v13249_v37 = vld [vmem:[%s17860_s7 + $0x400] ss:$28 sps:$4 sm:$0xff]  }
 0x511   : > { %7322 = vmatpush1.bf16.msra.mxu0 %v13212_v10  ;;  %v13256_v10 = vld [vmem:[%s17860_s7 + $0x408] ss:$28 sps:$4 sm:$0xff]  }
 0x512   : > { %7323 = vmatprep.subr.bf16.mxu0 %v13219_v20  ;;  %v13254_v20 = vld [vmem:[%s17860_s7 + $0x43c] ss:$28 sps:$4 sm:$0xff]  }
 0x513   : > { %6807 = vmatmul.mubr.bf16.gmra.mrb[212].mxu0 %v16014_v45  ;;  %7193 = vmatmul.mubr.bf16.gmra.mrb[212].mxu1 %v16014_v45 }
 0x514   : > { %6816 = vmatprep.mubr.bf16.mxu0 %v16062_v6  ;;  %7202 = vmatprep.mubr.bf16.mxu1 %v16062_v6 }
 0x515   : > { %7324 = vmatpush1.bf16.msra.mxu0 %v13217_v32  ;;  %v13263_v32 = vld [vmem:[%s17860_s7 + $0x600] ss:$28 sps:$4 sm:$0xff]  }
 0x516   : > { %7325 = vmatprep.subr.bf16.mxu0 %v13222_v57  ;;  %v13252_v57 = vld [vmem:[%s17860_s7 + $0x438] ss:$28 sps:$4 sm:$0xff]  }
 0x519   : > { %7326 = vmatpush1.bf16.msra.mxu0 %v13220_v19  ;;  %v13264_v19 = vld [vmem:[%s17860_s7 + $0x440] ss:$28 sps:$4 sm:$0xff]  }
 0x51a   : > { %7327 = vmatprep.subr.bf16.mxu0 %v13227_v21  ;;  %v13259_v21 = vld [vmem:[%s17860_s7 + $0x474] ss:$28 sps:$4 sm:$0xff]  }
 0x51b   : > { %6817 = vmatmul.mubr.bf16.gmra.mrb[216].mxu0 %v16058_v4  ;;  %7203 = vmatmul.mubr.bf16.gmra.mrb[216].mxu1 %v16058_v4 }
 0x51c   : > { %6826 = vmatprep.mubr.bf16.mxu0 %v16106_v15  ;;  %7212 = vmatprep.mubr.bf16.mxu1 %v16106_v15 }
 0x51d   : > { %7328 = vmatpush1.bf16.msra.mxu0 %v13225_v22  ;;  %v13272_v22 = vld [vmem:[%s17860_s7 + $0x478] ss:$28 sps:$4 sm:$0xff]  }
 0x51e   : > { %7329 = vmatprep.subr.bf16.mxu0 %v13230_v38  ;;  %v13262_v38 = vld [vmem:[%s17860_s7 + $0x4ac] ss:$28 sps:$4 sm:$0xff]  }
 0x521   : > { %7330 = vmatpush1.bf16.msra.mxu0 %v13228_v61  ;;  %v13279_v61 = vld [vmem:[%s17860_s7 + $0x670] ss:$28 sps:$4 sm:$0xff]  }
 0x522   : > { %7331 = vmatprep.subr.bf16.mxu0 %v13235_v16  ;;  %v13260_v16 = vld [vmem:[%s17860_s7 + $0x4a8] ss:$28 sps:$4 sm:$0xff]  }
 0x523   : > { %6827 = vmatmul.mubr.bf16.gmra.mrb[220].mxu0 %v16102_v25  ;;  %7213 = vmatmul.mubr.bf16.gmra.mrb[220].mxu1 %v16102_v25 }
 0x524   : > { %6836 = vmatprep.mubr.bf16.mxu0 %v16150_v23  ;;  %7222 = vmatprep.mubr.bf16.mxu1 %v16150_v23 }
 0x525   : > { %7332 = vmatpush1.bf16.msra.mxu0 %v13233_v42  ;;  %v13280_v42 = vld [vmem:[%s17860_s7 + $0x4b0] ss:$28 sps:$4 sm:$0xff]  }
 0x526   : > { %7333 = vmatprep.subr.bf16.mxu0 %v13238_v7  ;;  %v13267_v7 = vld [vmem:[%s17860_s7 + $0x4e4] ss:$28 sps:$4 sm:$0xff]  }
 0x529   : > { %7334 = vmatpush1.bf16.msra.mxu0 %v13236_v43  ;;  %v13288_v43 = vld [vmem:[%s17860_s7 + $0x4e8] ss:$28 sps:$4 sm:$0xff]  }
 0x52a   : > { %7496 = vmatprep.subr.bf16.mxu0 %v13243_v35  ;;  %v13270_v35 = vld [vmem:[%s17860_s7 + $0x51c] ss:$28 sps:$4 sm:$0xff]  }
 0x52b   : > { %6837 = vmatmul.mubr.bf16.gmra.mrb[224].mxu0 %v16146_v56  ;;  %7223 = vmatmul.mubr.bf16.gmra.mrb[224].mxu1 %v16146_v56 }
 0x52c   : > { %6846 = vmatprep.mubr.bf16.mxu0 %v16170_v60  ;;  %7232 = vmatprep.mubr.bf16.mxu1 %v16170_v60 }
 0x533   : > { %6847 = vmatmul.mubr.bf16.gmra.mrb[228].mxu0 %v16166_v8  ;;  %7233 = vmatmul.mubr.bf16.gmra.mrb[228].mxu1 %v16166_v8 }
 0x534   : > { %6856 = vmatprep.mubr.bf16.mxu0 %v16190_v53  ;;  %7242 = vmatprep.mubr.bf16.mxu1 %v16190_v53 }
 0x53b   : > { %6857 = vmatmul.mubr.bf16.gmra.mrb[232].mxu0 %v16186_v17  ;;  %7243 = vmatmul.mubr.bf16.gmra.mrb[232].mxu1 %v16186_v17 }
 0x53c   : > { %6866 = vmatprep.mubr.bf16.mxu0 %v16210_v18  ;;  %7252 = vmatprep.mubr.bf16.mxu1 %v16210_v18 }
 0x543   : > { %6867 = vmatmul.mubr.bf16.gmra.mrb[236].mxu0 %v16206_v39  ;;  %7253 = vmatmul.mubr.bf16.gmra.mrb[236].mxu1 %v16206_v39 }
 0x544   : > { %6876 = vmatprep.mubr.bf16.mxu0 %v16230_v54  ;;  %7262 = vmatprep.mubr.bf16.mxu1 %v16230_v54 }
 0x54b   : > { %6877 = vmatmul.mubr.bf16.gmra.mrb[240].mxu0 %v16226_v40  ;;  %7263 = vmatmul.mubr.bf16.gmra.mrb[240].mxu1 %v16226_v40 }
 0x54c   : > { %6886 = vmatprep.mubr.bf16.mxu0 %v16250_v44  ;;  %7272 = vmatprep.mubr.bf16.mxu1 %v16250_v44 }
 0x553   : > { %6887 = vmatmul.mubr.bf16.gmra.mrb[244].mxu0 %v16246_v9  ;;  %7273 = vmatmul.mubr.bf16.gmra.mrb[244].mxu1 %v16246_v9 }
 0x554   : > { %6896 = vmatprep.mubr.bf16.mxu0 %v16270_v62  ;;  %7282 = vmatprep.mubr.bf16.mxu1 %v16270_v62 }
 0x55b   : > { %6897 = vmatmul.mubr.bf16.gmra.mrb[248].mxu0 %v16266_v33  ;;  %7283 = vmatmul.mubr.bf16.gmra.mrb[248].mxu1 %v16266_v33 }
 0x55c   : > { %6906 = vmatprep.mubr.bf16.mxu0 %v16290_v46  ;;  %7292 = vmatprep.mubr.bf16.mxu1 %v16290_v46 }
 0x563   : > { %6907 = vmatmul.mubr.bf16.gmra.mrb[252].mxu0 %v16286_v50  ;;  %7293 = vmatmul.mubr.bf16.gmra.mrb[252].mxu1 %v16286_v50 }
 0x564   : > { %7335 = vmatprep.mubr.bf16.mxu0 %v15796_v0  ;;  %7721 = vmatprep.mubr.bf16.mxu1 %v15796_v0  ;;  %v13244_v0 = vld [vmem:[%s17860_s7 + $0x3c8] ss:$28 sps:$4 sm:$0xff]  }
 0x56b   : > { %7336 = vmatmul.mubr.bf16.vlgmr.msra.gmra.mrb[0].mxu0 %v15792_v47  ;;  %7722 = vmatmul.mubr.bf16.vlgmr.msra.gmra.mrb[0].mxu1 %v15792_v47  ;;  %v13251_v47 = vld [vmem:[%s17860_s7 + $0x404] ss:$28 sps:$4 sm:$0xff]  }
 0x56c   : > { %7345 = vmatprep.mubr.bf16.mxu0 %v15840_v30  ;;  %7729 = vmatprep.mubr.bf16.mxu1 %v15840_v30  ;;  %v13255_v30 = vld [vmem:[%s17860_s7 + $0x5c8] ss:$28 sps:$4 sm:$0xff]  }
 0x56d   : > { %11591 = vmatpush3.bf16.msra.mxu1 %v13240_v58  ;;  %7497 = vmatpush1.bf16.msra.mxu0 %v13241_v26  ;;  %v13295_v58 = vld [vmem:[%s17860_s7 + $0x6e0] ss:$28 sps:$4 sm:$0xff]   ;;  %v13268_v26 = vld [vmem:[%s17860_s7 + $0x518] ss:$28 sps:$4 sm:$0xff]  }
 0x56e   : > { %7498 = vmatprep.subr.bf16.mxu0 %v13246_v36  ;;  %11592 = vmatprep.subr.bf16.mxu1 %v13247_v27  ;;  %v13296_v36 = vld [vmem:[%s17860_s7 + $0x520] ss:$28 sps:$4 sm:$0xff]   ;;  %v13278_v27 = vld [vmem:[%s17860_s7 + $0x58c] ss:$28 sps:$4 sm:$0xff]  }
 0x571   : > { %7499 = vmatpush1.bf16.msra.mxu0 %v13244_v0  ;;  %11593 = vmatpush3.bf16.msra.mxu1 %v13248_v34  ;;  %v17976_v0 = vld [vmem:[#allocation7_spill] sm:$0xff]  ;;  %v17977_v34 = vld [vmem:[#allocation9_spill] sm:$0xff] }
 0x572   : > { %7500 = vmatprep.subr.bf16.mxu0 %v13251_v47  ;;  %11594 = vmatprep.subr.bf16.mxu1 %v13255_v30  ;;  %v13276_v47 = vld [vmem:[%s17860_s7 + $0x588] ss:$28 sps:$4 sm:$0xff]  }
 0x573   : > { %7346 = vmatmul.mubr.bf16.gmra.mrb[4].mxu0 %v15836_v28  ;;  %7730 = vmatmul.mubr.bf16.gmra.mrb[4].mxu1 %v15836_v28  ;;  %v13271_v28 = vld [vmem:[%s17860_s7 + $0x638] ss:$28 sps:$4 sm:$0xff]   ;;  %v13283_v30 = vld [vmem:[%s17860_s7 + $0x5c4] ss:$28 sps:$4 sm:$0xff]  }
 0x574   : > { %7355 = vmatprep.mubr.bf16.mxu0 %v15884_v13  ;;  %7737 = vmatprep.mubr.bf16.mxu1 %v15884_v13  ;;  %v13257_v13 = vld [vmem:[%s17860_s7 + $0x470] ss:$28 sps:$4 sm:$0xff]  }
 0x575   : > { %7501 = vmatpush1.bf16.msra.mxu0 %v13249_v37  ;;  %11595 = vmatpush3.bf16.msra.mxu1 %v13256_v10  ;;  %v13281_v37 = vld [vmem:[%s17860_s7 + $0x5c0] ss:$28 sps:$4 sm:$0xff]  }
 0x576   : > { %7502 = vmatprep.subr.bf16.mxu0 %v13254_v20  ;;  %11596 = vmatprep.subr.bf16.mxu1 %v13263_v32  ;;  %v13286_v10 = vld [vmem:[%s17860_s7 + $0x5fc] ss:$28 sps:$4 sm:$0xff]   ;;  %v17978_v20 = vld [vmem:[#allocation8_spill] sm:$0xff]  ;;  %v17979_v32 = vld [vmem:[#allocation11_spill] sm:$0xff] }
 0x579   : > { %7503 = vmatpush1.bf16.msra.mxu0 %v13252_v57  ;;  %11597 = vmatpush3.bf16.msra.mxu1 %v13264_v19  ;;  %v13284_v57 = vld [vmem:[%s17860_s7 + $0x5f8] ss:$28 sps:$4 sm:$0xff]  }
 0x57a   : > { %7504 = vmatprep.subr.bf16.mxu0 %v13259_v21  ;;  %11598 = vmatprep.subr.bf16.mxu1 %v13271_v28  ;;  %v13291_v19 = vld [vmem:[%s17860_s7 + $0x634] ss:$28 sps:$4 sm:$0xff]   ;;  %v13294_v28 = vld [vmem:[%s17860_s7 + $0x66c] ss:$28 sps:$4 sm:$0xff]  }
 0x57b   : > { %7356 = vmatmul.mubr.bf16.gmra.mrb[8].mxu0 %v15880_v11  ;;  %7738 = vmatmul.mubr.bf16.gmra.mrb[8].mxu1 %v15880_v11  ;;  %v13287_v11 = vld [vmem:[%s17860_s7 + $0x6a8] ss:$28 sps:$4 sm:$0xff]   ;;  %v13289_v21 = vld [vmem:[%s17860_s7 + $0x630] ss:$28 sps:$4 sm:$0xff]  }
 0x57c   : > { %7365 = vmatprep.mubr.bf16.mxu0 %v15928_v2  ;;  %7745 = vmatprep.mubr.bf16.mxu1 %v15928_v2  ;;  %v13265_v2 = vld [vmem:[%s17860_s7 + $0x4e0] ss:$28 sps:$4 sm:$0xff]  }
 0x57d   : > { %7505 = vmatpush1.bf16.msra.mxu0 %v13257_v13  ;;  %11599 = vmatpush3.bf16.msra.mxu1 %v13272_v22  ;;  %v17980_v13 = vld [vmem:[#allocation10_spill] sm:$0xff]  ;;  %v17981_v22 = vld [vmem:[#allocation13_spill] sm:$0xff] }
 0x57e   : > { %7506 = vmatprep.subr.bf16.mxu0 %v13262_v38  ;;  %11600 = vmatprep.subr.bf16.mxu1 %v13279_v61  ;;  %v13292_v38 = vld [vmem:[%s17860_s7 + $0x668] ss:$28 sps:$4 sm:$0xff]  }
 0x57f   : > { %v13299_v61 = vld [vmem:[%s17860_s7 + $0x6a4] ss:$28 sps:$4 sm:$0xff]  }
 0x581   : > { %7507 = vmatpush1.bf16.msra.mxu0 %v13260_v16  ;;  %11601 = vmatpush3.bf16.msra.mxu1 %v13280_v42  ;;  %v13297_v16 = vld [vmem:[%s17860_s7 + $0x6a0] ss:$28 sps:$4 sm:$0xff]  }
 0x582   : > { %7508 = vmatprep.subr.bf16.mxu0 %v13267_v7  ;;  %11602 = vmatprep.subr.bf16.mxu1 %v13287_v11  ;;  %v13302_v42 = vld [vmem:[%s17860_s7 + $0x6dc] ss:$28 sps:$4 sm:$0xff]   ;;  %v17982_v7 = vld [vmem:[#allocation12_spill] sm:$0xff]  ;;  %v17983_v11 = vld [vmem:[#allocation15_spill] sm:$0xff] }
 0x583   : > { %7366 = vmatmul.mubr.bf16.gmra.mrb[12].mxu0 %v15924_v55  ;;  %7746 = vmatmul.mubr.bf16.gmra.mrb[12].mxu1 %v15924_v55  ;;  %v13275_v55 = vld [vmem:[%s17860_s7 + $0x554] ss:$28 sps:$4 sm:$0xff]  }
 0x584   : > { %7375 = vmatprep.mubr.bf16.mxu0 %v15972_v49  ;;  %7753 = vmatprep.mubr.bf16.mxu1 %v15972_v49  ;;  %v13273_v49 = vld [vmem:[%s17860_s7 + $0x550] ss:$28 sps:$4 sm:$0xff]  }
 0x585   : > { %7509 = vmatpush1.bf16.msra.mxu0 %v13265_v2  ;;  %11603 = vmatpush3.bf16.msra.mxu1 %v13288_v43  ;;  %v13300_v2 = vld [vmem:[%s17860_s7 + $0x6d8] ss:$28 sps:$4 sm:$0xff]   ;;  %v17984_v43 = vld [vmem:[#allocation14_spill] sm:$0xff] }
 0x586   : > { %7510 = vmatprep.subr.bf16.mxu0 %v13270_v35  ;;  %11604 = vmatprep.subr.bf16.mxu1 %v13295_v58  ;;  %v17985_v35 = vld [vmem:[#allocation18_spill] sm:$0xff]  ;;  %v17986_v58 = vld [vmem:[#allocation16_spill] sm:$0xff] }
 0x589   : > { %7511 = vmatpush1.bf16.msra.mxu0 %v13268_v26  ;;  %11605 = vmatpush3.bf16.msra.mxu1 %v13296_v36  ;;  %v17987_v26 = vld [vmem:[#allocation22_spill] sm:$0xff] }
 0x58a   : > { %7512 = vmatprep.subr.bf16.mxu0 %v13275_v55  ;;  %v5342_v36 = vld [vmem:[%s17861_s8] sm:$0x7f]  ;;  %v17988_v55 = vld [vmem:[#allocation20_spill] sm:$0xff] }
 0x58b   : > { %7376 = vmatmul.mubr.bf16.gmra.mrb[16].mxu0 %v17976_v0  ;;  %7754 = vmatmul.mubr.bf16.gmra.mrb[16].mxu1 %v17976_v0  ;;  %v17990_v0 = vld [vmem:[#allocation4_spill] sm:$0xff] }
 0x58c   : > { %7385 = vmatprep.mubr.bf16.mxu0 %v17977_v34  ;;  %7761 = vmatprep.mubr.bf16.mxu1 %v17977_v34  ;;  %v16693_v34 = vrot.slane %v5342_v36, %v17990_v0  ;;  %v17994_v0 = vld [vmem:[#allocation24_spill] sm:$0xff] }
 0x58d   : > { %7513 = vmatpush1.bf16.msra.mxu0 %v13273_v49  ;;  %v17989_v49 = vld [vmem:[#allocation3_spill] sm:$0xff] }
 0x58e   : > { %7514 = vmatprep.subr.bf16.mxu0 %v13278_v27  ;;  %v16690_v27 = vrot.slane %v5342_v36, %v17989_v49 }
 0x591   : > { %7515 = vmatpush1.bf16.msra.mxu0 %v13276_v47  ;;  %v17991_v47 = vld [vmem:[#allocation26_spill] sm:$0xff] }
 0x592   : > { %7516 = vmatprep.subr.bf16.mxu0 %v13283_v30  ;;  %v17992_v30 = vld [vmem:[#allocation5_spill] sm:$0xff] }
 0x593   : > { %7386 = vmatmul.mubr.bf16.gmra.mrb[20].mxu0 %v17978_v20  ;;  %7762 = vmatmul.mubr.bf16.gmra.mrb[20].mxu1 %v17978_v20 }
 0x594   : > { %7395 = vmatprep.mubr.bf16.mxu0 %v17979_v32  ;;  %7769 = vmatprep.mubr.bf16.mxu1 %v17979_v32 }
 0x595   : > { %7517 = vmatpush1.bf16.msra.mxu0 %v13281_v37  ;;  %v16698_v37 = vrot.slane %v5342_v36, %v17992_v30  ;;  %v17995_v30 = vld [vmem:[#allocation30_spill] sm:$0xff] }
 0x596   : > { %7518 = vmatprep.subr.bf16.mxu0 %v13286_v10  ;;  %v17993_v10 = vld [vmem:[#allocation6_spill] sm:$0xff] }
 0x597   : > { %v16701_v20 = vrot.slane %v5342_v36, %v17993_v10 }
 0x599   : > { %7519 = vmatpush1.bf16.msra.mxu0 %v13284_v57 }
 0x59a   : > { %7520 = vmatprep.subr.bf16.mxu0 %v13291_v19 }
 0x59b   : > { %7396 = vmatmul.mubr.bf16.gmra.mrb[24].mxu0 %v17980_v13  ;;  %7770 = vmatmul.mubr.bf16.gmra.mrb[24].mxu1 %v17980_v13 }
 0x59c   : > { %7405 = vmatprep.mubr.bf16.mxu0 %v17981_v22  ;;  %7777 = vmatprep.mubr.bf16.mxu1 %v17981_v22 }
 0x59d   : > { %7521 = vmatpush1.bf16.msra.mxu0 %v13289_v21 }
 0x59e   : > { %7522 = vmatprep.subr.bf16.mxu0 %v13294_v28 }
 0x5a1   : > { %7523 = vmatpush1.bf16.msra.mxu0 %v13292_v38 }
 0x5a2   : > { %7524 = vmatprep.subr.bf16.mxu0 %v13299_v61 }
 0x5a3   : > { %7406 = vmatmul.mubr.bf16.gmra.mrb[28].mxu0 %v17982_v7  ;;  %7778 = vmatmul.mubr.bf16.gmra.mrb[28].mxu1 %v17982_v7 }
 0x5a4   : > { %7415 = vmatprep.mubr.bf16.mxu0 %v17983_v11  ;;  %7785 = vmatprep.mubr.bf16.mxu1 %v17983_v11 }
 0x5a5   : > { %7525 = vmatpush1.bf16.msra.mxu0 %v13297_v16 }
 0x5a6   : > { %7526 = vmatprep.subr.bf16.mxu0 %v13302_v42 }
 0x5a9   : > { %7527 = vmatpush1.bf16.msra.mxu0 %v13300_v2 }
 0x5ab   : > { %7416 = vmatmul.mubr.bf16.gmra.mrb[32].mxu0 %v17984_v43  ;;  %7786 = vmatmul.mubr.bf16.gmra.mrb[32].mxu1 %v17984_v43 }
 0x5ac   : > { %7425 = vmatprep.mubr.bf16.mxu0 %v17985_v35  ;;  %7793 = vmatprep.mubr.bf16.mxu1 %v17985_v35 }
 0x5b3   : > { %7426 = vmatmul.mubr.bf16.gmra.mrb[36].mxu0 %v17986_v58  ;;  %7794 = vmatmul.mubr.bf16.gmra.mrb[36].mxu1 %v17986_v58 }
 0x5b4   : > { %7435 = vmatprep.mubr.bf16.mxu0 %v17987_v26  ;;  %7801 = vmatprep.mubr.bf16.mxu1 %v17987_v26 }
 0x5bb   : > { %7436 = vmatmul.mubr.bf16.gmra.mrb[40].mxu0 %v17988_v55  ;;  %7802 = vmatmul.mubr.bf16.gmra.mrb[40].mxu1 %v17988_v55 }
 0x5bc   : > { %7445 = vmatprep.mubr.bf16.mxu0 %v17991_v47  ;;  %7809 = vmatprep.mubr.bf16.mxu1 %v17991_v47 }
 0x5be   : > { %v6758_v32 = vpop.f32.mrb[192].mxu0  ;;  %v7144_v57 = vpop.f32.mrb[192].mxu1 }
 0x5bf   : > { %v11830_v19 = vadd.f32 %v6758_v32, %v16690_v27  ;;  %v11894_v21 = vadd.f32 %v7144_v57, %v16693_v34  ;;  %v6760_v28 = vpop.f32.mrb[193].mxu0  ;;  %v7146_v13 = vpop.f32.mrb[193].mxu1 }
 0x5c0   : > { %v11831_v22 = vadd.f32 %v6760_v28, %v16698_v37  ;;  %v11895_v38 = vadd.f32 %v7146_v13, %v16701_v20  ;;  %v6762_v61 = vpop.f32.mrb[194].mxu0  ;;  %v7148_v16 = vpop.f32.mrb[194].mxu1 }
 0x5c1   : > { %v10772_v42 = vmul.f32 -1.442695, %v11830_v19  ;;  %v10774_v7 = vmul.f32 -1.442695, %v11894_v21  ;;  %v11832_v11 = vadd.f32 %v6762_v61, %v16690_v27  ;;  %v11896_v2 = vadd.f32 %v7148_v16, %v16693_v34  ;;  %v6764_v43 = vpop.f32.mrb[195].mxu0  ;;  %v7150_v35 = vpop.f32.mrb[195].mxu1 }
 0x5c2   : > { %v10773_v58 = vmul.f32 -1.442695, %v11831_v22  ;;  %v10775_v26 = vmul.f32 -1.442695, %v11895_v38  ;;  %v11833_v36 = vadd.f32 %v6764_v43, %v16698_v37  ;;  %v11897_v55 = vadd.f32 %v7150_v35, %v16701_v20 }
 0x5c3   : > { %13303 = vpow2.f32 %v10772_v42  ;;  %v10779_v49 = vmul.f32 -1.442695, %v11832_v11  ;;  %7446 = vmatmul.mubr.bf16.gmra.mrb[44].mxu0 %v17994_v0  ;;  %7810 = vmatmul.mubr.bf16.gmra.mrb[44].mxu1 %v17994_v0  ;;  %v10781_v47 = vmul.f32 -1.442695, %v11896_v2 }
 0x5c4   : > { %13305 = vpow2.f32 %v10774_v7  ;;  %7455 = vmatprep.mubr.bf16.mxu0 %v17995_v30  ;;  %7817 = vmatprep.mubr.bf16.mxu1 %v17995_v30  ;;  %v10780_v10 = vmul.f32 -1.442695, %v11833_v36  ;;  %v10782_v32 = vmul.f32 -1.442695, %v11897_v55  ;;  %v17996_v55 = vld [vmem:[#allocation28_spill] sm:$0xff] }
 0x5c5   : > { %13307 = vpow2.f32 %v10773_v58 }
 0x5c6   : > { %13309 = vpow2.f32 %v10775_v26  ;;  %v6768_v57 = vpop.f32.mrb[196].mxu0  ;;  %v7154_v19 = vpop.f32.mrb[196].mxu1 }
 0x5c7   : > { %13311 = vpow2.f32 %v10779_v49  ;;  %v11834_v21 = vadd.f32 %v6768_v57, %v16690_v27  ;;  %v11898_v28 = vadd.f32 %v7154_v19, %v16693_v34  ;;  %v6770_v13 = vpop.f32.mrb[197].mxu0  ;;  %v7156_v22 = vpop.f32.mrb[197].mxu1  ;;  %v17997_v49 = vld [vmem:[#allocation34_spill] sm:$0xff] }
 0x5c8   : > { %13313 = vpow2.f32 %v10781_v47  ;;  %v11835_v38 = vadd.f32 %v6770_v13, %v16698_v37  ;;  %v11899_v61 = vadd.f32 %v7156_v22, %v16701_v20  ;;  %v6772_v16 = vpop.f32.mrb[198].mxu0  ;;  %v7158_v42 = vpop.f32.mrb[198].mxu1 }
 0x5c9   : > { %13315 = vpow2.f32 %v10780_v10  ;;  %v10786_v7 = vmul.f32 -1.442695, %v11834_v21  ;;  %v10788_v11 = vmul.f32 -1.442695, %v11898_v28  ;;  %v11836_v2 = vadd.f32 %v6772_v16, %v16690_v27  ;;  %v6774_v43 = vpop.f32.mrb[199].mxu0  ;;  %v7160_v35 = vpop.f32.mrb[199].mxu1 }
 0x5ca   : > { %13317 = vpow2.f32 %v10782_v32  ;;  %v10787_v58 = vmul.f32 -1.442695, %v11835_v38  ;;  %v10789_v26 = vmul.f32 -1.442695, %v11899_v61 }
 0x5cb   : > { %13319 = vpow2.f32 %v10786_v7  ;;  %v10793_v36 = vmul.f32 -1.442695, %v11836_v2  ;;  %7456 = vmatmul.mubr.bf16.gmra.mrb[48].mxu0 %v17996_v55  ;;  %7818 = vmatmul.mubr.bf16.gmra.mrb[48].mxu1 %v17996_v55 }
 0x5cc   : > { %13321 = vpow2.f32 %v10788_v11  ;;  %7465 = vmatprep.mubr.bf16.mxu0 %v17997_v49  ;;  %7825 = vmatprep.mubr.bf16.mxu1 %v17997_v49  ;;  %v17998_v49 = vld [vmem:[#allocation32_spill] sm:$0xff] }
 0x5cd   : > { %v13304_v0 = vpop.eup %13303  ;;  %13323 = vpow2.f32 %v10787_v58 }
 0x5ce   : > { %v13306_v47 = vpop.eup %13305  ;;  %v8683_v30 = vadd.f32 1.0, %v13304_v0  ;;  %13325 = vpow2.f32 %v10789_v26  ;;  %v6778_v10 = vpop.f32.mrb[200].mxu0 }
 0x5cf   : > { %v7164_v32 = vpop.f32.mrb[200].mxu1  ;;  %v13308_v57 = vpop.eup %13307  ;;  %v8685_v19 = vadd.f32 1.0, %v13306_v47  ;;  %13327 = vpow2.f32 %v10793_v36 }
 0x5d0   : > { %v6780_v21 = vpop.f32.mrb[201].mxu0  ;;  %v7166_v28 = vpop.f32.mrb[201].mxu1  ;;  %13329 = vrcp.f32 %v8683_v30  ;;  %v8684_v22 = vadd.f32 1.0, %v13308_v57  ;;  %v17999_v30 = vld [vmem:[#allocation37_spill] sm:$0xff] }
 0x5d1   : > { %v13310_v13 = vpop.eup %13309  ;;  %v16724_v38 = vpop.f32.mrb[202].mxu0  ;;  %13331 = vrcp.f32 %v8685_v19 }
 0x5d2   : > { %v16726_v61 = vpop.f32.mrb[202].mxu1  ;;  %v13312_v16 = vpop.eup %13311  ;;  %v8686_v7 = vadd.f32 1.0, %v13310_v13  ;;  %13333 = vrcp.f32 %v8684_v22  ;;  %v11900_v13 = vadd.f32 %v7158_v42, %v16693_v34 }
 0x5d3   : > { %v16728_v11 = vpop.f32.mrb[203].mxu0  ;;  %v13314_v2 = vpop.eup %13313  ;;  %v8690_v58 = vadd.f32 1.0, %v13312_v16  ;;  %7466 = vmatmul.mubr.bf16.gmra.mrb[52].mxu0 %v17998_v49  ;;  %7826 = vmatmul.mubr.bf16.gmra.mrb[52].mxu1 %v17998_v49 }
 0x5d4   : > { %v16730_v26 = vpop.f32.mrb[203].mxu1  ;;  %v13316_v36 = vpop.eup %13315  ;;  %13335 = vrcp.f32 %v8686_v7  ;;  %v8692_v55 = vadd.f32 1.0, %v13314_v2  ;;  %7475 = vmatprep.mubr.bf16.mxu0 %v17999_v30  ;;  %7833 = vmatprep.mubr.bf16.mxu1 %v17999_v30  ;;  %v11837_v7 = vadd.f32 %v6774_v43, %v16698_v37 }
 0x5d5   : > { %v13318_v0 = vpop.eup %13317  ;;  %13337 = vrcp.f32 %v8690_v58  ;;  %v8691_v47 = vadd.f32 1.0, %v13316_v36  ;;  %v11901_v36 = vadd.f32 %v7160_v35, %v16701_v20  ;;  %v11902_v35 = vadd.f32 %v7164_v32, %v16693_v34 }
 0x5d6   : > { %v13320_v57 = vpop.eup %13319  ;;  %13339 = vrcp.f32 %v8692_v55  ;;  %v8693_v19 = vadd.f32 1.0, %v13318_v0  ;;  %v16738_v2 = vpop.f32.mrb[204].mxu0  ;;  %v11838_v0 = vadd.f32 %v6778_v10, %v16690_v27  ;;  %v11839_v10 = vadd.f32 %v6780_v21, %v16698_v37 }
 0x5d7   : > { %v13322_v22 = vpop.eup %13321  ;;  %13341 = vrcp.f32 %v8691_v47  ;;  %v8697_v16 = vadd.f32 1.0, %v13320_v57  ;;  %v16741_v50 = vpop.f32.mrb[204].mxu1  ;;  %v10796_v40 = vmul.f32 -1.442695, %v11901_v36  ;;  %v11840_v21 = vadd.f32 %v16724_v38, %v16690_v27 }
 0x5d8   : > { %v13324_v49 = vpop.eup %13323  ;;  %13343 = vrcp.f32 %v8693_v19  ;;  %v8699_v58 = vadd.f32 1.0, %v13322_v22  ;;  %v16743_v30 = vpop.f32.mrb[205].mxu0  ;;  %v10795_v22 = vmul.f32 -1.442695, %v11900_v13  ;;  %v10800_v13 = vmul.f32 -1.442695, %v11838_v0 }
 0x5d9   : > { %v13326_v55 = vpop.eup %13325  ;;  %13345 = vrcp.f32 %v8697_v16  ;;  %v8698_v42 = vadd.f32 1.0, %v13324_v49  ;;  %v16747_v47 = vpop.f32.mrb[205].mxu1  ;;  %v10794_v49 = vmul.f32 -1.442695, %v11837_v7  ;;  %v11904_v36 = vadd.f32 %v16726_v61, %v16693_v34 }
 0x5da   : > { %v16749_v43 = vpop.f32.mrb[206].mxu0  ;;  %v13328_v57 = vpop.eup %13327  ;;  %13347 = vrcp.f32 %v8699_v58  ;;  %v8700_v19 = vadd.f32 1.0, %v13326_v55  ;;  %v11903_v58 = vadd.f32 %v7166_v28, %v16701_v20  ;;  %v10801_v0 = vmul.f32 -1.442695, %v11839_v10 }
 0x5db   : > { %v16752_v46 = vpop.f32.mrb[206].mxu1  ;;  %v16754_v33 = vpop.f32.mrb[207].mxu0  ;;  %13349 = vrcp.f32 %v8698_v42  ;;  %v8704_v16 = vadd.f32 1.0, %v13328_v57  ;;  %7476 = vmatmul.mubr.bf16.gmra.mrb[56].mxu0 %v16264_v5  ;;  %7834 = vmatmul.mubr.bf16.gmra.mrb[56].mxu1 %v16264_v5  ;;  %v10802_v5 = vmul.f32 -1.442695, %v11902_v35  ;;  %v11841_v38 = vadd.f32 %v16728_v11, %v16698_v37 }
 0x5dc   : > { %v13330_v62 = vpop.eup %13329  ;;  %v16757_v9 = vpop.f32.mrb[207].mxu1  ;;  %13351 = vrcp.f32 %v8700_v19  ;;  %7485 = vmatprep.mubr.bf16.mxu0 %v16288_v41  ;;  %7841 = vmatprep.mubr.bf16.mxu1 %v16288_v41  ;;  %v11842_v11 = vadd.f32 %v16738_v2, %v16690_v27 }
 0x5dd   : > { %v13332_v44 = vpop.eup %13331  ;;  %13353 = vrcp.f32 %v8704_v16  ;;  %v10807_v16 = vmul.f32 -1.442695, %v11840_v21  ;;  %v10808_v2 = vmul.f32 -1.442695, %v11841_v38 }
 0x5de   : > { %v13334_v32 = vpop.eup %13333  ;;  %13355 = vpow2.f32 %v10795_v22  ;;  %v16775_v57 = vpop.f32.mrb[208].mxu0  ;;  %v11905_v22 = vadd.f32 %v16730_v26, %v16701_v20  ;;  %v10809_v26 = vmul.f32 -1.442695, %v11904_v36 }
 0x5df   : > { %v13336_v28 = vpop.eup %13335  ;;  %v11126_v7 = vpack.c.bf16 %v13334_v32, %v13330_v62  ;;  %13357 = vpow2.f32 %v10794_v49  ;;  %v16777_v19 = vpop.f32.mrb[208].mxu1  ;;  %v10803_v62 = vmul.f32 -1.442695, %v11903_v58  ;;  %v11906_v32 = vadd.f32 %v16741_v50, %v16693_v34 }
 0x5e0   : > { %v13338_v55 = vpop.eup %13337  ;;  %v11127_v42 = vpack.c.bf16 %v13336_v28, %v13332_v44  ;;  %13359 = vpow2.f32 %v10796_v40  ;;  %v16782_v61 = vpop.f32.mrb[209].mxu0  ;;  %v10810_v54 = vmul.f32 -1.442695, %v11905_v22  ;;  %v10814_v50 = vmul.f32 -1.442695, %v11842_v11 }
 0x5e1   : > { %v13340_v41 = vpop.eup %13339  ;;  %10059 = vst [vmem:[%s16765_s24] sm:$0xff] %v11126_v7  ;;  %v16784_v35 = vpop.f32.mrb[209].mxu1  ;;  %13361 = vpow2.f32 %v10800_v13 }
 0x5e2   : > { %v13342_v44 = vpop.eup %13341  ;;  %10060 = vst [vmem:[%s16765_s24 + $0x8] sm:$0xff] %v11127_v42  ;;  %v16789_v49 = vpop.f32.mrb[210].mxu0  ;;  %13363 = vpow2.f32 %v10802_v5 }
 0x5e3   : > { %v16791_v10 = vpop.f32.mrb[210].mxu1  ;;  %v13344_v40 = vpop.eup %13343  ;;  %v11130_v58 = vpack.c.bf16 %v13342_v44, %v13338_v55  ;;  %13365 = vpow2.f32 %v10801_v0  ;;  %7486 = vmatmul.mubr.bf16.gmra.mrb[60].mxu0 %v16284_v24  ;;  %7842 = vmatmul.mubr.bf16.gmra.mrb[60].mxu1 %v16284_v24  ;;  %v10816_v0 = vmul.f32 -1.442695, %v11906_v32 }
 0x5e4   : > { %v16795_v28 = vpop.f32.mrb[211].mxu0  ;;  %v16797_v13 = vpop.f32.mrb[211].mxu1  ;;  %v11131_v7 = vpack.c.bf16 %v13344_v40, %v13340_v41  ;;  %13367 = vpow2.f32 %v10803_v62  ;;  %7528 = vmatprep.mubr.bf16.mxu0 %v15798_v1  ;;  %7882 = vmatprep.mubr.bf16.mxu1 %v15798_v1 }
 0x5e5   : > { %v13346_v21 = vpop.eup %13345  ;;  %10064 = vst [vmem:[%s16765_s24 + $0x1c] sm:$0xff] %v11130_v58  ;;  %13369 = vpow2.f32 %v10807_v16 }
 0x5e6   : > { %v13348_v42 = vpop.eup %13347  ;;  %10065 = vst [vmem:[%s16765_s24 + $0x24] sm:$0xff] %v11131_v7  ;;  %13371 = vpow2.f32 %v10809_v26  ;;  %v16807_v62 = vpop.f32.mrb[212].mxu0 }
 0x5e7   : > { %v13350_v5 = vpop.eup %13349  ;;  %13373 = vpow2.f32 %v10808_v2  ;;  %v16809_v24 = vpop.f32.mrb[212].mxu1 }
 0x5e8   : > { %v13352_v36 = vpop.eup %13351  ;;  %v11134_v55 = vpack.c.bf16 %v13350_v5, %v13346_v21  ;;  %13375 = vpow2.f32 %v10810_v54  ;;  %v16812_v44 = vpop.f32.mrb[213].mxu0 }
 0x5e9   : > { %v16805_v38 = vpop.eup %13353  ;;  %v11135_v41 = vpack.c.bf16 %v13352_v36, %v13348_v42  ;;  %v16814_v16 = vpop.f32.mrb[213].mxu1  ;;  %13377 = vpow2.f32 %v10814_v50 }
 0x5ea   : > { %v13356_v22 = vpop.eup %13355  ;;  %10068 = vst [vmem:[%s16765_s24 + $0x38] sm:$0xff] %v11134_v55  ;;  %v16817_v40 = vpop.f32.mrb[214].mxu0  ;;  %13379 = vpow2.f32 %v10816_v0 }
 0x5eb   : > { %v13358_v1 = vpop.eup %13357  ;;  %10069 = vst [vmem:[%s16765_s24 + $0x40] sm:$0xff] %v11135_v41  ;;  %v8706_v11 = vadd.f32 1.0, %v13356_v22  ;;  %v16819_v58 = vpop.f32.mrb[214].mxu1  ;;  %7529 = vmatmul.mubr.bf16.vlgmr.msra.gmra.mrb[0].mxu0 %v15794_v63  ;;  %7883 = vmatmul.mubr.bf16.vlgmr.msra.gmra.mrb[64].mxu1 %v15794_v63  ;;  %v11843_v63 = vadd.f32 %v16743_v30, %v16698_v37  ;;  %v11844_v30 = vadd.f32 %v16749_v43, %v16690_v27 }
 0x5ec   : > { %v13360_v26 = vpop.eup %13359  ;;  %v8705_v32 = vadd.f32 1.0, %v13358_v1  ;;  %v16821_v21 = vpop.f32.mrb[215].mxu0  ;;  %7538 = vmatprep.mubr.bf16.mxu0 %v15842_v31  ;;  %7890 = vmatprep.mubr.bf16.mxu1 %v15842_v31 }
 0x5ed   : > { %v13362_v7 = vpop.eup %13361  ;;  %13381 = vrcp.f32 %v8706_v11  ;;  %v8707_v54 = vadd.f32 1.0, %v13360_v26  ;;  %v16823_v2 = vpop.f32.mrb[215].mxu1 }
 0x5ee   : > { %v13364_v42 = vpop.eup %13363  ;;  %13383 = vrcp.f32 %v8705_v32  ;;  %v8711_v5 = vadd.f32 1.0, %v13362_v7  ;;  %v16829_v1 = vpop.f32.mrb[216].mxu0 }
 0x5ef   : > { %v13366_v50 = vpop.eup %13365  ;;  %13385 = vrcp.f32 %v8707_v54  ;;  %v8713_v36 = vadd.f32 1.0, %v13364_v42  ;;  %v16833_v32 = vpop.f32.mrb[216].mxu1  ;;  %v11907_v42 = vadd.f32 %v16747_v47, %v16701_v20  ;;  %v11908_v47 = vadd.f32 %v16752_v46, %v16693_v34 }
 0x5f0   : > { %v13368_v55 = vpop.eup %13367  ;;  %13387 = vrcp.f32 %v8711_v5  ;;  %v8712_v0 = vadd.f32 1.0, %v13366_v50  ;;  %v16835_v7 = vpop.f32.mrb[217].mxu0  ;;  %v11909_v46 = vadd.f32 %v16757_v9, %v16701_v20 }
 0x5f1   : > { %v13370_v41 = vpop.eup %13369  ;;  %13389 = vrcp.f32 %v8713_v36  ;;  %v8714_v22 = vadd.f32 1.0, %v13368_v55  ;;  %v16839_v5 = vpop.f32.mrb[217].mxu1 }
 0x5f2   : > { %v13372_v11 = vpop.eup %13371  ;;  %13391 = vrcp.f32 %v8712_v0  ;;  %v8718_v26 = vadd.f32 1.0, %v13370_v41  ;;  %v16841_v50 = vpop.f32.mrb[218].mxu0 }
 0x5f3   : > { %v13374_v54 = vpop.eup %13373  ;;  %13393 = vrcp.f32 %v8714_v22  ;;  %v8720_v31 = vadd.f32 1.0, %v13372_v11  ;;  %v16845_v0 = vpop.f32.mrb[218].mxu1  ;;  %7539 = vmatmul.mubr.bf16.gmra.mrb[4].mxu0 %v15838_v29  ;;  %7891 = vmatmul.mubr.bf16.gmra.mrb[68].mxu1 %v15838_v29 }
 0x5f4   : > { %v13376_v36 = vpop.eup %13375  ;;  %13395 = vrcp.f32 %v8718_v26  ;;  %v8719_v55 = vadd.f32 1.0, %v13374_v54  ;;  %v16847_v41 = vpop.f32.mrb[219].mxu0  ;;  %v10815_v26 = vmul.f32 -1.442695, %v11843_v63  ;;  %v11845_v54 = vadd.f32 %v16754_v33, %v16698_v37  ;;  %7548 = vmatprep.mubr.bf16.mxu0 %v15886_v14  ;;  %7898 = vmatprep.mubr.bf16.mxu1 %v15886_v14 }
 0x5f5   : > { %v13378_v39 = vpop.eup %13377  ;;  %13397 = vrcp.f32 %v8720_v31  ;;  %v8721_v22 = vadd.f32 1.0, %v13376_v36  ;;  %v16851_v11 = vpop.f32.mrb[219].mxu1  ;;  %v10817_v36 = vmul.f32 -1.442695, %v11907_v42  ;;  %v10821_v63 = vmul.f32 -1.442695, %v11844_v30 }
 0x5f6   : > { %v13380_v18 = vpop.eup %13379  ;;  %13399 = vrcp.f32 %v8719_v55  ;;  %v8725_v17 = vadd.f32 1.0, %v13378_v39  ;;  %v11846_v33 = vadd.f32 %v16775_v57, %v16690_v27  ;;  %v11910_v42 = vadd.f32 %v16777_v19, %v16693_v34  ;;  %v16866_v9 = vpop.f32.mrb[220].mxu0 }
 0x5f7   : > { %v13382_v43 = vpop.eup %13381  ;;  %13401 = vrcp.f32 %v8721_v22  ;;  %v8727_v31 = vadd.f32 1.0, %v13380_v18  ;;  %v10823_v18 = vmul.f32 -1.442695, %v11908_v47  ;;  %v16868_v22 = vpop.f32.mrb[220].mxu1  ;;  %v10822_v30 = vmul.f32 -1.442695, %v11845_v54 }
 0x5f8   : > { %v13384_v39 = vpop.eup %13383  ;;  %13403 = vrcp.f32 %v8725_v17  ;;  %v11847_v57 = vadd.f32 %v16782_v61, %v16698_v37  ;;  %v16872_v53 = vpop.f32.mrb[221].mxu0  ;;  %v10824_v19 = vmul.f32 -1.442695, %v11909_v46  ;;  %v10828_v54 = vmul.f32 -1.442695, %v11846_v33 }
 0x5f9   : > { %v13386_v55 = vpop.eup %13385  ;;  %v11138_v29 = vpack.c.bf16 %v13384_v39, %v16805_v38  ;;  %13405 = vrcp.f32 %v8727_v31  ;;  %v16874_v38 = vpop.f32.mrb[221].mxu1  ;;  %v11911_v31 = vadd.f32 %v16784_v35, %v16701_v20  ;;  %v11848_v61 = vadd.f32 %v16789_v49, %v16690_v27 }
 0x5fa   : > { %v13388_v14 = vpop.eup %13387  ;;  %v11139_v17 = vpack.c.bf16 %v13386_v55, %v13382_v43  ;;  %13407 = vpow2.f32 %v10815_v26  ;;  %v16879_v39 = vpop.f32.mrb[222].mxu0  ;;  %v10830_v35 = vmul.f32 -1.442695, %v11910_v42  ;;  %v11849_v49 = vadd.f32 %v16795_v28, %v16698_v37 }
 0x5fb   : > { %v13390_v47 = vpop.eup %13389  ;;  %10072 = vst [vmem:[%s16765_s24 + $0x54] sm:$0xff] %v11138_v29  ;;  %13409 = vpow2.f32 %v10817_v36  ;;  %v16881_v8 = vpop.f32.mrb[222].mxu1  ;;  %v11912_v29 = vadd.f32 %v16791_v10, %v16693_v34  ;;  %7549 = vmatmul.mubr.bf16.gmra.mrb[8].mxu0 %v15882_v12  ;;  %7899 = vmatmul.mubr.bf16.gmra.mrb[72].mxu1 %v15882_v12  ;;  %v10835_v42 = vmul.f32 -1.442695, %v11848_v61 }
 0x5fc   : > { %v13392_v26 = vpop.eup %13391  ;;  %10073 = vst [vmem:[%s16765_s24 + $0x5c] sm:$0xff] %v11139_v17  ;;  %13411 = vpow2.f32 %v10821_v63  ;;  %v16886_v43 = vpop.f32.mrb[223].mxu0  ;;  %v10829_v63 = vmul.f32 -1.442695, %v11847_v57  ;;  %7558 = vmatprep.mubr.bf16.mxu0 %v15930_v3  ;;  %7906 = vmatprep.mubr.bf16.mxu1 %v15930_v3 }
 0x5fd   : > { %v16888_v55 = vpop.f32.mrb[223].mxu1  ;;  %v13394_v36 = vpop.eup %13393  ;;  %v11142_v46 = vpack.c.bf16 %v13392_v26, %v13388_v14  ;;  %13413 = vpow2.f32 %v10823_v18  ;;  %v10831_v18 = vmul.f32 -1.442695, %v11911_v31  ;;  %v10837_v28 = vmul.f32 -1.442695, %v11912_v29 }
 0x5fe   : > { %v13396_v60 = vpop.eup %13395  ;;  %v11143_v17 = vpack.c.bf16 %v13394_v36, %v13390_v47  ;;  %13415 = vpow2.f32 %v10822_v30  ;;  %v16900_v57 = vpop.f32.mrb[224].mxu0  ;;  %v10836_v31 = vmul.f32 -1.442695, %v11849_v49 }
 0x5ff   : > { %v13398_v33 = vpop.eup %13397  ;;  %10076 = vst [vmem:[%s16765_s24 + $0x70] sm:$0xff] %v11142_v46  ;;  %13417 = vpow2.f32 %v10824_v19  ;;  %v16902_v12 = vpop.f32.mrb[224].mxu1 }
 0x600   : > { %v13400_v10 = vpop.eup %13399  ;;  %10077 = vst [vmem:[%s16765_s24 + $0x78] sm:$0xff] %v11143_v17  ;;  %13419 = vpow2.f32 %v10828_v54  ;;  %v16906_v3 = vpop.f32.mrb[225].mxu0 }
 0x601   : > { %v13402_v14 = vpop.eup %13401  ;;  %v11146_v30 = vpack.c.bf16 %v13400_v10, %v13396_v60  ;;  %13421 = vpow2.f32 %v10830_v35  ;;  %v16908_v26 = vpop.f32.mrb[225].mxu1 }
 0x602   : > { %v16904_v47 = vpop.eup %13403  ;;  %v11147_v19 = vpack.c.bf16 %v13402_v14, %v13398_v33  ;;  %13423 = vpow2.f32 %v10829_v63  ;;  %v16913_v60 = vpop.f32.mrb[226].mxu0 }
 0x603   : > { %v16910_v54 = vpop.eup %13405  ;;  %10080 = vst [vmem:[%s16765_s24 + $0x8c] sm:$0xff] %v11146_v30  ;;  %13425 = vpow2.f32 %v10831_v18  ;;  %v16915_v61 = vpop.f32.mrb[226].mxu1  ;;  %7559 = vmatmul.mubr.bf16.gmra.mrb[12].mxu0 %v15926_v59  ;;  %7907 = vmatmul.mubr.bf16.gmra.mrb[76].mxu1 %v15926_v59 }
 0x604   : > { %v13408_v36 = vpop.eup %13407  ;;  %10081 = vst [vmem:[%s16765_s24 + $0x94] sm:$0xff] %v11147_v19  ;;  %13427 = vpow2.f32 %v10835_v42  ;;  %v16918_v46 = vpop.f32.mrb[227].mxu0  ;;  %7568 = vmatprep.mubr.bf16.mxu0 %v15974_v51  ;;  %7914 = vmatprep.mubr.bf16.mxu1 %v15974_v51 }
 0x605   : > { %v16920_v35 = vpop.f32.mrb[227].mxu1  ;;  %v13410_v29 = vpop.eup %13409  ;;  %v8726_v17 = vadd.f32 1.0, %v13408_v36  ;;  %13429 = vpow2.f32 %v10837_v28 }
 0x606   : > { %v13412_v63 = vpop.eup %13411  ;;  %v8728_v49 = vadd.f32 1.0, %v13410_v29  ;;  %13431 = vpow2.f32 %v10836_v31  ;;  %v16926_v28 = vpop.f32.mrb[228].mxu0 }
 0x607   : > { %v13414_v33 = vpop.eup %13413  ;;  %13433 = vrcp.f32 %v8726_v17  ;;  %v8732_v18 = vadd.f32 1.0, %v13412_v63  ;;  %v16928_v36 = vpop.f32.mrb[228].mxu1 }
 0x608   : > { %v13416_v10 = vpop.eup %13415  ;;  %13435 = vrcp.f32 %v8728_v49  ;;  %v8734_v42 = vadd.f32 1.0, %v13414_v33  ;;  %v16930_v59 = vpop.f32.mrb[229].mxu0 }
 0x609   : > { %v13418_v14 = vpop.eup %13417  ;;  %13437 = vrcp.f32 %v8732_v18  ;;  %v8733_v30 = vadd.f32 1.0, %v13416_v10  ;;  %18000 = vst [vmem:[#allocation7_spill] sm:$0xff] %v16930_v59  ;;  %v16932_v63 = vpop.f32.mrb[229].mxu1  ;;  %v11913_v18 = vadd.f32 %v16797_v13, %v16701_v20 }
 0x60a   : > { %v13420_v19 = vpop.eup %13419  ;;  %13439 = vrcp.f32 %v8734_v42  ;;  %v8735_v31 = vadd.f32 1.0, %v13418_v14  ;;  %18001 = vst [vmem:[#allocation9_spill] sm:$0xff] %v16932_v63  ;;  %v16934_v51 = vpop.f32.mrb[230].mxu0 }
 0x60b   : > { %v13422_v29 = vpop.eup %13421  ;;  %13441 = vrcp.f32 %v8733_v30  ;;  %v8739_v17 = vadd.f32 1.0, %v13420_v19  ;;  %18002 = vst [vmem:[#allocation8_spill] sm:$0xff] %v16934_v51  ;;  %v16938_v10 = vpop.f32.mrb[230].mxu1  ;;  %v11850_v30 = vadd.f32 %v16807_v62, %v16690_v27  ;;  %7569 = vmatmul.mubr.bf16.gmra.mrb[16].mxu0 %v15970_v48  ;;  %7915 = vmatmul.mubr.bf16.gmra.mrb[80].mxu1 %v15970_v48 }
 0x60c   : > { %v13424_v49 = vpop.eup %13423  ;;  %13443 = vrcp.f32 %v8735_v31  ;;  %v8741_v33 = vadd.f32 1.0, %v13422_v29  ;;  %v16940_v42 = vpop.f32.mrb[231].mxu0  ;;  %v11914_v31 = vadd.f32 %v16809_v24, %v16693_v34  ;;  %7578 = vmatprep.mubr.bf16.mxu0 %v16018_v52  ;;  %7922 = vmatprep.mubr.bf16.mxu1 %v16018_v52  ;;  %v11915_v24 = vadd.f32 %v16814_v16, %v16701_v20 }
 0x60d   : > { %v13426_v14 = vpop.eup %13425  ;;  %13445 = vrcp.f32 %v8739_v17  ;;  %v8740_v59 = vadd.f32 1.0, %v13424_v49  ;;  %v16944_v19 = vpop.f32.mrb[231].mxu1  ;;  %v11851_v17 = vadd.f32 %v16812_v44, %v16698_v37 }
 0x60e   : > { %18003 = vst [vmem:[#allocation11_spill] sm:$0xff] %v16944_v19  ;;  %v13428_v63 = vpop.eup %13427  ;;  %13447 = vrcp.f32 %v8741_v33  ;;  %v8742_v51 = vadd.f32 1.0, %v13426_v14  ;;  %v10838_v33 = vmul.f32 -1.442695, %v11913_v18  ;;  %v10842_v19 = vmul.f32 -1.442695, %v11850_v30 }
 0x60f   : > { %v13430_v13 = vpop.eup %13429  ;;  %13449 = vrcp.f32 %v8740_v59  ;;  %v8746_v29 = vadd.f32 1.0, %v13428_v63  ;;  %v11852_v59 = vadd.f32 %v16817_v40, %v16690_v27  ;;  %v16958_v63 = vpop.f32.mrb[232].mxu0  ;;  %v11916_v18 = vadd.f32 %v16819_v58, %v16693_v34 }
 0x610   : > { %v13432_v62 = vpop.eup %13431  ;;  %13451 = vrcp.f32 %v8742_v51  ;;  %v8748_v49 = vadd.f32 1.0, %v13430_v13  ;;  %18004 = vst [vmem:[#allocation10_spill] sm:$0xff] %v16958_v63  ;;  %v10844_v51 = vmul.f32 -1.442695, %v11914_v31  ;;  %v16963_v13 = vpop.f32.mrb[232].mxu1 }
 0x611   : > { %v13434_v14 = vpop.eup %13433  ;;  %13453 = vrcp.f32 %v8746_v29  ;;  %v8747_v48 = vadd.f32 1.0, %v13432_v62  ;;  %v16965_v16 = vpop.f32.mrb[233].mxu0  ;;  %v10843_v40 = vmul.f32 -1.442695, %v11851_v17  ;;  %v11853_v62 = vadd.f32 %v16821_v21, %v16698_v37 }
 0x612   : > { %v13436_v44 = vpop.eup %13435  ;;  %v11150_v52 = vpack.c.bf16 %v13434_v14, %v16904_v47  ;;  %13455 = vrcp.f32 %v8748_v49  ;;  %18005 = vst [vmem:[#allocation13_spill] sm:$0xff] %v16965_v16  ;;  %v16970_v63 = vpop.f32.mrb[233].mxu1  ;;  %v10845_v58 = vmul.f32 -1.442695, %v11915_v24  ;;  %v11917_v49 = vadd.f32 %v16823_v2, %v16701_v20 }
 0x613   : > { %v13438_v30 = vpop.eup %13437  ;;  %v11151_v29 = vpack.c.bf16 %v13436_v44, %v16910_v54  ;;  %13457 = vrcp.f32 %v8747_v48  ;;  %v16972_v47 = vpop.f32.mrb[234].mxu0  ;;  %v10849_v17 = vmul.f32 -1.442695, %v11852_v59  ;;  %v11854_v21 = vadd.f32 %v16829_v1, %v16690_v27  ;;  %7579 = vmatmul.mubr.bf16.gmra.mrb[20].mxu0 %v16014_v45  ;;  %7923 = vmatmul.mubr.bf16.gmra.mrb[84].mxu1 %v16014_v45 }
 0x614   : > { %v13440_v31 = vpop.eup %13439  ;;  %10084 = vst [vmem:[%s16765_s24 + $0xa8] sm:$0xff] %v11150_v52  ;;  %13459 = vpow2.f32 %v10838_v33  ;;  %v16977_v14 = vpop.f32.mrb[234].mxu1  ;;  %v10851_v24 = vmul.f32 -1.442695, %v11916_v18  ;;  %v11918_v2 = vadd.f32 %v16833_v32, %v16693_v34  ;;  %v10850_v52 = vmul.f32 -1.442695, %v11853_v62  ;;  %7588 = vmatprep.mubr.bf16.mxu0 %v16062_v6  ;;  %7930 = vmatprep.mubr.bf16.mxu1 %v16062_v6 }
 0x615   : > { %v16979_v16 = vpop.f32.mrb[235].mxu0  ;;  %v13442_v54 = vpop.eup %13441  ;;  %10085 = vst [vmem:[%s16765_s24 + $0xb0] sm:$0xff] %v11151_v29  ;;  %13461 = vpow2.f32 %v10842_v19  ;;  %v11855_v1 = vadd.f32 %v16835_v7, %v16698_v37  ;;  %v10852_v32 = vmul.f32 -1.442695, %v11917_v49  ;;  %v11919_v18 = vadd.f32 %v16839_v5, %v16701_v20 }
 0x616   : > { %v16984_v48 = vpop.f32.mrb[235].mxu1  ;;  %v13444_v44 = vpop.eup %13443  ;;  %v11154_v33 = vpack.c.bf16 %v13442_v54, %v13438_v30  ;;  %13463 = vpow2.f32 %v10844_v51  ;;  %v10856_v45 = vmul.f32 -1.442695, %v11854_v21  ;;  %v10858_v6 = vmul.f32 -1.442695, %v11918_v2 }
 0x617   : > { %v13446_v19 = vpop.eup %13445  ;;  %v11155_v59 = vpack.c.bf16 %v13444_v44, %v13440_v31  ;;  %13465 = vpow2.f32 %v10843_v40  ;;  %v16998_v29 = vpop.f32.mrb[236].mxu0  ;;  %v10857_v54 = vmul.f32 -1.442695, %v11855_v1 }
 0x618   : > { %v13448_v51 = vpop.eup %13447  ;;  %10088 = vst [vmem:[%s16765_s24 + $0xc4] sm:$0xff] %v11154_v33  ;;  %13467 = vpow2.f32 %v10845_v58  ;;  %v17000_v40 = vpop.f32.mrb[236].mxu1  ;;  %v10859_v33 = vmul.f32 -1.442695, %v11919_v18 }
 0x619   : > { %v13450_v30 = vpop.eup %13449  ;;  %10089 = vst [vmem:[%s16765_s24 + $0xcc] sm:$0xff] %v11155_v59  ;;  %13469 = vpow2.f32 %v10849_v17  ;;  %v17002_v31 = vpop.f32.mrb[237].mxu0 }
 0x61a   : > { %v13452_v7 = vpop.eup %13451  ;;  %v11158_v62 = vpack.c.bf16 %v13450_v30, %v13446_v19  ;;  %13471 = vpow2.f32 %v10851_v24  ;;  %v17004_v58 = vpop.f32.mrb[237].mxu1 }
 0x61b   : > { %v13454_v49 = vpop.eup %13453  ;;  %v11159_v5 = vpack.c.bf16 %v13452_v7, %v13448_v51  ;;  %13473 = vpow2.f32 %v10850_v52  ;;  %v17006_v17 = vpop.f32.mrb[238].mxu0  ;;  %7589 = vmatmul.mubr.bf16.gmra.mrb[24].mxu0 %v16058_v4  ;;  %7931 = vmatmul.mubr.bf16.gmra.mrb[88].mxu1 %v16058_v4 }
 0x61c   : > { %v17008_v21 = vpop.f32.mrb[238].mxu1  ;;  %v17010_v44 = vpop.eup %13455  ;;  %10092 = vst [vmem:[%s16765_s24 + $0xe0] sm:$0xff] %v11158_v62  ;;  %13475 = vpow2.f32 %v10852_v32  ;;  %7598 = vmatprep.mubr.bf16.mxu0 %v16106_v15  ;;  %7938 = vmatprep.mubr.bf16.mxu1 %v16106_v15 }
 0x61d   : > { %v17013_v24 = vpop.f32.mrb[239].mxu0  ;;  %v17015_v2 = vpop.f32.mrb[239].mxu1  ;;  %10093 = vst [vmem:[%s16765_s24 + $0xe8] sm:$0xff] %v11159_v5  ;;  %13477 = vpow2.f32 %v10856_v45 }
 0x61e   : > { %v13458_v19 = vpop.eup %13457  ;;  %13479 = vpow2.f32 %v10858_v6  ;;  %v17023_v7 = vpop.f32.mrb[240].mxu0 }
 0x61f   : > { %v13460_v59 = vpop.eup %13459  ;;  %v11162_v52 = vpack.c.bf16 %v13458_v19, %v13454_v49  ;;  %13481 = vpow2.f32 %v10857_v54  ;;  %v17025_v62 = vpop.f32.mrb[240].mxu1 }
 0x620   : > { %v13462_v1 = vpop.eup %13461  ;;  %v8749_v51 = vadd.f32 1.0, %v13460_v59  ;;  %13483 = vpow2.f32 %v10859_v33  ;;  %v17027_v49 = vpop.f32.mrb[241].mxu0 }
 0x621   : > { %v13464_v32 = vpop.eup %13463  ;;  %10096 = vst [vmem:[%s16765_s24 + $0xfc] sm:$0xff] %v11162_v52  ;;  %v8753_v18 = vadd.f32 1.0, %v13462_v1  ;;  %v17029_v5 = vpop.f32.mrb[241].mxu1 }
 0x622   : > { %v13466_v30 = vpop.eup %13465  ;;  %13485 = vrcp.f32 %v8749_v51  ;;  %v8755_v45 = vadd.f32 1.0, %v13464_v32  ;;  %18006 = vst [vmem:[#allocation12_spill] sm:$0xff] %v17029_v5  ;;  %v17031_v19 = vpop.f32.mrb[242].mxu0 }
 0x623   : > { %v13468_v6 = vpop.eup %13467  ;;  %13487 = vrcp.f32 %v8753_v18  ;;  %v8754_v4 = vadd.f32 1.0, %v13466_v30  ;;  %v17033_v33 = vpop.f32.mrb[242].mxu1  ;;  %7599 = vmatmul.mubr.bf16.gmra.mrb[28].mxu0 %v16102_v25  ;;  %7939 = vmatmul.mubr.bf16.gmra.mrb[92].mxu1 %v16102_v25  ;;  %v11921_v25 = vadd.f32 %v16851_v11, %v16701_v20  ;;  %v11922_v11 = vadd.f32 %v16868_v22, %v16693_v34 }
 0x624   : > { %v13470_v54 = vpop.eup %13469  ;;  %13489 = vrcp.f32 %v8755_v45  ;;  %v8756_v15 = vadd.f32 1.0, %v13468_v6  ;;  %v17035_v1 = vpop.f32.mrb[243].mxu0  ;;  %v11856_v45 = vadd.f32 %v16841_v50, %v16690_v27  ;;  %7608 = vmatprep.mubr.bf16.mxu0 %v16150_v23  ;;  %7946 = vmatprep.mubr.bf16.mxu1 %v16150_v23  ;;  %v11857_v50 = vadd.f32 %v16847_v41, %v16698_v37 }
 0x625   : > { %v13472_v59 = vpop.eup %13471  ;;  %13491 = vrcp.f32 %v8754_v4  ;;  %v8760_v52 = vadd.f32 1.0, %v13470_v54  ;;  %v17037_v51 = vpop.f32.mrb[243].mxu1  ;;  %v11920_v54 = vadd.f32 %v16845_v0, %v16693_v34  ;;  %v11858_v23 = vadd.f32 %v16866_v9, %v16690_v27 }
 0x626   : > { %18007 = vst [vmem:[#allocation15_spill] sm:$0xff] %v17037_v51  ;;  %v13474_v32 = vpop.eup %13473  ;;  %13493 = vrcp.f32 %v8756_v15  ;;  %v8762_v18 = vadd.f32 1.0, %v13472_v59  ;;  %v10863_v51 = vmul.f32 -1.442695, %v11856_v45  ;;  %v10864_v9 = vmul.f32 -1.442695, %v11857_v50 }
 0x627   : > { %v13476_v30 = vpop.eup %13475  ;;  %13495 = vrcp.f32 %v8760_v52  ;;  %v8761_v5 = vadd.f32 1.0, %v13474_v32  ;;  %v10866_v22 = vmul.f32 -1.442695, %v11921_v25  ;;  %v11860_v50 = vadd.f32 %v16879_v39, %v16690_v27 }
 0x628   : > { %v13478_v6 = vpop.eup %13477  ;;  %13497 = vrcp.f32 %v8762_v18  ;;  %v8763_v4 = vadd.f32 1.0, %v13476_v30  ;;  %v17051_v18 = vpop.f32.mrb[244].mxu0  ;;  %v10872_v25 = vmul.f32 -1.442695, %v11922_v11  ;;  %v11925_v11 = vadd.f32 %v16888_v55, %v16701_v20 }
 0x629   : > { %v13480_v15 = vpop.eup %13479  ;;  %13499 = vrcp.f32 %v8761_v5  ;;  %v8767_v59 = vadd.f32 1.0, %v13478_v6  ;;  %18008 = vst [vmem:[#allocation14_spill] sm:$0xff] %v17051_v18  ;;  %v17055_v5 = vpop.f32.mrb[244].mxu1 }
 0x62a   : > { %v13482_v52 = vpop.eup %13481  ;;  %13501 = vrcp.f32 %v8763_v4  ;;  %v8769_v32 = vadd.f32 1.0, %v13480_v15  ;;  %18009 = vst [vmem:[#allocation18_spill] sm:$0xff] %v17055_v5  ;;  %v17057_v6 = vpop.f32.mrb[245].mxu0  ;;  %v10865_v15 = vmul.f32 -1.442695, %v11920_v54 }
 0x62b   : > { %v13484_v30 = vpop.eup %13483  ;;  %13503 = vrcp.f32 %v8767_v59  ;;  %v8768_v0 = vadd.f32 1.0, %v13482_v52  ;;  %18010 = vst [vmem:[#allocation16_spill] sm:$0xff] %v17057_v6  ;;  %v17061_v18 = vpop.f32.mrb[245].mxu1  ;;  %v11859_v6 = vadd.f32 %v16872_v53, %v16698_v37  ;;  %7609 = vmatmul.mubr.bf16.gmra.mrb[32].mxu0 %v16146_v56  ;;  %7947 = vmatmul.mubr.bf16.gmra.mrb[96].mxu1 %v16146_v56 }
 0x62c   : > { %v13486_v41 = vpop.eup %13485  ;;  %13505 = vrcp.f32 %v8769_v32  ;;  %v8770_v4 = vadd.f32 1.0, %v13484_v30  ;;  %18011 = vst [vmem:[#allocation22_spill] sm:$0xff] %v17061_v18  ;;  %v17063_v59 = vpop.f32.mrb[246].mxu0  ;;  %v11923_v30 = vadd.f32 %v16874_v38, %v16701_v20  ;;  %v11924_v38 = vadd.f32 %v16881_v8, %v16693_v34 }
 0x62d   : > { %18012 = vst [vmem:[#allocation20_spill] sm:$0xff] %v17063_v59  ;;  %v13488_v45 = vpop.eup %13487  ;;  %v11163_v52 = vpack.c.bf16 %v13486_v41, %v17010_v44  ;;  %13507 = vrcp.f32 %v8768_v0  ;;  %v17068_v5 = vpop.f32.mrb[246].mxu1  ;;  %v10870_v44 = vmul.f32 -1.442695, %v11858_v23  ;;  %v18013_v41 = vld [vmem:[#allocation19_spill] sm:$0xff] }
 0x62e   : > { %v17070_v32 = vpop.f32.mrb[247].mxu0  ;;  %v13490_v54 = vpop.eup %13489  ;;  %13509 = vrcp.f32 %v8770_v4  ;;  %7618 = vmatprep.mubr.bf16.mxu0 %v18013_v41  ;;  %7954 = vmatprep.mubr.bf16.mxu1 %v18013_v41  ;;  %v10871_v39 = vmul.f32 -1.442695, %v11859_v6  ;;  %v11861_v4 = vadd.f32 %v16886_v43, %v16698_v37  ;;  %v11862_v6 = vadd.f32 %v16900_v57, %v16690_v27 }
 0x62f   : > { %v17074_v18 = vpop.f32.mrb[247].mxu1  ;;  %v13492_v59 = vpop.eup %13491  ;;  %10097 = vst [vmem:[%s16765_s24 + $0x104] sm:$0xff] %v11163_v52  ;;  %13511 = vpow2.f32 %v10863_v51  ;;  %v10877_v52 = vmul.f32 -1.442695, %v11860_v50  ;;  %v10879_v55 = vmul.f32 -1.442695, %v11924_v38 }
 0x630   : > { %v13494_v53 = vpop.eup %13493  ;;  %v11166_v0 = vpack.c.bf16 %v13492_v59, %v13488_v45  ;;  %13513 = vpow2.f32 %v10865_v15  ;;  %v10873_v15 = vmul.f32 -1.442695, %v11923_v30  ;;  %v17090_v8 = vpop.f32.mrb[248].mxu0  ;;  %v10878_v50 = vmul.f32 -1.442695, %v11861_v4  ;;  %v18015_v38 = vld [vmem:[#allocation17_spill] sm:$0xff] }
 0x631   : > { %v13496_v51 = vpop.eup %13495  ;;  %v11167_v23 = vpack.c.bf16 %v13494_v53, %v13490_v54  ;;  %13515 = vpow2.f32 %v10864_v9  ;;  %v17092_v59 = vpop.f32.mrb[248].mxu1 }
 0x632   : > { %v13498_v56 = vpop.eup %13497  ;;  %10100 = vst [vmem:[%s16765_s24 + $0x118] sm:$0xff] %v11166_v0  ;;  %13517 = vpow2.f32 %v10866_v22  ;;  %v17097_v43 = vpop.f32.mrb[249].mxu0 }
 0x633   : > { %v13500_v45 = vpop.eup %13499  ;;  %10101 = vst [vmem:[%s16765_s24 + $0x120] sm:$0xff] %v11167_v23  ;;  %13519 = vpow2.f32 %v10870_v44  ;;  %v17099_v9 = vpop.f32.mrb[249].mxu1  ;;  %7619 = vmatmul.mubr.bf16.gmra.mrb[36].mxu0 %v18015_v38  ;;  %7955 = vmatmul.mubr.bf16.gmra.mrb[100].mxu1 %v18015_v38 }
 0x634   : > { %18014 = vst [vmem:[#allocation3_spill] sm:$0xff] %v17099_v9  ;;  %v13502_v54 = vpop.eup %13501  ;;  %v11170_v22 = vpack.c.bf16 %v13500_v45, %v13496_v51  ;;  %13521 = vpow2.f32 %v10872_v25  ;;  %v17101_v30 = vpop.f32.mrb[250].mxu0  ;;  %v10880_v9 = vmul.f32 -1.442695, %v11925_v11  ;;  %v10884_v25 = vmul.f32 -1.442695, %v11862_v6 }
 0x635   : > { %v17103_v53 = vpop.f32.mrb[250].mxu1  ;;  %v13504_v0 = vpop.eup %13503  ;;  %v11171_v44 = vpack.c.bf16 %v13502_v54, %v13498_v56  ;;  %13523 = vpow2.f32 %v10871_v39  ;;  %v18016_v56 = vld [vmem:[#allocation23_spill] sm:$0xff] }
 0x636   : > { %v17105_v41 = vpop.f32.mrb[251].mxu0  ;;  %v17107_v57 = vpop.f32.mrb[251].mxu1  ;;  %10104 = vst [vmem:[%s16765_s24 + $0x134] sm:$0xff] %v11170_v22  ;;  %13525 = vpow2.f32 %v10873_v15  ;;  %7628 = vmatprep.mubr.bf16.mxu0 %v18016_v56  ;;  %7962 = vmatprep.mubr.bf16.mxu1 %v18016_v56 }
 0x637   : > { %v13506_v23 = vpop.eup %13505  ;;  %10105 = vst [vmem:[%s16765_s24 + $0x13c] sm:$0xff] %v11171_v44  ;;  %13527 = vpow2.f32 %v10877_v52  ;;  %v17116_v52 = vpop.f32.mrb[252].mxu0 }
 0x638   : > { %v13508_v51 = vpop.eup %13507  ;;  %13529 = vpow2.f32 %v10879_v55  ;;  %v17118_v6 = vpop.f32.mrb[252].mxu1 }
 0x639   : > { %v13510_v39 = vpop.eup %13509  ;;  %v11174_v4 = vpack.c.bf16 %v13508_v51, %v13504_v0  ;;  %13531 = vpow2.f32 %v10878_v50  ;;  %v17121_v55 = vpop.f32.mrb[253].mxu0 }
 0x63a   : > { %v13512_v45 = vpop.eup %13511  ;;  %v11175_v15 = vpack.c.bf16 %v13510_v39, %v13506_v23  ;;  %13533 = vpow2.f32 %v10880_v9  ;;  %18017 = vst [vmem:[#allocation4_spill] sm:$0xff] %v17121_v55  ;;  %v17123_v0 = vpop.f32.mrb[253].mxu1 }
 0x63b   : > { %v13514_v11 = vpop.eup %13513  ;;  %10108 = vst [vmem:[%s16765_s24 + $0x150] sm:$0xff] %v11174_v4  ;;  %v8774_v54 = vadd.f32 1.0, %v13512_v45  ;;  %13535 = vpow2.f32 %v10884_v25  ;;  %18018 = vst [vmem:[#allocation26_spill] sm:$0xff] %v17123_v0  ;;  %v17125_v50 = vpop.f32.mrb[254].mxu0 }
 0x63c   : > { %v13516_v22 = vpop.eup %13515  ;;  %10109 = vst [vmem:[%s16765_s24 + $0x158] sm:$0xff] %v11175_v15  ;;  %v8776_v44 = vadd.f32 1.0, %v13514_v11  ;;  %18019 = vst [vmem:[#allocation5_spill] sm:$0xff] %v17125_v50  ;;  %v17127_v38 = vpop.f32.mrb[254].mxu1 }
 0x63d   : > { %v13518_v51 = vpop.eup %13517  ;;  %13537 = vrcp.f32 %v8774_v54  ;;  %v8775_v23 = vadd.f32 1.0, %v13516_v22  ;;  %18020 = vst [vmem:[#allocation6_spill] sm:$0xff] %v17127_v38  ;;  %v17129_v4 = vpop.f32.mrb[255].mxu0  ;;  %v11926_v54 = vadd.f32 %v16902_v12, %v16693_v34  ;;  %v18023_v22 = vld [vmem:[#allocation21_spill] sm:$0xff] }
 0x63e   : > { %v13520_v9 = vpop.eup %13519  ;;  %13539 = vrcp.f32 %v8776_v44  ;;  %v8777_v39 = vadd.f32 1.0, %v13518_v51  ;;  %18021 = vst [vmem:[#allocation24_spill] sm:$0xff] %v17129_v4  ;;  %v17131_v25 = vpop.f32.mrb[255].mxu1  ;;  %7629 = vmatmul.mubr.bf16.gmra.mrb[40].mxu0 %v18023_v22  ;;  %7963 = vmatmul.mubr.bf16.gmra.mrb[104].mxu1 %v18023_v22  ;;  %v18024_v51 = vld [vmem:[#allocation27_spill] sm:$0xff] }
 0x63f   : > { %v13522_v56 = vpop.eup %13521  ;;  %13541 = vrcp.f32 %v8775_v23  ;;  %v8781_v45 = vadd.f32 1.0, %v13520_v9  ;;  %18022 = vst [vmem:[#allocation30_spill] sm:$0xff] %v17131_v25  ;;  %7638 = vmatprep.mubr.bf16.mxu0 %v18024_v51  ;;  %7970 = vmatprep.mubr.bf16.mxu1 %v18024_v51  ;;  %v11494_v25 = vpop.f32.mrb[0].mxu1  ;;  %v10886_v50 = vmul.f32 -1.442695, %v11926_v54  ;;  %v11928_v54 = vadd.f32 %v16915_v61, %v16693_v34 }
 0x640   : > { %v13524_v15 = vpop.eup %13523  ;;  %13543 = vrcp.f32 %v8777_v39  ;;  %v8783_v11 = vadd.f32 1.0, %v13522_v56  ;;  %v11863_v39 = vadd.f32 %v16906_v3, %v16698_v37 }
 0x641   : > { %v13526_v38 = vpop.eup %13525  ;;  %13545 = vrcp.f32 %v8781_v45  ;;  %v8782_v44 = vadd.f32 1.0, %v13524_v15  ;;  %v11927_v45 = vadd.f32 %v16908_v26, %v16701_v20  ;;  %v11495_v15 = vpop.f32.mrb[1].mxu1 }
 0x642   : > { %v13528_v23 = vpop.eup %13527  ;;  %13547 = vrcp.f32 %v8783_v11  ;;  %v8784_v9 = vadd.f32 1.0, %v13526_v38  ;;  %v11864_v38 = vadd.f32 %v16913_v60, %v16690_v27  ;;  %v17145_v11 = vadd.f32 %v11495_v15, %v11494_v25  ;;  %v11497_v3 = vpop.f32.mrb[2].mxu1 }
 0x643   : > { %v13530_v56 = vpop.eup %13529  ;;  %13549 = vrcp.f32 %v8782_v44  ;;  %v8788_v12 = vadd.f32 1.0, %v13528_v23  ;;  %v10885_v55 = vmul.f32 -1.442695, %v11863_v39  ;;  %v10887_v25 = vmul.f32 -1.442695, %v11927_v45 }
 0x644   : > { %v13532_v4 = vpop.eup %13531  ;;  %13551 = vrcp.f32 %v8784_v9  ;;  %v8790_v22 = vadd.f32 1.0, %v13530_v56  ;;  %18025 = vst [vmem:[#allocation28_spill] sm:$0xff] %v17145_v11  ;;  %v11498_v9 = vpop.f32.mrb[3].mxu1  ;;  %v10891_v39 = vmul.f32 -1.442695, %v11864_v38  ;;  %v11866_v15 = vadd.f32 %v16926_v28, %v16690_v27 }
 0x645   : > { %v13534_v0 = vpop.eup %13533  ;;  %13553 = vrcp.f32 %v8788_v12  ;;  %v8789_v51 = vadd.f32 1.0, %v13532_v4  ;;  %v11865_v4 = vadd.f32 %v16918_v46, %v16698_v37  ;;  %v17151_v12 = vadd.f32 %v11498_v9, %v11497_v3  ;;  %v18028_v46 = vld [vmem:[#allocation31_spill] sm:$0xff] }
 0x646   : > { %v13536_v44 = vpop.eup %13535  ;;  %13555 = vrcp.f32 %v8790_v22  ;;  %v8791_v23 = vadd.f32 1.0, %v13534_v0  ;;  %v11929_v22 = vadd.f32 %v16920_v35, %v16701_v20  ;;  %v18027_v0 = vld [vmem:[#allocation25_spill] sm:$0xff]  ;;  %v10893_v35 = vmul.f32 -1.442695, %v11928_v54  ;;  %v18029_v9 = vld [vmem:[#allocation7_spill] sm:$0xff]  ;;  %v11500_v28 = vpop.f32.mrb[4].mxu1 }
 0x647   : > { %v13538_v56 = vpop.eup %13537  ;;  %13557 = vrcp.f32 %v8789_v51  ;;  %v8795_v26 = vadd.f32 1.0, %v13536_v44  ;;  %18026 = vst [vmem:[#allocation34_spill] sm:$0xff] %v17151_v12  ;;  %7639 = vmatmul.mubr.bf16.gmra.mrb[44].mxu0 %v18027_v0  ;;  %7971 = vmatmul.mubr.bf16.gmra.mrb[108].mxu1 %v18027_v0  ;;  %v11930_v3 = vadd.f32 %v16928_v36, %v16693_v34  ;;  %v10892_v38 = vmul.f32 -1.442695, %v11865_v4 }
 0x648   : > { %v13540_v60 = vpop.eup %13539  ;;  %13559 = vrcp.f32 %v8791_v23  ;;  %7648 = vmatprep.mubr.bf16.mxu0 %v18028_v46  ;;  %7978 = vmatprep.mubr.bf16.mxu1 %v18028_v46  ;;  %v10894_v46 = vmul.f32 -1.442695, %v11929_v22  ;;  %v10898_v36 = vmul.f32 -1.442695, %v11866_v15  ;;  %v11932_v22 = vadd.f32 %v16938_v10, %v16693_v34 }
 0x649   : > { %v13542_v61 = vpop.eup %13541  ;;  %13561 = vrcp.f32 %v8795_v26  ;;  %v11867_v26 = vadd.f32 %v18029_v9, %v16698_v37 }
 0x64a   : > { %v13544_v51 = vpop.eup %13543  ;;  %v11178_v45 = vpack.c.bf16 %v13542_v61, %v13538_v56  ;;  %13563 = vpow2.f32 %v10886_v50  ;;  %v18030_v56 = vld [vmem:[#allocation9_spill] sm:$0xff]  ;;  %v11501_v61 = vpop.f32.mrb[5].mxu1 }
 0x64b   : > { %v13546_v44 = vpop.eup %13545  ;;  %v11179_v23 = vpack.c.bf16 %v13544_v51, %v13540_v60  ;;  %13565 = vpow2.f32 %v10885_v55  ;;  %v11931_v50 = vadd.f32 %v18030_v56, %v16701_v20  ;;  %v18031_v60 = vld [vmem:[#allocation8_spill] sm:$0xff]  ;;  %v17171_v4 = vadd.f32 %v11501_v61, %v11500_v28  ;;  %v11503_v51 = vpop.f32.mrb[6].mxu1  ;;  %v18032_v61 = vld [vmem:[#allocation29_spill] sm:$0xff] }
 0x64c   : > { %v13548_v0 = vpop.eup %13547  ;;  %10112 = vst [vmem:[%s16765_s24 + $0x16c] sm:$0xff] %v11178_v45  ;;  %13567 = vpow2.f32 %v10887_v25  ;;  %v11868_v55 = vadd.f32 %v18031_v60, %v16690_v27  ;;  %v10900_v25 = vmul.f32 -1.442695, %v11930_v3  ;;  %v11504_v45 = vpop.f32.mrb[7].mxu1  ;;  %v18033_v3 = vld [vmem:[#allocation35_spill] sm:$0xff] }
 0x64d   : > { %v13550_v54 = vpop.eup %13549  ;;  %10113 = vst [vmem:[%s16765_s24 + $0x174] sm:$0xff] %v11179_v23  ;;  %13569 = vpow2.f32 %v10891_v39  ;;  %v10899_v39 = vmul.f32 -1.442695, %v11867_v26  ;;  %v17175_v15 = vadd.f32 %v11504_v45, %v11503_v51  ;;  %v10901_v28 = vmul.f32 -1.442695, %v11931_v50 }
 0x64e   : > { %v13552_v9 = vpop.eup %13551  ;;  %v11182_v12 = vpack.c.bf16 %v13550_v54, %v13546_v44  ;;  %13571 = vpow2.f32 %v10893_v35  ;;  %v10905_v10 = vmul.f32 -1.442695, %v11868_v55 }
 0x64f   : > { %v13554_v56 = vpop.eup %13553  ;;  %v11183_v23 = vpack.c.bf16 %v13552_v9, %v13548_v0  ;;  %13573 = vpow2.f32 %v10892_v38  ;;  %7649 = vmatmul.mubr.bf16.gmra.mrb[48].mxu0 %v18032_v61  ;;  %7979 = vmatmul.mubr.bf16.gmra.mrb[112].mxu1 %v18032_v61 }
 0x650   : > { %v13556_v11 = vpop.eup %13555  ;;  %10116 = vst [vmem:[%s16765_s24 + $0x188] sm:$0xff] %v11182_v12  ;;  %13575 = vpow2.f32 %v10894_v46  ;;  %7658 = vmatprep.mubr.bf16.mxu0 %v18033_v3  ;;  %7986 = vmatprep.mubr.bf16.mxu1 %v18033_v3  ;;  %v10907_v12 = vmul.f32 -1.442695, %v11932_v22  ;;  %v11506_v46 = vpop.f32.mrb[8].mxu1 }
 0x651   : > { %v13558_v35 = vpop.eup %13557  ;;  %10117 = vst [vmem:[%s16765_s24 + $0x190] sm:$0xff] %v11183_v23  ;;  %13577 = vpow2.f32 %v10898_v36  ;;  %v11507_v54 = vpop.f32.mrb[9].mxu1 }
 0x652   : > { %v13560_v44 = vpop.eup %13559  ;;  %v11186_v38 = vpack.c.bf16 %v13558_v35, %v13554_v56  ;;  %13579 = vpow2.f32 %v10900_v25  ;;  %v17187_v55 = vadd.f32 %v11507_v54, %v11506_v46  ;;  %v11509_v51 = vpop.f32.mrb[10].mxu1  ;;  %v11869_v54 = vadd.f32 %v16940_v42, %v16698_v37 }
 0x653   : > { %v17183_v26 = vpop.eup %13561  ;;  %v11187_v0 = vpack.c.bf16 %v13560_v44, %v13556_v11  ;;  %13581 = vpow2.f32 %v10899_v39  ;;  %v11510_v25 = vpop.f32.mrb[11].mxu1 }
 0x654   : > { %v13564_v50 = vpop.eup %13563  ;;  %10120 = vst [vmem:[%s16765_s24 + $0x1a4] sm:$0xff] %v11186_v38  ;;  %13583 = vpow2.f32 %v10901_v28  ;;  %v17189_v56 = vadd.f32 %v11510_v25, %v11509_v51  ;;  %v18034_v28 = vld [vmem:[#allocation33_spill] sm:$0xff] }
 0x655   : > { %v13566_v36 = vpop.eup %13565  ;;  %10121 = vst [vmem:[%s16765_s24 + $0x1ac] sm:$0xff] %v11187_v0  ;;  %v8797_v60 = vadd.f32 1.0, %v13564_v50  ;;  %13585 = vpow2.f32 %v10905_v10  ;;  %v18035_v10 = vld [vmem:[#allocation38_spill] sm:$0xff] }
 0x656   : > { %v13568_v9 = vpop.eup %13567  ;;  %v8796_v45 = vadd.f32 1.0, %v13566_v36  ;;  %13587 = vpow2.f32 %v10907_v12  ;;  %v11512_v0 = vpop.f32.mrb[12].mxu1 }
 0x657   : > { %v13570_v22 = vpop.eup %13569  ;;  %13589 = vrcp.f32 %v8797_v60  ;;  %v8798_v11 = vadd.f32 1.0, %v13568_v9  ;;  %7659 = vmatmul.mubr.bf16.gmra.mrb[52].mxu0 %v18034_v28  ;;  %7987 = vmatmul.mubr.bf16.gmra.mrb[116].mxu1 %v18034_v28  ;;  %v11513_v36 = vpop.f32.mrb[13].mxu1  ;;  %v18036_v9 = vld [vmem:[#allocation11_spill] sm:$0xff] }
 0x658   : > { %v13572_v23 = vpop.eup %13571  ;;  %13591 = vrcp.f32 %v8796_v45  ;;  %v8802_v39 = vadd.f32 1.0, %v13570_v22  ;;  %7668 = vmatprep.mubr.bf16.mxu0 %v18035_v10  ;;  %7994 = vmatprep.mubr.bf16.mxu1 %v18035_v10  ;;  %v11933_v45 = vadd.f32 %v18036_v9, %v16701_v20  ;;  %v17199_v25 = vadd.f32 %v11513_v36, %v11512_v0  ;;  %v11515_v22 = vpop.f32.mrb[14].mxu1  ;;  %v18038_v0 = vld [vmem:[#allocation13_spill] sm:$0xff]  ;;  %v18040_v9 = vld [vmem:[#allocation40_spill] sm:$0xff] }
 0x659   : > { %v13574_v61 = vpop.eup %13573  ;;  %13593 = vrcp.f32 %v8798_v11  ;;  %v8804_v35 = vadd.f32 1.0, %v13572_v23  ;;  %v11934_v10 = vadd.f32 %v16963_v13, %v16693_v34  ;;  %v11935_v13 = vadd.f32 %v16970_v63, %v16701_v20 }
 0x65a   : > { %v13576_v3 = vpop.eup %13575  ;;  %13595 = vrcp.f32 %v8802_v39  ;;  %v8803_v44 = vadd.f32 1.0, %v13574_v61  ;;  %v18037_v39 = vld [vmem:[#allocation10_spill] sm:$0xff]  ;;  %v11516_v61 = vpop.f32.mrb[15].mxu1 }
 0x65b   : > { %v13578_v38 = vpop.eup %13577  ;;  %13597 = vrcp.f32 %v8804_v35  ;;  %v8805_v12 = vadd.f32 1.0, %v13576_v3  ;;  %v11870_v28 = vadd.f32 %v18037_v39, %v16690_v27  ;;  %v17205_v3 = vadd.f32 %v11516_v61, %v11515_v22 }
 0x65c   : > { %v13580_v46 = vpop.eup %13579  ;;  %13599 = vrcp.f32 %v8803_v44  ;;  %v8809_v50 = vadd.f32 1.0, %v13578_v38  ;;  %v10914_v61 = vmul.f32 -1.442695, %v11934_v10 }
 0x65d   : > { %v13582_v60 = vpop.eup %13581  ;;  %13601 = vrcp.f32 %v8805_v12  ;;  %v8811_v51 = vadd.f32 1.0, %v13580_v46  ;;  %v10906_v12 = vmul.f32 -1.442695, %v11869_v54  ;;  %v11871_v46 = vadd.f32 %v18038_v0, %v16698_v37 }
 0x65e   : > { %v13584_v11 = vpop.eup %13583  ;;  %13603 = vrcp.f32 %v8809_v50  ;;  %v8810_v23 = vadd.f32 1.0, %v13582_v60  ;;  %v18039_v50 = vld [vmem:[#allocation36_spill] sm:$0xff]  ;;  %v10912_v54 = vmul.f32 -1.442695, %v11870_v28  ;;  %v11518_v63 = vpop.f32.mrb[16].mxu1  ;;  %v11873_v28 = vadd.f32 %v16979_v16, %v16698_v37 }
 0x65f   : > { %v13586_v35 = vpop.eup %13585  ;;  %13605 = vrcp.f32 %v8811_v51  ;;  %v8812_v42 = vadd.f32 1.0, %v13584_v11  ;;  %7669 = vmatmul.mubr.bf16.gmra.mrb[56].mxu0 %v18039_v50  ;;  %7995 = vmatmul.mubr.bf16.gmra.mrb[120].mxu1 %v18039_v50  ;;  %v10908_v51 = vmul.f32 -1.442695, %v11933_v45  ;;  %v11872_v11 = vadd.f32 %v16972_v47, %v16690_v27 }
 0x660   : > { %v13588_v44 = vpop.eup %13587  ;;  %13607 = vrcp.f32 %v8810_v23  ;;  %v8816_v38 = vadd.f32 1.0, %v13586_v35  ;;  %7678 = vmatprep.mubr.bf16.mxu0 %v18040_v9  ;;  %8002 = vmatprep.mubr.bf16.mxu1 %v18040_v9  ;;  %v11936_v23 = vadd.f32 %v16977_v14, %v16693_v34  ;;  %v10915_v47 = vmul.f32 -1.442695, %v11935_v13 }
 0x661   : > { %v13590_v36 = vpop.eup %13589  ;;  %13609 = vrcp.f32 %v8812_v42  ;;  %v8818_v60 = vadd.f32 1.0, %v13588_v44  ;;  %v10913_v44 = vmul.f32 -1.442695, %v11871_v46  ;;  %v11937_v14 = vadd.f32 %v16984_v48, %v16701_v20 }
 0x662   : > { %v13592_v22 = vpop.eup %13591  ;;  %13611 = vrcp.f32 %v8816_v38  ;;  %v11519_v38 = vpop.f32.mrb[17].mxu1  ;;  %v11874_v16 = vadd.f32 %v16998_v29, %v16690_v27  ;;  %v11938_v48 = vadd.f32 %v17000_v40, %v16693_v34 }
 0x663   : > { %v13594_v39 = vpop.eup %13593  ;;  %v11190_v45 = vpack.c.bf16 %v13592_v22, %v17183_v26  ;;  %13613 = vrcp.f32 %v8818_v60  ;;  %v17225_v26 = vadd.f32 %v11519_v38, %v11518_v63  ;;  %v11521_v10 = vpop.f32.mrb[18].mxu1 }
 0x664   : > { %v13596_v35 = vpop.eup %13595  ;;  %v11191_v42 = vpack.c.bf16 %v13594_v39, %v13590_v36  ;;  %13615 = vpow2.f32 %v10906_v12  ;;  %v10919_v36 = vmul.f32 -1.442695, %v11872_v11  ;;  %v10921_v12 = vmul.f32 -1.442695, %v11936_v23  ;;  %v11522_v46 = vpop.f32.mrb[19].mxu1  ;;  %v18041_v23 = vld [vmem:[#allocation39_spill] sm:$0xff] }
 0x665   : > { %v13598_v0 = vpop.eup %13597  ;;  %10124 = vst [vmem:[%s16765_s24 + $0x1c0] sm:$0xff] %v11190_v45  ;;  %13617 = vpow2.f32 %v10908_v51  ;;  %v17232_v51 = vadd.f32 %v11522_v46, %v11521_v10  ;;  %v11875_v11 = vadd.f32 %v17002_v31, %v16698_v37  ;;  %v10922_v39 = vmul.f32 -1.442695, %v11937_v14 }
 0x666   : > { %v13600_v50 = vpop.eup %13599  ;;  %10125 = vst [vmem:[%s16765_s24 + $0x1c8] sm:$0xff] %v11191_v42  ;;  %13619 = vpow2.f32 %v10912_v54  ;;  %v10920_v54 = vmul.f32 -1.442695, %v11873_v28  ;;  %v10926_v40 = vmul.f32 -1.442695, %v11874_v16  ;;  %v11524_v42 = vpop.f32.mrb[20].mxu1 }
 0x667   : > { %v13602_v60 = vpop.eup %13601  ;;  %v11194_v9 = vpack.c.bf16 %v13600_v50, %v13596_v35  ;;  %13621 = vpow2.f32 %v10914_v61  ;;  %7679 = vmatmul.mubr.bf16.gmra.mrb[60].mxu0 %v18041_v23  ;;  %8003 = vmatmul.mubr.bf16.gmra.mrb[124].mxu1 %v18041_v23  ;;  %v10928_v35 = vmul.f32 -1.442695, %v11938_v48  ;;  %v10927_v28 = vmul.f32 -1.442695, %v11875_v11  ;;  %v11525_v38 = vpop.f32.mrb[21].mxu1 }
 0x668   : > { %v13604_v13 = vpop.eup %13603  ;;  %v11195_v22 = vpack.c.bf16 %v13602_v60, %v13598_v0  ;;  %13623 = vpow2.f32 %v10913_v44  ;;  %v11527_v14 = vpop.f32.mrb[22].mxu1 }
 0x669   : > { %v13606_v29 = vpop.eup %13605  ;;  %10128 = vst [vmem:[%s16765_s24 + $0x1dc] sm:$0xff] %v11194_v9  ;;  %13625 = vpow2.f32 %v10915_v47  ;;  %v17245_v47 = vadd.f32 %v11525_v38, %v11524_v42  ;;  %v11528_v50 = vpop.f32.mrb[23].mxu1  ;;  %v11876_v38 = vadd.f32 %v17006_v17, %v16690_v27 }
 0x66a   : > { %v13608_v45 = vpop.eup %13607  ;;  %10129 = vst [vmem:[%s16765_s24 + $0x1e4] sm:$0xff] %v11195_v22  ;;  %13627 = vpow2.f32 %v10919_v36  ;;  %v17248_v16 = vadd.f32 %v11528_v50, %v11527_v14 }
 0x66b   : > { %v13610_v61 = vpop.eup %13609  ;;  %v11198_v63 = vpack.c.bf16 %v13608_v45, %v13604_v13  ;;  %13629 = vpow2.f32 %v10921_v12 }
 0x66c   : > { %v17240_v31 = vpop.eup %13611  ;;  %v11199_v44 = vpack.c.bf16 %v13610_v61, %v13606_v29  ;;  %13631 = vpow2.f32 %v10920_v54 }
 0x66d   : > { %v17242_v0 = vpop.eup %13613  ;;  %10132 = vst [vmem:[%s16765_s24 + $0x1f8] sm:$0xff] %v11198_v63  ;;  %13633 = vpow2.f32 %v10922_v39  ;;  %v11939_v63 = vadd.f32 %v17004_v58, %v16701_v20 }
 0x66e   : > { %v13616_v10 = vpop.eup %13615  ;;  %10133 = vst [vmem:[%s16765_s24 + $0x200] sm:$0xff] %v11199_v44  ;;  %13635 = vpow2.f32 %v10926_v40  ;;  %v11530_v23 = vpop.f32.mrb[24].mxu1 }
 0x66f   : > { %v13618_v36 = vpop.eup %13617  ;;  %v8817_v12 = vadd.f32 1.0, %v13616_v10  ;;  %13637 = vpow2.f32 %v10928_v35  ;;  %v11531_v45 = vpop.f32.mrb[25].mxu1 }
 0x670   : > { %v13620_v46 = vpop.eup %13619  ;;  %v8819_v60 = vadd.f32 1.0, %v13618_v36  ;;  %13639 = vpow2.f32 %v10927_v28  ;;  %v17252_v35 = vadd.f32 %v11531_v45, %v11530_v23  ;;  %v11533_v42 = vpop.f32.mrb[26].mxu1  ;;  %v11940_v36 = vadd.f32 %v17008_v21, %v16693_v34 }
 0x671   : > { %v13622_v9 = vpop.eup %13621  ;;  %13641 = vrcp.f32 %v8817_v12  ;;  %v8823_v48 = vadd.f32 1.0, %v13620_v46  ;;  %v11534_v14 = vpop.f32.mrb[27].mxu1 }
 0x672   : > { %v13624_v13 = vpop.eup %13623  ;;  %13643 = vrcp.f32 %v8819_v60  ;;  %v8825_v22 = vadd.f32 1.0, %v13622_v9  ;;  %v17258_v12 = vadd.f32 %v11534_v14, %v11533_v42  ;;  %v11877_v60 = vadd.f32 %v17013_v24, %v16698_v37 }
 0x673   : > { %v13626_v54 = vpop.eup %13625  ;;  %13645 = vrcp.f32 %v8823_v48  ;;  %v8824_v11 = vadd.f32 1.0, %v13624_v13  ;;  %v10929_v13 = vmul.f32 -1.442695, %v11939_v63  ;;  %v11942_v63 = vadd.f32 %v17025_v62, %v16693_v34 }
 0x674   : > { %v13628_v29 = vpop.eup %13627  ;;  %13647 = vrcp.f32 %v8825_v22  ;;  %v8826_v39 = vadd.f32 1.0, %v13626_v54  ;;  %v10933_v54 = vmul.f32 -1.442695, %v11876_v38 }
 0x675   : > { %v13630_v40 = vpop.eup %13629  ;;  %13649 = vrcp.f32 %v8824_v11  ;;  %v8830_v61 = vadd.f32 1.0, %v13628_v29  ;;  %v11941_v11 = vadd.f32 %v17015_v2, %v16701_v20  ;;  %v10935_v29 = vmul.f32 -1.442695, %v11940_v36 }
 0x676   : > { %v13632_v44 = vpop.eup %13631  ;;  %13651 = vrcp.f32 %v8826_v39  ;;  %v8832_v28 = vadd.f32 1.0, %v13630_v40  ;;  %v11878_v39 = vadd.f32 %v17023_v7, %v16690_v27  ;;  %v11536_v24 = vpop.f32.mrb[28].mxu1 }
 0x677   : > { %v13634_v10 = vpop.eup %13633  ;;  %13653 = vrcp.f32 %v8830_v61  ;;  %v8831_v50 = vadd.f32 1.0, %v13632_v44  ;;  %v10934_v61 = vmul.f32 -1.442695, %v11877_v60  ;;  %v11537_v42 = vpop.f32.mrb[29].mxu1 }
 0x678   : > { %v13636_v46 = vpop.eup %13635  ;;  %13655 = vrcp.f32 %v8832_v28  ;;  %v8833_v58 = vadd.f32 1.0, %v13634_v10  ;;  %v11879_v28 = vadd.f32 %v17027_v49, %v16698_v37  ;;  %v17272_v38 = vadd.f32 %v11537_v42, %v11536_v24  ;;  %v11539_v7 = vpop.f32.mrb[30].mxu1  ;;  %v18042_v10 = vld [vmem:[#allocation12_spill] sm:$0xff] }
 0x679   : > { %v13638_v9 = vpop.eup %13637  ;;  %13657 = vrcp.f32 %v8831_v50  ;;  %v8837_v48 = vadd.f32 1.0, %v13636_v46  ;;  %v11943_v50 = vadd.f32 %v18042_v10, %v16701_v20  ;;  %v11540_v36 = vpop.f32.mrb[31].mxu1  ;;  %v11880_v46 = vadd.f32 %v17031_v19, %v16690_v27 }
 0x67a   : > { %v13640_v17 = vpop.eup %13639  ;;  %13659 = vrcp.f32 %v8833_v58  ;;  %v8839_v22 = vadd.f32 1.0, %v13638_v9  ;;  %v17280_v49 = vadd.f32 %v11540_v36, %v11539_v7  ;;  %v10942_v9 = vmul.f32 -1.442695, %v11942_v63 }
 0x67b   : > { %v13642_v21 = vpop.eup %13641  ;;  %13661 = vrcp.f32 %v8837_v48  ;;  %v8838_v23 = vadd.f32 1.0, %v13640_v17  ;;  %v11944_v48 = vadd.f32 %v17033_v33, %v16693_v34  ;;  %v10943_v19 = vmul.f32 -1.442695, %v11943_v50 }
 0x67c   : > { %v13644_v45 = vpop.eup %13643  ;;  %v11202_v40 = vpack.c.bf16 %v13642_v21, %v17240_v31  ;;  %13663 = vrcp.f32 %v8839_v22  ;;  %v10936_v31 = vmul.f32 -1.442695, %v11941_v11  ;;  %v10941_v22 = vmul.f32 -1.442695, %v11879_v28  ;;  %v18043_v21 = vld [vmem:[#allocation15_spill] sm:$0xff] }
 0x67d   : > { %v13646_v2 = vpop.eup %13645  ;;  %v11203_v44 = vpack.c.bf16 %v13644_v45, %v17242_v0  ;;  %13665 = vrcp.f32 %v8838_v23  ;;  %v10940_v0 = vmul.f32 -1.442695, %v11878_v39  ;;  %v11945_v23 = vadd.f32 %v18043_v21, %v16701_v20 }
 0x67e   : > { %v13648_v14 = vpop.eup %13647  ;;  %10136 = vst [vmem:[%s16765_s24 + $0x214] sm:$0xff] %v11202_v40  ;;  %13667 = vpow2.f32 %v10929_v13  ;;  %v11542_v33 = vpop.f32.mrb[32].mxu1  ;;  %v10949_v40 = vmul.f32 -1.442695, %v11944_v48 }
 0x67f   : > { %v13650_v62 = vpop.eup %13649  ;;  %10137 = vst [vmem:[%s16765_s24 + $0x21c] sm:$0xff] %v11203_v44  ;;  %13669 = vpow2.f32 %v10933_v54  ;;  %v11881_v54 = vadd.f32 %v17035_v1, %v16698_v37  ;;  %v10950_v7 = vmul.f32 -1.442695, %v11945_v23 }
 0x680   : > { %v13652_v58 = vpop.eup %13651  ;;  %v11206_v60 = vpack.c.bf16 %v13650_v62, %v13646_v2  ;;  %13671 = vpow2.f32 %v10935_v29  ;;  %v10947_v29 = vmul.f32 -1.442695, %v11880_v46 }
 0x681   : > { %v13654_v13 = vpop.eup %13653  ;;  %v11207_v17 = vpack.c.bf16 %v13652_v58, %v13648_v14  ;;  %13673 = vpow2.f32 %v10934_v61  ;;  %v11543_v61 = vpop.f32.mrb[33].mxu1  ;;  %v10948_v42 = vmul.f32 -1.442695, %v11881_v54 }
 0x682   : > { %v13656_v11 = vpop.eup %13655  ;;  %10140 = vst [vmem:[%s16765_s24 + $0x230] sm:$0xff] %v11206_v60  ;;  %13675 = vpow2.f32 %v10936_v31  ;;  %v17290_v2 = vadd.f32 %v11543_v61, %v11542_v33  ;;  %v11545_v44 = vpop.f32.mrb[34].mxu1 }
 0x683   : > { %v13658_v39 = vpop.eup %13657  ;;  %10141 = vst [vmem:[%s16765_s24 + $0x238] sm:$0xff] %v11207_v17  ;;  %13677 = vpow2.f32 %v10940_v0  ;;  %v11546_v14 = vpop.f32.mrb[35].mxu1 }
 0x684   : > { %v13660_v24 = vpop.eup %13659  ;;  %v11210_v45 = vpack.c.bf16 %v13658_v39, %v13654_v13  ;;  %13679 = vpow2.f32 %v10942_v9  ;;  %v17296_v10 = vadd.f32 %v11546_v14, %v11545_v44 }
 0x685   : > { %v13662_v1 = vpop.eup %13661  ;;  %v11211_v63 = vpack.c.bf16 %v13660_v24, %v13656_v11  ;;  %13681 = vpow2.f32 %v10941_v22 }
 0x686   : > { %v17292_v28 = vpop.eup %13663  ;;  %10144 = vst [vmem:[%s16765_s24 + $0x24c] sm:$0xff] %v11210_v45  ;;  %13683 = vpow2.f32 %v10943_v19  ;;  %v11548_v48 = vpop.f32.mrb[36].mxu1  ;;  %v18044_v45 = vld [vmem:[#allocation14_spill] sm:$0xff] }
 0x687   : > { %v13666_v31 = vpop.eup %13665  ;;  %10145 = vst [vmem:[%s16765_s24 + $0x254] sm:$0xff] %v11211_v63  ;;  %13685 = vpow2.f32 %v10947_v29  ;;  %v11549_v22 = vpop.f32.mrb[37].mxu1 }
 0x688   : > { %v13668_v50 = vpop.eup %13667  ;;  %v11214_v36 = vpack.c.bf16 %v13666_v31, %v13662_v1  ;;  %13687 = vpow2.f32 %v10949_v40  ;;  %v17299_v19 = vadd.f32 %v11549_v22, %v11548_v48  ;;  %v11551_v21 = vpop.f32.mrb[38].mxu1  ;;  %v11882_v40 = vadd.f32 %v18044_v45, %v16690_v27 }
 0x689   : > { %v13670_v62 = vpop.eup %13669  ;;  %v8840_v0 = vadd.f32 1.0, %v13668_v50  ;;  %13689 = vpow2.f32 %v10948_v42  ;;  %v11552_v29 = vpop.f32.mrb[39].mxu1  ;;  %v18045_v42 = vld [vmem:[#allocation18_spill] sm:$0xff] }
 0x68a   : > { %v13672_v46 = vpop.eup %13671  ;;  %10148 = vst [vmem:[%s16765_s24 + $0x268] sm:$0xff] %v11214_v36  ;;  %v8844_v58 = vadd.f32 1.0, %v13670_v62  ;;  %13691 = vpow2.f32 %v10950_v7  ;;  %v17303_v61 = vadd.f32 %v11552_v29, %v11551_v21  ;;  %v11946_v44 = vadd.f32 %v18045_v42, %v16693_v34  ;;  %v18046_v36 = vld [vmem:[#allocation16_spill] sm:$0xff] }
 0x68b   : > { %v13674_v60 = vpop.eup %13673  ;;  %13693 = vrcp.f32 %v8840_v0  ;;  %v8846_v9 = vadd.f32 1.0, %v13672_v46  ;;  %v11883_v62 = vadd.f32 %v18046_v36, %v16698_v37  ;;  %v11948_v29 = vadd.f32 %v17068_v5, %v16693_v34 }
 0x68c   : > { %v13676_v13 = vpop.eup %13675  ;;  %13695 = vrcp.f32 %v8844_v58  ;;  %v8845_v17 = vadd.f32 1.0, %v13674_v60  ;;  %v10954_v58 = vmul.f32 -1.442695, %v11882_v40  ;;  %v18047_v60 = vld [vmem:[#allocation22_spill] sm:$0xff]  ;;  %v10956_v22 = vmul.f32 -1.442695, %v11946_v44 }
 0x68d   : > { %v13678_v54 = vpop.eup %13677  ;;  %13697 = vrcp.f32 %v8846_v9  ;;  %v8847_v11 = vadd.f32 1.0, %v13676_v13  ;;  %v11947_v9 = vadd.f32 %v18047_v60, %v16701_v20 }
 0x68e   : > { %v13680_v23 = vpop.eup %13679  ;;  %13699 = vrcp.f32 %v8845_v17  ;;  %v8851_v39 = vadd.f32 1.0, %v13678_v54  ;;  %v11554_v48 = vpop.f32.mrb[40].mxu1  ;;  %v18048_v54 = vld [vmem:[#allocation20_spill] sm:$0xff] }
 0x68f   : > { %v13682_v33 = vpop.eup %13681  ;;  %13701 = vrcp.f32 %v8847_v11  ;;  %v8853_v24 = vadd.f32 1.0, %v13680_v23  ;;  %v11884_v11 = vadd.f32 %v18048_v54, %v16690_v27  ;;  %v11555_v21 = vpop.f32.mrb[41].mxu1  ;;  %v11888_v54 = vadd.f32 %v17101_v30, %v16690_v27 }
 0x690   : > { %v13684_v1 = vpop.eup %13683  ;;  %13703 = vrcp.f32 %v8851_v39  ;;  %v8852_v63 = vadd.f32 1.0, %v13682_v33  ;;  %v17315_v33 = vadd.f32 %v11555_v21, %v11554_v48 }
 0x691   : > { %v13686_v7 = vpop.eup %13685  ;;  %13705 = vrcp.f32 %v8853_v24  ;;  %v8854_v14 = vadd.f32 1.0, %v13684_v1  ;;  %v11557_v24 = vpop.f32.mrb[42].mxu1  ;;  %v10955_v1 = vmul.f32 -1.442695, %v11883_v62 }
 0x692   : > { %v13688_v31 = vpop.eup %13687  ;;  %13707 = vrcp.f32 %v8852_v63  ;;  %v8858_v50 = vadd.f32 1.0, %v13686_v7  ;;  %v11885_v63 = vadd.f32 %v17070_v32, %v16698_v37  ;;  %v11558_v42 = vpop.f32.mrb[43].mxu1  ;;  %v10957_v7 = vmul.f32 -1.442695, %v11947_v9 }
 0x693   : > { %v13690_v0 = vpop.eup %13689  ;;  %13709 = vrcp.f32 %v8854_v14  ;;  %v8860_v46 = vadd.f32 1.0, %v13688_v31  ;;  %v11949_v14 = vadd.f32 %v17074_v18, %v16701_v20  ;;  %v17322_v31 = vadd.f32 %v11558_v42, %v11557_v24 }
 0x694   : > { %v13692_v13 = vpop.eup %13691  ;;  %13711 = vrcp.f32 %v8858_v50  ;;  %v8859_v17 = vadd.f32 1.0, %v13690_v0  ;;  %v10961_v50 = vmul.f32 -1.442695, %v11884_v11  ;;  %v10963_v32 = vmul.f32 -1.442695, %v11948_v29 }
 0x695   : > { %v13694_v23 = vpop.eup %13693  ;;  %13713 = vrcp.f32 %v8860_v46  ;;  %v8861_v39 = vadd.f32 1.0, %v13692_v13  ;;  %v11950_v0 = vadd.f32 %v17092_v59, %v16693_v34  ;;  %v10962_v60 = vmul.f32 -1.442695, %v11885_v63 }
 0x696   : > { %v13696_v45 = vpop.eup %13695  ;;  %v11215_v40 = vpack.c.bf16 %v13694_v23, %v17292_v28  ;;  %13715 = vrcp.f32 %v8859_v17  ;;  %v11886_v28 = vadd.f32 %v17090_v8, %v16690_v27  ;;  %v11887_v9 = vadd.f32 %v17097_v43, %v16698_v37  ;;  %v18049_v8 = vld [vmem:[#allocation3_spill] sm:$0xff]  ;;  %v11560_v17 = vpop.f32.mrb[44].mxu1 }
 0x697   : > { %v13698_v44 = vpop.eup %13697  ;;  %13717 = vrcp.f32 %v8861_v39  ;;  %v10964_v48 = vmul.f32 -1.442695, %v11949_v14  ;;  %v11951_v13 = vadd.f32 %v18049_v8, %v16701_v20  ;;  %v11561_v11 = vpop.f32.mrb[45].mxu1  ;;  %v10970_v43 = vmul.f32 -1.442695, %v11950_v0 }
 0x698   : > { %v13700_v5 = vpop.eup %13699  ;;  %10149 = vst [vmem:[%s16765_s24 + $0x270] sm:$0xff] %v11215_v40  ;;  %13719 = vpow2.f32 %v10954_v58  ;;  %v10968_v59 = vmul.f32 -1.442695, %v11886_v28  ;;  %v17337_v39 = vadd.f32 %v11561_v11, %v11560_v17  ;;  %v11563_v29 = vpop.f32.mrb[46].mxu1  ;;  %v10969_v40 = vmul.f32 -1.442695, %v11887_v9 }
 0x699   : > { %v13702_v36 = vpop.eup %13701  ;;  %v11218_v62 = vpack.c.bf16 %v13700_v5, %v13696_v45  ;;  %13721 = vpow2.f32 %v10956_v22  ;;  %v10971_v42 = vmul.f32 -1.442695, %v11951_v13 }
 0x69a   : > { %v13704_v46 = vpop.eup %13703  ;;  %v11219_v18 = vpack.c.bf16 %v13702_v36, %v13698_v44  ;;  %13723 = vpow2.f32 %v10955_v1  ;;  %v11564_v1 = vpop.f32.mrb[47].mxu1 }
 0x69b   : > { %v13706_v58 = vpop.eup %13705  ;;  %10152 = vst [vmem:[%s16765_s24 + $0x284] sm:$0xff] %v11218_v62  ;;  %13725 = vpow2.f32 %v10957_v7  ;;  %v17340_v30 = vadd.f32 %v11564_v1, %v11563_v29  ;;  %v10975_v7 = vmul.f32 -1.442695, %v11888_v54 }
 0x69c   : > { %v13708_v22 = vpop.eup %13707  ;;  %10153 = vst [vmem:[%s16765_s24 + $0x28c] sm:$0xff] %v11219_v18  ;;  %13727 = vpow2.f32 %v10961_v50 }
 0x69d   : > { %v13710_v21 = vpop.eup %13709  ;;  %v11222_v23 = vpack.c.bf16 %v13708_v22, %v13704_v46  ;;  %13729 = vpow2.f32 %v10963_v32 }
 0x69e   : > { %v13712_v24 = vpop.eup %13711  ;;  %v11223_v45 = vpack.c.bf16 %v13710_v21, %v13706_v58  ;;  %13731 = vpow2.f32 %v10962_v60  ;;  %v11566_v32 = vpop.f32.mrb[48].mxu1 }
 0x69f   : > { %v13714_v63 = vpop.eup %13713  ;;  %10156 = vst [vmem:[%s16765_s24 + $0x2a0] sm:$0xff] %v11222_v23  ;;  %13733 = vpow2.f32 %v10964_v48  ;;  %v11567_v18 = vpop.f32.mrb[49].mxu1 }
 0x6a0   : > { %v13716_v44 = vpop.eup %13715  ;;  %10157 = vst [vmem:[%s16765_s24 + $0x2a8] sm:$0xff] %v11223_v45  ;;  %13735 = vpow2.f32 %v10968_v59  ;;  %v17345_v58 = vadd.f32 %v11567_v18, %v11566_v32  ;;  %v11569_v48 = vpop.f32.mrb[50].mxu1  ;;  %v11952_v45 = vadd.f32 %v17103_v53, %v16693_v34  ;;  %v11890_v53 = vadd.f32 %v17116_v52, %v16690_v27 }
 0x6a1   : > { %v13718_v14 = vpop.eup %13717  ;;  %v11226_v5 = vpack.c.bf16 %v13716_v44, %v13712_v24  ;;  %13737 = vpow2.f32 %v10970_v43  ;;  %v11570_v17 = vpop.f32.mrb[51].mxu1 }
 0x6a2   : > { %v13720_v50 = vpop.eup %13719  ;;  %v11227_v28 = vpack.c.bf16 %v13718_v14, %v13714_v63  ;;  %13739 = vpow2.f32 %v10969_v40  ;;  %v17347_v54 = vadd.f32 %v11570_v17, %v11569_v48  ;;  %v11889_v63 = vadd.f32 %v17105_v41, %v16698_v37  ;;  %v18051_v17 = vld [vmem:[#allocation26_spill] sm:$0xff] }
 0x6a3   : > { %v13722_v36 = vpop.eup %13721  ;;  %10160 = vst [vmem:[%s16765_s24 + $0x2bc] sm:$0xff] %v11226_v5  ;;  %v8865_v62 = vadd.f32 1.0, %v13720_v50  ;;  %13741 = vpow2.f32 %v10971_v42  ;;  %v11953_v14 = vadd.f32 %v17107_v57, %v16701_v20 }
 0x6a4   : > { %v13724_v0 = vpop.eup %13723  ;;  %10161 = vst [vmem:[%s16765_s24 + $0x2c4] sm:$0xff] %v11227_v28  ;;  %v8867_v46 = vadd.f32 1.0, %v13722_v36  ;;  %13743 = vpow2.f32 %v10975_v7  ;;  %v10976_v57 = vmul.f32 -1.442695, %v11889_v63 }
 0x6a5   : > { %v13726_v60 = vpop.eup %13725  ;;  %13745 = vrcp.f32 %v8865_v62  ;;  %v8866_v9 = vadd.f32 1.0, %v13724_v0  ;;  %v10977_v0 = vmul.f32 -1.442695, %v11952_v45 }
 0x6a6   : > { %v13728_v8 = vpop.eup %13727  ;;  %13747 = vrcp.f32 %v8867_v46  ;;  %v8868_v13 = vadd.f32 1.0, %v13726_v60  ;;  %v11572_v42 = vpop.f32.mrb[52].mxu1  ;;  %v11954_v46 = vadd.f32 %v17118_v6, %v16693_v34  ;;  %v18052_v6 = vld [vmem:[#allocation5_spill] sm:$0xff] }
 0x6a7   : > { %v13730_v22 = vpop.eup %13729  ;;  %13749 = vrcp.f32 %v8866_v9  ;;  %v8872_v59 = vadd.f32 1.0, %v13728_v8  ;;  %v11573_v5 = vpop.f32.mrb[53].mxu1  ;;  %v18050_v9 = vld [vmem:[#allocation4_spill] sm:$0xff] }
 0x6a8   : > { %v13732_v11 = vpop.eup %13731  ;;  %13751 = vrcp.f32 %v8868_v13  ;;  %v8874_v21 = vadd.f32 1.0, %v13730_v22  ;;  %v17357_v36 = vadd.f32 %v11573_v5, %v11572_v42  ;;  %v11575_v62 = vpop.f32.mrb[54].mxu1  ;;  %v11891_v48 = vadd.f32 %v18050_v9, %v16698_v37  ;;  %v18054_v42 = vld [vmem:[#allocation24_spill] sm:$0xff]  ;;  %v18055_v5 = vld [vmem:[#allocation30_spill] sm:$0xff] }
 0x6a9   : > { %v13734_v23 = vpop.eup %13733  ;;  %13753 = vrcp.f32 %v8872_v59  ;;  %v8873_v43 = vadd.f32 1.0, %v13732_v11  ;;  %v11576_v18 = vpop.f32.mrb[55].mxu1  ;;  %v10978_v13 = vmul.f32 -1.442695, %v11953_v14  ;;  %v11955_v22 = vadd.f32 %v18051_v17, %v16701_v20 }
 0x6aa   : > { %v13736_v29 = vpop.eup %13735  ;;  %13755 = vrcp.f32 %v8874_v21  ;;  %v8875_v24 = vadd.f32 1.0, %v13734_v23  ;;  %v17363_v8 = vadd.f32 %v11576_v18, %v11575_v62  ;;  %v10982_v11 = vmul.f32 -1.442695, %v11890_v53 }
 0x6ab   : > { %v13738_v40 = vpop.eup %13737  ;;  %13757 = vrcp.f32 %v8873_v43  ;;  %v8879_v1 = vadd.f32 1.0, %v13736_v29  ;;  %v11892_v21 = vadd.f32 %v18052_v6, %v16690_v27  ;;  %v10984_v29 = vmul.f32 -1.442695, %v11954_v46 }
 0x6ac   : > { %v13740_v44 = vpop.eup %13739  ;;  %13759 = vrcp.f32 %v8875_v24  ;;  %v8881_v7 = vadd.f32 1.0, %v13738_v40  ;;  %v18053_v24 = vld [vmem:[#allocation6_spill] sm:$0xff]  ;;  %v10983_v63 = vmul.f32 -1.442695, %v11891_v48  ;;  %v10985_v27 = vmul.f32 -1.442695, %v11955_v22 }
 0x6ad   : > { %v13742_v50 = vpop.eup %13741  ;;  %13761 = vrcp.f32 %v8879_v1  ;;  %v8880_v28 = vadd.f32 1.0, %v13740_v44  ;;  %v11956_v45 = vadd.f32 %v18053_v24, %v16693_v34  ;;  %v11893_v44 = vadd.f32 %v18054_v42, %v16698_v37 }
 0x6ae   : > { %v13744_v32 = vpop.eup %13743  ;;  %13763 = vrcp.f32 %v8881_v7  ;;  %v8882_v41 = vadd.f32 1.0, %v13742_v50  ;;  %v11578_v7 = vpop.f32.mrb[56].mxu1  ;;  %v11957_v50 = vadd.f32 %v18055_v5, %v16701_v20  ;;  %v10989_v34 = vmul.f32 -1.442695, %v11892_v21 }
 0x6af   : > { %v13746_v60 = vpop.eup %13745  ;;  %13765 = vrcp.f32 %v8880_v28  ;;  %v11579_v28 = vpop.f32.mrb[57].mxu1  ;;  %v10991_v46 = vmul.f32 -1.442695, %v11956_v45  ;;  %v10990_v9 = vmul.f32 -1.442695, %v11893_v44 }
 0x6b0   : > { %v13748_v52 = vpop.eup %13747  ;;  %13767 = vrcp.f32 %v8882_v41  ;;  %v17377_v62 = vadd.f32 %v11579_v28, %v11578_v7  ;;  %v11581_v41 = vpop.f32.mrb[58].mxu1 }
 0x6b1   : > { %v13750_v59 = vpop.eup %13749  ;;  %13769 = vpow2.f32 %v10977_v0  ;;  %v11582_v18 = vpop.f32.mrb[59].mxu1 }
 0x6b2   : > { %v13752_v23 = vpop.eup %13751  ;;  %v11230_v43 = vpack.c.bf16 %v13750_v59, %v13746_v60  ;;  %13771 = vpow2.f32 %v10976_v57  ;;  %v17379_v20 = vadd.f32 %v11582_v18, %v11581_v41  ;;  %v8886_v59 = vadd.f32 1.0, %v13744_v32 }
 0x6b3   : > { %v13754_v40 = vpop.eup %13753  ;;  %v11231_v1 = vpack.c.bf16 %v13752_v23, %v13748_v52  ;;  %13773 = vpow2.f32 %v10978_v13  ;;  %v10992_v52 = vmul.f32 -1.442695, %v11957_v50  ;;  %v18056_v23 = vld [vmem:[#allocation2_spill] sm:$0xff] }
 0x6b4   : > { %v13756_v14 = vpop.eup %13755  ;;  %10164 = vst [vmem:[%s16765_s24 + $0x2d8] sm:$0xff] %v11230_v43  ;;  %13775 = vpow2.f32 %v10982_v11  ;;  %v5370_v43 = vsub.s32 6, %v18056_v23  ;;  %v5362_v24 = vsub.s32 4, %v18056_v23  ;;  %v5366_v32 = vsub.s32 5, %v18056_v23 }
 0x6b5   : > { %v13758_v53 = vpop.eup %13757  ;;  %10165 = vst [vmem:[%s16765_s24 + $0x2e0] sm:$0xff] %v11231_v1  ;;  %13777 = vpow2.f32 %v10984_v29 }
 0x6b6   : > { %v13760_v0 = vpop.eup %13759  ;;  %v11234_v37 = vpack.c.bf16 %v13758_v53, %v13754_v40  ;;  %13779 = vpow2.f32 %v10983_v63  ;;  %v11584_v6 = vpop.f32.mrb[60].mxu1  ;;  %v14199_v53 = vld [vmem:[%s17861_s8] sm:$0x7f] }
 0x6b7   : > { %v13762_v60 = vpop.eup %13761  ;;  %v11235_v57 = vpack.c.bf16 %v13760_v0, %v13756_v14  ;;  %13781 = vpow2.f32 %v10985_v27  ;;  %v11585_v29 = vpop.f32.mrb[61].mxu1  ;;  %v17397_v41 = vrot.slane %v14199_v53, %v5362_v24 }
 0x6b8   : > { %v13764_v48 = vpop.eup %13763  ;;  %10168 = vst [vmem:[%s16765_s24 + $0x2f4] sm:$0xff] %v11234_v37  ;;  %13783 = vpow2.f32 %v10989_v34  ;;  %v17387_v1 = vadd.f32 %v11585_v29, %v11584_v6  ;;  %v11587_v63 = vpop.f32.mrb[62].mxu1  ;;  %v17395_v34 = vrot.slane %v14199_v53, %v5370_v43 }
 0x6b9   : > { %v13766_v13 = vpop.eup %13765  ;;  %10169 = vst [vmem:[%s16765_s24 + $0x2fc] sm:$0xff] %v11235_v57  ;;  %13785 = vpow2.f32 %v10991_v46  ;;  %v11588_v7 = vpop.f32.mrb[63].mxu1  ;;  %v17399_v46 = vrot.slane %v14199_v53, %v5366_v32 }
 0x6ba   : > { %v13768_v17 = vpop.eup %13767  ;;  %v11238_v22 = vpack.c.bf16 %v13766_v13, %v13762_v60  ;;  %13787 = vpow2.f32 %v10990_v9  ;;  %v17390_v5 = vadd.f32 %v11588_v7, %v11587_v63 }
 0x6bb   : > { %v11239_v11 = vpack.c.bf16 %v13768_v17, %v13764_v48  ;;  %v13770_v21 = vpop.eup %13769  ;;  %13789 = vpow2.f32 %v10992_v52 }
 0x6bc   : > { %10172 = vst [vmem:[%s16765_s24 + $0x310] sm:$0xff] %v11238_v22  ;;  %v13772_v45 = vpop.eup %13771  ;;  %v8888_v40 = vadd.f32 1.0, %v13770_v21  ;;  %13791 = vrcp.f32 %v8886_v59  ;;  %v18057_v22 = vld [vmem:[#allocation28_spill] sm:$0xff] }
 0x6bd   : > { %10173 = vst [vmem:[%s16765_s24 + $0x318] sm:$0xff] %v11239_v11  ;;  %v13774_v42 = vpop.eup %13773  ;;  %v8887_v44 = vadd.f32 1.0, %v13772_v45  ;;  %v7724_v59 = vadd.f32 %v18057_v22, %v17395_v34 }
 0x6be   : > { %v13776_v14 = vpop.eup %13775  ;;  %13793 = vrcp.f32 %v8888_v40  ;;  %v8889_v27 = vadd.f32 1.0, %v13774_v42  ;;  %v7530_v48 = vpop.f32.mrb[0].mxu0 }
 0x6bf   : > { %v13778_v50 = vpop.eup %13777  ;;  %13795 = vrcp.f32 %v8887_v44  ;;  %v8893_v28 = vadd.f32 1.0, %v13776_v14  ;;  %v11606_v52 = vpop.f32.mrb[64].mxu1  ;;  %v11958_v11 = vadd.f32 %v7530_v48, %v17397_v41 }
 0x6c0   : > { %v13780_v0 = vpop.eup %13779  ;;  %13797 = vrcp.f32 %v8889_v27  ;;  %v8895_v37 = vadd.f32 1.0, %v13778_v50  ;;  %v7532_v6 = vpop.f32.mrb[1].mxu0 }
 0x6c1   : > { %v13782_v18 = vpop.eup %13781  ;;  %13799 = vrcp.f32 %v8893_v28  ;;  %v8894_v60 = vadd.f32 1.0, %v13780_v0  ;;  %v11607_v21 = vpop.f32.mrb[65].mxu1  ;;  %v11959_v29 = vadd.f32 %v7532_v6, %v17399_v46  ;;  %v10776_v42 = vmul.f32 -1.442695, %v11958_v11  ;;  %v18058_v0 = vld [vmem:[#allocation34_spill] sm:$0xff] }
 0x6c2   : > { %v13784_v57 = vpop.eup %13783  ;;  %13801 = vrcp.f32 %v8895_v37  ;;  %v8896_v9 = vadd.f32 1.0, %v13782_v18  ;;  %v11608_v24 = vadd.f32 %v11607_v21, %v11606_v52  ;;  %v7534_v45 = vpop.f32.mrb[2].mxu0  ;;  %v7727_v37 = vadd.f32 %v18058_v0, %v17395_v34 }
 0x6c3   : > { %v13786_v13 = vpop.eup %13785  ;;  %13803 = vrcp.f32 %v8894_v60  ;;  %v8900_v17 = vadd.f32 1.0, %v13784_v57  ;;  %v11609_v40 = vpop.f32.mrb[66].mxu1  ;;  %v11960_v44 = vadd.f32 %v7534_v45, %v17397_v41  ;;  %v10777_v50 = vmul.f32 -1.442695, %v11959_v29 }
 0x6c4   : > { %v13788_v23 = vpop.eup %13787  ;;  %13805 = vrcp.f32 %v8896_v9  ;;  %v8902_v43 = vadd.f32 1.0, %v13786_v13  ;;  %v7536_v7 = vpop.f32.mrb[3].mxu0  ;;  %v7885_v28 = vadd.f32 %v11608_v24, %v7724_v59 }
 0x6c5   : > { %v13790_v63 = vpop.eup %13789  ;;  %13807 = vrcp.f32 %v8900_v17  ;;  %v8901_v32 = vadd.f32 1.0, %v13788_v23  ;;  %v11610_v14 = vpop.f32.mrb[67].mxu1  ;;  %v11961_v18 = vadd.f32 %v7536_v7, %v17399_v46  ;;  %v10783_v48 = vmul.f32 -1.442695, %v11960_v44 }
 0x6c6   : > { %13809 = vrcp.f32 %v8902_v43  ;;  %v8903_v27 = vadd.f32 1.0, %v13790_v63  ;;  %v13792_v53 = vpop.eup %13791  ;;  %v11611_v60 = vadd.f32 %v11610_v14, %v11609_v40  ;;  %v10778_v9 = vmul.f32 -1.442695, %v7885_v28  ;;  %v7540_v59 = vpop.f32.mrb[4].mxu0 }
 0x6c7   : > { %13811 = vrcp.f32 %v8901_v32  ;;  %v10784_v13 = vmul.f32 -1.442695, %v11961_v18  ;;  %v11612_v6 = vpop.f32.mrb[68].mxu1  ;;  %v11962_v29 = vadd.f32 %v7540_v59, %v17397_v41  ;;  %v7542_v24 = vpop.f32.mrb[5].mxu0  ;;  %v7732_v63 = vadd.f32 %v17171_v4, %v17395_v34 }
 0x6c8   : > { %v13794_v57 = vpop.eup %13793  ;;  %13813 = vrcp.f32 %v8903_v27  ;;  %v7888_v17 = vadd.f32 %v11611_v60, %v7727_v37  ;;  %v11613_v45 = vpop.f32.mrb[69].mxu1  ;;  %v11963_v32 = vadd.f32 %v7542_v24, %v17399_v46 }
 0x6c9   : > { %v13796_v52 = vpop.eup %13795  ;;  %13815 = vpow2.f32 %v10776_v42  ;;  %v11614_v42 = vadd.f32 %v11613_v45, %v11612_v6  ;;  %v7544_v44 = vpop.f32.mrb[6].mxu0  ;;  %v10790_v27 = vmul.f32 -1.442695, %v11962_v29 }
 0x6ca   : > { %v13798_v22 = vpop.eup %13797  ;;  %v11242_v11 = vpack.c.bf16 %v13796_v52, %v13792_v53  ;;  %13817 = vpow2.f32 %v10777_v50  ;;  %v10785_v43 = vmul.f32 -1.442695, %v7888_v17  ;;  %v11615_v7 = vpop.f32.mrb[70].mxu1  ;;  %v11964_v50 = vadd.f32 %v7544_v44, %v17397_v41 }
 0x6cb   : > { %v13800_v21 = vpop.eup %13799  ;;  %v11243_v23 = vpack.c.bf16 %v13798_v22, %v13794_v57  ;;  %13819 = vpow2.f32 %v10778_v9  ;;  %v7546_v28 = vpop.f32.mrb[7].mxu0  ;;  %v10791_v4 = vmul.f32 -1.442695, %v11963_v32  ;;  %v7893_v18 = vadd.f32 %v11614_v42, %v7732_v63 }
 0x6cc   : > { %v13802_v40 = vpop.eup %13801  ;;  %10176 = vst [vmem:[%s16765_s24 + $0x32c] sm:$0xff] %v11242_v11  ;;  %13821 = vpow2.f32 %v10783_v48  ;;  %v11616_v53 = vpop.f32.mrb[71].mxu1  ;;  %v10797_v9 = vmul.f32 -1.442695, %v11964_v50  ;;  %v11965_v48 = vadd.f32 %v7546_v28, %v17399_v46  ;;  %v7740_v32 = vadd.f32 %v17187_v55, %v17395_v34 }
 0x6cd   : > { %v13804_v14 = vpop.eup %13803  ;;  %10177 = vst [vmem:[%s16765_s24 + $0x334] sm:$0xff] %v11243_v23  ;;  %13823 = vpow2.f32 %v10784_v13  ;;  %v7735_v13 = vadd.f32 %v17175_v15, %v17395_v34  ;;  %v10792_v17 = vmul.f32 -1.442695, %v7893_v18  ;;  %v11617_v22 = vadd.f32 %v11616_v53, %v11615_v7 }
 0x6ce   : > { %v13806_v0 = vpop.eup %13805  ;;  %v11246_v37 = vpack.c.bf16 %v13804_v14, %v13800_v21  ;;  %13825 = vpow2.f32 %v10785_v43  ;;  %v10798_v59 = vmul.f32 -1.442695, %v11965_v48  ;;  %v7550_v43 = vpop.f32.mrb[8].mxu0  ;;  %v7743_v55 = vadd.f32 %v17189_v56, %v17395_v34 }
 0x6cf   : > { %v13808_v60 = vpop.eup %13807  ;;  %v11247_v57 = vpack.c.bf16 %v13806_v0, %v13802_v40  ;;  %13827 = vpow2.f32 %v10790_v27  ;;  %v7896_v23 = vadd.f32 %v11617_v22, %v7735_v13  ;;  %v11618_v29 = vpop.f32.mrb[72].mxu1 }
 0x6d0   : > { %v13810_v52 = vpop.eup %13809  ;;  %10180 = vst [vmem:[%s16765_s24 + $0x348] sm:$0xff] %v11246_v37  ;;  %13829 = vpow2.f32 %v10791_v4  ;;  %v7552_v40 = vpop.f32.mrb[9].mxu0 }
 0x6d1   : > { %v13812_v11 = vpop.eup %13811  ;;  %10181 = vst [vmem:[%s16765_s24 + $0x350] sm:$0xff] %v11247_v57  ;;  %13831 = vpow2.f32 %v10797_v9  ;;  %v11619_v15 = vpop.f32.mrb[73].mxu1 }
 0x6d2   : > { %v13814_v6 = vpop.eup %13813  ;;  %v11250_v21 = vpack.c.bf16 %v13812_v11, %v13808_v60  ;;  %13833 = vpow2.f32 %v10792_v17  ;;  %v11620_v44 = vadd.f32 %v11619_v15, %v11618_v29  ;;  %v7554_v7 = vpop.f32.mrb[10].mxu0  ;;  %v11966_v11 = vadd.f32 %v7550_v43, %v17397_v41 }
 0x6d3   : > { %v13816_v24 = vpop.eup %13815  ;;  %v11251_v45 = vpack.c.bf16 %v13814_v6, %v13810_v52  ;;  %13835 = vpow2.f32 %v10798_v59  ;;  %v11621_v14 = vpop.f32.mrb[74].mxu1  ;;  %v10799_v43 = vmul.f32 -1.442695, %v7896_v23 }
 0x6d4   : > { %v13818_v63 = vpop.eup %13817  ;;  %10184 = vst [vmem:[%s16765_s24 + $0x364] sm:$0xff] %v11250_v21  ;;  %v8687_v42 = vadd.f32 1.0, %v13816_v24  ;;  %v7556_v28 = vpop.f32.mrb[11].mxu0  ;;  %v7901_v4 = vadd.f32 %v11620_v44, %v7740_v32  ;;  %v7748_v24 = vadd.f32 %v17199_v25, %v17395_v34  ;;  %v11968_v25 = vadd.f32 %v7554_v7, %v17397_v41 }
 0x6d5   : > { %v13820_v27 = vpop.eup %13819  ;;  %10185 = vst [vmem:[%s16765_s24 + $0x36c] sm:$0xff] %v11251_v45  ;;  %v8688_v50 = vadd.f32 1.0, %v13818_v63  ;;  %v11622_v53 = vpop.f32.mrb[75].mxu1  ;;  %v11967_v45 = vadd.f32 %v7552_v40, %v17399_v46 }
 0x6d6   : > { %v13822_v0 = vpop.eup %13821  ;;  %13837 = vrcp.f32 %v8687_v42  ;;  %v8689_v37 = vadd.f32 1.0, %v13820_v27  ;;  %v11623_v48 = vadd.f32 %v11622_v53, %v11621_v14  ;;  %v7560_v6 = vpop.f32.mrb[12].mxu0  ;;  %v7751_v42 = vadd.f32 %v17205_v3, %v17395_v34 }
 0x6d7   : > { %v13824_v18 = vpop.eup %13823  ;;  %13839 = vrcp.f32 %v8688_v50  ;;  %v8694_v60 = vadd.f32 1.0, %v13822_v0  ;;  %v11624_v21 = vpop.f32.mrb[76].mxu1  ;;  %v10805_v3 = vmul.f32 -1.442695, %v11967_v45  ;;  %v10811_v7 = vmul.f32 -1.442695, %v11968_v25 }
 0x6d8   : > { %v13826_v57 = vpop.eup %13825  ;;  %13841 = vrcp.f32 %v8689_v37  ;;  %v8695_v9 = vadd.f32 1.0, %v13824_v18  ;;  %v7904_v59 = vadd.f32 %v11623_v48, %v7743_v55  ;;  %v7562_v15 = vpop.f32.mrb[13].mxu0  ;;  %v10806_v48 = vmul.f32 -1.442695, %v7901_v4 }
 0x6d9   : > { %v13828_v52 = vpop.eup %13827  ;;  %13843 = vrcp.f32 %v8694_v60  ;;  %v8696_v13 = vadd.f32 1.0, %v13826_v57  ;;  %v11625_v63 = vpop.f32.mrb[77].mxu1  ;;  %v10804_v60 = vmul.f32 -1.442695, %v11966_v11  ;;  %v11969_v57 = vadd.f32 %v7556_v28, %v17399_v46 }
 0x6da   : > { %v13830_v17 = vpop.eup %13829  ;;  %13845 = vrcp.f32 %v8695_v9  ;;  %v8701_v22 = vadd.f32 1.0, %v13828_v52  ;;  %v7564_v14 = vpop.f32.mrb[14].mxu0  ;;  %v11626_v0 = vadd.f32 %v11625_v63, %v11624_v21  ;;  %v11970_v52 = vadd.f32 %v7560_v6, %v17397_v41 }
 0x6db   : > { %v13832_v29 = vpop.eup %13831  ;;  %13847 = vrcp.f32 %v8696_v13  ;;  %v8702_v56 = vadd.f32 1.0, %v13830_v17  ;;  %v11627_v27 = vpop.f32.mrb[78].mxu1  ;;  %v11971_v17 = vadd.f32 %v7562_v15, %v17399_v46  ;;  %v7756_v28 = vadd.f32 %v17225_v26, %v17395_v34 }
 0x6dc   : > { %v13834_v32 = vpop.eup %13833  ;;  %13849 = vrcp.f32 %v8701_v22  ;;  %v8708_v44 = vadd.f32 1.0, %v13832_v29  ;;  %v7566_v37 = vpop.f32.mrb[15].mxu0  ;;  %v7909_v55 = vadd.f32 %v11626_v0, %v7748_v24  ;;  %v10812_v29 = vmul.f32 -1.442695, %v11969_v57 }
 0x6dd   : > { %v13836_v50 = vpop.eup %13835  ;;  %13851 = vrcp.f32 %v8702_v56  ;;  %v8703_v53 = vadd.f32 1.0, %v13834_v32  ;;  %v11628_v18 = vpop.f32.mrb[79].mxu1  ;;  %v10813_v45 = vmul.f32 -1.442695, %v7904_v59  ;;  %v11972_v63 = vadd.f32 %v7564_v14, %v17397_v41 }
 0x6de   : > { %13853 = vrcp.f32 %v8708_v44  ;;  %v8709_v40 = vadd.f32 1.0, %v13836_v50  ;;  %v11629_v9 = vadd.f32 %v11628_v18, %v11627_v27  ;;  %v17439_v24 = vpop.f32.mrb[16].mxu0  ;;  %v11630_v56 = vpop.f32.mrb[80].mxu1  ;;  %v10818_v26 = vmul.f32 -1.442695, %v11970_v52 }
 0x6df   : > { %13855 = vrcp.f32 %v8703_v53  ;;  %v17442_v15 = vpop.f32.mrb[17].mxu0  ;;  %v11631_v32 = vpop.f32.mrb[81].mxu1  ;;  %v11973_v44 = vadd.f32 %v7566_v37, %v17399_v46  ;;  %v10819_v14 = vmul.f32 -1.442695, %v11971_v17 }
 0x6e0   : > { %v13838_v23 = vpop.eup %13837  ;;  %13857 = vrcp.f32 %v8709_v40  ;;  %v7912_v22 = vadd.f32 %v11629_v9, %v7751_v42  ;;  %v17446_v27 = vpop.f32.mrb[18].mxu0  ;;  %v10825_v9 = vmul.f32 -1.442695, %v11972_v63 }
 0x6e1   : > { %v13840_v13 = vpop.eup %13839  ;;  %13859 = vpow2.f32 %v10799_v43  ;;  %v11632_v43 = vadd.f32 %v11631_v32, %v11630_v56  ;;  %v11633_v50 = vpop.f32.mrb[82].mxu1 }
 0x6e2   : > { %v13842_v11 = vpop.eup %13841  ;;  %v11128_v21 = vpack.c.bf16 %v13840_v13, %v13838_v23  ;;  %13861 = vpow2.f32 %v10804_v60  ;;  %v17450_v25 = vpop.f32.mrb[19].mxu0  ;;  %v10820_v60 = vmul.f32 -1.442695, %v7909_v55  ;;  %v10826_v13 = vmul.f32 -1.442695, %v11973_v44 }
 0x6e3   : > { %v13844_v4 = vpop.eup %13843  ;;  %v11129_v6 = vpack.c.bf16 %v13842_v11, %v13842_v11  ;;  %13863 = vpow2.f32 %v10805_v3  ;;  %v11634_v0 = vpop.f32.mrb[83].mxu1  ;;  %v17452_v37 = vadd.f32 %v11632_v43, %v7756_v28  ;;  %v7759_v3 = vadd.f32 %v17232_v51, %v17395_v34 }
 0x6e4   : > { %v13846_v42 = vpop.eup %13845  ;;  %10061 = vst [vmem:[%s16765_s24 + $0x10] sm:$0xff] %v11128_v21  ;;  %13865 = vpow2.f32 %v10806_v48  ;;  %v11635_v23 = vadd.f32 %v11634_v0, %v11633_v50  ;;  %v10827_v55 = vmul.f32 -1.442695, %v7912_v22  ;;  %v7764_v22 = vadd.f32 %v17245_v47, %v17395_v34 }
 0x6e5   : > { %v13848_v53 = vpop.eup %13847  ;;  %10063 = vst.msk [vmem:[%s16765_s24 + $0x18] sm:$0xf] %vm10062_vm1, %v11129_v6  ;;  %v11132_v59 = vpack.c.bf16 %v13846_v42, %v13844_v4  ;;  %13867 = vpow2.f32 %v10811_v7 }
 0x6e6   : > { %v13850_v18 = vpop.eup %13849  ;;  %v11133_v40 = vpack.c.bf16 %v13848_v53, %v13848_v53  ;;  %13869 = vpow2.f32 %v10812_v29  ;;  %v17459_v17 = vadd.f32 %v11635_v23, %v7759_v3  ;;  %v17462_v51 = vpop.f32.mrb[20].mxu0 }
 0x6e7   : > { %v13852_v57 = vpop.eup %13851  ;;  %10066 = vst [vmem:[%s16765_s24 + $0x2c] sm:$0xff] %v11132_v59  ;;  %13871 = vpow2.f32 %v10813_v45  ;;  %v11636_v21 = vpop.f32.mrb[84].mxu1 }
 0x6e8   : > { %v13854_v48 = vpop.eup %13853  ;;  %10067 = vst.msk [vmem:[%s16765_s24 + $0x34] sm:$0xf] %vm10062_vm1, %v11133_v40  ;;  %v11136_v52 = vpack.c.bf16 %v13852_v57, %v13850_v18  ;;  %13873 = vpow2.f32 %v10818_v26  ;;  %v17464_v4 = vpop.f32.mrb[21].mxu0 }
 0x6e9   : > { %v13856_v7 = vpop.eup %13855  ;;  %13875 = vpow2.f32 %v10819_v14  ;;  %v11637_v6 = vpop.f32.mrb[85].mxu1 }
 0x6ea   : > { %v13858_v11 = vpop.eup %13857  ;;  %10070 = vst [vmem:[%s16765_s24 + $0x48] sm:$0xff] %v11136_v52  ;;  %v11137_v28 = vpack.c.bf16 %v13856_v7, %v13856_v7  ;;  %13877 = vpow2.f32 %v10820_v60  ;;  %v11638_v32 = vadd.f32 %v11637_v6, %v11636_v21  ;;  %v17470_v42 = vpop.f32.mrb[22].mxu0  ;;  %v7767_v60 = vadd.f32 %v17248_v16, %v17395_v34 }
 0x6eb   : > { %v13860_v29 = vpop.eup %13859  ;;  %v11140_v56 = vpack.c.bf16 %v13858_v11, %v13854_v48  ;;  %13879 = vpow2.f32 %v10825_v9  ;;  %v11639_v26 = vpop.f32.mrb[86].mxu1  ;;  %v7772_v6 = vadd.f32 %v17252_v35, %v17395_v34 }
 0x6ec   : > { %v13862_v45 = vpop.eup %13861  ;;  %10071 = vst.msk [vmem:[%s16765_s24 + $0x50] sm:$0xf] %vm10062_vm1, %v11137_v28  ;;  %v8710_v63 = vadd.f32 1.0, %v13860_v29  ;;  %13881 = vpow2.f32 %v10826_v13  ;;  %v17473_v50 = vpop.f32.mrb[23].mxu0  ;;  %v17475_v0 = vadd.f32 %v11638_v32, %v7764_v22  ;;  %v11974_v13 = vadd.f32 %v17439_v24, %v17397_v41 }
 0x6ed   : > { %v13864_v44 = vpop.eup %13863  ;;  %10074 = vst [vmem:[%s16765_s24 + $0x64] sm:$0xff] %v11140_v56  ;;  %v8715_v43 = vadd.f32 1.0, %v13862_v45  ;;  %13883 = vpow2.f32 %v10827_v55  ;;  %v11640_v53 = vpop.f32.mrb[87].mxu1  ;;  %v11975_v24 = vadd.f32 %v17442_v15, %v17399_v46  ;;  %v11976_v15 = vadd.f32 %v17446_v27, %v17397_v41 }
 0x6ee   : > { %v13866_v59 = vpop.eup %13865  ;;  %13885 = vrcp.f32 %v8710_v63  ;;  %v8716_v14 = vadd.f32 1.0, %v13864_v44  ;;  %v11641_v3 = vadd.f32 %v11640_v53, %v11639_v26  ;;  %v17483_v55 = vpop.f32.mrb[24].mxu0  ;;  %v7775_v26 = vadd.f32 %v17258_v12, %v17395_v34 }
 0x6ef   : > { %v13868_v47 = vpop.eup %13867  ;;  %13887 = vrcp.f32 %v8715_v43  ;;  %v8717_v18 = vadd.f32 1.0, %v13866_v59  ;;  %v11642_v11 = vpop.f32.mrb[88].mxu1  ;;  %v11978_v27 = vadd.f32 %v17462_v51, %v17397_v41 }
 0x6f0   : > { %v13870_v40 = vpop.eup %13869  ;;  %13889 = vrcp.f32 %v8716_v14  ;;  %v8722_v57 = vadd.f32 1.0, %v13868_v47  ;;  %v17481_v7 = vadd.f32 %v11641_v3, %v7767_v60  ;;  %v17485_v21 = vpop.f32.mrb[25].mxu0  ;;  %v10832_v47 = vmul.f32 -1.442695, %v11974_v13 }
 0x6f1   : > { %v13872_v9 = vpop.eup %13871  ;;  %13891 = vrcp.f32 %v8717_v18  ;;  %v8723_v23 = vadd.f32 1.0, %v13870_v40  ;;  %v11643_v29 = vpop.f32.mrb[89].mxu1  ;;  %v11977_v60 = vadd.f32 %v17450_v25, %v17399_v46  ;;  %v10834_v13 = vmul.f32 -1.442695, %v17452_v37 }
 0x6f2   : > { %v13874_v48 = vpop.eup %13873  ;;  %13893 = vrcp.f32 %v8722_v57  ;;  %v8724_v52 = vadd.f32 1.0, %v13872_v9  ;;  %v17491_v22 = vpop.f32.mrb[26].mxu0  ;;  %v11644_v43 = vadd.f32 %v11643_v29, %v11642_v11  ;;  %v10833_v9 = vmul.f32 -1.442695, %v11975_v24 }
 0x6f3   : > { %v13876_v28 = vpop.eup %13875  ;;  %13895 = vrcp.f32 %v8723_v23  ;;  %v8729_v16 = vadd.f32 1.0, %v13874_v48  ;;  %v11645_v63 = vpop.f32.mrb[90].mxu1  ;;  %v11979_v25 = vadd.f32 %v17464_v4, %v17399_v46  ;;  %v10840_v51 = vmul.f32 -1.442695, %v11977_v60 }
 0x6f4   : > { %v13878_v56 = vpop.eup %13877  ;;  %13897 = vrcp.f32 %v8724_v52  ;;  %v8730_v45 = vadd.f32 1.0, %v13876_v28  ;;  %v17495_v53 = vpop.f32.mrb[27].mxu0  ;;  %v17501_v12 = vadd.f32 %v11644_v43, %v7772_v6  ;;  %v10839_v28 = vmul.f32 -1.442695, %v11976_v15 }
 0x6f5   : > { %v13880_v32 = vpop.eup %13879  ;;  %13899 = vrcp.f32 %v8729_v16  ;;  %v8731_v44 = vadd.f32 1.0, %v13878_v56  ;;  %v11646_v59 = vpop.f32.mrb[91].mxu1  ;;  %v10848_v60 = vmul.f32 -1.442695, %v17475_v0 }
 0x6f6   : > { %v13882_v14 = vpop.eup %13881  ;;  %13901 = vrcp.f32 %v8730_v45  ;;  %v8736_v35 = vadd.f32 1.0, %v13880_v32  ;;  %v11647_v23 = vadd.f32 %v11646_v59, %v11645_v63  ;;  %v17510_v29 = vpop.f32.mrb[28].mxu0  ;;  %v7780_v45 = vadd.f32 %v17272_v38, %v17395_v34 }
 0x6f7   : > { %v13884_v18 = vpop.eup %13883  ;;  %13903 = vrcp.f32 %v8731_v44  ;;  %v8737_v40 = vadd.f32 1.0, %v13882_v14  ;;  %v11648_v56 = vpop.f32.mrb[92].mxu1  ;;  %v11980_v44 = vadd.f32 %v17470_v42, %v17397_v41  ;;  %v10846_v14 = vmul.f32 -1.442695, %v11978_v27 }
 0x6f8   : > { %v13886_v57 = vpop.eup %13885  ;;  %13905 = vrcp.f32 %v8736_v35  ;;  %v8738_v3 = vadd.f32 1.0, %v13884_v18  ;;  %v17508_v16 = vadd.f32 %v11647_v23, %v7775_v26  ;;  %v17516_v24 = vpop.f32.mrb[29].mxu0  ;;  %v10841_v26 = vmul.f32 -1.442695, %v17459_v17 }
 0x6f9   : > { %v13888_v48 = vpop.eup %13887  ;;  %v11141_v52 = vpack.c.bf16 %v13886_v57, %v13886_v57  ;;  %13907 = vrcp.f32 %v8737_v40  ;;  %v11649_v63 = vpop.f32.mrb[93].mxu1  ;;  %v11981_v35 = vadd.f32 %v17473_v50, %v17399_v46  ;;  %v10847_v42 = vmul.f32 -1.442695, %v11979_v25 }
 0x6fa   : > { %v13890_v11 = vpop.eup %13889  ;;  %13909 = vrcp.f32 %v8738_v3  ;;  %v17521_v43 = vpop.f32.mrb[30].mxu0  ;;  %v11982_v50 = vadd.f32 %v17483_v55, %v17397_v41  ;;  %v10855_v25 = vmul.f32 -1.442695, %v17481_v7 }
 0x6fb   : > { %v13892_v6 = vpop.eup %13891  ;;  %10075 = vst.msk [vmem:[%s16765_s24 + $0x6c] sm:$0xf] %vm10062_vm1, %v11141_v52  ;;  %v11144_v37 = vpack.c.bf16 %v13890_v11, %v13888_v48  ;;  %13911 = vpow2.f32 %v10832_v47  ;;  %v11651_v38 = vpop.f32.mrb[94].mxu1  ;;  %v11650_v47 = vadd.f32 %v11649_v63, %v11648_v56  ;;  %v7783_v48 = vadd.f32 %v17280_v49, %v17395_v34 }
 0x6fc   : > { %v13894_v32 = vpop.eup %13893  ;;  %v11145_v4 = vpack.c.bf16 %v13892_v6, %v13892_v6  ;;  %13913 = vpow2.f32 %v10833_v9  ;;  %v17526_v15 = vpop.f32.mrb[31].mxu0  ;;  %v10853_v52 = vmul.f32 -1.442695, %v11980_v44  ;;  %v10854_v11 = vmul.f32 -1.442695, %v11981_v35 }
 0x6fd   : > { %v13896_v59 = vpop.eup %13895  ;;  %10078 = vst [vmem:[%s16765_s24 + $0x80] sm:$0xff] %v11144_v37  ;;  %13915 = vpow2.f32 %v10834_v13  ;;  %v11652_v18 = vpop.f32.mrb[95].mxu1  ;;  %v17533_v9 = vadd.f32 %v11650_v47, %v7780_v45  ;;  %v10860_v37 = vmul.f32 -1.442695, %v11982_v50 }
 0x6fe   : > { %v13898_v40 = vpop.eup %13897  ;;  %10079 = vst.msk [vmem:[%s16765_s24 + $0x88] sm:$0xf] %vm10062_vm1, %v11145_v4  ;;  %v11148_v17 = vpack.c.bf16 %v13896_v59, %v13894_v32  ;;  %13917 = vpow2.f32 %v10839_v28  ;;  %v11653_v13 = vadd.f32 %v11652_v18, %v11651_v38  ;;  %v17543_v49 = vpop.f32.mrb[32].mxu0  ;;  %v7788_v38 = vadd.f32 %v17290_v2, %v17395_v34 }
 0x6ff   : > { %v13900_v57 = vpop.eup %13899  ;;  %v11149_v3 = vpack.c.bf16 %v13898_v40, %v13898_v40  ;;  %13919 = vpow2.f32 %v10840_v51  ;;  %v11654_v6 = vpop.f32.mrb[96].mxu1  ;;  %v7791_v2 = vadd.f32 %v17296_v10, %v17395_v34 }
 0x700   : > { %v13902_v23 = vpop.eup %13901  ;;  %10082 = vst [vmem:[%s16765_s24 + $0x9c] sm:$0xff] %v11148_v17  ;;  %13921 = vpow2.f32 %v10841_v26  ;;  %v17541_v56 = vadd.f32 %v11653_v13, %v7783_v48  ;;  %v17546_v51 = vpop.f32.mrb[33].mxu0 }
 0x701   : > { %v13904_v27 = vpop.eup %13903  ;;  %10083 = vst.msk [vmem:[%s16765_s24 + $0xa4] sm:$0xf] %vm10062_vm1, %v11149_v3  ;;  %v11152_v0 = vpack.c.bf16 %v13902_v23, %v13900_v57  ;;  %13923 = vpow2.f32 %v10846_v14  ;;  %v11655_v63 = vpop.f32.mrb[97].mxu1 }
 0x702   : > { %v13906_v28 = vpop.eup %13905  ;;  %v11153_v55 = vpack.c.bf16 %v13904_v27, %v13904_v27  ;;  %13925 = vpow2.f32 %v10847_v42  ;;  %v17550_v7 = vpop.f32.mrb[34].mxu0  ;;  %v11656_v14 = vadd.f32 %v11655_v63, %v11654_v6  ;;  %v11983_v27 = vadd.f32 %v17485_v21, %v17399_v46 }
 0x703   : > { %v13908_v45 = vpop.eup %13907  ;;  %10086 = vst [vmem:[%s16765_s24 + $0xb8] sm:$0xff] %v11152_v0  ;;  %13927 = vpow2.f32 %v10848_v60  ;;  %v11657_v26 = vpop.f32.mrb[98].mxu1  ;;  %v7796_v21 = vadd.f32 %v17299_v19, %v17395_v34 }
 0x704   : > { %v13910_v32 = vpop.eup %13909  ;;  %10087 = vst.msk [vmem:[%s16765_s24 + $0xc0] sm:$0xf] %vm10062_vm1, %v11153_v55  ;;  %v11156_v4 = vpack.c.bf16 %v13908_v45, %v13906_v28  ;;  %13929 = vpow2.f32 %v10853_v52  ;;  %v17554_v35 = vpop.f32.mrb[35].mxu0  ;;  %v17559_v60 = vadd.f32 %v11656_v14, %v7788_v38 }
 0x705   : > { %v13912_v44 = vpop.eup %13911  ;;  %v11157_v59 = vpack.c.bf16 %v13910_v32, %v13910_v32  ;;  %13931 = vpow2.f32 %v10854_v11  ;;  %v11658_v47 = vpop.f32.mrb[99].mxu1 }
 0x706   : > { %v13914_v18 = vpop.eup %13913  ;;  %10090 = vst [vmem:[%s16765_s24 + $0xd4] sm:$0xff] %v11156_v4  ;;  %v8743_v40 = vadd.f32 1.0, %v13912_v44  ;;  %13933 = vpow2.f32 %v10855_v25  ;;  %v11659_v50 = vadd.f32 %v11658_v47, %v11657_v26  ;;  %v17567_v11 = vpop.f32.mrb[36].mxu0  ;;  %v7799_v47 = vadd.f32 %v17303_v61, %v17395_v34 }
 0x707   : > { %v13916_v17 = vpop.eup %13915  ;;  %10091 = vst.msk [vmem:[%s16765_s24 + $0xdc] sm:$0xf] %vm10062_vm1, %v11157_v59  ;;  %v8744_v42 = vadd.f32 1.0, %v13914_v18  ;;  %13935 = vpow2.f32 %v10860_v37  ;;  %v11660_v28 = vpop.f32.mrb[100].mxu1 }
 0x708   : > { %v13918_v57 = vpop.eup %13917  ;;  %13937 = vrcp.f32 %v8743_v40  ;;  %v8745_v3 = vadd.f32 1.0, %v13916_v17  ;;  %v17565_v0 = vadd.f32 %v11659_v50, %v7791_v2  ;;  %v17569_v25 = vpop.f32.mrb[37].mxu0  ;;  %v10861_v40 = vmul.f32 -1.442695, %v11983_v27 }
 0x709   : > { %v13920_v23 = vpop.eup %13919  ;;  %13939 = vrcp.f32 %v8744_v42  ;;  %v8750_v48 = vadd.f32 1.0, %v13918_v57  ;;  %v11661_v6 = vpop.f32.mrb[101].mxu1  ;;  %v11984_v57 = vadd.f32 %v17491_v22, %v17397_v41  ;;  %v11985_v50 = vadd.f32 %v17495_v53, %v17399_v46 }
 0x70a   : > { %v13922_v52 = vpop.eup %13921  ;;  %13941 = vrcp.f32 %v8745_v3  ;;  %v8751_v13 = vadd.f32 1.0, %v13920_v23  ;;  %v17571_v63 = vpop.f32.mrb[38].mxu0  ;;  %v11662_v44 = vadd.f32 %v11661_v6, %v11660_v28  ;;  %v11987_v28 = vadd.f32 %v17516_v24, %v17399_v46 }
 0x70b   : > { %v13924_v55 = vpop.eup %13923  ;;  %13943 = vrcp.f32 %v8750_v48  ;;  %v8752_v10 = vadd.f32 1.0, %v13922_v52  ;;  %v11663_v32 = vpop.f32.mrb[102].mxu1  ;;  %v10862_v52 = vmul.f32 -1.442695, %v17501_v12  ;;  %v7807_v12 = vadd.f32 %v17322_v31, %v17395_v34 }
 0x70c   : > { %v13926_v45 = vpop.eup %13925  ;;  %13945 = vrcp.f32 %v8751_v13  ;;  %v8757_v37 = vadd.f32 1.0, %v13924_v55  ;;  %v17575_v38 = vpop.f32.mrb[39].mxu0  ;;  %v17581_v19 = vadd.f32 %v11662_v44, %v7796_v21  ;;  %v11986_v13 = vadd.f32 %v17510_v29, %v17397_v41 }
 0x70d   : > { %v13928_v4 = vpop.eup %13927  ;;  %13947 = vrcp.f32 %v8752_v10  ;;  %v8758_v26 = vadd.f32 1.0, %v13926_v45  ;;  %v11664_v59 = vpop.f32.mrb[103].mxu1  ;;  %v7804_v45 = vadd.f32 %v17315_v33, %v17395_v34  ;;  %v10867_v29 = vmul.f32 -1.442695, %v11984_v57 }
 0x70e   : > { %v13930_v14 = vpop.eup %13929  ;;  %13949 = vrcp.f32 %v8757_v37  ;;  %v8759_v18 = vadd.f32 1.0, %v13928_v4  ;;  %v11665_v23 = vadd.f32 %v11664_v59, %v11663_v32  ;;  %v10868_v21 = vmul.f32 -1.442695, %v11985_v50 }
 0x70f   : > { %v13932_v17 = vpop.eup %13931  ;;  %13951 = vrcp.f32 %v8758_v26  ;;  %v8764_v42 = vadd.f32 1.0, %v13930_v14  ;;  %v10869_v26 = vmul.f32 -1.442695, %v17508_v16  ;;  %v11988_v31 = vadd.f32 %v17521_v43, %v17397_v41 }
 0x710   : > { %v13934_v2 = vpop.eup %13933  ;;  %13953 = vrcp.f32 %v8759_v18  ;;  %v8765_v3 = vadd.f32 1.0, %v13932_v17  ;;  %v17590_v55 = vadd.f32 %v11665_v23, %v7799_v47  ;;  %v10874_v57 = vmul.f32 -1.442695, %v11986_v13 }
 0x711   : > { %v13936_v48 = vpop.eup %13935  ;;  %13955 = vrcp.f32 %v8764_v42  ;;  %v8766_v61 = vadd.f32 1.0, %v13934_v2  ;;  %v17592_v10 = vpop.f32.mrb[40].mxu0  ;;  %v10875_v16 = vmul.f32 -1.442695, %v11987_v28  ;;  %v11989_v2 = vadd.f32 %v17526_v15, %v17399_v46 }
 0x712   : > { %v13938_v27 = vpop.eup %13937  ;;  %13957 = vrcp.f32 %v8765_v3  ;;  %v8771_v22 = vadd.f32 1.0, %v13936_v48  ;;  %v11666_v53 = vpop.f32.mrb[104].mxu1  ;;  %v10881_v15 = vmul.f32 -1.442695, %v11988_v31 }
 0x713   : > { %v13940_v6 = vpop.eup %13939  ;;  %13959 = vrcp.f32 %v8766_v61  ;;  %v17598_v37 = vpop.f32.mrb[41].mxu0  ;;  %v10876_v61 = vmul.f32 -1.442695, %v17533_v9 }
 0x714   : > { %v11667_v32 = vpop.f32.mrb[105].mxu1  ;;  %v13942_v4 = vpop.eup %13941  ;;  %v11160_v24 = vpack.c.bf16 %v13940_v6, %v13938_v27  ;;  %13961 = vrcp.f32 %v8771_v22  ;;  %v11991_v27 = vadd.f32 %v17546_v51, %v17399_v46  ;;  %v10882_v6 = vmul.f32 -1.442695, %v11989_v2 }
 0x715   : > { %v17601_v44 = vpop.f32.mrb[42].mxu0  ;;  %v11669_v59 = vpop.f32.mrb[106].mxu1  ;;  %v11161_v14 = vpack.c.bf16 %v13942_v4, %v13942_v4  ;;  %13963 = vpow2.f32 %v10861_v40  ;;  %v11668_v47 = vadd.f32 %v11667_v32, %v11666_v53  ;;  %v10883_v32 = vmul.f32 -1.442695, %v17541_v56 }
 0x716   : > { %v13944_v33 = vpop.eup %13943  ;;  %v17605_v18 = vpop.f32.mrb[43].mxu0  ;;  %10094 = vst [vmem:[%s16765_s24 + $0xf0] sm:$0xff] %v11160_v24  ;;  %13965 = vpow2.f32 %v10862_v52  ;;  %v11990_v52 = vadd.f32 %v17543_v49, %v17397_v41  ;;  %v7812_v24 = vadd.f32 %v17337_v39, %v17395_v34  ;;  %v10889_v31 = vmul.f32 -1.442695, %v11991_v27 }
 0x717   : > { %v11670_v17 = vpop.f32.mrb[107].mxu1  ;;  %v13946_v42 = vpop.eup %13945  ;;  %10095 = vst.msk [vmem:[%s16765_s24 + $0xf8] sm:$0xf] %vm10062_vm1, %v11161_v14  ;;  %13967 = vpow2.f32 %v10867_v29  ;;  %v17612_v43 = vadd.f32 %v11668_v47, %v7804_v45  ;;  %v7815_v2 = vadd.f32 %v17340_v30, %v17395_v34 }
 0x718   : > { %v13948_v3 = vpop.eup %13947  ;;  %v11164_v40 = vpack.c.bf16 %v13946_v42, %v13944_v33  ;;  %v11671_v50 = vadd.f32 %v11670_v17, %v11669_v59  ;;  %13969 = vpow2.f32 %v10868_v21  ;;  %v10888_v21 = vmul.f32 -1.442695, %v11990_v52 }
 0x719   : > { %v13950_v23 = vpop.eup %13949  ;;  %v11165_v48 = vpack.c.bf16 %v13948_v3, %v13948_v3  ;;  %13971 = vpow2.f32 %v10869_v26 }
 0x71a   : > { %v13952_v13 = vpop.eup %13951  ;;  %10098 = vst [vmem:[%s16765_s24 + $0x10c] sm:$0xff] %v11164_v40  ;;  %v17620_v22 = vadd.f32 %v11671_v50, %v7807_v12  ;;  %13973 = vpow2.f32 %v10874_v57  ;;  %v17624_v9 = vpop.f32.mrb[44].mxu0 }
 0x71b   : > { %v13954_v28 = vpop.eup %13953  ;;  %10099 = vst.msk [vmem:[%s16765_s24 + $0x114] sm:$0xf] %vm10062_vm1, %v11165_v48  ;;  %v11168_v53 = vpack.c.bf16 %v13952_v13, %v13950_v23  ;;  %v11672_v45 = vpop.f32.mrb[108].mxu1  ;;  %13975 = vpow2.f32 %v10875_v16 }
 0x71c   : > { %v13956_v49 = vpop.eup %13955  ;;  %v11169_v29 = vpack.c.bf16 %v13954_v28, %v13954_v28  ;;  %v17627_v4 = vpop.f32.mrb[45].mxu0  ;;  %13977 = vpow2.f32 %v10876_v61 }
 0x71d   : > { %v11673_v51 = vpop.f32.mrb[109].mxu1  ;;  %v13958_v12 = vpop.eup %13957  ;;  %10102 = vst [vmem:[%s16765_s24 + $0x128] sm:$0xff] %v11168_v53  ;;  %13979 = vpow2.f32 %v10881_v15 }
 0x71e   : > { %v11674_v26 = vadd.f32 %v11673_v51, %v11672_v45  ;;  %v17632_v59 = vpop.f32.mrb[46].mxu0  ;;  %v11675_v33 = vpop.f32.mrb[110].mxu1  ;;  %10103 = vst.msk [vmem:[%s16765_s24 + $0x130] sm:$0xf] %vm10062_vm1, %v11169_v29  ;;  %v11172_v56 = vpack.c.bf16 %v13958_v12, %v13956_v49  ;;  %13981 = vpow2.f32 %v10882_v6  ;;  %v7820_v49 = vadd.f32 %v17345_v58, %v17395_v34 }
 0x71f   : > { %v13960_v14 = vpop.eup %13959  ;;  %v17636_v47 = vpop.f32.mrb[47].mxu0  ;;  %13983 = vpow2.f32 %v10883_v32 }
 0x720   : > { %v11676_v17 = vpop.f32.mrb[111].mxu1  ;;  %v17638_v42 = vpop.eup %13961  ;;  %v11173_v39 = vpack.c.bf16 %v13960_v14, %v13960_v14  ;;  %v17640_v57 = vadd.f32 %v11674_v26, %v7812_v24  ;;  %10106 = vst [vmem:[%s16765_s24 + $0x144] sm:$0xff] %v11172_v56  ;;  %13985 = vpow2.f32 %v10888_v21  ;;  %v11992_v26 = vadd.f32 %v17550_v7, %v17397_v41 }
 0x721   : > { %v13964_v16 = vpop.eup %13963  ;;  %v11677_v3 = vadd.f32 %v11676_v17, %v11675_v33  ;;  %13987 = vpow2.f32 %v10889_v31  ;;  %v11993_v7 = vadd.f32 %v17554_v35, %v17399_v46  ;;  %v7828_v35 = vadd.f32 %v17357_v36, %v17395_v34 }
 0x722   : > { %v13966_v40 = vpop.eup %13965  ;;  %10107 = vst.msk [vmem:[%s16765_s24 + $0x14c] sm:$0xf] %vm10062_vm1, %v11173_v39  ;;  %v8772_v50 = vadd.f32 1.0, %v13964_v16  ;;  %v17649_v15 = vpop.f32.mrb[48].mxu0  ;;  %v7823_v39 = vadd.f32 %v17347_v54, %v17395_v34 }
 0x723   : > { %v13968_v23 = vpop.eup %13967  ;;  %v8773_v48 = vadd.f32 1.0, %v13966_v40  ;;  %v17647_v61 = vadd.f32 %v11677_v3, %v7815_v2  ;;  %v11678_v27 = vpop.f32.mrb[112].mxu1 }
 0x724   : > { %v13970_v52 = vpop.eup %13969  ;;  %13989 = vrcp.f32 %v8772_v50  ;;  %v8778_v13 = vadd.f32 1.0, %v13968_v23  ;;  %v17651_v53 = vpop.f32.mrb[49].mxu0 }
 0x725   : > { %v13972_v30 = vpop.eup %13971  ;;  %13991 = vrcp.f32 %v8773_v48  ;;  %v8779_v28 = vadd.f32 1.0, %v13970_v52  ;;  %v11679_v6 = vpop.f32.mrb[113].mxu1  ;;  %v10895_v48 = vmul.f32 -1.442695, %v11992_v26 }
 0x726   : > { %v13974_v45 = vpop.eup %13973  ;;  %13993 = vrcp.f32 %v8778_v13  ;;  %v8780_v29 = vadd.f32 1.0, %v13972_v30  ;;  %v11680_v32 = vadd.f32 %v11679_v6, %v11678_v27  ;;  %v17655_v51 = vpop.f32.mrb[50].mxu0  ;;  %v11994_v27 = vadd.f32 %v17567_v11, %v17397_v41 }
 0x727   : > { %v11681_v12 = vpop.f32.mrb[114].mxu1  ;;  %v13976_v24 = vpop.eup %13975  ;;  %13995 = vrcp.f32 %v8779_v28  ;;  %v8785_v21 = vadd.f32 1.0, %v13974_v45  ;;  %v10896_v11 = vmul.f32 -1.442695, %v11993_v7 }
 0x728   : > { %v17659_v33 = vpop.f32.mrb[51].mxu0  ;;  %v11682_v14 = vpop.f32.mrb[115].mxu1  ;;  %13997 = vrcp.f32 %v8780_v29  ;;  %v8786_v31 = vadd.f32 1.0, %v13976_v24  ;;  %v17661_v17 = vadd.f32 %v11680_v32, %v7820_v49  ;;  %v10890_v49 = vmul.f32 -1.442695, %v17559_v60 }
 0x729   : > { %v13978_v56 = vpop.eup %13977  ;;  %13999 = vrcp.f32 %v8785_v21  ;;  %v11683_v40 = vadd.f32 %v11682_v14, %v11681_v12  ;;  %v11995_v21 = vadd.f32 %v17569_v25, %v17399_v46  ;;  %v10897_v60 = vmul.f32 -1.442695, %v17565_v0 }
 0x72a   : > { %v13980_v58 = vpop.eup %13979  ;;  %v8787_v16 = vadd.f32 1.0, %v13978_v56  ;;  %14001 = vrcp.f32 %v8786_v31  ;;  %v17671_v30 = vpop.f32.mrb[52].mxu0  ;;  %v11996_v25 = vadd.f32 %v17571_v63, %v17397_v41 }
 0x72b   : > { %v13982_v2 = vpop.eup %13981  ;;  %v8792_v3 = vadd.f32 1.0, %v13980_v58  ;;  %v17669_v54 = vadd.f32 %v11683_v40, %v7823_v39  ;;  %v11684_v28 = vpop.f32.mrb[116].mxu1  ;;  %v10903_v63 = vmul.f32 -1.442695, %v11995_v21 }
 0x72c   : > { %v13984_v50 = vpop.eup %13983  ;;  %14003 = vrcp.f32 %v8787_v16  ;;  %v8793_v23 = vadd.f32 1.0, %v13982_v2  ;;  %v17676_v29 = vpop.f32.mrb[53].mxu0 }
 0x72d   : > { %v13986_v52 = vpop.eup %13985  ;;  %14005 = vrcp.f32 %v8792_v3  ;;  %v8794_v13 = vadd.f32 1.0, %v13984_v50  ;;  %v11685_v32 = vpop.f32.mrb[117].mxu1  ;;  %v10902_v3 = vmul.f32 -1.442695, %v11994_v27 }
 0x72e   : > { %v13988_v6 = vpop.eup %13987  ;;  %14007 = vrcp.f32 %v8793_v23  ;;  %v8799_v45 = vadd.f32 1.0, %v13986_v52  ;;  %v17680_v26 = vpop.f32.mrb[54].mxu0  ;;  %v11686_v31 = vadd.f32 %v11685_v32, %v11684_v28  ;;  %v7831_v23 = vadd.f32 %v17363_v8, %v17395_v34 }
 0x72f   : > { %v13990_v12 = vpop.eup %13989  ;;  %14009 = vrcp.f32 %v8794_v13  ;;  %v8800_v24 = vadd.f32 1.0, %v13988_v6  ;;  %v11687_v14 = vpop.f32.mrb[118].mxu1  ;;  %v10904_v28 = vmul.f32 -1.442695, %v17581_v19  ;;  %v11999_v8 = vadd.f32 %v17598_v37, %v17399_v46 }
 0x730   : > { %v13992_v56 = vpop.eup %13991  ;;  %v11176_v36 = vpack.c.bf16 %v13990_v12, %v17638_v42  ;;  %14011 = vrcp.f32 %v8799_v45  ;;  %v17684_v58 = vpop.f32.mrb[55].mxu0  ;;  %v11997_v42 = vadd.f32 %v17575_v38, %v17399_v46  ;;  %v17691_v0 = vadd.f32 %v11686_v31, %v7828_v35 }
 0x731   : > { %v11688_v39 = vpop.f32.mrb[119].mxu1  ;;  %v13994_v16 = vpop.eup %13993  ;;  %v11177_v2 = vpack.c.bf16 %v13992_v56, %v13992_v56  ;;  %14013 = vrcp.f32 %v8800_v24  ;;  %v11998_v38 = vadd.f32 %v17592_v10, %v17397_v41  ;;  %v10909_v35 = vmul.f32 -1.442695, %v11996_v25 }
 0x732   : > { %v13996_v7 = vpop.eup %13995  ;;  %10110 = vst [vmem:[%s16765_s24 + $0x160] sm:$0xff] %v11176_v36  ;;  %14015 = vpow2.f32 %v10890_v49  ;;  %v11689_v40 = vadd.f32 %v11688_v39, %v11687_v14  ;;  %v11690_v49 = vpop.f32.mrb[120].mxu1  ;;  %v10910_v12 = vmul.f32 -1.442695, %v11997_v42  ;;  %v10911_v37 = vmul.f32 -1.442695, %v17590_v55 }
 0x733   : > { %v13998_v50 = vpop.eup %13997  ;;  %10111 = vst.msk [vmem:[%s16765_s24 + $0x168] sm:$0xf] %vm10062_vm1, %v11177_v2  ;;  %v11180_v52 = vpack.c.bf16 %v13996_v7, %v13994_v16  ;;  %14017 = vpow2.f32 %v10895_v48  ;;  %v17705_v48 = vpop.f32.mrb[56].mxu0  ;;  %v10916_v31 = vmul.f32 -1.442695, %v11998_v38 }
 0x734   : > { %v14000_v13 = vpop.eup %13999  ;;  %v11181_v27 = vpack.c.bf16 %v13998_v50, %v13998_v50  ;;  %14019 = vpow2.f32 %v10896_v11  ;;  %v17703_v45 = vadd.f32 %v11689_v40, %v7831_v23  ;;  %v17709_v10 = vpop.f32.mrb[57].mxu0  ;;  %v10917_v25 = vmul.f32 -1.442695, %v11999_v8 }
 0x735   : > { %v14002_v6 = vpop.eup %14001  ;;  %10114 = vst [vmem:[%s16765_s24 + $0x17c] sm:$0xff] %v11180_v52  ;;  %14021 = vpow2.f32 %v10897_v60  ;;  %v11691_v24 = vpop.f32.mrb[121].mxu1  ;;  %v7836_v60 = vadd.f32 %v17377_v62, %v17395_v34  ;;  %v10918_v62 = vmul.f32 -1.442695, %v17612_v43  ;;  %v7839_v23 = vadd.f32 %v17379_v20, %v17395_v34 }
 0x736   : > { %v14004_v32 = vpop.eup %14003  ;;  %10115 = vst.msk [vmem:[%s16765_s24 + $0x184] sm:$0xf] %vm10062_vm1, %v11181_v27  ;;  %v11184_v19 = vpack.c.bf16 %v14002_v6, %v14000_v13  ;;  %14023 = vpow2.f32 %v10902_v3  ;;  %v17712_v14 = vpop.f32.mrb[58].mxu0  ;;  %v11692_v39 = vadd.f32 %v11691_v24, %v11690_v49 }
 0x737   : > { %v14006_v11 = vpop.eup %14005  ;;  %v11185_v21 = vpack.c.bf16 %v14004_v32, %v14004_v32  ;;  %14025 = vpow2.f32 %v10903_v63  ;;  %v11693_v56 = vpop.f32.mrb[122].mxu1 }
 0x738   : > { %v14008_v36 = vpop.eup %14007  ;;  %10118 = vst [vmem:[%s16765_s24 + $0x198] sm:$0xff] %v11184_v19  ;;  %14027 = vpow2.f32 %v10904_v28  ;;  %v17717_v16 = vpop.f32.mrb[59].mxu0  ;;  %v17722_v40 = vadd.f32 %v11692_v39, %v7836_v60 }
 0x739   : > { %v11694_v2 = vpop.f32.mrb[123].mxu1  ;;  %v14010_v3 = vpop.eup %14009  ;;  %10119 = vst.msk [vmem:[%s16765_s24 + $0x1a0] sm:$0xf] %vm10062_vm1, %v11185_v21  ;;  %v11188_v55 = vpack.c.bf16 %v14008_v36, %v14006_v11  ;;  %14029 = vpow2.f32 %v10909_v35  ;;  %v7844_v21 = vadd.f32 %v17387_v1, %v17395_v34 }
 0x73a   : > { %v14012_v7 = vpop.eup %14011  ;;  %v11189_v42 = vpack.c.bf16 %v14010_v3, %v14010_v3  ;;  %14031 = vpow2.f32 %v10910_v12  ;;  %v11695_v52 = vadd.f32 %v11694_v2, %v11693_v56  ;;  %v17731_v43 = vpop.f32.mrb[60].mxu0 }
 0x73b   : > { %v14014_v50 = vpop.eup %14013  ;;  %10122 = vst [vmem:[%s16765_s24 + $0x1b4] sm:$0xff] %v11188_v55  ;;  %14033 = vpow2.f32 %v10911_v37  ;;  %v11696_v6 = vpop.f32.mrb[124].mxu1 }
 0x73c   : > { %v14016_v63 = vpop.eup %14015  ;;  %10123 = vst.msk [vmem:[%s16765_s24 + $0x1bc] sm:$0xf] %vm10062_vm1, %v11189_v42  ;;  %v11192_v13 = vpack.c.bf16 %v14014_v50, %v14012_v7  ;;  %14035 = vpow2.f32 %v10916_v31  ;;  %v17729_v38 = vadd.f32 %v11695_v52, %v7839_v23  ;;  %v17734_v20 = vpop.f32.mrb[61].mxu0  ;;  %v7847_v7 = vadd.f32 %v17390_v5, %v17395_v34 }
 0x73d   : > { %v14018_v27 = vpop.eup %14017  ;;  %v8801_v28 = vadd.f32 1.0, %v14016_v63  ;;  %14037 = vpow2.f32 %v10917_v25  ;;  %v11697_v49 = vpop.f32.mrb[125].mxu1  ;;  %v12000_v23 = vadd.f32 %v17601_v44, %v17397_v41 }
 0x73e   : > { %v14020_v35 = vpop.eup %14019  ;;  %10126 = vst [vmem:[%s16765_s24 + $0x1d0] sm:$0xff] %v11192_v13  ;;  %v8806_v8 = vadd.f32 1.0, %v14018_v27  ;;  %14039 = vpow2.f32 %v10918_v62  ;;  %v17736_v12 = vpop.f32.mrb[62].mxu0  ;;  %v11698_v56 = vadd.f32 %v11697_v49, %v11696_v6  ;;  %v12001_v13 = vadd.f32 %v17605_v18, %v17399_v46 }
 0x73f   : > { %v14022_v32 = vpop.eup %14021  ;;  %14041 = vrcp.f32 %v8801_v28  ;;  %v8807_v19 = vadd.f32 1.0, %v14020_v35  ;;  %v11699_v24 = vpop.f32.mrb[126].mxu1  ;;  %v12002_v35 = vadd.f32 %v17624_v9, %v17397_v41  ;;  %v10923_v49 = vmul.f32 -1.442695, %v12000_v23 }
 0x740   : > { %v14024_v11 = vpop.eup %14023  ;;  %14043 = vrcp.f32 %v8806_v8  ;;  %v8808_v37 = vadd.f32 1.0, %v14022_v32  ;;  %v17740_v36 = vpop.f32.mrb[63].mxu0  ;;  %v17742_v55 = vadd.f32 %v11698_v56, %v7844_v21  ;;  %v12003_v32 = vadd.f32 %v17627_v4, %v17399_v46 }
 0x741   : > { %v11700_v60 = vpop.f32.mrb[127].mxu1  ;;  %v14026_v31 = vpop.eup %14025  ;;  %14045 = vrcp.f32 %v8807_v19  ;;  %v8813_v39 = vadd.f32 1.0, %v14024_v11  ;;  %v12004_v9 = vadd.f32 %v17632_v59, %v17397_v41  ;;  %v12006_v59 = vadd.f32 %v17649_v15, %v17397_v41 }
 0x742   : > { %v14028_v2 = vpop.eup %14027  ;;  %14047 = vrcp.f32 %v8808_v37  ;;  %v8814_v3 = vadd.f32 1.0, %v14026_v31  ;;  %v11701_v42 = vadd.f32 %v11700_v60, %v11699_v24  ;;  %v10924_v24 = vmul.f32 -1.442695, %v12001_v13 }
 0x743   : > { %v14030_v25 = vpop.eup %14029  ;;  %14049 = vrcp.f32 %v8813_v39  ;;  %v8815_v1 = vadd.f32 1.0, %v14028_v2  ;;  %v10925_v37 = vmul.f32 -1.442695, %v17620_v22  ;;  %v10930_v60 = vmul.f32 -1.442695, %v12002_v35 }
 0x744   : > { %v14032_v62 = vpop.eup %14031  ;;  %14051 = vrcp.f32 %v8814_v3  ;;  %v8820_v50 = vadd.f32 1.0, %v14030_v25  ;;  %v17750_v27 = vadd.f32 %v11701_v42, %v7847_v7  ;;  %v12005_v31 = vadd.f32 %v17636_v47, %v17399_v46 }
 0x745   : > { %v14034_v52 = vpop.eup %14033  ;;  %14053 = vrcp.f32 %v8815_v1  ;;  %v8821_v63 = vadd.f32 1.0, %v14032_v62  ;;  %v10931_v2 = vmul.f32 -1.442695, %v12003_v32  ;;  %v10932_v22 = vmul.f32 -1.442695, %v17640_v57 }
 0x746   : > { %v14036_v28 = vpop.eup %14035  ;;  %14055 = vrcp.f32 %v8820_v50  ;;  %v8822_v5 = vadd.f32 1.0, %v14034_v52  ;;  %v10937_v47 = vmul.f32 -1.442695, %v12004_v9  ;;  %v12007_v1 = vadd.f32 %v17651_v53, %v17399_v46 }
 0x747   : > { %v14038_v34 = vpop.eup %14037  ;;  %14057 = vrcp.f32 %v8821_v63  ;;  %v8827_v6 = vadd.f32 1.0, %v14036_v28  ;;  %v10938_v50 = vmul.f32 -1.442695, %v12005_v31  ;;  %v10939_v15 = vmul.f32 -1.442695, %v17647_v61 }
 0x748   : > { %v14040_v8 = vpop.eup %14039  ;;  %14059 = vrcp.f32 %v8822_v5  ;;  %v8828_v44 = vadd.f32 1.0, %v14038_v34  ;;  %v12008_v52 = vadd.f32 %v17655_v51, %v17397_v41  ;;  %v10944_v53 = vmul.f32 -1.442695, %v12006_v59 }
 0x749   : > { %v14042_v18 = vpop.eup %14041  ;;  %14061 = vrcp.f32 %v8827_v6  ;;  %v8829_v19 = vadd.f32 1.0, %v14040_v8  ;;  %v10945_v5 = vmul.f32 -1.442695, %v12007_v1  ;;  %v10946_v61 = vmul.f32 -1.442695, %v17661_v17 }
 0x74a   : > { %v14044_v11 = vpop.eup %14043  ;;  %v11193_v21 = vpack.c.bf16 %v14042_v18, %v14042_v18  ;;  %14063 = vrcp.f32 %v8828_v44  ;;  %v10951_v51 = vmul.f32 -1.442695, %v12008_v52 }
 0x74b   : > { %v14046_v56 = vpop.eup %14045  ;;  %14065 = vrcp.f32 %v8829_v19 }
 0x74c   : > { %v14048_v4 = vpop.eup %14047  ;;  %10127 = vst.msk [vmem:[%s16765_s24 + $0x1d8] sm:$0xf] %vm10062_vm1, %v11193_v21  ;;  %v11196_v39 = vpack.c.bf16 %v14046_v56, %v14044_v11  ;;  %14067 = vpow2.f32 %v10923_v49 }
 0x74d   : > { %v14050_v3 = vpop.eup %14049  ;;  %v11197_v25 = vpack.c.bf16 %v14048_v4, %v14048_v4  ;;  %14069 = vpow2.f32 %v10924_v24 }
 0x74e   : > { %v14052_v7 = vpop.eup %14051  ;;  %10130 = vst [vmem:[%s16765_s24 + $0x1ec] sm:$0xff] %v11196_v39  ;;  %14071 = vpow2.f32 %v10925_v37 }
 0x74f   : > { %v14054_v42 = vpop.eup %14053  ;;  %10131 = vst.msk [vmem:[%s16765_s24 + $0x1f4] sm:$0xf] %vm10062_vm1, %v11197_v25  ;;  %v11200_v62 = vpack.c.bf16 %v14052_v7, %v14050_v3  ;;  %14073 = vpow2.f32 %v10930_v60 }
 0x750   : > { %v14056_v23 = vpop.eup %14055  ;;  %v11201_v57 = vpack.c.bf16 %v14054_v42, %v14054_v42  ;;  %14075 = vpow2.f32 %v10931_v2  ;;  %v12010_v42 = vadd.f32 %v17671_v30, %v17397_v41 }
 0x751   : > { %v14058_v63 = vpop.eup %14057  ;;  %10134 = vst [vmem:[%s16765_s24 + $0x208] sm:$0xff] %v11200_v62  ;;  %14077 = vpow2.f32 %v10932_v22  ;;  %v12009_v22 = vadd.f32 %v17659_v33, %v17399_v46 }
 0x752   : > { %v14060_v13 = vpop.eup %14059  ;;  %10135 = vst.msk [vmem:[%s16765_s24 + $0x210] sm:$0xf] %vm10062_vm1, %v11201_v57  ;;  %v11204_v28 = vpack.c.bf16 %v14058_v63, %v14056_v23  ;;  %14079 = vpow2.f32 %v10937_v47  ;;  %v12011_v23 = vadd.f32 %v17676_v29, %v17399_v46 }
 0x753   : > { %v14062_v34 = vpop.eup %14061  ;;  %v11205_v6 = vpack.c.bf16 %v14060_v13, %v14060_v13  ;;  %14081 = vpow2.f32 %v10938_v50  ;;  %v10952_v52 = vmul.f32 -1.442695, %v12009_v22  ;;  %v12012_v13 = vadd.f32 %v17680_v26, %v17397_v41 }
 0x754   : > { %v14064_v35 = vpop.eup %14063  ;;  %10138 = vst [vmem:[%s16765_s24 + $0x224] sm:$0xff] %v11204_v28  ;;  %14083 = vpow2.f32 %v10939_v15  ;;  %v10958_v28 = vmul.f32 -1.442695, %v12010_v42 }
 0x755   : > { %v14066_v8 = vpop.eup %14065  ;;  %10139 = vst.msk [vmem:[%s16765_s24 + $0x22c] sm:$0xf] %vm10062_vm1, %v11205_v6  ;;  %v11208_v44 = vpack.c.bf16 %v14064_v35, %v14062_v34  ;;  %14085 = vpow2.f32 %v10944_v53  ;;  %v10953_v53 = vmul.f32 -1.442695, %v17669_v54  ;;  %v10959_v6 = vmul.f32 -1.442695, %v12011_v23 }
 0x756   : > { %v14068_v49 = vpop.eup %14067  ;;  %v11209_v32 = vpack.c.bf16 %v14066_v8, %v14066_v8  ;;  %14087 = vpow2.f32 %v10945_v5  ;;  %v12013_v5 = vadd.f32 %v17684_v58, %v17399_v46  ;;  %v10960_v54 = vmul.f32 -1.442695, %v17691_v0 }
 0x757   : > { %v14070_v18 = vpop.eup %14069  ;;  %10142 = vst [vmem:[%s16765_s24 + $0x240] sm:$0xff] %v11208_v44  ;;  %v8834_v19 = vadd.f32 1.0, %v14068_v49  ;;  %14089 = vpow2.f32 %v10946_v61  ;;  %v10965_v8 = vmul.f32 -1.442695, %v12012_v13  ;;  %v12015_v58 = vadd.f32 %v17709_v10, %v17399_v46 }
 0x758   : > { %v14072_v24 = vpop.eup %14071  ;;  %10143 = vst.msk [vmem:[%s16765_s24 + $0x248] sm:$0xf] %vm10062_vm1, %v11209_v32  ;;  %v8835_v17 = vadd.f32 1.0, %v14070_v18  ;;  %14091 = vpow2.f32 %v10951_v51  ;;  %v12014_v51 = vadd.f32 %v17705_v48, %v17397_v41  ;;  %v10966_v32 = vmul.f32 -1.442695, %v12013_v5 }
 0x759   : > { %v14074_v11 = vpop.eup %14073  ;;  %14093 = vrcp.f32 %v8834_v19  ;;  %v8836_v21 = vadd.f32 1.0, %v14072_v24  ;;  %v10967_v48 = vmul.f32 -1.442695, %v17703_v45  ;;  %v12016_v19 = vadd.f32 %v17712_v14, %v17397_v41 }
 0x75a   : > { %v14076_v37 = vpop.eup %14075  ;;  %14095 = vrcp.f32 %v8835_v17  ;;  %v8841_v9 = vadd.f32 1.0, %v14074_v11  ;;  %v10972_v10 = vmul.f32 -1.442695, %v12014_v51  ;;  %v12017_v17 = vadd.f32 %v17717_v16, %v17399_v46 }
 0x75b   : > { %v14078_v56 = vpop.eup %14077  ;;  %14097 = vrcp.f32 %v8836_v21  ;;  %v8842_v60 = vadd.f32 1.0, %v14076_v37  ;;  %v10973_v37 = vmul.f32 -1.442695, %v12015_v58  ;;  %v10974_v14 = vmul.f32 -1.442695, %v17722_v40 }
 0x75c   : > { %v14080_v31 = vpop.eup %14079  ;;  %14099 = vrcp.f32 %v8841_v9  ;;  %v8843_v4 = vadd.f32 1.0, %v14078_v56  ;;  %v12020_v51 = vadd.f32 %v17736_v12, %v17397_v41 }
 0x75d   : > { %v14082_v39 = vpop.eup %14081  ;;  %14101 = vrcp.f32 %v8842_v60  ;;  %v8848_v2 = vadd.f32 1.0, %v14080_v31  ;;  %v10979_v60 = vmul.f32 -1.442695, %v12016_v19 }
 0x75e   : > { %v14084_v3 = vpop.eup %14083  ;;  %14103 = vrcp.f32 %v8843_v4  ;;  %v8849_v25 = vadd.f32 1.0, %v14082_v39  ;;  %v10980_v4 = vmul.f32 -1.442695, %v12017_v17 }
 0x75f   : > { %v14086_v59 = vpop.eup %14085  ;;  %14105 = vrcp.f32 %v8848_v2  ;;  %v8850_v7 = vadd.f32 1.0, %v14084_v3 }
 0x760   : > { %v14088_v47 = vpop.eup %14087  ;;  %14107 = vrcp.f32 %v8849_v25  ;;  %v8855_v1 = vadd.f32 1.0, %v14086_v59 }
 0x761   : > { %v14090_v62 = vpop.eup %14089  ;;  %14109 = vrcp.f32 %v8850_v7  ;;  %v8856_v50 = vadd.f32 1.0, %v14088_v47 }
 0x762   : > { %v14092_v57 = vpop.eup %14091  ;;  %14111 = vrcp.f32 %v8855_v1  ;;  %v8857_v15 = vadd.f32 1.0, %v14090_v62 }
 0x763   : > { %v14094_v33 = vpop.eup %14093  ;;  %14113 = vrcp.f32 %v8856_v50  ;;  %v8862_v63 = vadd.f32 1.0, %v14092_v57 }
 0x764   : > { %v14096_v30 = vpop.eup %14095  ;;  %14115 = vrcp.f32 %v8857_v15 }
 0x765   : > { %v14098_v29 = vpop.eup %14097  ;;  %v11212_v34 = vpack.c.bf16 %v14096_v30, %v14094_v33  ;;  %14117 = vrcp.f32 %v8862_v63  ;;  %v12018_v30 = vadd.f32 %v17731_v43, %v17397_v41  ;;  %v10993_v41 = vmul.f32 -1.442695, %v12020_v51 }
 0x766   : > { %v14100_v61 = vpop.eup %14099  ;;  %v11213_v35 = vpack.c.bf16 %v14098_v29, %v14098_v29  ;;  %14119 = vpow2.f32 %v10952_v52  ;;  %v12019_v29 = vadd.f32 %v17734_v20, %v17399_v46  ;;  %v12021_v20 = vadd.f32 %v17740_v36, %v17399_v46 }
 0x767   : > { %v14102_v26 = vpop.eup %14101  ;;  %10146 = vst [vmem:[%s16765_s24 + $0x25c] sm:$0xff] %v11212_v34  ;;  %14121 = vpow2.f32 %v10953_v53 }
 0x768   : > { %v14104_v44 = vpop.eup %14103  ;;  %10147 = vst.msk [vmem:[%s16765_s24 + $0x264] sm:$0xf] %vm10062_vm1, %v11213_v35  ;;  %v11216_v49 = vpack.c.bf16 %v14102_v26, %v14100_v61  ;;  %14123 = vpow2.f32 %v10958_v28  ;;  %v10994_v46 = vmul.f32 -1.442695, %v12021_v20 }
 0x769   : > { %v14106_v18 = vpop.eup %14105  ;;  %v11217_v0 = vpack.c.bf16 %v14104_v44, %v14104_v44  ;;  %14125 = vpow2.f32 %v10959_v6 }
 0x76a   : > { %v14108_v24 = vpop.eup %14107  ;;  %10150 = vst [vmem:[%s16765_s24 + $0x278] sm:$0xff] %v11216_v49  ;;  %14127 = vpow2.f32 %v10960_v54  ;;  %v10981_v54 = vmul.f32 -1.442695, %v17729_v38  ;;  %v10987_v49 = vmul.f32 -1.442695, %v12019_v29 }
 0x76b   : > { %v14110_v11 = vpop.eup %14109  ;;  %10151 = vst.msk [vmem:[%s16765_s24 + $0x280] sm:$0xf] %vm10062_vm1, %v11217_v0  ;;  %v11220_v21 = vpack.c.bf16 %v14108_v24, %v14106_v18  ;;  %14129 = vpow2.f32 %v10965_v8  ;;  %v10986_v8 = vmul.f32 -1.442695, %v12018_v30  ;;  %v10988_v38 = vmul.f32 -1.442695, %v17742_v55 }
 0x76c   : > { %v14112_v9 = vpop.eup %14111  ;;  %v11221_v45 = vpack.c.bf16 %v14110_v11, %v14110_v11  ;;  %14131 = vpow2.f32 %v10966_v32  ;;  %v10995_v24 = vmul.f32 -1.442695, %v17750_v27 }
 0x76d   : > { %v14114_v56 = vpop.eup %14113  ;;  %10154 = vst [vmem:[%s16765_s24 + $0x294] sm:$0xff] %v11220_v21  ;;  %14133 = vpow2.f32 %v10967_v48 }
 0x76e   : > { %v14116_v31 = vpop.eup %14115  ;;  %10155 = vst.msk [vmem:[%s16765_s24 + $0x29c] sm:$0xf] %vm10062_vm1, %v11221_v45  ;;  %v11224_v16 = vpack.c.bf16 %v14114_v56, %v14112_v9  ;;  %14135 = vpow2.f32 %v10972_v10 }
 0x76f   : > { %v14118_v39 = vpop.eup %14117  ;;  %v11225_v2 = vpack.c.bf16 %v14116_v31, %v14116_v31  ;;  %14137 = vpow2.f32 %v10973_v37 }
 0x770   : > { %v14120_v3 = vpop.eup %14119  ;;  %10158 = vst [vmem:[%s16765_s24 + $0x2b0] sm:$0xff] %v11224_v16  ;;  %14139 = vpow2.f32 %v10974_v14 }
 0x771   : > { %v14122_v25 = vpop.eup %14121  ;;  %10159 = vst.msk [vmem:[%s16765_s24 + $0x2b8] sm:$0xf] %vm10062_vm1, %v11225_v2  ;;  %v8863_v40 = vadd.f32 1.0, %v14120_v3  ;;  %14141 = vpow2.f32 %v10979_v60 }
 0x772   : > { %v14124_v22 = vpop.eup %14123  ;;  %v8864_v59 = vadd.f32 1.0, %v14122_v25  ;;  %14143 = vpow2.f32 %v10980_v4 }
 0x773   : > { %v14126_v7 = vpop.eup %14125  ;;  %14145 = vrcp.f32 %v8863_v40  ;;  %v8869_v47 = vadd.f32 1.0, %v14124_v22 }
 0x774   : > { %v14128_v1 = vpop.eup %14127  ;;  %14147 = vrcp.f32 %v8864_v59  ;;  %v8870_v42 = vadd.f32 1.0, %v14126_v7 }
 0x775   : > { %v14130_v62 = vpop.eup %14129  ;;  %14149 = vrcp.f32 %v8869_v47  ;;  %v8871_v50 = vadd.f32 1.0, %v14128_v1 }
 0x776   : > { %v14132_v23 = vpop.eup %14131  ;;  %14151 = vrcp.f32 %v8870_v42  ;;  %v8876_v57 = vadd.f32 1.0, %v14130_v62 }
 0x777   : > { %v14134_v15 = vpop.eup %14133  ;;  %14153 = vrcp.f32 %v8871_v50  ;;  %v8877_v52 = vadd.f32 1.0, %v14132_v23 }
 0x778   : > { %v14136_v33 = vpop.eup %14135  ;;  %14155 = vrcp.f32 %v8876_v57  ;;  %v8878_v63 = vadd.f32 1.0, %v14134_v15 }
 0x779   : > { %v14138_v53 = vpop.eup %14137  ;;  %14157 = vrcp.f32 %v8877_v52  ;;  %v8883_v13 = vadd.f32 1.0, %v14136_v33 }
 0x77a   : > { %v14140_v28 = vpop.eup %14139  ;;  %14159 = vrcp.f32 %v8878_v63  ;;  %v8884_v5 = vadd.f32 1.0, %v14138_v53 }
 0x77b   : > { %v14142_v34 = vpop.eup %14141  ;;  %14161 = vrcp.f32 %v8883_v13  ;;  %v8885_v6 = vadd.f32 1.0, %v14140_v28 }
 0x77c   : > { %v14144_v61 = vpop.eup %14143  ;;  %14163 = vrcp.f32 %v8884_v5  ;;  %v8890_v35 = vadd.f32 1.0, %v14142_v34 }
 0x77d   : > { %v14146_v26 = vpop.eup %14145  ;;  %14165 = vrcp.f32 %v8885_v6  ;;  %v8891_v43 = vadd.f32 1.0, %v14144_v61 }
 0x77e   : > { %v14148_v58 = vpop.eup %14147  ;;  %v11228_v44 = vpack.c.bf16 %v14146_v26, %v14118_v39  ;;  %14167 = vrcp.f32 %v8890_v35 }
 0x77f   : > { %v14150_v32 = vpop.eup %14149  ;;  %v11229_v18 = vpack.c.bf16 %v14148_v58, %v14148_v58  ;;  %14169 = vrcp.f32 %v8891_v43 }
 0x780   : > { %v14152_v0 = vpop.eup %14151  ;;  %10162 = vst [vmem:[%s16765_s24 + $0x2cc] sm:$0xff] %v11228_v44  ;;  %14171 = vpow2.f32 %v10981_v54 }
 0x781   : > { %v14154_v12 = vpop.eup %14153  ;;  %10163 = vst.msk [vmem:[%s16765_s24 + $0x2d4] sm:$0xf] %vm10062_vm1, %v11229_v18  ;;  %v11232_v48 = vpack.c.bf16 %v14152_v0, %v14150_v32  ;;  %14173 = vpow2.f32 %v10986_v8 }
 0x782   : > { %v14156_v36 = vpop.eup %14155  ;;  %v11233_v19 = vpack.c.bf16 %v14154_v12, %v14154_v12  ;;  %14175 = vpow2.f32 %v10987_v49 }
 0x783   : > { %v14158_v10 = vpop.eup %14157  ;;  %10166 = vst [vmem:[%s16765_s24 + $0x2e8] sm:$0xff] %v11232_v48  ;;  %14177 = vpow2.f32 %v10988_v38 }
 0x784   : > { %v14160_v55 = vpop.eup %14159  ;;  %10167 = vst.msk [vmem:[%s16765_s24 + $0x2f0] sm:$0xf] %vm10062_vm1, %v11233_v19  ;;  %v11236_v17 = vpack.c.bf16 %v14158_v10, %v14156_v36  ;;  %14179 = vpow2.f32 %v10993_v41 }
 0x785   : > { %v14162_v11 = vpop.eup %14161  ;;  %v11237_v21 = vpack.c.bf16 %v14160_v55, %v14160_v55  ;;  %14181 = vpow2.f32 %v10994_v46 }
 0x786   : > { %v14164_v37 = vpop.eup %14163  ;;  %10170 = vst [vmem:[%s16765_s24 + $0x304] sm:$0xff] %v11236_v17  ;;  %14183 = vpow2.f32 %v10995_v24 }
 0x787   : > { %v14166_v9 = vpop.eup %14165  ;;  %10171 = vst.msk [vmem:[%s16765_s24 + $0x30c] sm:$0xf] %vm10062_vm1, %v11237_v21  ;;  %v11240_v27 = vpack.c.bf16 %v14164_v37, %v14162_v11 }
 0x788   : > { %v14168_v45 = vpop.eup %14167  ;;  %v11241_v14 = vpack.c.bf16 %v14166_v9, %v14166_v9 }
 0x789   : > { %v14170_v56 = vpop.eup %14169  ;;  %10174 = vst [vmem:[%s16765_s24 + $0x320] sm:$0xff] %v11240_v27 }
 0x78a   : > { %v14172_v60 = vpop.eup %14171  ;;  %10175 = vst.msk [vmem:[%s16765_s24 + $0x328] sm:$0xf] %vm10062_vm1, %v11241_v14  ;;  %v11244_v31 = vpack.c.bf16 %v14170_v56, %v14168_v45 }
 0x78b   : > { %v14174_v16 = vpop.eup %14173  ;;  %v8892_v4 = vadd.f32 1.0, %v14172_v60 }
 0x78c   : > { %v14176_v39 = vpop.eup %14175  ;;  %10178 = vst [vmem:[%s16765_s24 + $0x33c] sm:$0xff] %v11244_v31  ;;  %v8897_v2 = vadd.f32 1.0, %v14174_v16 }
 0x78d   : > { %v14178_v3 = vpop.eup %14177  ;;  %14185 = vrcp.f32 %v8892_v4  ;;  %v8898_v25 = vadd.f32 1.0, %v14176_v39 }
 0x78e   : > { %v14180_v40 = vpop.eup %14179  ;;  %14187 = vrcp.f32 %v8897_v2  ;;  %v8899_v22 = vadd.f32 1.0, %v14178_v3 }
 0x78f   : > { %v14182_v59 = vpop.eup %14181  ;;  %14189 = vrcp.f32 %v8898_v25  ;;  %v8904_v7 = vadd.f32 1.0, %v14180_v40 }
 0x790   : > { %v14184_v47 = vpop.eup %14183  ;;  %14191 = vrcp.f32 %v8899_v22  ;;  %v8905_v1 = vadd.f32 1.0, %v14182_v59 }
 0x791   : > { %14193 = vrcp.f32 %v8904_v7  ;;  %v8906_v42 = vadd.f32 1.0, %v14184_v47 }
 0x792   : > { %14195 = vrcp.f32 %v8905_v1 }
 0x793   : > { %14197 = vrcp.f32 %v8906_v42 }
 0x797   : > { %v14186_v62 = vpop.eup %14185 }
 0x798   : > { %v14188_v50 = vpop.eup %14187  ;;  %v11245_v23 = vpack.c.bf16 %v14186_v62, %v14186_v62 }
 0x799   : > { %v14190_v57 = vpop.eup %14189 }
 0x79a   : > { %v14192_v15 = vpop.eup %14191  ;;  %10179 = vst.msk [vmem:[%s16765_s24 + $0x344] sm:$0xf] %vm10062_vm1, %v11245_v23  ;;  %v11248_v52 = vpack.c.bf16 %v14190_v57, %v14188_v50 }
 0x79b   : > { %v14194_v33 = vpop.eup %14193  ;;  %v11249_v63 = vpack.c.bf16 %v14192_v15, %v14192_v15 }
 0x79c   : > { %v14196_v53 = vpop.eup %14195  ;;  %10182 = vst [vmem:[%s16765_s24 + $0x358] sm:$0xff] %v11248_v52 }
 0x79d   : > { %v14198_v13 = vpop.eup %14197  ;;  %10183 = vst.msk [vmem:[%s16765_s24 + $0x360] sm:$0xf] %vm10062_vm1, %v11249_v63  ;;  %v11252_v30 = vpack.c.bf16 %v14196_v53, %v14194_v33 }
 0x79e   : > { %v11253_v28 = vpack.c.bf16 %v14198_v13, %v14198_v13 }
 0x79f   : > { %10186 = vst [vmem:[%s16765_s24 + $0x374] sm:$0xff] %v11252_v30 }
 0x7a0   : > { %10187 = vst.msk [vmem:[%s16765_s24 + $0x37c] sm:$0xf] %vm10062_vm1, %v11253_v28 }
 0x7a1 PF: > { %s19_s30 = sadd.s32 1, %s14206_s30  }
 0x7a2   : > { %p16_p4 = scmp.ge.s32.totalorder %s19_s30, 4  }
 0x7a4   :  { %18 = sbr.rel (!%p16_p4) target bundleno = 1 (0x1), region = 86 }

</bundles_post_ra>
